<compile_context>
chip_gen: v7x
topology: tpu7x:2x2x1
jax: 0.10.0
libtpu: 0.0.40
codegen_flags: <defaults>
</compile_context>

<pallas_src>
import functools

import jax
import jax.numpy as jnp
from jax import lax
from jax.experimental import pallas as pl
from jax.experimental.pallas import tpu as pltpu


def _round_up(x, m):
    return (x + m - 1) // m * m


def _fused_matmul_kernel(x_ref, w_ref, scale_ref, shift_ref, o_ref, *, apply_relu):
    # x_ref: (TM, K), w_ref: (K, TN), scale/shift: (1, TN), o_ref: (TM, TN)
    acc = jnp.dot(x_ref[...], w_ref[...], preferred_element_type=jnp.float32)
    y = acc * scale_ref[...] + shift_ref[...]
    if apply_relu:
        y = jnp.maximum(y, 0.0)
    o_ref[...] = y.astype(o_ref.dtype)


def fused_matmul(x, w, scale, shift, *, relu, tn=128):
    """maybe_relu((x @ w) * scale + shift).  x:(M,K), w:(K,N), scale/shift:(N,)."""
    M, K = x.shape
    K2, N = w.shape
    assert K == K2 and N % tn == 0, (x.shape, w.shape)

    # Rows per grid step: 128 when there are many rows, else full (sublane-padded).
    tm = 128 if M > 128 else _round_up(max(M, 1), 8)
    Mp = _round_up(M, tm)
    if Mp != M:
        x = jnp.pad(x, ((0, Mp - M), (0, 0)))

    kernel = functools.partial(_fused_matmul_kernel, apply_relu=relu)
    out = pl.pallas_call(
        kernel,
        out_shape=jax.ShapeDtypeStruct((Mp, N), jnp.float32),
        grid_spec=pltpu.PrefetchScalarGridSpec(
            num_scalar_prefetch=0,
            grid=(Mp // tm, N // tn),
            in_specs=[
                pl.BlockSpec((tm, K), lambda i, j: (i, 0)),   # activations (full K)
                pl.BlockSpec((K, tn), lambda i, j: (0, j)),   # weights (full K)
                pl.BlockSpec((1, tn), lambda i, j: (0, j)),   # folded scale
                pl.BlockSpec((1, tn), lambda i, j: (0, j)),   # folded shift
            ],
            out_specs=pl.BlockSpec((tm, tn), lambda i, j: (i, j)),
        ),
        compiler_params=pltpu.CompilerParams(
            dimension_semantics=("parallel", "parallel")),
    )(
        x.astype(jnp.float32),
        w.astype(jnp.float32),
        scale.reshape(1, N).astype(jnp.float32),
        shift.reshape(1, N).astype(jnp.float32),
    )
    return out[:M]


def _im2col(x, k=3, stride=2, pad=1):
    """(B,C,H,W) -> patches (B*Ho*Wo, C*k*k), feature order (c, kh, kw)."""
    B, C, H, W = x.shape
    Ho = (H + 2 * pad - k) // stride + 1
    Wo = (W + 2 * pad - k) // stride + 1
    xp = jnp.pad(x, ((0, 0), (0, 0), (pad, pad), (pad, pad)))
    taps = []
    for dh in range(k):
        for dw in range(k):
            taps.append(xp[:, :, dh:dh + stride * Ho:stride,
                              dw:dw + stride * Wo:stride])      # (B, C, Ho, Wo)
    p = jnp.stack(taps, axis=2)               # (B, C, k*k, Ho, Wo)
    p = p.transpose(0, 3, 4, 1, 2)            # (B, Ho, Wo, C, k*k)
    return p.reshape(B * Ho * Wo, C * k * k), Ho, Wo


def conv_bn_relu(x, w, b, gamma, beta, mean, var, eps=1e-5):
    """Conv2d(k3,s2,p1,bias) + BatchNorm2d(eval) + ReLU as one fused Pallas matmul."""
    B, C, H, W = x.shape
    O = w.shape[0]
    patches, Ho, Wo = _im2col(x)              # (B*Ho*Wo, C*9)
    w_mat = w.reshape(O, C * 9).T             # (C*9, O), matches patch feature order
    inv_std = 1.0 / jnp.sqrt(var + eps)
    scale = gamma * inv_std                   # (O,)
    shift = beta + scale * (b - mean)         # (O,)  folds conv bias + BN
    y = fused_matmul(patches, w_mat, scale, shift, relu=True)   # (B*Ho*Wo, O)
    return y.reshape(B, Ho, Wo, O).transpose(0, 3, 1, 2)        # (B, O, Ho, Wo)


def linear_layer(x, w, b):
    """x:(B,F) @ w(out,F).T + b via the same fused Pallas kernel (no relu)."""
    return fused_matmul(x, w.T, jnp.ones_like(b), b, relu=False)


def res_cnn_forward(x, params):
    # NOTE: BatchNorm uses inference-mode running statistics, folded into the
    # matmul epilogue (scale/shift).
    # TODO(synk): train-mode BatchNorm (batch statistics) is not implemented.
    x = conv_bn_relu(x, *params["conv1"])
    x = conv_bn_relu(x, *params["conv2"])
    x = conv_bn_relu(x, *params["conv3"])
    B = x.shape[0]
    x = x.reshape(B, -1)                      # torch.flatten(x, 1): (c, h, w) order
    w_lin, b_lin = params["linear"]
    return linear_layer(x, w_lin, b_lin)


def _reference(x, params, eps=1e-5):
    """Pure-JAX reference (eval-mode BN), high-precision convs/matmul."""
    def block(x, w, b, gamma, beta, mean, var):
        y = lax.conv_general_dilated(
            x, w, window_strides=(2, 2), padding=((1, 1), (1, 1)),
            dimension_numbers=("NCHW", "OIHW", "NCHW"),
            precision=lax.Precision.HIGHEST)
        y = y + b[None, :, None, None]
        y = (y - mean[None, :, None, None]) * (
            gamma[None, :, None, None] / jnp.sqrt(var[None, :, None, None] + eps))
        y = y + beta[None, :, None, None]
        return jnp.maximum(y, 0.0)

    for name in ("conv1", "conv2", "conv3"):
        x = block(x, *params[name])
    B = x.shape[0]
    x = x.reshape(B, -1)
    w_lin, b_lin = params["linear"]
    return jnp.dot(x, w_lin.T, precision=lax.Precision.HIGHEST) + b_lin


if __name__ == "__main__":
    # Spatial size chosen so the final feature map is 4x5, matching the
    # hard-coded Linear(128*4*5, out_channels) of the module.
    B, Cin, H, W = 2, 3, 32, 40
    out_channels = 256            # ResCNN(in_channels=3, out_channels=256) small variant

    key = jax.random.PRNGKey(0)
    ks = jax.random.split(key, 6)

    def conv_params(k, cout, cin):
        k1, k2, k3, k4 = jax.random.split(k, 4)
        w = jax.random.normal(k1, (cout, cin, 3, 3), jnp.float32) / jnp.sqrt(9.0 * cin)
        b = 0.1 * jax.random.normal(k2, (cout,), jnp.float32)
        gamma = 1.0 + 0.1 * jax.random.normal(k3, (cout,), jnp.float32)
        beta = 0.1 * jax.random.normal(k4, (cout,), jnp.float32)
        mean = 0.05 * jnp.ones((cout,), jnp.float32)
        var = jnp.full((cout,), 0.9, jnp.float32)
        return (w, b, gamma, beta, mean, var)

    params = {
        "conv1": conv_params(ks[0], 256, Cin),
        "conv2": conv_params(ks[1], 128, 256),
        "conv3": conv_params(ks[2], 128, 128),
        "linear": (
            jax.random.normal(ks[3], (out_channels, 128 * 4 * 5), jnp.float32)
            / jnp.sqrt(128.0 * 4 * 5),
            0.1 * jax.random.normal(ks[4], (out_channels,), jnp.float32),
        ),
    }
    x = jax.random.normal(ks[5], (B, Cin, H, W), jnp.float32)

    forward = jax.jit(res_cnn_forward)
    out = jax.block_until_ready(forward(x, params))

    ref = _reference(x, params)
    assert out.shape == (B, out_channels), out.shape
    max_err = float(jnp.max(jnp.abs(out - ref)))
    assert jnp.allclose(out, ref, atol=2e-2, rtol=2e-2), max_err
    print("KERNEL_OK")
</pallas_src>

<mosaic_0001>
module attributes {stable_mosaic.version = 11 : i64} {
  func.func @_fused_matmul_kernel(%arg0: i32, %arg1: i32, %arg2: memref<128x27xf32, #tpu.memory_space<vmem>>, %arg3: memref<27x128xf32, #tpu.memory_space<vmem>>, %arg4: memref<1x128xf32, #tpu.memory_space<vmem>>, %arg5: memref<1x128xf32, #tpu.memory_space<vmem>>, %arg6: memref<128x128xf32, #tpu.memory_space<vmem>>) attributes {dimension_semantics = [#tpu.dimension_semantics<parallel>, #tpu.dimension_semantics<parallel>], iteration_bounds = array<i64: 5, 2>, scalar_prefetch = 0 : i64, scratch_operands = 0 : i64, tpu.core_type = #tpu.core_type<tc>, window_params = [{transform_indices = @transform_0, window_bounds = array<i64: 128, 27>}, {transform_indices = @transform_1, window_bounds = array<i64: 27, 128>}, {transform_indices = @transform_2, window_bounds = array<i64: 1, 128>}, {transform_indices = @transform_3, window_bounds = array<i64: 1, 128>}, {transform_indices = @transform_4, window_bounds = array<i64: 128, 128>}]} {
    %c0 = arith.constant 0 : index
    %c0_0 = arith.constant 0 : index
    %0 = vector.load %arg2[%c0, %c0_0] : memref<128x27xf32, #tpu.memory_space<vmem>>, vector<128x27xf32>
    %c0_1 = arith.constant 0 : index
    %c0_2 = arith.constant 0 : index
    %1 = vector.load %arg3[%c0_1, %c0_2] : memref<27x128xf32, #tpu.memory_space<vmem>>, vector<27x128xf32>
    %cst = arith.constant dense<0.000000e+00> : vector<128x128xf32>
    %2 = tpu.matmul %0, %1, %cst {dimension_numbers = #tpu.dot_dimension_numbers<[1], [0], [0], [1], [0, 0, 1, 1], [], []>} : vector<128x27xf32>, vector<27x128xf32>, vector<128x128xf32> -> vector<128x128xf32>
    %c0_3 = arith.constant 0 : index
    %c0_4 = arith.constant 0 : index
    %3 = vector.load %arg4[%c0_3, %c0_4] : memref<1x128xf32, #tpu.memory_space<vmem>>, vector<1x128xf32>
    %4 = vector.broadcast %3 : vector<1x128xf32> to vector<128x128xf32>
    %5 = arith.mulf %2, %4 : vector<128x128xf32>
    %c0_5 = arith.constant 0 : index
    %c0_6 = arith.constant 0 : index
    %6 = vector.load %arg5[%c0_5, %c0_6] : memref<1x128xf32, #tpu.memory_space<vmem>>, vector<1x128xf32>
    %7 = vector.broadcast %6 : vector<1x128xf32> to vector<128x128xf32>
    %8 = arith.addf %5, %7 : vector<128x128xf32>
    %cst_7 = arith.constant 0.000000e+00 : f32
    %9 = vector.broadcast %cst_7 : f32 to vector<128x128xf32>
    %10 = arith.maximumf %8, %9 : vector<128x128xf32>
    %c0_8 = arith.constant 0 : index
    %c0_9 = arith.constant 0 : index
    %11 = vector.load %arg6[%c0_8, %c0_9] : memref<128x128xf32, #tpu.memory_space<vmem>>, vector<128x128xf32>
    tpu.vector_store %arg6[%c0_8, %c0_9], %10 {strides = array<i32>} : memref<128x128xf32, #tpu.memory_space<vmem>>, vector<128x128xf32>,
    return
  }
  func.func @transform_0(%arg0: i32, %arg1: i32) -> (i32, i32) {
    %c0_i32 = arith.constant 0 : i32
    %c0_i32_0 = arith.constant 0 : i32
    return %arg0, %c0_i32 : i32, i32
  }
  func.func @transform_1(%arg0: i32, %arg1: i32) -> (i32, i32) {
    %c0_i32 = arith.constant 0 : i32
    %c0_i32_0 = arith.constant 0 : i32
    return %c0_i32, %arg1 : i32, i32
  }
  func.func @transform_2(%arg0: i32, %arg1: i32) -> (i32, i32) {
    %c0_i32 = arith.constant 0 : i32
    %c0_i32_0 = arith.constant 0 : i32
    return %c0_i32, %arg1 : i32, i32
  }
  func.func @transform_3(%arg0: i32, %arg1: i32) -> (i32, i32) {
    %c0_i32 = arith.constant 0 : i32
    %c0_i32_0 = arith.constant 0 : i32
    return %c0_i32, %arg1 : i32, i32
  }
  func.func @transform_4(%arg0: i32, %arg1: i32) -> (i32, i32) {
    %c0_i32 = arith.constant 0 : i32
    return %arg0, %arg1 : i32, i32
  }
}

module attributes {stable_mosaic.version = 11 : i64} {
  func.func @_fused_matmul_kernel(%arg0: i32, %arg1: i32, %arg2: memref<128x2304xf32, #tpu.memory_space<vmem>>, %arg3: memref<2304x128xf32, #tpu.memory_space<vmem>>, %arg4: memref<1x128xf32, #tpu.memory_space<vmem>>, %arg5: memref<1x128xf32, #tpu.memory_space<vmem>>, %arg6: memref<128x128xf32, #tpu.memory_space<vmem>>) attributes {dimension_semantics = [#tpu.dimension_semantics<parallel>, #tpu.dimension_semantics<parallel>], iteration_bounds = array<i64: 2, 1>, scalar_prefetch = 0 : i64, scratch_operands = 0 : i64, tpu.core_type = #tpu.core_type<tc>, window_params = [{transform_indices = @transform_0, window_bounds = array<i64: 128, 2304>}, {transform_indices = @transform_1, window_bounds = array<i64: 2304, 128>}, {transform_indices = @transform_2, window_bounds = array<i64: 1, 128>}, {transform_indices = @transform_3, window_bounds = array<i64: 1, 128>}, {transform_indices = @transform_4, window_bounds = array<i64: 128, 128>}]} {
    %c0 = arith.constant 0 : index
    %c0_0 = arith.constant 0 : index
    %0 = vector.load %arg2[%c0, %c0_0] : memref<128x2304xf32, #tpu.memory_space<vmem>>, vector<128x2304xf32>
    %c0_1 = arith.constant 0 : index
    %c0_2 = arith.constant 0 : index
    %1 = vector.load %arg3[%c0_1, %c0_2] : memref<2304x128xf32, #tpu.memory_space<vmem>>, vector<2304x128xf32>
    %cst = arith.constant dense<0.000000e+00> : vector<128x128xf32>
    %2 = tpu.matmul %0, %1, %cst {dimension_numbers = #tpu.dot_dimension_numbers<[1], [0], [0], [1], [0, 0, 1, 1], [], []>} : vector<128x2304xf32>, vector<2304x128xf32>, vector<128x128xf32> -> vector<128x128xf32>
    %c0_3 = arith.constant 0 : index
    %c0_4 = arith.constant 0 : index
    %3 = vector.load %arg4[%c0_3, %c0_4] : memref<1x128xf32, #tpu.memory_space<vmem>>, vector<1x128xf32>
    %4 = vector.broadcast %3 : vector<1x128xf32> to vector<128x128xf32>
    %5 = arith.mulf %2, %4 : vector<128x128xf32>
    %c0_5 = arith.constant 0 : index
    %c0_6 = arith.constant 0 : index
    %6 = vector.load %arg5[%c0_5, %c0_6] : memref<1x128xf32, #tpu.memory_space<vmem>>, vector<1x128xf32>
    %7 = vector.broadcast %6 : vector<1x128xf32> to vector<128x128xf32>
    %8 = arith.addf %5, %7 : vector<128x128xf32>
    %cst_7 = arith.constant 0.000000e+00 : f32
    %9 = vector.broadcast %cst_7 : f32 to vector<128x128xf32>
    %10 = arith.maximumf %8, %9 : vector<128x128xf32>
    %c0_8 = arith.constant 0 : index
    %c0_9 = arith.constant 0 : index
    %11 = vector.load %arg6[%c0_8, %c0_9] : memref<128x128xf32, #tpu.memory_space<vmem>>, vector<128x128xf32>
    tpu.vector_store %arg6[%c0_8, %c0_9], %10 {strides = array<i32>} : memref<128x128xf32, #tpu.memory_space<vmem>>, vector<128x128xf32>,
    return
  }
  func.func @transform_0(%arg0: i32, %arg1: i32) -> (i32, i32) {
    %c0_i32 = arith.constant 0 : i32
    %c0_i32_0 = arith.constant 0 : i32
    return %arg0, %c0_i32 : i32, i32
  }
  func.func @transform_1(%arg0: i32, %arg1: i32) -> (i32, i32) {
    %c0_i32 = arith.constant 0 : i32
    %c0_i32_0 = arith.constant 0 : i32
    return %c0_i32, %arg1 : i32, i32
  }
  func.func @transform_2(%arg0: i32, %arg1: i32) -> (i32, i32) {
    %c0_i32 = arith.constant 0 : i32
    %c0_i32_0 = arith.constant 0 : i32
    return %c0_i32, %arg1 : i32, i32
  }
  func.func @transform_3(%arg0: i32, %arg1: i32) -> (i32, i32) {
    %c0_i32 = arith.constant 0 : i32
    %c0_i32_0 = arith.constant 0 : i32
    return %c0_i32, %arg1 : i32, i32
  }
  func.func @transform_4(%arg0: i32, %arg1: i32) -> (i32, i32) {
    %c0_i32 = arith.constant 0 : i32
    return %arg0, %arg1 : i32, i32
  }
}

module attributes {stable_mosaic.version = 11 : i64} {
  func.func @_fused_matmul_kernel(%arg0: i32, %arg1: i32, %arg2: memref<40x1152xf32, #tpu.memory_space<vmem>>, %arg3: memref<1152x128xf32, #tpu.memory_space<vmem>>, %arg4: memref<1x128xf32, #tpu.memory_space<vmem>>, %arg5: memref<1x128xf32, #tpu.memory_space<vmem>>, %arg6: memref<40x128xf32, #tpu.memory_space<vmem>>) attributes {dimension_semantics = [#tpu.dimension_semantics<parallel>, #tpu.dimension_semantics<parallel>], iteration_bounds = array<i64: 1, 1>, scalar_prefetch = 0 : i64, scratch_operands = 0 : i64, tpu.core_type = #tpu.core_type<tc>, window_params = [{transform_indices = @transform_0, window_bounds = array<i64: 40, 1152>}, {transform_indices = @transform_1, window_bounds = array<i64: 1152, 128>}, {transform_indices = @transform_2, window_bounds = array<i64: 1, 128>}, {transform_indices = @transform_3, window_bounds = array<i64: 1, 128>}, {transform_indices = @transform_4, window_bounds = array<i64: 40, 128>}]} {
    %c0 = arith.constant 0 : index
    %c0_0 = arith.constant 0 : index
    %0 = vector.load %arg2[%c0, %c0_0] : memref<40x1152xf32, #tpu.memory_space<vmem>>, vector<40x1152xf32>
    %c0_1 = arith.constant 0 : index
    %c0_2 = arith.constant 0 : index
    %1 = vector.load %arg3[%c0_1, %c0_2] : memref<1152x128xf32, #tpu.memory_space<vmem>>, vector<1152x128xf32>
    %cst = arith.constant dense<0.000000e+00> : vector<40x128xf32>
    %2 = tpu.matmul %0, %1, %cst {dimension_numbers = #tpu.dot_dimension_numbers<[1], [0], [0], [1], [0, 0, 1, 1], [], []>} : vector<40x1152xf32>, vector<1152x128xf32>, vector<40x128xf32> -> vector<40x128xf32>
    %c0_3 = arith.constant 0 : index
    %c0_4 = arith.constant 0 : index
    %3 = vector.load %arg4[%c0_3, %c0_4] : memref<1x128xf32, #tpu.memory_space<vmem>>, vector<1x128xf32>
    %4 = vector.broadcast %3 : vector<1x128xf32> to vector<40x128xf32>
    %5 = arith.mulf %2, %4 : vector<40x128xf32>
    %c0_5 = arith.constant 0 : index
    %c0_6 = arith.constant 0 : index
    %6 = vector.load %arg5[%c0_5, %c0_6] : memref<1x128xf32, #tpu.memory_space<vmem>>, vector<1x128xf32>
    %7 = vector.broadcast %6 : vector<1x128xf32> to vector<40x128xf32>
    %8 = arith.addf %5, %7 : vector<40x128xf32>
    %cst_7 = arith.constant 0.000000e+00 : f32
    %9 = vector.broadcast %cst_7 : f32 to vector<40x128xf32>
    %10 = arith.maximumf %8, %9 : vector<40x128xf32>
    %c0_8 = arith.constant 0 : index
    %c0_9 = arith.constant 0 : index
    %11 = vector.load %arg6[%c0_8, %c0_9] : memref<40x128xf32, #tpu.memory_space<vmem>>, vector<40x128xf32>
    tpu.vector_store %arg6[%c0_8, %c0_9], %10 {strides = array<i32>} : memref<40x128xf32, #tpu.memory_space<vmem>>, vector<40x128xf32>,
    return
  }
  func.func @transform_0(%arg0: i32, %arg1: i32) -> (i32, i32) {
    %c0_i32 = arith.constant 0 : i32
    %c0_i32_0 = arith.constant 0 : i32
    return %arg0, %c0_i32 : i32, i32
  }
  func.func @transform_1(%arg0: i32, %arg1: i32) -> (i32, i32) {
    %c0_i32 = arith.constant 0 : i32
    %c0_i32_0 = arith.constant 0 : i32
    return %c0_i32, %arg1 : i32, i32
  }
  func.func @transform_2(%arg0: i32, %arg1: i32) -> (i32, i32) {
    %c0_i32 = arith.constant 0 : i32
    %c0_i32_0 = arith.constant 0 : i32
    return %c0_i32, %arg1 : i32, i32
  }
  func.func @transform_3(%arg0: i32, %arg1: i32) -> (i32, i32) {
    %c0_i32 = arith.constant 0 : i32
    %c0_i32_0 = arith.constant 0 : i32
    return %c0_i32, %arg1 : i32, i32
  }
  func.func @transform_4(%arg0: i32, %arg1: i32) -> (i32, i32) {
    %c0_i32 = arith.constant 0 : i32
    return %arg0, %arg1 : i32, i32
  }
}

module attributes {stable_mosaic.version = 11 : i64} {
  func.func @_fused_matmul_kernel(%arg0: i32, %arg1: i32, %arg2: memref<8x2560xf32, #tpu.memory_space<vmem>>, %arg3: memref<2560x128xf32, #tpu.memory_space<vmem>>, %arg4: memref<1x128xf32, #tpu.memory_space<vmem>>, %arg5: memref<1x128xf32, #tpu.memory_space<vmem>>, %arg6: memref<8x128xf32, #tpu.memory_space<vmem>>) attributes {dimension_semantics = [#tpu.dimension_semantics<parallel>, #tpu.dimension_semantics<parallel>], iteration_bounds = array<i64: 1, 2>, scalar_prefetch = 0 : i64, scratch_operands = 0 : i64, tpu.core_type = #tpu.core_type<tc>, window_params = [{transform_indices = @transform_0, window_bounds = array<i64: 8, 2560>}, {transform_indices = @transform_1, window_bounds = array<i64: 2560, 128>}, {transform_indices = @transform_2, window_bounds = array<i64: 1, 128>}, {transform_indices = @transform_3, window_bounds = array<i64: 1, 128>}, {transform_indices = @transform_4, window_bounds = array<i64: 8, 128>}]} {
    %c0 = arith.constant 0 : index
    %c0_0 = arith.constant 0 : index
    %0 = vector.load %arg2[%c0, %c0_0] : memref<8x2560xf32, #tpu.memory_space<vmem>>, vector<8x2560xf32>
    %c0_1 = arith.constant 0 : index
    %c0_2 = arith.constant 0 : index
    %1 = vector.load %arg3[%c0_1, %c0_2] : memref<2560x128xf32, #tpu.memory_space<vmem>>, vector<2560x128xf32>
    %cst = arith.constant dense<0.000000e+00> : vector<8x128xf32>
    %2 = tpu.matmul %0, %1, %cst {dimension_numbers = #tpu.dot_dimension_numbers<[1], [0], [0], [1], [0, 0, 1, 1], [], []>} : vector<8x2560xf32>, vector<2560x128xf32>, vector<8x128xf32> -> vector<8x128xf32>
    %c0_3 = arith.constant 0 : index
    %c0_4 = arith.constant 0 : index
    %3 = vector.load %arg4[%c0_3, %c0_4] : memref<1x128xf32, #tpu.memory_space<vmem>>, vector<1x128xf32>
    %4 = vector.broadcast %3 : vector<1x128xf32> to vector<8x128xf32>
    %5 = arith.mulf %2, %4 : vector<8x128xf32>
    %c0_5 = arith.constant 0 : index
    %c0_6 = arith.constant 0 : index
    %6 = vector.load %arg5[%c0_5, %c0_6] : memref<1x128xf32, #tpu.memory_space<vmem>>, vector<1x128xf32>
    %7 = vector.broadcast %6 : vector<1x128xf32> to vector<8x128xf32>
    %8 = arith.addf %5, %7 : vector<8x128xf32>
    %c0_7 = arith.constant 0 : index
    %c0_8 = arith.constant 0 : index
    %9 = vector.load %arg6[%c0_7, %c0_8] : memref<8x128xf32, #tpu.memory_space<vmem>>, vector<8x128xf32>
    tpu.vector_store %arg6[%c0_7, %c0_8], %8 {strides = array<i32>} : memref<8x128xf32, #tpu.memory_space<vmem>>, vector<8x128xf32>,
    return
  }
  func.func @transform_0(%arg0: i32, %arg1: i32) -> (i32, i32) {
    %c0_i32 = arith.constant 0 : i32
    %c0_i32_0 = arith.constant 0 : i32
    return %arg0, %c0_i32 : i32, i32
  }
  func.func @transform_1(%arg0: i32, %arg1: i32) -> (i32, i32) {
    %c0_i32 = arith.constant 0 : i32
    %c0_i32_0 = arith.constant 0 : i32
    return %c0_i32, %arg1 : i32, i32
  }
  func.func @transform_2(%arg0: i32, %arg1: i32) -> (i32, i32) {
    %c0_i32 = arith.constant 0 : i32
    %c0_i32_0 = arith.constant 0 : i32
    return %c0_i32, %arg1 : i32, i32
  }
  func.func @transform_3(%arg0: i32, %arg1: i32) -> (i32, i32) {
    %c0_i32 = arith.constant 0 : i32
    %c0_i32_0 = arith.constant 0 : i32
    return %c0_i32, %arg1 : i32, i32
  }
  func.func @transform_4(%arg0: i32, %arg1: i32) -> (i32, i32) {
    %c0_i32 = arith.constant 0 : i32
    return %arg0, %arg1 : i32, i32
  }
}

</mosaic_0001>

<bundles_post_ra>
// kernel: res_cnn_forward.4
= control target key start
LH: loop header
LB: loop body
LE: loop exit
PB: predicated region body
PF: predicated region fallthrough
CT: control target
= control target key end

     0   :  { %s1077_s15 = smov 0   ;;  %s1079_s16 = smov 0   ;;  %s1311_s0 = inlined_call_operand.vmem [shape: f32[640,27], index: 0, kind: input, shape index: {}]   ;;  %s1312_s1 = inlined_call_operand.vmem [shape: f32[27,256], index: 1, kind: input, shape index: {}]   ;;  %s1313_s2 = inlined_call_operand.vmem [shape: f32[1,256], index: 2, kind: input, shape index: {}]   ;;  %s1314_s3 = inlined_call_operand.vmem [shape: f32[1,256], index: 3, kind: input, shape index: {}]   ;;  %s1315_s4 = inlined_call_operand.vmem [shape: f32[640,256], index: 4, kind: output, shape index: {}]  }
   0x1   :  { %s1081_s17 = smov 0   ;;  %s1083_s18 = smov 0  }
   0x2   :  { %s1085_s19 = smov 0   ;;  %s1087_s20 = smov 0  }
   0x3   :  { %s1089_s21 = smov 0   ;;  %s1091_s22 = smov 0  }
   0x4   :  { %s1093_s23 = smov 0  }
   0x5 LB: > { %s803_s24 = sadd.s32 4294967295, %s1049_s23   ;;  %s23_s25 = sadd.s32 1, %s1041_s21  ;;  %s1049_s23 = sphi %s1093_s23, %s14_s23   ;;  %s1045_s22 = sphi %s1091_s22, %s1324_s22   ;;  %s1041_s21 = sphi %s1089_s21, %s1323_s21   ;;  %s1037_s20 = sphi %s1087_s20, %s1322_s20   ;;  %s1033_s19 = sphi %s1085_s19, %s1321_s19   ;;  %s1029_s18 = sphi %s1083_s18, %s1320_s18   ;;  %s1025_s17 = sphi %s1081_s17, %s1319_s17   ;;  %s1021_s16 = sphi %s1079_s16, %s1318_s16   ;;  %s1017_s15 = sphi %s1077_s15, %s1317_s15  }
   0x6   : > { %p24_p0 = scmp.ge.s32.totalorder %s23_s25, 2  ;;  %s26_s26 = sadd.s32 1, %s1045_s22 }
   0x7   : > { %s59_s27 = sadd.s32 1, %s1029_s18  ;;  %p66_p1 = scmp.ne.s32.totalorder %s1029_s18, %s1025_s17 }
   0x8   : > { %s1326_s25 = smov (%p24_p0, %s23_s25), 0  ;;  %s1328_s26 = smov (!%p24_p0, %s26_s26), %s1045_s22 }
   0x9   : > { %s56_s28 = ssub.s32 %s1041_s21, %s1326_s25  ;;  %p67_p2 = scmp.eq.s32.totalorder %s1049_s23, 0 }
   0xa   : > { %p28_p3 = scmp.ge.s32.totalorder %s1328_s26, 5  ;;  %p57_p4 = scmp.eq.s32.totalorder %s56_s28, 0 }
   0xb   : > { %p68_p5 = por %p67_p2, %p66_p1  ;;  %s139_s29 = sadd.s32 1, %s1021_s16 }
   0xc   : > { %s1330_s26 = smov (%p28_p3, %s1328_s26), 0  ;;  %p149_p6 = scmp.ne.s32.totalorder %s1021_s16, %s1017_s15 }
   0xd   : > { %s1138_s30 = scalar_select %p57_p4, %s1029_s18, %s59_s27  }
   0xe   : > { %s134_s5 = ssub.s32 %s1045_s22, %s1330_s26  ;;  %p150_p7 = scmp.eq.s32.totalorder %s803_s24, 9 }
   0xf   : > { %s136_s6 = sor.u32 %s134_s5, %s56_s28  ;;  %p806_p10 = scmp.ge.s32.totalorder %s1049_s23, 10 }
  0x10   : > { %p137_p8 = scmp.eq.s32.totalorder %s136_s6, 0  ;;  %p1144_p9 = por %p150_p7, %p149_p6 }
  0x11   : > { %172 = sbr.rel (%p806_p10) target bundleno = 31 (0x1f), region = 16 }
  0x12   : > { %s1149_s8 = scalar_select %p137_p8, %s1021_s16, %s139_s29  }
  0x18   : > { %184 = sbr.rel (!%p68_p5) target bundleno = 31 (0x1f), region = 24  ;;  %s186_s9 = sand.u32 (%p68_p5), 1, %s1029_s18  }
  0x19   : > { %s808_s10 = sshll.u32 (%p68_p5), %s1041_s21, 3  ;;  %s807_s11 = sshll.u32 (%p68_p5), %s186_s9, 5 }
  0x1a   : > { %s190_s14 = scalar_lea.vmem (%p68_p5), %s1312_s1, %s808_s10  ;;  %s188_s24 = scalar_lea.vmem (%p68_p5), [#allocation2], %s807_s11 }
  0x1b   : > { %v224_v0 = vld [vmem:[%s190_s14] sm:$0xff] (%p68_p5)  ;;  %v226_v1 = vld [vmem:[%s190_s14 + $0x10] sm:$0xff] (%p68_p5) }
  0x1c   : > { %v228_v2 = vld [vmem:[%s190_s14 + $0x20] sm:$0xff] (%p68_p5)  ;;  %225 = vst [vmem:[%s188_s24] sm:$0xff] (%p68_p5), %v224_v0  ;;  %227 = vst [vmem:[%s188_s24 + $0x8] sm:$0xff] (%p68_p5), %v226_v1  ;;  %v230_v3 = vld [vmem:[%s190_s14 + $0x30] sm:$0xff] (%p68_p5) }
  0x1d   : > { %229 = vst [vmem:[%s188_s24 + $0x10] sm:$0xff] (%p68_p5), %v228_v2  ;;  %231 = vst [vmem:[%s188_s24 + $0x18] sm:$0xff] (%p68_p5), %v230_v3 }
  0x1f PF: > { %p809_p11 = scmp.ge.s32.totalorder %s1049_s23, 1  ;;  %p248_p12 = scmp.lt.s32.totalorder %s1049_s23, 11 }
  0x21   : > { %p249_p13 = pnand %p809_p11, %p248_p12 }
  0x22   : > { %s255_s27 = sand.u32 (!%p249_p13), 1, %s1025_s17   ;;  %s812_s28 = sshll.u32 (!%p249_p13), %s1037_s20, 4  ;;  %vm372_vm0 = vcmask (!%p249_p13), 1042432   ;;  %vm1051_vm1 = vmmov (!%p249_p13), 1   ;;  %vm323_vm3 = vcmask (!%p249_p13), 220160  }
  0x23   : > { %252 = sbr.rel (%p249_p13) target bundleno = 289 (0x121), region = 70  ;;  %s810_s29 = sshll.u32 (!%p249_p13), %s255_s27, 5  ;;  %vm897_vm2 = vmpackc.low (!%p249_p13), %vm372_vm0, %vm1051_vm1 }
  0x24   : > { %p291_p0 = scmp.lt.s32.totalorder (!%p249_p13), %s812_s28, 79  ;;  %s257_s5 = scalar_lea.vmem (!%p249_p13), [#allocation2], %s810_s29 }
  0x25   : > { %v319_v4 = vld [vmem:[%s257_s5] sm:$0xff] (!%p249_p13)  ;;  %v320_v5 = vld [vmem:[%s257_s5 + $0x8] sm:$0xff] (!%p249_p13)  ;;  %v321_v6 = vld [vmem:[%s257_s5 + $0x10] sm:$0xff] (!%p249_p13)  ;;  %p296_p1 = scmp.lt.s32.totalorder (!%p249_p13), %s1033_s19, 1  ;;  %s287_s29 = sand.u32 (!%p249_p13), 1, %s1017_s15  }
  0x26   : > { %v892_v7 = vpack.c.bf16 (!%p249_p13), %v320_v5, %v319_v4  ;;  %v322_v8 = vld [vmem:[%s257_s5 + $0x18] sm:$0x7] (!%p249_p13)  ;;  %s811_s5 = sshll.u32 (!%p249_p13), %s287_s29, 7 }
  0x27   : > { %v896_v9 = vpack.c.bf16 (!%p249_p13), %v322_v8, %v321_v6  ;;  %s1223_s15 = scalar_lea.vmem (!%p249_p13), [#allocation3], %s811_s5 }
  0x28   : > { %893 = vmatprep.subr.bf16.mxu0 (!%p249_p13), %v892_v7  ;;  %902 = vmatprep.subr.bf16.mxu1 (!%p249_p13), %v892_v7 }
  0x29   : > { %895 = vmatpush3.bf16.msra.mxu0 (!%p249_p13), %v892_v7  ;;  %904 = vmatpush3.bf16.msra.mxu1 (!%p249_p13), %v892_v7 }
  0x2a   : > { %s1332_s28 = smov (!%p291_p0, %s812_s28), 79  ;;  %898 = vmatprep.subr.msk.bf16.mxu0 %vm897_vm2, %v896_v9  ;;  %903 = vmatprep.subr.msk.bf16.mxu1 %vm897_vm2, %v896_v9 }
  0x2b   : > { %s813_s6 = sshll.u32 %s1332_s28, 3 }
  0x2c   : > { %s1164_s17 = scalar_lea.vmem %s1311_s0, %s813_s6  ;;  %s839_s6 = sshll.u32 (%p1144_p9), %s1037_s20, 5 }
  0x2d   : > { %v303_v10 = vld [vmem:[%s1164_s17] sm:$0xff]  ;;  %901 = vmatpush3.bf16.msk.msra.mxu0 %vm897_vm2, %v896_v9  ;;  %905 = vmatpush3.bf16.msk.msra.mxu1 %vm897_vm2, %v896_v9  ;;  %v304_v12 = vld [vmem:[%s1164_s17 + $0x8] sm:$0xff]  ;;  %v305_v14 = vld [vmem:[%s1164_s17 + $0x10] sm:$0xff]  ;;  %s297_s11 = scalar_select %p296_p1, %s1033_s19, 1 }
  0x2e   : > { %v311_v11 = vld [vmem:[%s1164_s17 + $0x40] sm:$0xff]  ;;  %868 = vmatprep.mubr.msk.f32.mxu0 %vm323_vm3, %v303_v10  ;;  %v312_v13 = vld [vmem:[%s1164_s17 + $0x48] sm:$0xff]  ;;  %v313_v15 = vld [vmem:[%s1164_s17 + $0x50] sm:$0xff]  ;;  %s608_s7 = sadd.s32 (%p1144_p9), %s1033_s19, %s839_s6 }
  0x2f   : > { %880 = vmatprep.mubr.msk.f32.mxu1 %vm323_vm3, %v311_v11  ;;  %v306_v16 = vld [vmem:[%s1164_s17 + $0x18] sm:$0xff]  ;;  %v307_v18 = vld [vmem:[%s1164_s17 + $0x20] sm:$0xff]  ;;  %v308_v20 = vld [vmem:[%s1164_s17 + $0x28] sm:$0xff]  ;;  %s298_s14 = scalar_lea.vmem %s1313_s2, %s297_s11  ;;  %s301_s28 = scalar_lea.vmem %s1314_s3, %s297_s11 }
  0x30   : > { %869 = vmatmul.mubr.msk.f32.vlgmr.msra.gmra.mrb[0].mxu0 %vm323_vm3, %v304_v12  ;;  %881 = vmatmul.mubr.msk.f32.vlgmr.msra.gmra.mrb[0].mxu1 %vm323_vm3, %v312_v13  ;;  %v314_v17 = vld [vmem:[%s1164_s17 + $0x58] sm:$0xff]  ;;  %v315_v19 = vld [vmem:[%s1164_s17 + $0x60] sm:$0xff]  ;;  %v316_v21 = vld [vmem:[%s1164_s17 + $0x68] sm:$0xff]  ;;  %s836_s9 = sshll.u32 (%p1144_p9), %s608_s7, 3 }
  0x31   : > { %871 = vmatprep.mubr.msk.f32.mxu0 %vm323_vm3, %v305_v14  ;;  %883 = vmatprep.mubr.msk.f32.mxu1 %vm323_vm3, %v313_v15  ;;  %v309_v22 = vld [vmem:[%s1164_s17 + $0x30] sm:$0xff]  ;;  %v310_v24 = vld [vmem:[%s1164_s17 + $0x38] sm:$0xff]  ;;  %v1207_v26 = vld [vmem:[%s298_s14] ss:$0 sm:$0xff]  ;;  %s610_s11 = scalar_lea.vmem (%p1144_p9), %s1315_s4, %s836_s9 }
  0x32   : > { %v317_v23 = vld [vmem:[%s1164_s17 + $0x70] sm:$0xff]  ;;  %v318_v25 = vld [vmem:[%s1164_s17 + $0x78] sm:$0xff]  ;;  %v1209_v28 = vld [vmem:[%s301_s28] ss:$0 sm:$0xff] }
  0x34   : > { %872 = vmatmul.mubr.msk.f32.gmra.mrb[2].mxu0 %vm323_vm3, %v306_v16  ;;  %884 = vmatmul.mubr.msk.f32.gmra.mrb[2].mxu1 %vm323_vm3, %v314_v17 }
  0x35   : > { %874 = vmatprep.mubr.msk.f32.mxu0 %vm323_vm3, %v307_v18  ;;  %886 = vmatprep.mubr.msk.f32.mxu1 %vm323_vm3, %v315_v19 }
  0x38   : > { %875 = vmatmul.mubr.msk.f32.gmra.mrb[4].mxu0 %vm323_vm3, %v308_v20  ;;  %887 = vmatmul.mubr.msk.f32.gmra.mrb[4].mxu1 %vm323_vm3, %v316_v21 }
  0x39   : > { %877 = vmatprep.mubr.msk.f32.mxu0 %vm323_vm3, %v309_v22  ;;  %889 = vmatprep.mubr.msk.f32.mxu1 %vm323_vm3, %v317_v23 }
  0x3c   : > { %878 = vmatmul.mubr.msk.f32.gmra.mrb[6].mxu0 %vm323_vm3, %v310_v24  ;;  %890 = vmatmul.mubr.msk.f32.gmra.mrb[6].mxu1 %vm323_vm3, %v318_v25 }
 0x103   : > { %v870_v27 = vpop.f32.mrb[0].mxu0  ;;  %v882_v29 = vpop.f32.mrb[0].mxu1 }
 0x104   : > { %v529_v30 = vmul.f32 %v870_v27, %v1207_v26  ;;  %v537_v31 = vmul.f32 %v882_v29, %v1207_v26  ;;  %v442_v32 = vpop.f32.mrb[1].mxu0  ;;  %v482_v33 = vpop.f32.mrb[1].mxu1 }
 0x105   : > { %v528_v34 = vmul.f32 %v1207_v26, %v442_v32  ;;  %v536_v35 = vmul.f32 %v1207_v26, %v482_v33 }
 0x106   : > { %v552_v36 = vadd.f32 %v1209_v28, %v529_v30  ;;  %v560_v37 = vadd.f32 %v1209_v28, %v537_v31 }
 0x107   : > { %v551_v38 = vadd.f32 %v1209_v28, %v528_v34  ;;  %v559_v39 = vadd.f32 %v1209_v28, %v536_v35  ;;  %v873_v40 = vpop.f32.mrb[2].mxu0  ;;  %v885_v41 = vpop.f32.mrb[2].mxu1 }
 0x108   : > { %v568_v42 = vmax.f32 %v552_v36, 0.0  ;;  %v576_v43 = vmax.f32 %v560_v37, 0.0  ;;  %v531_v44 = vmul.f32 %v873_v40, %v1207_v26  ;;  %v539_v45 = vmul.f32 %v885_v41, %v1207_v26  ;;  %v452_v46 = vpop.f32.mrb[3].mxu0  ;;  %v492_v47 = vpop.f32.mrb[3].mxu1 }
 0x109   : > { %v567_v48 = vmax.f32 %v551_v38, 0.0  ;;  %v575_v49 = vmax.f32 %v559_v39, 0.0  ;;  %v530_v50 = vmul.f32 %v1207_v26, %v452_v46  ;;  %v538_v51 = vmul.f32 %v1207_v26, %v492_v47 }
 0x10a   : > { %584 = vst [vmem:[%s1223_s15 + $0x8] sm:$0xff] %v568_v42  ;;  %592 = vst [vmem:[%s1223_s15 + $0x48] sm:$0xff] %v576_v43  ;;  %v554_v52 = vadd.f32 %v1209_v28, %v531_v44  ;;  %v562_v53 = vadd.f32 %v1209_v28, %v539_v45 }
 0x10b   : > { %583 = vst [vmem:[%s1223_s15] sm:$0xff] %v567_v48  ;;  %591 = vst [vmem:[%s1223_s15 + $0x40] sm:$0xff] %v575_v49  ;;  %v553_v54 = vadd.f32 %v1209_v28, %v530_v50  ;;  %v561_v55 = vadd.f32 %v1209_v28, %v538_v51  ;;  %v876_v56 = vpop.f32.mrb[4].mxu0  ;;  %v888_v57 = vpop.f32.mrb[4].mxu1 }
 0x10c   : > { %v570_v58 = vmax.f32 %v554_v52, 0.0  ;;  %v578_v59 = vmax.f32 %v562_v53, 0.0  ;;  %v533_v60 = vmul.f32 %v876_v56, %v1207_v26  ;;  %v541_v61 = vmul.f32 %v888_v57, %v1207_v26  ;;  %v462_v62 = vpop.f32.mrb[5].mxu0  ;;  %v502_v63 = vpop.f32.mrb[5].mxu1 }
 0x10d   : > { %v569_v0 = vmax.f32 %v553_v54, 0.0  ;;  %v577_v1 = vmax.f32 %v561_v55, 0.0  ;;  %v532_v2 = vmul.f32 %v1207_v26, %v462_v62  ;;  %v540_v3 = vmul.f32 %v1207_v26, %v502_v63 }
 0x10e   : > { %586 = vst [vmem:[%s1223_s15 + $0x18] sm:$0xff] %v570_v58  ;;  %594 = vst [vmem:[%s1223_s15 + $0x58] sm:$0xff] %v578_v59  ;;  %v556_v4 = vadd.f32 %v1209_v28, %v533_v60  ;;  %v564_v5 = vadd.f32 %v1209_v28, %v541_v61 }
 0x10f   : > { %585 = vst [vmem:[%s1223_s15 + $0x10] sm:$0xff] %v569_v0  ;;  %593 = vst [vmem:[%s1223_s15 + $0x50] sm:$0xff] %v577_v1  ;;  %v555_v6 = vadd.f32 %v1209_v28, %v532_v2  ;;  %v563_v7 = vadd.f32 %v1209_v28, %v540_v3  ;;  %v879_v8 = vpop.f32.mrb[6].mxu0  ;;  %v891_v9 = vpop.f32.mrb[6].mxu1 }
 0x110   : > { %v572_v10 = vmax.f32 %v556_v4, 0.0  ;;  %v580_v11 = vmax.f32 %v564_v5, 0.0  ;;  %v535_v12 = vmul.f32 %v879_v8, %v1207_v26  ;;  %v543_v13 = vmul.f32 %v891_v9, %v1207_v26  ;;  %v472_v14 = vpop.f32.mrb[7].mxu0  ;;  %v512_v15 = vpop.f32.mrb[7].mxu1 }
 0x111   : > { %v571_v16 = vmax.f32 %v555_v6, 0.0  ;;  %v579_v17 = vmax.f32 %v563_v7, 0.0  ;;  %v534_v18 = vmul.f32 %v1207_v26, %v472_v14  ;;  %v542_v19 = vmul.f32 %v1207_v26, %v512_v15  ;;  %605 = sbr.rel (!%p1144_p9) target bundleno = 289 (0x121), region = 78  ;;  %v686_v37 = vld [vmem:[%s1223_s15 + $0x48] sm:$0xff] (%p1144_p9) }
 0x112   : > { %588 = vst [vmem:[%s1223_s15 + $0x28] sm:$0xff] %v572_v10  ;;  %596 = vst [vmem:[%s1223_s15 + $0x68] sm:$0xff] %v580_v11  ;;  %v558_v20 = vadd.f32 %v1209_v28, %v535_v12  ;;  %v566_v21 = vadd.f32 %v1209_v28, %v543_v13  ;;  %v668_v26 = vld [vmem:[%s1223_s15] sm:$0xff] (%p1144_p9) }
 0x113   : > { %587 = vst [vmem:[%s1223_s15 + $0x20] sm:$0xff] %v571_v16  ;;  %595 = vst [vmem:[%s1223_s15 + $0x60] sm:$0xff] %v579_v17  ;;  %v557_v22 = vadd.f32 %v1209_v28, %v534_v18  ;;  %v565_v23 = vadd.f32 %v1209_v28, %v542_v19  ;;  %v670_v28 = vld [vmem:[%s1223_s15 + $0x8] sm:$0xff] (%p1144_p9)  ;;  %v684_v36 = vld [vmem:[%s1223_s15 + $0x40] sm:$0xff] (%p1144_p9) }
 0x114   : > { %v574_v24 = vmax.f32 %v558_v20, 0.0  ;;  %v582_v25 = vmax.f32 %v566_v21, 0.0  ;;  %669 = vst [vmem:[%s610_s11] sm:$0xff] (%p1144_p9), %v668_v26  ;;  %671 = vst [vmem:[%s610_s11 + $0x10] sm:$0xff] (%p1144_p9), %v670_v28 }
 0x115   : > { %v573_v27 = vmax.f32 %v557_v22, 0.0  ;;  %v581_v29 = vmax.f32 %v565_v23, 0.0  ;;  %v674_v31 = vld [vmem:[%s1223_s15 + $0x18] sm:$0xff] (%p1144_p9)  ;;  %685 = vst [vmem:[%s610_s11 + $0x80] sm:$0xff] (%p1144_p9), %v684_v36  ;;  %687 = vst [vmem:[%s610_s11 + $0x90] sm:$0xff] (%p1144_p9), %v686_v37 }
 0x116   : > { %590 = vst [vmem:[%s1223_s15 + $0x38] sm:$0xff] %v574_v24  ;;  %598 = vst [vmem:[%s1223_s15 + $0x78] sm:$0xff] %v582_v25  ;;  %v672_v30 = vld [vmem:[%s1223_s15 + $0x10] sm:$0xff] (%p1144_p9)  ;;  %v690_v39 = vld [vmem:[%s1223_s15 + $0x58] sm:$0xff] (%p1144_p9) }
 0x117   : > { %589 = vst [vmem:[%s1223_s15 + $0x30] sm:$0xff] %v573_v27  ;;  %597 = vst [vmem:[%s1223_s15 + $0x70] sm:$0xff] %v581_v29  ;;  %v688_v38 = vld [vmem:[%s1223_s15 + $0x50] sm:$0xff] (%p1144_p9) }
 0x118   : > { %673 = vst [vmem:[%s610_s11 + $0x20] sm:$0xff] %v672_v30  ;;  %675 = vst [vmem:[%s610_s11 + $0x30] sm:$0xff] %v674_v31 }
 0x119   : > { %v678_v33 = vld [vmem:[%s1223_s15 + $0x28] sm:$0xff]  ;;  %689 = vst [vmem:[%s610_s11 + $0xa0] sm:$0xff] %v688_v38  ;;  %691 = vst [vmem:[%s610_s11 + $0xb0] sm:$0xff] %v690_v39 }
 0x11a   : > { %v676_v32 = vld [vmem:[%s1223_s15 + $0x20] sm:$0xff]  ;;  %679 = vst [vmem:[%s610_s11 + $0x50] sm:$0xff] %v678_v33  ;;  %v694_v41 = vld [vmem:[%s1223_s15 + $0x68] sm:$0xff] }
 0x11b   : > { %677 = vst [vmem:[%s610_s11 + $0x40] sm:$0xff] %v676_v32  ;;  %v692_v40 = vld [vmem:[%s1223_s15 + $0x60] sm:$0xff]  ;;  %695 = vst [vmem:[%s610_s11 + $0xd0] sm:$0xff] %v694_v41 }
 0x11c   : > { %693 = vst [vmem:[%s610_s11 + $0xc0] sm:$0xff] %v692_v40 }
 0x11d   : > { %v682_v35 = vld [vmem:[%s1223_s15 + $0x38] sm:$0xff] }
 0x11e   : > { %v680_v34 = vld [vmem:[%s1223_s15 + $0x30] sm:$0xff]  ;;  %683 = vst [vmem:[%s610_s11 + $0x70] sm:$0xff] %v682_v35  ;;  %v698_v43 = vld [vmem:[%s1223_s15 + $0x78] sm:$0xff] }
 0x11f   : > { %681 = vst [vmem:[%s610_s11 + $0x60] sm:$0xff] %v680_v34  ;;  %v696_v42 = vld [vmem:[%s1223_s15 + $0x70] sm:$0xff]  ;;  %699 = vst [vmem:[%s610_s11 + $0xf0] sm:$0xff] %v698_v43 }
 0x120   : > { %697 = vst [vmem:[%s610_s11 + $0xe0] sm:$0xff] %v696_v42 }
 0x121 PF: > { %s14_s23 = sadd.s32 1, %s1049_s23   ;;  %s1317_s15 = smov %s1021_s16 }
 0x122   : > { %p11_p2 = scmp.ge.s32.totalorder %s14_s23, 12   ;;  %s1318_s16 = smov %s1149_s8 }
 0x123   : > { %s1319_s17 = smov %s1029_s18  ;;  %s1320_s18 = smov %s1138_s30 }
 0x124   : > { %s1321_s19 = smov %s1041_s21  ;;  %s1322_s20 = smov %s1045_s22 }
 0x125   : > { %s1323_s21 = smov %s1326_s25  ;;  %s1324_s22 = smov %s1330_s26 }
 0x126   :  { %13 = sbr.rel (!%p11_p2) target bundleno = 5 (0x5), region = 156 }

// kernel: res_cnn_forward.5
= control target key start
LH: loop header
LB: loop body
LE: loop exit
PB: predicated region body
PF: predicated region fallthrough
CT: control target
= control target key end

     0   :  { %s3456_s15 = smov 0   ;;  %s3458_s16 = smov 0   ;;  %s4899_s0 = inlined_call_operand.vmem [shape: f32[256,2304], index: 0, kind: input, shape index: {}]   ;;  %s4900_s1 = inlined_call_operand.vmem [shape: f32[2304,128], index: 1, kind: input, shape index: {}]   ;;  %s4901_s2 = inlined_call_operand.vmem [shape: f32[1,128], index: 2, kind: input, shape index: {}]   ;;  %s4902_s3 = inlined_call_operand.vmem [shape: f32[1,128], index: 3, kind: input, shape index: {}]   ;;  %s4903_s4 = inlined_call_operand.vmem [shape: f32[256,128], index: 4, kind: output, shape index: {}]  }
   0x1   :  { %s3460_s17 = smov 0  }
   0x2 LB: > { %s26_s18 = sadd.s32 1, %s3425_s16  ;;  %p2349_p0 = scmp.ge.s32.totalorder %s3429_s17, 1  ;;  %s3429_s17 = sphi %s3460_s17, %s14_s17   ;;  %s3425_s16 = sphi %s3458_s16, %s4905_s16   ;;  %s3421_s15 = sphi %s3456_s15, %s4904_s15  }
   0x3   : > { %p28_p1 = scmp.ge.s32.totalorder %s26_s18, 2  ;;  %p203_p2 = scmp.lt.s32.totalorder %s3429_s17, 3 }
   0x5   : > { %s4907_s18 = smov (%p28_p1, %s26_s18), 0  ;;  %p204_p3 = pnand %p2349_p0, %p203_p2 }
   0x6   : > { %v573_v0 = vld [vmem:[%s4900_s1 + $0x80] sm:$0xff] (!%p204_p3)  ;;  %v574_v1 = vld [vmem:[%s4900_s1 + $0x88] sm:$0xff] (!%p204_p3)  ;;  %s2350_s25 = sshll.u32 (!%p204_p3), %s3421_s15, 4  ;;  %v575_v5 = vld [vmem:[%s4900_s1 + $0x90] sm:$0xff] (!%p204_p3) }
   0x7   : > { %207 = sbr.rel (%p204_p3) target bundleno = 551 (0x227), region = 36  ;;  %v557_v2 = vld [vmem:[%s4900_s1] sm:$0xff] (!%p204_p3)  ;;  %v3078_v3 = vpack.c.bf16 (!%p204_p3), %v574_v1, %v573_v0  ;;  %v558_v4 = vld [vmem:[%s4900_s1 + $0x8] sm:$0xff] (!%p204_p3)  ;;  %v576_v6 = vld [vmem:[%s4900_s1 + $0x98] sm:$0xff] (!%p204_p3)  ;;  %p244_p4 = scmp.lt.s32.totalorder (!%p204_p3), %s2350_s25, 31 }
   0x8   : > { %v3080_v7 = vpack.c.bf16 (!%p204_p3), %v558_v4, %v557_v2  ;;  %v3082_v8 = vpack.c.bf16 (!%p204_p3), %v576_v6, %v575_v5  ;;  %v559_v9 = vld [vmem:[%s4900_s1 + $0x10] sm:$0xff] (!%p204_p3)  ;;  %v560_v10 = vld [vmem:[%s4900_s1 + $0x18] sm:$0xff] (!%p204_p3)  ;;  %v577_v11 = vld [vmem:[%s4900_s1 + $0xa0] sm:$0xff] (!%p204_p3) }
   0x9   : > { %3366 = vmatprep.subr.bf16.mxu1 (!%p204_p3), %v3078_v3  ;;  %3079 = vmatprep.subr.bf16.mxu0 (!%p204_p3), %v3078_v3  ;;  %v578_v12 = vld [vmem:[%s4900_s1 + $0xa8] sm:$0xff] (!%p204_p3)  ;;  %v3084_v13 = vpack.c.bf16 (!%p204_p3), %v560_v10, %v559_v9  ;;  %v561_v15 = vld [vmem:[%s4900_s1 + $0x20] sm:$0xff] (!%p204_p3)  ;;  %v579_v17 = vld [vmem:[%s4900_s1 + $0xb0] sm:$0xff] (!%p204_p3) }
   0xa   : > { %3374 = vmatpush3.bf16.msra.mxu1 (!%p204_p3), %v3080_v7  ;;  %3081 = vmatpush3.bf16.msra.mxu0 (!%p204_p3), %v3080_v7  ;;  %v3086_v14 = vpack.c.bf16 (!%p204_p3), %v578_v12, %v577_v11  ;;  %v562_v16 = vld [vmem:[%s4900_s1 + $0x28] sm:$0xff] (!%p204_p3)  ;;  %v580_v18 = vld [vmem:[%s4900_s1 + $0xb8] sm:$0xff] (!%p204_p3)  ;;  %v563_v21 = vld [vmem:[%s4900_s1 + $0x30] sm:$0xff] (!%p204_p3) }
   0xb   : > { %3367 = vmatprep.subr.bf16.mxu1 (!%p204_p3), %v3082_v8  ;;  %3083 = vmatprep.subr.bf16.mxu0 (!%p204_p3), %v3082_v8  ;;  %v3088_v19 = vpack.c.bf16 (!%p204_p3), %v562_v16, %v561_v15  ;;  %v3090_v20 = vpack.c.bf16 (!%p204_p3), %v580_v18, %v579_v17  ;;  %v564_v22 = vld [vmem:[%s4900_s1 + $0x38] sm:$0xff] (!%p204_p3)  ;;  %v581_v23 = vld [vmem:[%s4900_s1 + $0xc0] sm:$0xff] (!%p204_p3)  ;;  %v582_v24 = vld [vmem:[%s4900_s1 + $0xc8] sm:$0xff] (!%p204_p3) }
   0xc   : > { %v3092_v26 = vpack.c.bf16 (!%p204_p3), %v564_v22, %v563_v21  ;;  %v3094_v28 = vpack.c.bf16 (!%p204_p3), %v582_v24, %v581_v23  ;;  %v565_v29 = vld [vmem:[%s4900_s1 + $0x40] sm:$0xff] (!%p204_p3)  ;;  %v566_v30 = vld [vmem:[%s4900_s1 + $0x48] sm:$0xff] (!%p204_p3)  ;;  %v583_v31 = vld [vmem:[%s4900_s1 + $0xd0] sm:$0xff] (!%p204_p3) }
   0xd   : > { %v584_v32 = vld [vmem:[%s4900_s1 + $0xd8] sm:$0xff] (!%p204_p3)  ;;  %v3096_v33 = vpack.c.bf16 (!%p204_p3), %v566_v30, %v565_v29  ;;  %v567_v35 = vld [vmem:[%s4900_s1 + $0x50] sm:$0xff] (!%p204_p3)  ;;  %v585_v37 = vld [vmem:[%s4900_s1 + $0xe0] sm:$0xff] (!%p204_p3) }
   0xe   : > { %s4909_s25 = smov (!%p244_p4, %s2350_s25), 31  ;;  %3375 = vmatpush3.bf16.msra.mxu1 %v3084_v13  ;;  %3085 = vmatpush3.bf16.msra.mxu0 %v3084_v13  ;;  %v3098_v34 = vpack.c.bf16 %v584_v32, %v583_v31  ;;  %v568_v36 = vld [vmem:[%s4900_s1 + $0x58] sm:$0xff]  ;;  %v586_v38 = vld [vmem:[%s4900_s1 + $0xe8] sm:$0xff]  ;;  %v569_v41 = vld [vmem:[%s4900_s1 + $0x60] sm:$0xff] }
   0xf   : > { %s3382_s21 = smul.u32 144, %s4909_s25  ;;  %3368 = vmatprep.subr.bf16.mxu1 %v3086_v14  ;;  %3087 = vmatprep.subr.bf16.mxu0 %v3086_v14  ;;  %v3100_v39 = vpack.c.bf16 %v568_v36, %v567_v35  ;;  %v3102_v40 = vpack.c.bf16 %v586_v38, %v585_v37  ;;  %v570_v42 = vld [vmem:[%s4900_s1 + $0x68] sm:$0xff]  ;;  %v587_v43 = vld [vmem:[%s4900_s1 + $0xf0] sm:$0xff]  ;;  %v588_v44 = vld [vmem:[%s4900_s1 + $0xf8] sm:$0xff]  ;;  %s2353_s9 = sshll.u32 %s4909_s25, 3 }
  0x10   : > { %v3104_v45 = vpack.c.bf16 %v570_v42, %v569_v41  ;;  %v3106_v46 = vpack.c.bf16 %v588_v44, %v587_v43  ;;  %v571_v47 = vld [vmem:[%s4900_s1 + $0x70] sm:$0xff]  ;;  %v572_v48 = vld [vmem:[%s4900_s1 + $0x78] sm:$0xff]  ;;  %v605_v49 = vld [vmem:[%s4900_s1 + $0x180] sm:$0xff]  ;;  %s4828_s12 = scalar_lea.vmem %s4903_s4, %s2353_s9 }
  0x11   : > { %s3522_s29 = scalar_lea.vmem %s4899_s0, %s3382_s21  ;;  %v606_v50 = vld [vmem:[%s4900_s1 + $0x188] sm:$0xff]  ;;  %v637_v51 = vld [vmem:[%s4900_s1 + $0x280] sm:$0xff]  ;;  %v3108_v53 = vpack.c.bf16 %v572_v48, %v571_v47  ;;  %v607_v60 = vld [vmem:[%s4900_s1 + $0x190] sm:$0xff] }
  0x12   : > { %v414_v25 = vld [vmem:[%s3522_s29 + $0x488] sm:$0xff]  ;;  %3376 = vmatpush3.bf16.msra.mxu1 %v3088_v19  ;;  %3089 = vmatpush3.bf16.msra.mxu0 %v3088_v19  ;;  %v3110_v54 = vpack.c.bf16 %v606_v50, %v605_v49  ;;  %v589_v55 = vld [vmem:[%s4900_s1 + $0x100] sm:$0xff]  ;;  %v608_v61 = vld [vmem:[%s4900_s1 + $0x198] sm:$0xff] }
  0x13   : > { %949 = vmatprep.mubr.f32.mxu1 %v414_v25  ;;  %v270_v27 = vld [vmem:[%s3522_s29 + $0x8] sm:$0xff]  ;;  %3369 = vmatprep.subr.bf16.mxu1 %v3090_v20  ;;  %v621_v58 = vld [vmem:[%s4900_s1 + $0x200] sm:$0xff]  ;;  %v639_v62 = vld [vmem:[%s4900_s1 + $0x290] sm:$0xff]  ;;  %v3114_v5 = vpack.c.bf16 %v608_v61, %v607_v60 }
  0x14   : > { %3091 = vmatprep.subr.bf16.mxu0 %v3090_v20  ;;  %909 = vmatprep.mubr.f32.mxu0 %v270_v27  ;;  %v638_v52 = vld [vmem:[%s4900_s1 + $0x288] sm:$0xff]  ;;  %v640_v63 = vld [vmem:[%s4900_s1 + $0x298] sm:$0xff]  ;;  %v413_v0 = vld [vmem:[%s3522_s29 + $0x480] sm:$0xff] }
  0x15   : > { %v590_v56 = vld [vmem:[%s4900_s1 + $0x108] sm:$0xff]  ;;  %v3142_v57 = vpack.c.bf16 %v638_v52, %v637_v51  ;;  %v269_v2 = vld [vmem:[%s3522_s29] sm:$0xff]  ;;  %v432_v3 = vld [vmem:[%s3522_s29 + $0x518] sm:$0xff]  ;;  %v3146_v9 = vpack.c.bf16 %v640_v63, %v639_v62 }
  0x16   : > { %3377 = vmatpush3.bf16.msra.mxu1 %v3092_v26  ;;  %3093 = vmatpush3.bf16.msra.mxu0 %v3092_v26  ;;  %v622_v59 = vld [vmem:[%s4900_s1 + $0x208] sm:$0xff]  ;;  %v3112_v1 = vpack.c.bf16 %v590_v56, %v589_v55  ;;  %v591_v6 = vld [vmem:[%s4900_s1 + $0x110] sm:$0xff]  ;;  %v592_v7 = vld [vmem:[%s4900_s1 + $0x118] sm:$0xff] }
  0x17   : > { %3370 = vmatprep.subr.bf16.mxu1 %v3094_v28  ;;  %3095 = vmatprep.subr.bf16.mxu0 %v3094_v28  ;;  %v3144_v4 = vpack.c.bf16 %v622_v59, %v621_v58  ;;  %v623_v8 = vld [vmem:[%s4900_s1 + $0x210] sm:$0xff]  ;;  %v624_v10 = vld [vmem:[%s4900_s1 + $0x218] sm:$0xff]  ;;  %v609_v11 = vld [vmem:[%s4900_s1 + $0x1a0] sm:$0xff]  ;;  %v3116_v17 = vpack.c.bf16 %v592_v7, %v591_v6 }
  0x18   : > { %v610_v12 = vld [vmem:[%s4900_s1 + $0x1a8] sm:$0xff]  ;;  %v288_v13 = vld [vmem:[%s3522_s29 + $0x98] sm:$0xff]  ;;  %v641_v14 = vld [vmem:[%s4900_s1 + $0x2a0] sm:$0xff]  ;;  %v3148_v20 = vpack.c.bf16 %v624_v10, %v623_v8 }
  0x19   : > { %v642_v15 = vld [vmem:[%s4900_s1 + $0x2a8] sm:$0xff]  ;;  %v431_v16 = vld [vmem:[%s3522_s29 + $0x510] sm:$0xff]  ;;  %v3118_v21 = vpack.c.bf16 %v610_v12, %v609_v11  ;;  %v593_v22 = vld [vmem:[%s4900_s1 + $0x120] sm:$0xff] }
  0x1a   : > { %3378 = vmatpush3.bf16.msra.mxu1 %v3096_v33  ;;  %3097 = vmatpush3.bf16.msra.mxu0 %v3096_v33  ;;  %v287_v18 = vld [vmem:[%s3522_s29 + $0x90] sm:$0xff]  ;;  %v450_v19 = vld [vmem:[%s3522_s29 + $0x5a8] sm:$0xff]  ;;  %v625_v24 = vld [vmem:[%s4900_s1 + $0x220] sm:$0xff]  ;;  %v3150_v25 = vpack.c.bf16 %v642_v15, %v641_v14 }
  0x1b   : > { %3371 = vmatprep.subr.bf16.mxu1 %v3098_v34  ;;  %3099 = vmatprep.subr.bf16.mxu0 %v3098_v34  ;;  %v594_v23 = vld [vmem:[%s4900_s1 + $0x128] sm:$0xff]  ;;  %v611_v27 = vld [vmem:[%s4900_s1 + $0x1b0] sm:$0xff]  ;;  %v612_v28 = vld [vmem:[%s4900_s1 + $0x1b8] sm:$0xff] }
  0x1c   : > { %v626_v26 = vld [vmem:[%s4900_s1 + $0x228] sm:$0xff]  ;;  %v643_v30 = vld [vmem:[%s4900_s1 + $0x2b0] sm:$0xff]  ;;  %v644_v31 = vld [vmem:[%s4900_s1 + $0x2b8] sm:$0xff]  ;;  %v3120_v33 = vpack.c.bf16 %v594_v23, %v593_v22  ;;  %v3122_v37 = vpack.c.bf16 %v612_v28, %v611_v27 }
  0x1d   : > { %v306_v29 = vld [vmem:[%s3522_s29 + $0x128] sm:$0xff]  ;;  %v449_v32 = vld [vmem:[%s3522_s29 + $0x5a0] sm:$0xff]  ;;  %v468_v35 = vld [vmem:[%s3522_s29 + $0x638] sm:$0xff]  ;;  %v3152_v36 = vpack.c.bf16 %v626_v26, %v625_v24  ;;  %v3154_v41 = vpack.c.bf16 %v644_v31, %v643_v30 }
  0x1e   : > { %3379 = vmatpush3.bf16.msra.mxu1 %v3100_v39  ;;  %3101 = vmatpush3.bf16.msra.mxu0 %v3100_v39  ;;  %v305_v34 = vld [vmem:[%s3522_s29 + $0x120] sm:$0xff]  ;;  %v595_v38 = vld [vmem:[%s4900_s1 + $0x130] sm:$0xff]  ;;  %v596_v39 = vld [vmem:[%s4900_s1 + $0x138] sm:$0xff] }
  0x1f   : > { %3372 = vmatprep.subr.bf16.mxu1 %v3102_v40  ;;  %3103 = vmatprep.subr.bf16.mxu0 %v3102_v40  ;;  %v627_v40 = vld [vmem:[%s4900_s1 + $0x230] sm:$0xff]  ;;  %v628_v42 = vld [vmem:[%s4900_s1 + $0x238] sm:$0xff]  ;;  %v613_v43 = vld [vmem:[%s4900_s1 + $0x1c0] sm:$0xff]  ;;  %v3124_v49 = vpack.c.bf16 %v596_v39, %v595_v38 }
  0x20   : > { %v614_v44 = vld [vmem:[%s4900_s1 + $0x1c8] sm:$0xff]  ;;  %v467_v48 = vld [vmem:[%s3522_s29 + $0x630] sm:$0xff]  ;;  %v3156_v52 = vpack.c.bf16 %v628_v42, %v627_v40  ;;  %v629_v56 = vld [vmem:[%s4900_s1 + $0x240] sm:$0xff] }
  0x21   : > { %v646_v47 = vld [vmem:[%s4900_s1 + $0x2c8] sm:$0xff]  ;;  %v323_v50 = vld [vmem:[%s3522_s29 + $0x1b0] sm:$0xff]  ;;  %v616_v60 = vld [vmem:[%s4900_s1 + $0x1d8] sm:$0xff] }
  0x22   : > { %3380 = vmatpush3.bf16.msra.mxu1 %v3104_v45  ;;  %3105 = vmatpush3.bf16.msra.mxu0 %v3104_v45  ;;  %v324_v45 = vld [vmem:[%s3522_s29 + $0x1b8] sm:$0xff]  ;;  %v486_v51 = vld [vmem:[%s3522_s29 + $0x6c8] sm:$0xff]  ;;  %v615_v59 = vld [vmem:[%s4900_s1 + $0x1d0] sm:$0xff] }
  0x23   : > { %3373 = vmatprep.subr.bf16.mxu1 %v3106_v46  ;;  %3107 = vmatprep.subr.bf16.mxu0 %v3106_v46  ;;  %v645_v46 = vld [vmem:[%s4900_s1 + $0x2c0] sm:$0xff]  ;;  %v598_v55 = vld [vmem:[%s4900_s1 + $0x148] sm:$0xff]  ;;  %v647_v62 = vld [vmem:[%s4900_s1 + $0x2d0] sm:$0xff] }
  0x24   : > { %v630_v58 = vld [vmem:[%s4900_s1 + $0x248] sm:$0xff]  ;;  %v648_v63 = vld [vmem:[%s4900_s1 + $0x2d8] sm:$0xff]  ;;  %v599_v6 = vld [vmem:[%s4900_s1 + $0x150] sm:$0xff] }
  0x25   : > { %v342_v61 = vld [vmem:[%s3522_s29 + $0x248] sm:$0xff]  ;;  %v600_v7 = vld [vmem:[%s4900_s1 + $0x158] sm:$0xff]  ;;  %v631_v8 = vld [vmem:[%s4900_s1 + $0x250] sm:$0xff] }
  0x26   : > { %3381 = vmatpush3.bf16.msra.mxu1 %v3108_v53  ;;  %3109 = vmatpush3.bf16.msra.mxu0 %v3108_v53  ;;  %v3126_v53 = vpack.c.bf16 %v614_v44, %v613_v43  ;;  %v632_v10 = vld [vmem:[%s4900_s1 + $0x258] sm:$0xff]  ;;  %v617_v11 = vld [vmem:[%s4900_s1 + $0x1e0] sm:$0xff]  ;;  %v618_v12 = vld [vmem:[%s4900_s1 + $0x1e8] sm:$0xff] }
  0x27   : > { %3111 = vmatprep.subr.bf16.mxu1 %v3110_v54  ;;  %3143 = vmatprep.subr.bf16.mxu0 %v3142_v57  ;;  %v597_v54 = vld [vmem:[%s4900_s1 + $0x140] sm:$0xff]  ;;  %v3158_v57 = vpack.c.bf16 %v646_v47, %v645_v46  ;;  %v650_v15 = vld [vmem:[%s4900_s1 + $0x2e8] sm:$0xff]  ;;  %v619_v27 = vld [vmem:[%s4900_s1 + $0x1f0] sm:$0xff] }
  0x28   : > { %v649_v14 = vld [vmem:[%s4900_s1 + $0x2e0] sm:$0xff]  ;;  %v602_v23 = vld [vmem:[%s4900_s1 + $0x168] sm:$0xff]  ;;  %v620_v28 = vld [vmem:[%s4900_s1 + $0x1f8] sm:$0xff] }
  0x29   : > { %950 = vmatmul.mubr.f32.vlgmr.msra.gmra.mrb[0].mxu1 %v413_v0  ;;  %910 = vmatmul.mubr.f32.vlgmr.msra.gmra.mrb[0].mxu0 %v269_v2  ;;  %v485_v0 = vld [vmem:[%s3522_s29 + $0x6c0] sm:$0xff]  ;;  %v634_v26 = vld [vmem:[%s4900_s1 + $0x268] sm:$0xff]  ;;  %v651_v30 = vld [vmem:[%s4900_s1 + $0x2f0] sm:$0xff] }
  0x2a   : > { %3113 = vmatpush3.bf16.msra.mxu1 %v3112_v1  ;;  %954 = vmatprep.mubr.f32.mxu1 %v432_v3  ;;  %v3128_v1 = vpack.c.bf16 %v598_v55, %v597_v54  ;;  %v341_v2 = vld [vmem:[%s3522_s29 + $0x240] sm:$0xff]  ;;  %v504_v3 = vld [vmem:[%s3522_s29 + $0x758] sm:$0xff]  ;;  %v603_v38 = vld [vmem:[%s4900_s1 + $0x170] sm:$0xff] }
  0x2b   : > { %3145 = vmatpush3.bf16.msra.mxu0 %v3144_v4  ;;  %3115 = vmatprep.subr.bf16.mxu1 %v3114_v5  ;;  %v3160_v4 = vpack.c.bf16 %v630_v58, %v629_v56  ;;  %v3130_v5 = vpack.c.bf16 %v616_v60, %v615_v59  ;;  %v601_v22 = vld [vmem:[%s4900_s1 + $0x160] sm:$0xff]  ;;  %v652_v31 = vld [vmem:[%s4900_s1 + $0x2f8] sm:$0xff]  ;;  %v635_v40 = vld [vmem:[%s4900_s1 + $0x270] sm:$0xff] }
  0x2c   : > { %914 = vmatprep.mubr.f32.mxu0 %v288_v13  ;;  %3147 = vmatprep.subr.bf16.mxu0 %v3146_v9  ;;  %v3162_v9 = vpack.c.bf16 %v648_v63, %v647_v62  ;;  %v360_v13 = vld [vmem:[%s3522_s29 + $0x2d8] sm:$0xff]  ;;  %v633_v24 = vld [vmem:[%s4900_s1 + $0x260] sm:$0xff]  ;;  %v670_v44 = vld [vmem:[%s4900_s1 + $0x388] sm:$0xff] }
  0x2d   : > { %955 = vmatmul.mubr.f32.gmra.mrb[2].mxu1 %v431_v16  ;;  %915 = vmatmul.mubr.f32.gmra.mrb[2].mxu0 %v287_v18  ;;  %v503_v16 = vld [vmem:[%s3522_s29 + $0x750] sm:$0xff]  ;;  %v604_v39 = vld [vmem:[%s4900_s1 + $0x178] sm:$0xff]  ;;  %v669_v43 = vld [vmem:[%s4900_s1 + $0x380] sm:$0xff] }
  0x2e   : > { %3117 = vmatpush3.bf16.msra.mxu1 %v3116_v17  ;;  %959 = vmatprep.mubr.f32.mxu1 %v450_v19  ;;  %v3132_v17 = vpack.c.bf16 %v600_v7, %v599_v6  ;;  %v359_v18 = vld [vmem:[%s3522_s29 + $0x2d0] sm:$0xff]  ;;  %v522_v19 = vld [vmem:[%s3522_s29 + $0x7e8] sm:$0xff]  ;;  %v636_v42 = vld [vmem:[%s4900_s1 + $0x278] sm:$0xff] }
  0x2f   : > { %3149 = vmatpush3.bf16.msra.mxu0 %v3148_v20  ;;  %3119 = vmatprep.subr.bf16.mxu1 %v3118_v21  ;;  %v3164_v20 = vpack.c.bf16 %v632_v10, %v631_v8  ;;  %v3134_v21 = vpack.c.bf16 %v618_v12, %v617_v11  ;;  %v701_v46 = vld [vmem:[%s4900_s1 + $0x480] sm:$0xff]  ;;  %v702_v47 = vld [vmem:[%s4900_s1 + $0x488] sm:$0xff]  ;;  %v671_v60 = vld [vmem:[%s4900_s1 + $0x390] sm:$0xff] }
  0x30   : > { %919 = vmatprep.mubr.f32.mxu0 %v306_v29  ;;  %3151 = vmatprep.subr.bf16.mxu0 %v3150_v25  ;;  %v3166_v25 = vpack.c.bf16 %v650_v15, %v649_v14  ;;  %v378_v29 = vld [vmem:[%s3522_s29 + $0x368] sm:$0xff]  ;;  %v653_v54 = vld [vmem:[%s4900_s1 + $0x300] sm:$0xff]  ;;  %v3206_v56 = vpack.c.bf16 %v702_v47, %v701_v46  ;;  %v271_v62 = vld [vmem:[%s3522_s29 + $0x10] sm:$0xff] }
  0x31   : > { %960 = vmatmul.mubr.f32.gmra.mrb[4].mxu1 %v449_v32  ;;  %920 = vmatmul.mubr.f32.gmra.mrb[4].mxu0 %v305_v34  ;;  %v521_v32 = vld [vmem:[%s3522_s29 + $0x7e0] sm:$0xff]  ;;  %v654_v55 = vld [vmem:[%s4900_s1 + $0x308] sm:$0xff]  ;;  %v655_v7 = vld [vmem:[%s4900_s1 + $0x310] sm:$0xff] }
  0x32   : > { %3121 = vmatpush3.bf16.msra.mxu1 %v3120_v33  ;;  %964 = vmatprep.mubr.f32.mxu1 %v468_v35  ;;  %v3136_v33 = vpack.c.bf16 %v602_v23, %v601_v22  ;;  %v377_v34 = vld [vmem:[%s3522_s29 + $0x360] sm:$0xff]  ;;  %v540_v35 = vld [vmem:[%s3522_s29 + $0x878] sm:$0xff]  ;;  %v686_v58 = vld [vmem:[%s4900_s1 + $0x408] sm:$0xff]  ;;  %v3176_v63 = vpack.c.bf16 %v654_v55, %v653_v54 }
  0x33   : > { %3153 = vmatpush3.bf16.msra.mxu0 %v3152_v36  ;;  %3123 = vmatprep.subr.bf16.mxu1 %v3122_v37  ;;  %v3168_v36 = vpack.c.bf16 %v634_v26, %v633_v24  ;;  %v3138_v37 = vpack.c.bf16 %v620_v28, %v619_v27  ;;  %v274_v59 = vld [vmem:[%s3522_s29 + $0x28] sm:$0xff]  ;;  %v656_v8 = vld [vmem:[%s4900_s1 + $0x318] sm:$0xff]  ;;  %v673_v12 = vld [vmem:[%s4900_s1 + $0x3a0] sm:$0xff] }
  0x34   : > { %924 = vmatprep.mubr.f32.mxu0 %v324_v45  ;;  %3155 = vmatprep.subr.bf16.mxu0 %v3154_v41  ;;  %v3170_v41 = vpack.c.bf16 %v652_v31, %v651_v30  ;;  %v396_v45 = vld [vmem:[%s3522_s29 + $0x3f8] sm:$0xff]  ;;  %v289_v14 = vld [vmem:[%s3522_s29 + $0xa0] sm:$0xff]  ;;  %v658_v24 = vld [vmem:[%s4900_s1 + $0x328] sm:$0xff] }
  0x35   : > { %965 = vmatmul.mubr.f32.gmra.mrb[6].mxu1 %v467_v48  ;;  %925 = vmatmul.mubr.f32.gmra.mrb[6].mxu0 %v323_v50  ;;  %v539_v48 = vld [vmem:[%s3522_s29 + $0x870] sm:$0xff]  ;;  %v688_v11 = vld [vmem:[%s4900_s1 + $0x418] sm:$0xff]  ;;  %v705_v15 = vld [vmem:[%s4900_s1 + $0x4a0] sm:$0xff] }
  0x36   : > { %3125 = vmatpush3.bf16.msra.mxu1 %v3124_v49  ;;  %969 = vmatprep.mubr.f32.mxu1 %v486_v51  ;;  %v3140_v49 = vpack.c.bf16 %v604_v39, %v603_v38  ;;  %v395_v50 = vld [vmem:[%s3522_s29 + $0x3f0] sm:$0xff]  ;;  %v272_v51 = vld [vmem:[%s3522_s29 + $0x18] sm:$0xff]  ;;  %v657_v23 = vld [vmem:[%s4900_s1 + $0x320] sm:$0xff] }
  0x37   : > { %3157 = vmatpush3.bf16.msra.mxu0 %v3156_v52  ;;  %3127 = vmatprep.subr.bf16.mxu1 %v3126_v53  ;;  %v3172_v52 = vpack.c.bf16 %v636_v42, %v635_v40  ;;  %v3174_v53 = vpack.c.bf16 %v670_v44, %v669_v43  ;;  %v690_v27 = vld [vmem:[%s4900_s1 + $0x428] sm:$0xff]  ;;  %v675_v28 = vld [vmem:[%s4900_s1 + $0x3b0] sm:$0xff]  ;;  %v660_v40 = vld [vmem:[%s4900_s1 + $0x338] sm:$0xff] }
  0x38   : > { %929 = vmatprep.mubr.f32.mxu0 %v342_v61  ;;  %3159 = vmatprep.subr.bf16.mxu0 %v3158_v57  ;;  %v685_v57 = vld [vmem:[%s4900_s1 + $0x400] sm:$0xff]  ;;  %v672_v61 = vld [vmem:[%s4900_s1 + $0x398] sm:$0xff]  ;;  %v307_v30 = vld [vmem:[%s3522_s29 + $0x130] sm:$0xff] }
  0x39   : > { %970 = vmatmul.mubr.f32.gmra.mrb[8].mxu1 %v485_v0  ;;  %930 = vmatmul.mubr.f32.gmra.mrb[8].mxu0 %v341_v2  ;;  %v703_v0 = vld [vmem:[%s4900_s1 + $0x490] sm:$0xff]  ;;  %v273_v2 = vld [vmem:[%s3522_s29 + $0x20] sm:$0xff]  ;;  %v3178_v6 = vpack.c.bf16 %v672_v61, %v671_v60  ;;  %v692_v43 = vld [vmem:[%s4900_s1 + $0x438] sm:$0xff] }
  0x3a   : > { %3129 = vmatpush3.bf16.msra.mxu1 %v3128_v1  ;;  %974 = vmatprep.mubr.f32.mxu1 %v504_v3  ;;  %v704_v1 = vld [vmem:[%s4900_s1 + $0x498] sm:$0xff]  ;;  %v290_v3 = vld [vmem:[%s3522_s29 + $0xa8] sm:$0xff]  ;;  %v707_v31 = vld [vmem:[%s4900_s1 + $0x4b0] sm:$0xff] }
  0x3b   : > { %3161 = vmatpush3.bf16.msra.mxu0 %v3160_v4  ;;  %3131 = vmatprep.subr.bf16.mxu1 %v3130_v5  ;;  %v3208_v4 = vpack.c.bf16 %v686_v58, %v685_v57  ;;  %v292_v5 = vld [vmem:[%s3522_s29 + $0xb8] sm:$0xff]  ;;  %v3210_v10 = vpack.c.bf16 %v704_v1, %v703_v0  ;;  %v659_v39 = vld [vmem:[%s4900_s1 + $0x330] sm:$0xff]  ;;  %v677_v44 = vld [vmem:[%s4900_s1 + $0x3c0] sm:$0xff] }
  0x3c   : > { %934 = vmatprep.mubr.f32.mxu0 %v360_v13  ;;  %3163 = vmatprep.subr.bf16.mxu0 %v3162_v9  ;;  %v687_v9 = vld [vmem:[%s4900_s1 + $0x410] sm:$0xff]  ;;  %v674_v13 = vld [vmem:[%s4900_s1 + $0x3a8] sm:$0xff]  ;;  %v325_v46 = vld [vmem:[%s3522_s29 + $0x1c0] sm:$0xff] }
  0x3d   : > { %975 = vmatmul.mubr.f32.gmra.mrb[10].mxu1 %v503_v16  ;;  %935 = vmatmul.mubr.f32.gmra.mrb[10].mxu0 %v359_v18  ;;  %v706_v16 = vld [vmem:[%s4900_s1 + $0x4a8] sm:$0xff]  ;;  %v308_v18 = vld [vmem:[%s3522_s29 + $0x138] sm:$0xff]  ;;  %v3182_v22 = vpack.c.bf16 %v674_v13, %v673_v12  ;;  %v709_v47 = vld [vmem:[%s4900_s1 + $0x4c0] sm:$0xff] }
  0x3e   : > { %3133 = vmatpush3.bf16.msra.mxu1 %v3132_v17  ;;  %979 = vmatprep.mubr.f32.mxu1 %v522_v19  ;;  %v291_v17 = vld [vmem:[%s3522_s29 + $0xb0] sm:$0xff]  ;;  %v310_v19 = vld [vmem:[%s3522_s29 + $0x148] sm:$0xff]  ;;  %v3214_v26 = vpack.c.bf16 %v706_v16, %v705_v15  ;;  %v661_v55 = vld [vmem:[%s4900_s1 + $0x340] sm:$0xff] }
  0x3f   : > { %3165 = vmatpush3.bf16.msra.mxu0 %v3164_v20  ;;  %3135 = vmatprep.subr.bf16.mxu1 %v3134_v21  ;;  %v3180_v20 = vpack.c.bf16 %v656_v8, %v655_v7  ;;  %v3212_v21 = vpack.c.bf16 %v688_v11, %v687_v9  ;;  %v693_v57 = vld [vmem:[%s4900_s1 + $0x440] sm:$0xff]  ;;  %v679_v60 = vld [vmem:[%s4900_s1 + $0x3d0] sm:$0xff]  ;;  %v680_v61 = vld [vmem:[%s4900_s1 + $0x3d8] sm:$0xff] }
  0x40   : > { %939 = vmatprep.mubr.f32.mxu0 %v378_v29  ;;  %3167 = vmatprep.subr.bf16.mxu0 %v3166_v25  ;;  %v689_v25 = vld [vmem:[%s4900_s1 + $0x420] sm:$0xff]  ;;  %v676_v29 = vld [vmem:[%s4900_s1 + $0x3b8] sm:$0xff]  ;;  %v663_v7 = vld [vmem:[%s4900_s1 + $0x350] sm:$0xff] }
  0x41   : > { %980 = vmatmul.mubr.f32.gmra.mrb[12].mxu1 %v521_v32  ;;  %940 = vmatmul.mubr.f32.gmra.mrb[12].mxu0 %v377_v34  ;;  %v708_v32 = vld [vmem:[%s4900_s1 + $0x4b8] sm:$0xff]  ;;  %v326_v34 = vld [vmem:[%s3522_s29 + $0x1c8] sm:$0xff]  ;;  %v3186_v38 = vpack.c.bf16 %v676_v29, %v675_v28  ;;  %v345_v1 = vld [vmem:[%s3522_s29 + $0x260] sm:$0xff] }
  0x42   : > { %3137 = vmatpush3.bf16.msra.mxu1 %v3136_v33  ;;  %984 = vmatprep.mubr.f32.mxu1 %v540_v35  ;;  %v309_v33 = vld [vmem:[%s3522_s29 + $0x140] sm:$0xff]  ;;  %v328_v35 = vld [vmem:[%s3522_s29 + $0x1d8] sm:$0xff]  ;;  %v3218_v42 = vpack.c.bf16 %v708_v32, %v707_v31  ;;  %v695_v9 = vld [vmem:[%s4900_s1 + $0x450] sm:$0xff] }
  0x43   : > { %3169 = vmatpush3.bf16.msra.mxu0 %v3168_v36  ;;  %3139 = vmatprep.subr.bf16.mxu1 %v3138_v37  ;;  %v3184_v36 = vpack.c.bf16 %v658_v24, %v657_v23  ;;  %v3216_v37 = vpack.c.bf16 %v690_v27, %v689_v25  ;;  %v712_v0 = vld [vmem:[%s4900_s1 + $0x4d8] sm:$0xff]  ;;  %v681_v12 = vld [vmem:[%s4900_s1 + $0x3e0] sm:$0xff]  ;;  %v682_v13 = vld [vmem:[%s4900_s1 + $0x3e8] sm:$0xff] }
  0x44   : > { %944 = vmatprep.mubr.f32.mxu0 %v396_v45  ;;  %3171 = vmatprep.subr.bf16.mxu0 %v3170_v41  ;;  %v691_v41 = vld [vmem:[%s4900_s1 + $0x430] sm:$0xff]  ;;  %v678_v45 = vld [vmem:[%s4900_s1 + $0x3c8] sm:$0xff]  ;;  %v664_v8 = vld [vmem:[%s4900_s1 + $0x358] sm:$0xff] }
  0x45   : > { %985 = vmatmul.mubr.f32.gmra.mrb[14].mxu1 %v539_v48  ;;  %945 = vmatmul.mubr.f32.gmra.mrb[14].mxu0 %v395_v50  ;;  %v710_v48 = vld [vmem:[%s4900_s1 + $0x4c8] sm:$0xff]  ;;  %v344_v50 = vld [vmem:[%s3522_s29 + $0x258] sm:$0xff]  ;;  %v3190_v54 = vpack.c.bf16 %v678_v45, %v677_v44  ;;  %v713_v15 = vld [vmem:[%s4900_s1 + $0x4e0] sm:$0xff] }
  0x46   : > { %3141 = vmatpush3.bf16.msra.mxu1 %v3140_v49  ;;  %1054 = vmatprep.mubr.f32.mxu1 %v272_v51  ;;  %v327_v49 = vld [vmem:[%s3522_s29 + $0x1d0] sm:$0xff]  ;;  %v346_v51 = vld [vmem:[%s3522_s29 + $0x268] sm:$0xff]  ;;  %v3222_v58 = vpack.c.bf16 %v710_v48, %v709_v47  ;;  %v696_v11 = vld [vmem:[%s4900_s1 + $0x458] sm:$0xff] }
  0x47   : > { %3173 = vmatpush3.bf16.msra.mxu0 %v3172_v52  ;;  %3175 = vmatprep.subr.bf16.mxu1 %v3174_v53  ;;  %v3188_v52 = vpack.c.bf16 %v660_v40, %v659_v39  ;;  %v3220_v53 = vpack.c.bf16 %v692_v43, %v691_v41  ;;  %v714_v16 = vld [vmem:[%s4900_s1 + $0x4e8] sm:$0xff]  ;;  %v665_v23 = vld [vmem:[%s4900_s1 + $0x360] sm:$0xff]  ;;  %v683_v28 = vld [vmem:[%s4900_s1 + $0x3f0] sm:$0xff] }
  0x48   : > { %1199 = vmatprep.mubr.f32.mxu0 %v274_v59  ;;  %3207 = vmatprep.subr.bf16.mxu0 %v3206_v56  ;;  %v662_v56 = vld [vmem:[%s4900_s1 + $0x348] sm:$0xff]  ;;  %v697_v25 = vld [vmem:[%s4900_s1 + $0x460] sm:$0xff]  ;;  %v684_v29 = vld [vmem:[%s4900_s1 + $0x3f8] sm:$0xff] }
  0x49   : > { %1055 = vmatmul.mubr.f32.vlgmr.msra.gmra.mrb[16].mxu1 %v271_v62  ;;  %v694_v59 = vld [vmem:[%s4900_s1 + $0x448] sm:$0xff]  ;;  %v343_v62 = vld [vmem:[%s3522_s29 + $0x250] sm:$0xff]  ;;  %v716_v32 = vld [vmem:[%s4900_s1 + $0x4f8] sm:$0xff] }
  0x4a   : > { %3177 = vmatpush3.bf16.msra.mxu1 %v3176_v63  ;;  %1200 = vmatmul.mubr.f32.vlgmr.msra.gmra.mrb[16].mxu0 %v273_v2  ;;  %v711_v63 = vld [vmem:[%s4900_s1 + $0x4d0] sm:$0xff]  ;;  %v362_v2 = vld [vmem:[%s3522_s29 + $0x2e8] sm:$0xff]  ;;  %v668_v40 = vld [vmem:[%s4900_s1 + $0x378] sm:$0xff] }
  0x4b   : > { %1059 = vmatprep.mubr.f32.mxu1 %v290_v3  ;;  %3209 = vmatpush3.bf16.msra.mxu0 %v3208_v4  ;;  %v364_v3 = vld [vmem:[%s3522_s29 + $0x2f8] sm:$0xff]  ;;  %v3192_v4 = vpack.c.bf16 %v662_v56, %v661_v55  ;;  %v666_v24 = vld [vmem:[%s4900_s1 + $0x368] sm:$0xff]  ;;  %v715_v31 = vld [vmem:[%s4900_s1 + $0x4f0] sm:$0xff] }
  0x4c   : > { %1204 = vmatprep.mubr.f32.mxu0 %v292_v5  ;;  %3179 = vmatprep.subr.bf16.mxu1 %v3178_v6  ;;  %v3224_v5 = vpack.c.bf16 %v694_v59, %v693_v57  ;;  %v3194_v6 = vpack.c.bf16 %v680_v61, %v679_v60  ;;  %v698_v27 = vld [vmem:[%s4900_s1 + $0x468] sm:$0xff]  ;;  %v667_v39 = vld [vmem:[%s4900_s1 + $0x370] sm:$0xff]  ;;  %v700_v43 = vld [vmem:[%s4900_s1 + $0x478] sm:$0xff] }
  0x4d   : > { %1060 = vmatmul.mubr.f32.gmra.mrb[18].mxu1 %v289_v14  ;;  %3211 = vmatprep.subr.bf16.mxu0 %v3210_v10  ;;  %v3226_v10 = vpack.c.bf16 %v712_v0, %v711_v63  ;;  %v361_v14 = vld [vmem:[%s3522_s29 + $0x2e0] sm:$0xff]  ;;  %v699_v41 = vld [vmem:[%s4900_s1 + $0x470] sm:$0xff]  ;;  %v734_v45 = vld [vmem:[%s4900_s1 + $0x588] sm:$0xff] }
  0x4e   : > { %1205 = vmatmul.mubr.f32.gmra.mrb[18].mxu0 %v291_v17  ;;  %1064 = vmatprep.mubr.f32.mxu1 %v308_v18  ;;  %v363_v17 = vld [vmem:[%s3522_s29 + $0x2f0] sm:$0xff]  ;;  %v380_v18 = vld [vmem:[%s3522_s29 + $0x378] sm:$0xff]  ;;  %v733_v44 = vld [vmem:[%s4900_s1 + $0x580] sm:$0xff] }
  0x4f   : > { %1209 = vmatprep.mubr.f32.mxu0 %v310_v19  ;;  %3181 = vmatpush3.bf16.msra.mxu1 %v3180_v20  ;;  %v382_v19 = vld [vmem:[%s3522_s29 + $0x388] sm:$0xff]  ;;  %v3196_v20 = vpack.c.bf16 %v664_v8, %v663_v7  ;;  %v765_v47 = vld [vmem:[%s4900_s1 + $0x680] sm:$0xff]  ;;  %v415_v56 = vld [vmem:[%s3522_s29 + $0x490] sm:$0xff] }
  0x50   : > { %3213 = vmatpush3.bf16.msra.mxu0 %v3212_v21  ;;  %3183 = vmatprep.subr.bf16.mxu1 %v3182_v22  ;;  %v3228_v21 = vpack.c.bf16 %v696_v11, %v695_v9  ;;  %v3198_v22 = vpack.c.bf16 %v682_v13, %v681_v12  ;;  %v766_v48 = vld [vmem:[%s4900_s1 + $0x688] sm:$0xff]  ;;  %v417_v57 = vld [vmem:[%s3522_s29 + $0x4a0] sm:$0xff]  ;;  %v436_v59 = vld [vmem:[%s3522_s29 + $0x538] sm:$0xff] }
  0x51   : > { %1065 = vmatmul.mubr.f32.gmra.mrb[20].mxu1 %v307_v30  ;;  %3215 = vmatprep.subr.bf16.mxu0 %v3214_v26  ;;  %v3230_v26 = vpack.c.bf16 %v714_v16, %v713_v15  ;;  %v379_v30 = vld [vmem:[%s3522_s29 + $0x370] sm:$0xff]  ;;  %v3270_v55 = vpack.c.bf16 %v766_v48, %v765_v47  ;;  %v433_v60 = vld [vmem:[%s3522_s29 + $0x520] sm:$0xff]  ;;  %v454_v63 = vld [vmem:[%s3522_s29 + $0x5c8] sm:$0xff] }
  0x52   : > { %1210 = vmatmul.mubr.f32.gmra.mrb[20].mxu0 %v309_v33  ;;  %1069 = vmatprep.mubr.f32.mxu1 %v326_v34  ;;  %v381_v33 = vld [vmem:[%s3522_s29 + $0x380] sm:$0xff]  ;;  %v398_v34 = vld [vmem:[%s3522_s29 + $0x408] sm:$0xff]  ;;  %v435_v61 = vld [vmem:[%s3522_s29 + $0x530] sm:$0xff] }
  0x53   : > { %1214 = vmatprep.mubr.f32.mxu0 %v328_v35  ;;  %3185 = vmatpush3.bf16.msra.mxu1 %v3184_v36  ;;  %v400_v35 = vld [vmem:[%s3522_s29 + $0x418] sm:$0xff]  ;;  %v3200_v36 = vpack.c.bf16 %v666_v24, %v665_v23  ;;  %v451_v0 = vld [vmem:[%s3522_s29 + $0x5b0] sm:$0xff]  ;;  %v490_v7 = vld [vmem:[%s3522_s29 + $0x6e8] sm:$0xff] }
  0x54   : > { %3217 = vmatpush3.bf16.msra.mxu0 %v3216_v37  ;;  %3187 = vmatprep.subr.bf16.mxu1 %v3186_v38  ;;  %v3232_v37 = vpack.c.bf16 %v698_v27, %v697_v25  ;;  %v3202_v38 = vpack.c.bf16 %v684_v29, %v683_v28  ;;  %v487_v8 = vld [vmem:[%s3522_s29 + $0x6d0] sm:$0xff]  ;;  %v489_v9 = vld [vmem:[%s3522_s29 + $0x6e0] sm:$0xff]  ;;  %v508_v11 = vld [vmem:[%s3522_s29 + $0x778] sm:$0xff] }
  0x55   : > { %1070 = vmatmul.mubr.f32.gmra.mrb[22].mxu1 %v325_v46  ;;  %3219 = vmatprep.subr.bf16.mxu0 %v3218_v42  ;;  %v3234_v42 = vpack.c.bf16 %v716_v32, %v715_v31  ;;  %v397_v46 = vld [vmem:[%s3522_s29 + $0x400] sm:$0xff]  ;;  %v507_v13 = vld [vmem:[%s3522_s29 + $0x770] sm:$0xff]  ;;  %v526_v15 = vld [vmem:[%s3522_s29 + $0x808] sm:$0xff] }
  0x56   : > { %1215 = vmatmul.mubr.f32.gmra.mrb[22].mxu0 %v327_v49  ;;  %1074 = vmatprep.mubr.f32.mxu1 %v344_v50  ;;  %v399_v49 = vld [vmem:[%s3522_s29 + $0x410] sm:$0xff]  ;;  %v416_v50 = vld [vmem:[%s3522_s29 + $0x498] sm:$0xff]  ;;  %v505_v12 = vld [vmem:[%s3522_s29 + $0x760] sm:$0xff] }
  0x57   : > { %1219 = vmatprep.mubr.f32.mxu0 %v346_v51  ;;  %3189 = vmatpush3.bf16.msra.mxu1 %v3188_v52  ;;  %v3204_v51 = vpack.c.bf16 %v668_v40, %v667_v39  ;;  %v418_v52 = vld [vmem:[%s3522_s29 + $0x4a8] sm:$0xff]  ;;  %v523_v16 = vld [vmem:[%s3522_s29 + $0x7f0] sm:$0xff]  ;;  %v717_v23 = vld [vmem:[%s4900_s1 + $0x500] sm:$0xff] }
  0x58   : > { %3221 = vmatpush3.bf16.msra.mxu0 %v3220_v53  ;;  %3191 = vmatprep.subr.bf16.mxu1 %v3190_v54  ;;  %v3236_v53 = vpack.c.bf16 %v700_v43, %v699_v41  ;;  %v3238_v54 = vpack.c.bf16 %v734_v45, %v733_v44  ;;  %v718_v24 = vld [vmem:[%s4900_s1 + $0x508] sm:$0xff]  ;;  %v735_v28 = vld [vmem:[%s4900_s1 + $0x590] sm:$0xff]  ;;  %v736_v29 = vld [vmem:[%s4900_s1 + $0x598] sm:$0xff] }
  0x59   : > { %1075 = vmatmul.mubr.f32.gmra.mrb[24].mxu1 %v343_v62  ;;  %3223 = vmatprep.subr.bf16.mxu0 %v3222_v58  ;;  %v434_v58 = vld [vmem:[%s3522_s29 + $0x528] sm:$0xff]  ;;  %v452_v62 = vld [vmem:[%s3522_s29 + $0x5b8] sm:$0xff]  ;;  %v3240_v31 = vpack.c.bf16 %v718_v24, %v717_v23  ;;  %v767_v32 = vld [vmem:[%s4900_s1 + $0x690] sm:$0xff] }
  0x5a   : > { %1220 = vmatmul.mubr.f32.gmra.mrb[24].mxu0 %v345_v1  ;;  %1079 = vmatprep.mubr.f32.mxu1 %v362_v2  ;;  %v453_v1 = vld [vmem:[%s3522_s29 + $0x5c0] sm:$0xff]  ;;  %v470_v2 = vld [vmem:[%s3522_s29 + $0x648] sm:$0xff]  ;;  %v719_v39 = vld [vmem:[%s4900_s1 + $0x510] sm:$0xff] }
  0x5b   : > { %1224 = vmatprep.mubr.f32.mxu0 %v364_v3  ;;  %3193 = vmatpush3.bf16.msra.mxu1 %v3192_v4  ;;  %v472_v3 = vld [vmem:[%s3522_s29 + $0x658] sm:$0xff]  ;;  %v469_v4 = vld [vmem:[%s3522_s29 + $0x640] sm:$0xff]  ;;  %v278_v25 = vld [vmem:[%s3522_s29 + $0x48] sm:$0xff] }
  0x5c   : > { %3225 = vmatpush3.bf16.msra.mxu0 %v3224_v5  ;;  %3195 = vmatprep.subr.bf16.mxu1 %v3194_v6  ;;  %v471_v5 = vld [vmem:[%s3522_s29 + $0x650] sm:$0xff]  ;;  %v488_v6 = vld [vmem:[%s3522_s29 + $0x6d8] sm:$0xff]  ;;  %v750_v27 = vld [vmem:[%s4900_s1 + $0x608] sm:$0xff] }
  0x5d   : > { %1080 = vmatmul.mubr.f32.gmra.mrb[26].mxu1 %v361_v14  ;;  %3227 = vmatprep.subr.bf16.mxu0 %v3226_v10  ;;  %v506_v10 = vld [vmem:[%s3522_s29 + $0x768] sm:$0xff]  ;;  %v524_v14 = vld [vmem:[%s3522_s29 + $0x7f8] sm:$0xff]  ;;  %v751_v41 = vld [vmem:[%s4900_s1 + $0x610] sm:$0xff] }
  0x5e   : > { %1225 = vmatmul.mubr.f32.gmra.mrb[26].mxu0 %v363_v17  ;;  %1084 = vmatprep.mubr.f32.mxu1 %v380_v18  ;;  %v525_v17 = vld [vmem:[%s3522_s29 + $0x800] sm:$0xff]  ;;  %v542_v18 = vld [vmem:[%s3522_s29 + $0x888] sm:$0xff]  ;;  %v720_v40 = vld [vmem:[%s4900_s1 + $0x518] sm:$0xff] }
  0x5f   : > { %1229 = vmatprep.mubr.f32.mxu0 %v382_v19  ;;  %3197 = vmatpush3.bf16.msra.mxu1 %v3196_v20  ;;  %v544_v19 = vld [vmem:[%s3522_s29 + $0x898] sm:$0xff]  ;;  %v541_v20 = vld [vmem:[%s3522_s29 + $0x880] sm:$0xff]  ;;  %v738_v45 = vld [vmem:[%s4900_s1 + $0x5a8] sm:$0xff] }
  0x60   : > { %3229 = vmatpush3.bf16.msra.mxu0 %v3228_v21  ;;  %3199 = vmatprep.subr.bf16.mxu1 %v3198_v22  ;;  %v543_v21 = vld [vmem:[%s3522_s29 + $0x890] sm:$0xff]  ;;  %v276_v22 = vld [vmem:[%s3522_s29 + $0x38] sm:$0xff]  ;;  %v737_v44 = vld [vmem:[%s4900_s1 + $0x5a0] sm:$0xff] }
  0x61   : > { %1085 = vmatmul.mubr.f32.gmra.mrb[28].mxu1 %v379_v30  ;;  %3231 = vmatprep.subr.bf16.mxu0 %v3230_v26  ;;  %v749_v26 = vld [vmem:[%s4900_s1 + $0x600] sm:$0xff]  ;;  %v275_v30 = vld [vmem:[%s3522_s29 + $0x30] sm:$0xff]  ;;  %v752_v43 = vld [vmem:[%s4900_s1 + $0x618] sm:$0xff] }
  0x62   : > { %1230 = vmatmul.mubr.f32.gmra.mrb[28].mxu0 %v381_v33  ;;  %1089 = vmatprep.mubr.f32.mxu1 %v398_v34  ;;  %v768_v33 = vld [vmem:[%s4900_s1 + $0x698] sm:$0xff]  ;;  %v277_v34 = vld [vmem:[%s3522_s29 + $0x40] sm:$0xff]  ;;  %v770_v48 = vld [vmem:[%s4900_s1 + $0x6a8] sm:$0xff] }
  0x63   : > { %1234 = vmatprep.mubr.f32.mxu0 %v400_v35  ;;  %3201 = vmatpush3.bf16.msra.mxu1 %v3200_v36  ;;  %v294_v35 = vld [vmem:[%s3522_s29 + $0xc8] sm:$0xff]  ;;  %v3272_v36 = vpack.c.bf16 %v750_v27, %v749_v26  ;;  %v769_v47 = vld [vmem:[%s4900_s1 + $0x6a0] sm:$0xff] }
  0x64   : > { %3233 = vmatpush3.bf16.msra.mxu0 %v3232_v37  ;;  %3203 = vmatprep.subr.bf16.mxu1 %v3202_v38  ;;  %v296_v37 = vld [vmem:[%s3522_s29 + $0xd8] sm:$0xff]  ;;  %v3242_v38 = vpack.c.bf16 %v736_v29, %v735_v28  ;;  %v725_v23 = vld [vmem:[%s4900_s1 + $0x540] sm:$0xff]  ;;  %v726_v24 = vld [vmem:[%s4900_s1 + $0x548] sm:$0xff] }
  0x65   : > { %1090 = vmatmul.mubr.f32.gmra.mrb[30].mxu1 %v397_v46  ;;  %3235 = vmatprep.subr.bf16.mxu0 %v3234_v42  ;;  %v3274_v42 = vpack.c.bf16 %v768_v33, %v767_v32  ;;  %v293_v46 = vld [vmem:[%s3522_s29 + $0xc0] sm:$0xff]  ;;  %v758_v27 = vld [vmem:[%s4900_s1 + $0x648] sm:$0xff]  ;;  %v743_v28 = vld [vmem:[%s4900_s1 + $0x5d0] sm:$0xff] }
  0x66   : > { %1235 = vmatmul.mubr.f32.gmra.mrb[30].mxu0 %v399_v49  ;;  %1094 = vmatprep.mubr.f32.mxu1 %v416_v50  ;;  %v295_v49 = vld [vmem:[%s3522_s29 + $0xd0] sm:$0xff]  ;;  %v312_v50 = vld [vmem:[%s3522_s29 + $0x158] sm:$0xff]  ;;  %v349_v33 = vld [vmem:[%s3522_s29 + $0x280] sm:$0xff] }
  0x67   : > { %1239 = vmatprep.mubr.f32.mxu0 %v418_v52  ;;  %3205 = vmatpush3.bf16.msra.mxu1 %v3204_v51  ;;  %v314_v51 = vld [vmem:[%s3522_s29 + $0x168] sm:$0xff]  ;;  %v3244_v52 = vpack.c.bf16 %v720_v40, %v719_v39  ;;  %v744_v29 = vld [vmem:[%s4900_s1 + $0x5d8] sm:$0xff]  ;;  %v727_v39 = vld [vmem:[%s4900_s1 + $0x550] sm:$0xff] }
  0x68   : > { %3237 = vmatpush3.bf16.msra.mxu0 %v3236_v53  ;;  %3239 = vmatprep.subr.bf16.mxu1 %v3238_v54  ;;  %v3276_v53 = vpack.c.bf16 %v752_v43, %v751_v41  ;;  %v3246_v54 = vpack.c.bf16 %v738_v45, %v737_v44  ;;  %v776_v32 = vld [vmem:[%s4900_s1 + $0x6d8] sm:$0xff]  ;;  %v759_v41 = vld [vmem:[%s4900_s1 + $0x650] sm:$0xff]  ;;  %v745_v44 = vld [vmem:[%s4900_s1 + $0x5e0] sm:$0xff] }
  0x69   : > { %1095 = vmatmul.mubr.f32.gmra.mrb[32].mxu1 %v415_v56  ;;  %3271 = vmatprep.subr.bf16.mxu0 %v3270_v55  ;;  %v721_v55 = vld [vmem:[%s4900_s1 + $0x520] sm:$0xff]  ;;  %v722_v56 = vld [vmem:[%s4900_s1 + $0x528] sm:$0xff]  ;;  %v728_v40 = vld [vmem:[%s4900_s1 + $0x558] sm:$0xff] }
  0x6a   : > { %1240 = vmatmul.mubr.f32.gmra.mrb[32].mxu0 %v417_v57  ;;  %1099 = vmatprep.mubr.f32.mxu1 %v434_v58  ;;  %v753_v57 = vld [vmem:[%s4900_s1 + $0x620] sm:$0xff]  ;;  %v3278_v58 = vpack.c.bf16 %v770_v48, %v769_v47  ;;  %v760_v43 = vld [vmem:[%s4900_s1 + $0x658] sm:$0xff]  ;;  %v746_v45 = vld [vmem:[%s4900_s1 + $0x5e8] sm:$0xff] }
  0x6b   : > { %1244 = vmatprep.mubr.f32.mxu0 %v436_v59  ;;  %v754_v59 = vld [vmem:[%s4900_s1 + $0x628] sm:$0xff]  ;;  %v777_v47 = vld [vmem:[%s4900_s1 + $0x6e0] sm:$0xff] }
  0x6c   : > { %v778_v48 = vld [vmem:[%s4900_s1 + $0x6e8] sm:$0xff] }
  0x6d   : > { %1100 = vmatmul.mubr.f32.gmra.mrb[34].mxu1 %v433_v60  ;;  %v739_v60 = vld [vmem:[%s4900_s1 + $0x5b0] sm:$0xff] }
  0x6e   : > { %1245 = vmatmul.mubr.f32.gmra.mrb[34].mxu0 %v435_v61  ;;  %1104 = vmatprep.mubr.f32.mxu1 %v452_v62  ;;  %v740_v61 = vld [vmem:[%s4900_s1 + $0x5b8] sm:$0xff]  ;;  %v311_v62 = vld [vmem:[%s3522_s29 + $0x150] sm:$0xff] }
  0x6f   : > { %1249 = vmatprep.mubr.f32.mxu0 %v454_v63  ;;  %v771_v63 = vld [vmem:[%s4900_s1 + $0x6b0] sm:$0xff] }
  0x71   : > { %1105 = vmatmul.mubr.f32.gmra.mrb[36].mxu1 %v451_v0  ;;  %v772_v0 = vld [vmem:[%s4900_s1 + $0x6b8] sm:$0xff] }
  0x72   : > { %1250 = vmatmul.mubr.f32.gmra.mrb[36].mxu0 %v453_v1  ;;  %1109 = vmatprep.mubr.f32.mxu1 %v470_v2  ;;  %v313_v1 = vld [vmem:[%s3522_s29 + $0x160] sm:$0xff]  ;;  %v330_v2 = vld [vmem:[%s3522_s29 + $0x1e8] sm:$0xff] }
  0x73   : > { %1254 = vmatprep.mubr.f32.mxu0 %v472_v3  ;;  %v332_v3 = vld [vmem:[%s3522_s29 + $0x1f8] sm:$0xff] }
  0x75   : > { %1110 = vmatmul.mubr.f32.gmra.mrb[38].mxu1 %v469_v4  ;;  %v3248_v4 = vpack.c.bf16 %v722_v56, %v721_v55  ;;  %v729_v55 = vld [vmem:[%s4900_s1 + $0x560] sm:$0xff]  ;;  %v730_v56 = vld [vmem:[%s4900_s1 + $0x568] sm:$0xff] }
  0x76   : > { %1255 = vmatmul.mubr.f32.gmra.mrb[38].mxu0 %v471_v5  ;;  %1114 = vmatprep.mubr.f32.mxu1 %v488_v6  ;;  %v3280_v5 = vpack.c.bf16 %v754_v59, %v753_v57  ;;  %v3250_v6 = vpack.c.bf16 %v740_v61, %v739_v60  ;;  %v761_v57 = vld [vmem:[%s4900_s1 + $0x660] sm:$0xff]  ;;  %v762_v59 = vld [vmem:[%s4900_s1 + $0x668] sm:$0xff]  ;;  %v747_v60 = vld [vmem:[%s4900_s1 + $0x5f0] sm:$0xff] }
  0x77   : > { %1259 = vmatprep.mubr.f32.mxu0 %v490_v7  ;;  %v723_v7 = vld [vmem:[%s4900_s1 + $0x530] sm:$0xff]  ;;  %v748_v61 = vld [vmem:[%s4900_s1 + $0x5f8] sm:$0xff] }
  0x79   : > { %1115 = vmatmul.mubr.f32.gmra.mrb[40].mxu1 %v487_v8  ;;  %v724_v8 = vld [vmem:[%s4900_s1 + $0x538] sm:$0xff] }
  0x7a   : > { %1260 = vmatmul.mubr.f32.gmra.mrb[40].mxu0 %v489_v9  ;;  %1119 = vmatprep.mubr.f32.mxu1 %v506_v10  ;;  %v755_v9 = vld [vmem:[%s4900_s1 + $0x630] sm:$0xff]  ;;  %v3282_v10 = vpack.c.bf16 %v772_v0, %v771_v63  ;;  %v780_v0 = vld [vmem:[%s4900_s1 + $0x6f8] sm:$0xff] }
  0x7b   : > { %1264 = vmatprep.mubr.f32.mxu0 %v508_v11  ;;  %v756_v11 = vld [vmem:[%s4900_s1 + $0x638] sm:$0xff]  ;;  %v779_v63 = vld [vmem:[%s4900_s1 + $0x6f0] sm:$0xff] }
  0x7d   : > { %1120 = vmatmul.mubr.f32.gmra.mrb[42].mxu1 %v505_v12  ;;  %v741_v12 = vld [vmem:[%s4900_s1 + $0x5c0] sm:$0xff] }
  0x7e   : > { %1265 = vmatmul.mubr.f32.gmra.mrb[42].mxu0 %v507_v13  ;;  %1124 = vmatprep.mubr.f32.mxu1 %v524_v14  ;;  %v742_v13 = vld [vmem:[%s4900_s1 + $0x5c8] sm:$0xff]  ;;  %v329_v14 = vld [vmem:[%s3522_s29 + $0x1e0] sm:$0xff] }
  0x7f   : > { %1269 = vmatprep.mubr.f32.mxu0 %v526_v15  ;;  %v773_v15 = vld [vmem:[%s4900_s1 + $0x6c0] sm:$0xff] }
  0x81   : > { %1125 = vmatmul.mubr.f32.gmra.mrb[44].mxu1 %v523_v16  ;;  %v774_v16 = vld [vmem:[%s4900_s1 + $0x6c8] sm:$0xff] }
  0x82   : > { %1270 = vmatmul.mubr.f32.gmra.mrb[44].mxu0 %v525_v17  ;;  %1129 = vmatprep.mubr.f32.mxu1 %v542_v18  ;;  %v331_v17 = vld [vmem:[%s3522_s29 + $0x1f0] sm:$0xff]  ;;  %v348_v18 = vld [vmem:[%s3522_s29 + $0x278] sm:$0xff]  ;;  %v3286_v26 = vpack.c.bf16 %v774_v16, %v773_v15  ;;  %v829_v15 = vld [vmem:[%s4900_s1 + $0x880] sm:$0xff] }
  0x83   : > { %1274 = vmatprep.mubr.f32.mxu0 %v544_v19  ;;  %v350_v19 = vld [vmem:[%s3522_s29 + $0x288] sm:$0xff] }
  0x84   : > { %v830_v16 = vld [vmem:[%s4900_s1 + $0x888] sm:$0xff] }
  0x85   : > { %1130 = vmatmul.mubr.f32.gmra.mrb[46].mxu1 %v541_v20  ;;  %v3252_v20 = vpack.c.bf16 %v724_v8, %v723_v7  ;;  %v731_v7 = vld [vmem:[%s4900_s1 + $0x570] sm:$0xff]  ;;  %v732_v8 = vld [vmem:[%s4900_s1 + $0x578] sm:$0xff] }
  0x86   : > { %1275 = vmatmul.mubr.f32.gmra.mrb[46].mxu0 %v543_v21  ;;  %1344 = vmatprep.mubr.f32.mxu1 %v276_v22  ;;  %v3284_v21 = vpack.c.bf16 %v756_v11, %v755_v9  ;;  %v3254_v22 = vpack.c.bf16 %v742_v13, %v741_v12  ;;  %v763_v9 = vld [vmem:[%s4900_s1 + $0x670] sm:$0xff]  ;;  %v764_v11 = vld [vmem:[%s4900_s1 + $0x678] sm:$0xff]  ;;  %v797_v12 = vld [vmem:[%s4900_s1 + $0x780] sm:$0xff] }
  0x87   : > { %1489 = vmatprep.mubr.f32.mxu0 %v278_v25  ;;  %v757_v25 = vld [vmem:[%s4900_s1 + $0x640] sm:$0xff]  ;;  %v798_v13 = vld [vmem:[%s4900_s1 + $0x788] sm:$0xff] }
  0x89   : > { %1345 = vmatmul.mubr.f32.vlgmr.msra.gmra.mrb[48].mxu1 %v275_v30  ;;  %v347_v30 = vld [vmem:[%s3522_s29 + $0x270] sm:$0xff] }
  0x8a   : > { %3241 = vmatpush3.bf16.msra.mxu1 %v3240_v31  ;;  %1490 = vmatmul.mubr.f32.vlgmr.msra.gmra.mrb[48].mxu0 %v277_v34  ;;  %v775_v31 = vld [vmem:[%s4900_s1 + $0x6d0] sm:$0xff]  ;;  %v366_v34 = vld [vmem:[%s3522_s29 + $0x308] sm:$0xff] }
  0x8b   : > { %1349 = vmatprep.mubr.f32.mxu1 %v294_v35  ;;  %3273 = vmatpush3.bf16.msra.mxu0 %v3272_v36  ;;  %v368_v35 = vld [vmem:[%s3522_s29 + $0x318] sm:$0xff]  ;;  %v3256_v36 = vpack.c.bf16 %v726_v24, %v725_v23  ;;  %v3334_v23 = vpack.c.bf16 %v830_v16, %v829_v15  ;;  %v419_v24 = vld [vmem:[%s3522_s29 + $0x4b0] sm:$0xff]  ;;  %v833_v15 = vld [vmem:[%s4900_s1 + $0x8a0] sm:$0xff] }
  0x8c   : > { %1494 = vmatprep.mubr.f32.mxu0 %v296_v37  ;;  %3243 = vmatprep.subr.bf16.mxu1 %v3242_v38  ;;  %v3288_v37 = vpack.c.bf16 %v758_v27, %v757_v25  ;;  %v3258_v38 = vpack.c.bf16 %v744_v29, %v743_v28  ;;  %v421_v25 = vld [vmem:[%s3522_s29 + $0x4c0] sm:$0xff]  ;;  %v440_v27 = vld [vmem:[%s3522_s29 + $0x558] sm:$0xff]  ;;  %v439_v29 = vld [vmem:[%s3522_s29 + $0x550] sm:$0xff] }
  0x8d   : > { %1350 = vmatmul.mubr.f32.gmra.mrb[50].mxu1 %v293_v46  ;;  %3275 = vmatprep.subr.bf16.mxu0 %v3274_v42  ;;  %v3290_v42 = vpack.c.bf16 %v776_v32, %v775_v31  ;;  %v365_v46 = vld [vmem:[%s3522_s29 + $0x300] sm:$0xff]  ;;  %v458_v31 = vld [vmem:[%s3522_s29 + $0x5e8] sm:$0xff]  ;;  %v455_v32 = vld [vmem:[%s3522_s29 + $0x5d0] sm:$0xff] }
  0x8e   : > { %1495 = vmatmul.mubr.f32.gmra.mrb[50].mxu0 %v295_v49  ;;  %1354 = vmatprep.mubr.f32.mxu1 %v312_v50  ;;  %v367_v49 = vld [vmem:[%s3522_s29 + $0x310] sm:$0xff]  ;;  %v384_v50 = vld [vmem:[%s3522_s29 + $0x398] sm:$0xff]  ;;  %v437_v28 = vld [vmem:[%s3522_s29 + $0x540] sm:$0xff] }
  0x8f   : > { %1499 = vmatprep.mubr.f32.mxu0 %v314_v51  ;;  %3245 = vmatpush3.bf16.msra.mxu1 %v3244_v52  ;;  %v386_v51 = vld [vmem:[%s3522_s29 + $0x3a8] sm:$0xff]  ;;  %v3260_v52 = vpack.c.bf16 %v728_v40, %v727_v39  ;;  %v491_v40 = vld [vmem:[%s3522_s29 + $0x6f0] sm:$0xff] }
  0x90   : > { %3277 = vmatpush3.bf16.msra.mxu0 %v3276_v53  ;;  %3247 = vmatprep.subr.bf16.mxu1 %v3246_v54  ;;  %v3292_v53 = vpack.c.bf16 %v760_v43, %v759_v41  ;;  %v3262_v54 = vpack.c.bf16 %v746_v45, %v745_v44  ;;  %v494_v39 = vld [vmem:[%s3522_s29 + $0x708] sm:$0xff]  ;;  %v493_v41 = vld [vmem:[%s3522_s29 + $0x700] sm:$0xff]  ;;  %v512_v43 = vld [vmem:[%s3522_s29 + $0x798] sm:$0xff] }
  0x91   : > { %1355 = vmatmul.mubr.f32.gmra.mrb[52].mxu1 %v311_v62  ;;  %3279 = vmatprep.subr.bf16.mxu0 %v3278_v58  ;;  %v3294_v58 = vpack.c.bf16 %v778_v48, %v777_v47  ;;  %v383_v62 = vld [vmem:[%s3522_s29 + $0x390] sm:$0xff]  ;;  %v509_v44 = vld [vmem:[%s3522_s29 + $0x780] sm:$0xff]  ;;  %v530_v47 = vld [vmem:[%s3522_s29 + $0x828] sm:$0xff] }
  0x92   : > { %1500 = vmatmul.mubr.f32.gmra.mrb[52].mxu0 %v313_v1  ;;  %1359 = vmatprep.mubr.f32.mxu1 %v330_v2  ;;  %v385_v1 = vld [vmem:[%s3522_s29 + $0x3a0] sm:$0xff]  ;;  %v402_v2 = vld [vmem:[%s3522_s29 + $0x428] sm:$0xff]  ;;  %v511_v45 = vld [vmem:[%s3522_s29 + $0x790] sm:$0xff] }
  0x93   : > { %1504 = vmatprep.mubr.f32.mxu0 %v332_v3  ;;  %3249 = vmatpush3.bf16.msra.mxu1 %v3248_v4  ;;  %v404_v3 = vld [vmem:[%s3522_s29 + $0x438] sm:$0xff]  ;;  %v3264_v4 = vpack.c.bf16 %v730_v56, %v729_v55  ;;  %v527_v48 = vld [vmem:[%s3522_s29 + $0x810] sm:$0xff]  ;;  %v781_v55 = vld [vmem:[%s4900_s1 + $0x700] sm:$0xff] }
  0x94   : > { %3281 = vmatpush3.bf16.msra.mxu0 %v3280_v5  ;;  %3251 = vmatprep.subr.bf16.mxu1 %v3250_v6  ;;  %v3296_v5 = vpack.c.bf16 %v762_v59, %v761_v57  ;;  %v3266_v6 = vpack.c.bf16 %v748_v61, %v747_v60  ;;  %v782_v56 = vld [vmem:[%s4900_s1 + $0x708] sm:$0xff]  ;;  %v799_v60 = vld [vmem:[%s4900_s1 + $0x790] sm:$0xff]  ;;  %v800_v61 = vld [vmem:[%s4900_s1 + $0x798] sm:$0xff] }
  0x95   : > { %1360 = vmatmul.mubr.f32.gmra.mrb[54].mxu1 %v329_v14  ;;  %3283 = vmatprep.subr.bf16.mxu0 %v3282_v10  ;;  %v3298_v10 = vpack.c.bf16 %v780_v0, %v779_v63  ;;  %v401_v14 = vld [vmem:[%s3522_s29 + $0x420] sm:$0xff]  ;;  %v282_v57 = vld [vmem:[%s3522_s29 + $0x68] sm:$0xff]  ;;  %v3304_v63 = vpack.c.bf16 %v782_v56, %v781_v55  ;;  %v831_v0 = vld [vmem:[%s4900_s1 + $0x890] sm:$0xff] }
  0x96   : > { %1505 = vmatmul.mubr.f32.gmra.mrb[54].mxu0 %v331_v17  ;;  %1364 = vmatprep.mubr.f32.mxu1 %v348_v18  ;;  %v403_v17 = vld [vmem:[%s3522_s29 + $0x430] sm:$0xff]  ;;  %v420_v18 = vld [vmem:[%s3522_s29 + $0x4b8] sm:$0xff]  ;;  %v814_v59 = vld [vmem:[%s4900_s1 + $0x808] sm:$0xff] }
  0x97   : > { %1509 = vmatprep.mubr.f32.mxu0 %v350_v19  ;;  %3253 = vmatpush3.bf16.msra.mxu1 %v3252_v20  ;;  %v3268_v19 = vpack.c.bf16 %v732_v8, %v731_v7  ;;  %v422_v20 = vld [vmem:[%s3522_s29 + $0x4c8] sm:$0xff]  ;;  %v783_v7 = vld [vmem:[%s4900_s1 + $0x710] sm:$0xff]  ;;  %v784_v8 = vld [vmem:[%s4900_s1 + $0x718] sm:$0xff] }
  0x98   : > { %3285 = vmatpush3.bf16.msra.mxu0 %v3284_v21  ;;  %3255 = vmatprep.subr.bf16.mxu1 %v3254_v22  ;;  %v3300_v21 = vpack.c.bf16 %v764_v11, %v763_v9  ;;  %v3302_v22 = vpack.c.bf16 %v798_v13, %v797_v12  ;;  %v815_v9 = vld [vmem:[%s4900_s1 + $0x810] sm:$0xff]  ;;  %v816_v11 = vld [vmem:[%s4900_s1 + $0x818] sm:$0xff]  ;;  %v801_v12 = vld [vmem:[%s4900_s1 + $0x7a0] sm:$0xff] }
  0x99   : > { %1365 = vmatmul.mubr.f32.gmra.mrb[56].mxu1 %v347_v30  ;;  %3287 = vmatprep.subr.bf16.mxu0 %v3286_v26  ;;  %v438_v26 = vld [vmem:[%s3522_s29 + $0x548] sm:$0xff]  ;;  %v456_v30 = vld [vmem:[%s3522_s29 + $0x5d8] sm:$0xff]  ;;  %v789_v55 = vld [vmem:[%s4900_s1 + $0x740] sm:$0xff] }
  0x9a   : > { %1510 = vmatmul.mubr.f32.gmra.mrb[56].mxu0 %v349_v33  ;;  %1369 = vmatprep.mubr.f32.mxu1 %v366_v34  ;;  %v457_v33 = vld [vmem:[%s3522_s29 + $0x5e0] sm:$0xff]  ;;  %v474_v34 = vld [vmem:[%s3522_s29 + $0x668] sm:$0xff] }
  0x9b   : > { %1514 = vmatprep.mubr.f32.mxu0 %v368_v35  ;;  %3257 = vmatpush3.bf16.msra.mxu1 %v3256_v36  ;;  %v476_v35 = vld [vmem:[%s3522_s29 + $0x678] sm:$0xff]  ;;  %v473_v36 = vld [vmem:[%s3522_s29 + $0x660] sm:$0xff]  ;;  %v802_v13 = vld [vmem:[%s4900_s1 + $0x7a8] sm:$0xff] }
  0x9c   : > { %3289 = vmatpush3.bf16.msra.mxu0 %v3288_v37  ;;  %3259 = vmatprep.subr.bf16.mxu1 %v3258_v38  ;;  %v475_v37 = vld [vmem:[%s3522_s29 + $0x670] sm:$0xff]  ;;  %v492_v38 = vld [vmem:[%s3522_s29 + $0x6f8] sm:$0xff]  ;;  %v834_v16 = vld [vmem:[%s4900_s1 + $0x8a8] sm:$0xff] }
  0x9d   : > { %1370 = vmatmul.mubr.f32.gmra.mrb[58].mxu1 %v365_v46  ;;  %3291 = vmatprep.subr.bf16.mxu0 %v3290_v42  ;;  %v510_v42 = vld [vmem:[%s3522_s29 + $0x788] sm:$0xff]  ;;  %v528_v46 = vld [vmem:[%s3522_s29 + $0x818] sm:$0xff] }
  0x9e   : > { %1515 = vmatmul.mubr.f32.gmra.mrb[58].mxu0 %v367_v49  ;;  %1374 = vmatprep.mubr.f32.mxu1 %v384_v50  ;;  %v529_v49 = vld [vmem:[%s3522_s29 + $0x820] sm:$0xff]  ;;  %v546_v50 = vld [vmem:[%s3522_s29 + $0x8a8] sm:$0xff] }
  0x9f   : > { %1519 = vmatprep.mubr.f32.mxu0 %v386_v51  ;;  %3261 = vmatpush3.bf16.msra.mxu1 %v3260_v52  ;;  %v548_v51 = vld [vmem:[%s3522_s29 + $0x8b8] sm:$0xff]  ;;  %v545_v52 = vld [vmem:[%s3522_s29 + $0x8a0] sm:$0xff]  ;;  %v790_v56 = vld [vmem:[%s4900_s1 + $0x748] sm:$0xff] }
  0xa0   : > { %3293 = vmatpush3.bf16.msra.mxu0 %v3292_v53  ;;  %3263 = vmatprep.subr.bf16.mxu1 %v3262_v54  ;;  %v547_v53 = vld [vmem:[%s3522_s29 + $0x8b0] sm:$0xff]  ;;  %v280_v54 = vld [vmem:[%s3522_s29 + $0x58] sm:$0xff] }
  0xa1   : > { %1375 = vmatmul.mubr.f32.gmra.mrb[60].mxu1 %v383_v62  ;;  %3295 = vmatprep.subr.bf16.mxu0 %v3294_v58  ;;  %v813_v58 = vld [vmem:[%s4900_s1 + $0x800] sm:$0xff]  ;;  %v279_v62 = vld [vmem:[%s3522_s29 + $0x50] sm:$0xff] }
  0xa2   : > { %1520 = vmatmul.mubr.f32.gmra.mrb[60].mxu0 %v385_v1  ;;  %1379 = vmatprep.mubr.f32.mxu1 %v402_v2  ;;  %v832_v1 = vld [vmem:[%s4900_s1 + $0x898] sm:$0xff]  ;;  %v281_v2 = vld [vmem:[%s3522_s29 + $0x60] sm:$0xff] }
  0xa3   : > { %1524 = vmatprep.mubr.f32.mxu0 %v404_v3  ;;  %3265 = vmatpush3.bf16.msra.mxu1 %v3264_v4  ;;  %v298_v3 = vld [vmem:[%s3522_s29 + $0xe8] sm:$0xff]  ;;  %v3336_v4 = vpack.c.bf16 %v814_v59, %v813_v58 }
  0xa4   : > { %3297 = vmatpush3.bf16.msra.mxu0 %v3296_v5  ;;  %3267 = vmatprep.subr.bf16.mxu1 %v3266_v6  ;;  %v300_v5 = vld [vmem:[%s3522_s29 + $0xf8] sm:$0xff]  ;;  %v3306_v6 = vpack.c.bf16 %v800_v61, %v799_v60  ;;  %v822_v59 = vld [vmem:[%s4900_s1 + $0x848] sm:$0xff]  ;;  %v807_v60 = vld [vmem:[%s4900_s1 + $0x7d0] sm:$0xff] }
  0xa5   : > { %1380 = vmatmul.mubr.f32.gmra.mrb[62].mxu1 %v401_v14  ;;  %3299 = vmatprep.subr.bf16.mxu0 %v3298_v10  ;;  %v3338_v10 = vpack.c.bf16 %v832_v1, %v831_v0  ;;  %v297_v14 = vld [vmem:[%s3522_s29 + $0xe0] sm:$0xff]  ;;  %v808_v61 = vld [vmem:[%s4900_s1 + $0x7d8] sm:$0xff] }
  0xa6   : > { %1525 = vmatmul.mubr.f32.gmra.mrb[62].mxu0 %v403_v17  ;;  %1384 = vmatprep.mubr.f32.mxu1 %v420_v18  ;;  %v299_v17 = vld [vmem:[%s3522_s29 + $0xf0] sm:$0xff]  ;;  %v316_v18 = vld [vmem:[%s3522_s29 + $0x178] sm:$0xff]  ;;  %v353_v1 = vld [vmem:[%s3522_s29 + $0x2a0] sm:$0xff] }
  0xa7   : > { %1529 = vmatprep.mubr.f32.mxu0 %v422_v20  ;;  %3269 = vmatpush3.bf16.msra.mxu1 %v3268_v19  ;;  %v318_v19 = vld [vmem:[%s3522_s29 + $0x188] sm:$0xff]  ;;  %v3308_v20 = vpack.c.bf16 %v784_v8, %v783_v7  ;;  %v840_v0 = vld [vmem:[%s4900_s1 + $0x8d8] sm:$0xff]  ;;  %v791_v7 = vld [vmem:[%s4900_s1 + $0x750] sm:$0xff] }
  0xa8   : > { %3301 = vmatpush3.bf16.msra.mxu0 %v3300_v21  ;;  %3303 = vmatprep.subr.bf16.mxu1 %v3302_v22  ;;  %v3340_v21 = vpack.c.bf16 %v816_v11, %v815_v9  ;;  %v3310_v22 = vpack.c.bf16 %v802_v13, %v801_v12  ;;  %v792_v8 = vld [vmem:[%s4900_s1 + $0x758] sm:$0xff]  ;;  %v823_v9 = vld [vmem:[%s4900_s1 + $0x850] sm:$0xff]  ;;  %v809_v12 = vld [vmem:[%s4900_s1 + $0x7e0] sm:$0xff] }
  0xa9   : > { %1385 = vmatmul.mubr.f32.gmra.mrb[64].mxu1 %v419_v24  ;;  %3335 = vmatprep.subr.bf16.mxu0 %v3334_v23  ;;  %v785_v23 = vld [vmem:[%s4900_s1 + $0x720] sm:$0xff]  ;;  %v786_v24 = vld [vmem:[%s4900_s1 + $0x728] sm:$0xff]  ;;  %v824_v11 = vld [vmem:[%s4900_s1 + $0x858] sm:$0xff] }
  0xaa   : > { %1530 = vmatmul.mubr.f32.gmra.mrb[64].mxu0 %v421_v25  ;;  %1389 = vmatprep.mubr.f32.mxu1 %v438_v26  ;;  %v817_v25 = vld [vmem:[%s4900_s1 + $0x820] sm:$0xff]  ;;  %v3342_v26 = vpack.c.bf16 %v834_v16, %v833_v15  ;;  %v810_v13 = vld [vmem:[%s4900_s1 + $0x7e8] sm:$0xff] }
  0xab   : > { %1534 = vmatprep.mubr.f32.mxu0 %v440_v27  ;;  %v818_v27 = vld [vmem:[%s4900_s1 + $0x828] sm:$0xff]  ;;  %v841_v15 = vld [vmem:[%s4900_s1 + $0x8e0] sm:$0xff] }
  0xac   : > { %v842_v16 = vld [vmem:[%s4900_s1 + $0x8e8] sm:$0xff] }
  0xad   : > { %1390 = vmatmul.mubr.f32.gmra.mrb[66].mxu1 %v437_v28  ;;  %v803_v28 = vld [vmem:[%s4900_s1 + $0x7b0] sm:$0xff] }
  0xae   : > { %1535 = vmatmul.mubr.f32.gmra.mrb[66].mxu0 %v439_v29  ;;  %1394 = vmatprep.mubr.f32.mxu1 %v456_v30  ;;  %v804_v29 = vld [vmem:[%s4900_s1 + $0x7b8] sm:$0xff]  ;;  %v315_v30 = vld [vmem:[%s3522_s29 + $0x170] sm:$0xff] }
  0xaf   : > { %1539 = vmatprep.mubr.f32.mxu0 %v458_v31  ;;  %v835_v31 = vld [vmem:[%s4900_s1 + $0x8b0] sm:$0xff] }
  0xb1   : > { %1395 = vmatmul.mubr.f32.gmra.mrb[68].mxu1 %v455_v32  ;;  %v836_v32 = vld [vmem:[%s4900_s1 + $0x8b8] sm:$0xff] }
  0xb2   : > { %1540 = vmatmul.mubr.f32.gmra.mrb[68].mxu0 %v457_v33  ;;  %1399 = vmatprep.mubr.f32.mxu1 %v474_v34  ;;  %v317_v33 = vld [vmem:[%s3522_s29 + $0x180] sm:$0xff]  ;;  %v334_v34 = vld [vmem:[%s3522_s29 + $0x208] sm:$0xff] }
  0xb3   : > { %1544 = vmatprep.mubr.f32.mxu0 %v476_v35  ;;  %v336_v35 = vld [vmem:[%s3522_s29 + $0x218] sm:$0xff] }
  0xb5   : > { %1400 = vmatmul.mubr.f32.gmra.mrb[70].mxu1 %v473_v36  ;;  %v3312_v36 = vpack.c.bf16 %v786_v24, %v785_v23  ;;  %v793_v23 = vld [vmem:[%s4900_s1 + $0x760] sm:$0xff]  ;;  %v794_v24 = vld [vmem:[%s4900_s1 + $0x768] sm:$0xff] }
  0xb6   : > { %1545 = vmatmul.mubr.f32.gmra.mrb[70].mxu0 %v475_v37  ;;  %1404 = vmatprep.mubr.f32.mxu1 %v492_v38  ;;  %v3344_v37 = vpack.c.bf16 %v818_v27, %v817_v25  ;;  %v3314_v38 = vpack.c.bf16 %v804_v29, %v803_v28  ;;  %v825_v25 = vld [vmem:[%s4900_s1 + $0x860] sm:$0xff]  ;;  %v826_v27 = vld [vmem:[%s4900_s1 + $0x868] sm:$0xff]  ;;  %v811_v28 = vld [vmem:[%s4900_s1 + $0x7f0] sm:$0xff] }
  0xb7   : > { %1549 = vmatprep.mubr.f32.mxu0 %v494_v39  ;;  %v787_v39 = vld [vmem:[%s4900_s1 + $0x730] sm:$0xff]  ;;  %v812_v29 = vld [vmem:[%s4900_s1 + $0x7f8] sm:$0xff] }
  0xb9   : > { %1405 = vmatmul.mubr.f32.gmra.mrb[72].mxu1 %v491_v40  ;;  %v788_v40 = vld [vmem:[%s4900_s1 + $0x738] sm:$0xff] }
  0xba   : > { %1550 = vmatmul.mubr.f32.gmra.mrb[72].mxu0 %v493_v41  ;;  %1409 = vmatprep.mubr.f32.mxu1 %v510_v42  ;;  %v819_v41 = vld [vmem:[%s4900_s1 + $0x830] sm:$0xff]  ;;  %v3346_v42 = vpack.c.bf16 %v836_v32, %v835_v31  ;;  %v844_v32 = vld [vmem:[%s4900_s1 + $0x8f8] sm:$0xff] }
  0xbb   : > { %1554 = vmatprep.mubr.f32.mxu0 %v512_v43  ;;  %v820_v43 = vld [vmem:[%s4900_s1 + $0x838] sm:$0xff]  ;;  %v843_v31 = vld [vmem:[%s4900_s1 + $0x8f0] sm:$0xff] }
  0xbd   : > { %1410 = vmatmul.mubr.f32.gmra.mrb[74].mxu1 %v509_v44  ;;  %v805_v44 = vld [vmem:[%s4900_s1 + $0x7c0] sm:$0xff] }
  0xbe   : > { %1555 = vmatmul.mubr.f32.gmra.mrb[74].mxu0 %v511_v45  ;;  %1414 = vmatprep.mubr.f32.mxu1 %v528_v46  ;;  %v806_v45 = vld [vmem:[%s4900_s1 + $0x7c8] sm:$0xff]  ;;  %v333_v46 = vld [vmem:[%s3522_s29 + $0x200] sm:$0xff] }
  0xbf   : > { %1559 = vmatprep.mubr.f32.mxu0 %v530_v47  ;;  %v837_v47 = vld [vmem:[%s4900_s1 + $0x8c0] sm:$0xff] }
  0xc1   : > { %1415 = vmatmul.mubr.f32.gmra.mrb[76].mxu1 %v527_v48  ;;  %v838_v48 = vld [vmem:[%s4900_s1 + $0x8c8] sm:$0xff] }
  0xc2   : > { %1560 = vmatmul.mubr.f32.gmra.mrb[76].mxu0 %v529_v49  ;;  %1419 = vmatprep.mubr.f32.mxu1 %v546_v50  ;;  %v335_v49 = vld [vmem:[%s3522_s29 + $0x210] sm:$0xff]  ;;  %v352_v50 = vld [vmem:[%s3522_s29 + $0x298] sm:$0xff]  ;;  %v3350_v58 = vpack.c.bf16 %v838_v48, %v837_v47  ;;  %v426_v48 = vld [vmem:[%s3522_s29 + $0x4e8] sm:$0xff] }
  0xc3   : > { %1564 = vmatprep.mubr.f32.mxu0 %v548_v51  ;;  %v354_v51 = vld [vmem:[%s3522_s29 + $0x2a8] sm:$0xff] }
  0xc5   : > { %1420 = vmatmul.mubr.f32.gmra.mrb[78].mxu1 %v545_v52  ;;  %v3316_v52 = vpack.c.bf16 %v788_v40, %v787_v39  ;;  %v795_v39 = vld [vmem:[%s4900_s1 + $0x770] sm:$0xff]  ;;  %v796_v40 = vld [vmem:[%s4900_s1 + $0x778] sm:$0xff] }
  0xc6   : > { %1565 = vmatmul.mubr.f32.gmra.mrb[78].mxu0 %v547_v53  ;;  %1634 = vmatprep.mubr.f32.mxu1 %v280_v54  ;;  %v3348_v53 = vpack.c.bf16 %v820_v43, %v819_v41  ;;  %v3318_v54 = vpack.c.bf16 %v806_v45, %v805_v44  ;;  %v3362_v41 = vpack.c.bf16 %v844_v32, %v843_v31  ;;  %v828_v43 = vld [vmem:[%s4900_s1 + $0x878] sm:$0xff]  ;;  %v405_v44 = vld [vmem:[%s3522_s29 + $0x440] sm:$0xff]  ;;  %v407_v45 = vld [vmem:[%s3522_s29 + $0x450] sm:$0xff] }
  0xc7   : > { %1779 = vmatprep.mubr.f32.mxu0 %v282_v57  ;;  %v821_v57 = vld [vmem:[%s4900_s1 + $0x840] sm:$0xff]  ;;  %v3332_v47 = vpack.c.bf16 %v796_v40, %v795_v39  ;;  %v286_v31 = vld [vmem:[%s3522_s29 + $0x88] sm:$0xff] }
  0xc9   : > { %1635 = vmatmul.mubr.f32.vlgmr.msra.gmra.mrb[80].mxu1 %v279_v62  ;;  %v351_v62 = vld [vmem:[%s3522_s29 + $0x290] sm:$0xff] }
  0xca   : > { %3305 = vmatpush3.bf16.msra.mxu1 %v3304_v63  ;;  %1780 = vmatmul.mubr.f32.vlgmr.msra.gmra.mrb[80].mxu0 %v281_v2  ;;  %v839_v63 = vld [vmem:[%s4900_s1 + $0x8d0] sm:$0xff]  ;;  %v370_v2 = vld [vmem:[%s3522_s29 + $0x328] sm:$0xff] }
  0xcb   : > { %1639 = vmatprep.mubr.f32.mxu1 %v298_v3  ;;  %3337 = vmatpush3.bf16.msra.mxu0 %v3336_v4  ;;  %v372_v3 = vld [vmem:[%s3522_s29 + $0x338] sm:$0xff]  ;;  %v3320_v4 = vpack.c.bf16 %v790_v56, %v789_v55  ;;  %v443_v55 = vld [vmem:[%s3522_s29 + $0x570] sm:$0xff] }
  0xcc   : > { %1784 = vmatprep.mubr.f32.mxu0 %v300_v5  ;;  %3307 = vmatprep.subr.bf16.mxu1 %v3306_v6  ;;  %v3352_v5 = vpack.c.bf16 %v822_v59, %v821_v57  ;;  %v3322_v6 = vpack.c.bf16 %v808_v61, %v807_v60  ;;  %v460_v56 = vld [vmem:[%s3522_s29 + $0x5f8] sm:$0xff]  ;;  %v462_v57 = vld [vmem:[%s3522_s29 + $0x608] sm:$0xff]  ;;  %v461_v59 = vld [vmem:[%s3522_s29 + $0x600] sm:$0xff] }
  0xcd   : > { %1640 = vmatmul.mubr.f32.gmra.mrb[82].mxu1 %v297_v14  ;;  %3339 = vmatprep.subr.bf16.mxu0 %v3338_v10  ;;  %v3354_v10 = vpack.c.bf16 %v840_v0, %v839_v63  ;;  %v369_v14 = vld [vmem:[%s3522_s29 + $0x320] sm:$0xff]  ;;  %v478_v60 = vld [vmem:[%s3522_s29 + $0x688] sm:$0xff]  ;;  %v480_v61 = vld [vmem:[%s3522_s29 + $0x698] sm:$0xff] }
  0xce   : > { %1785 = vmatmul.mubr.f32.gmra.mrb[82].mxu0 %v299_v17  ;;  %1644 = vmatprep.mubr.f32.mxu1 %v316_v18  ;;  %v371_v17 = vld [vmem:[%s3522_s29 + $0x330] sm:$0xff]  ;;  %v388_v18 = vld [vmem:[%s3522_s29 + $0x3b8] sm:$0xff] }
  0xcf   : > { %1789 = vmatprep.mubr.f32.mxu0 %v318_v19  ;;  %3309 = vmatpush3.bf16.msra.mxu1 %v3308_v20  ;;  %v390_v19 = vld [vmem:[%s3522_s29 + $0x3c8] sm:$0xff]  ;;  %v3324_v20 = vpack.c.bf16 %v792_v8, %v791_v7  ;;  %v479_v63 = vld [vmem:[%s3522_s29 + $0x690] sm:$0xff]  ;;  %v496_v0 = vld [vmem:[%s3522_s29 + $0x718] sm:$0xff] }
  0xd0   : > { %3341 = vmatpush3.bf16.msra.mxu0 %v3340_v21  ;;  %3311 = vmatprep.subr.bf16.mxu1 %v3310_v22  ;;  %v3356_v21 = vpack.c.bf16 %v824_v11, %v823_v9  ;;  %v3326_v22 = vpack.c.bf16 %v810_v13, %v809_v12  ;;  %v515_v7 = vld [vmem:[%s3522_s29 + $0x7b0] sm:$0xff]  ;;  %v532_v8 = vld [vmem:[%s3522_s29 + $0x838] sm:$0xff]  ;;  %v534_v11 = vld [vmem:[%s3522_s29 + $0x848] sm:$0xff] }
  0xd1   : > { %1645 = vmatmul.mubr.f32.gmra.mrb[84].mxu1 %v315_v30  ;;  %3343 = vmatprep.subr.bf16.mxu0 %v3342_v26  ;;  %v3358_v26 = vpack.c.bf16 %v842_v16, %v841_v15  ;;  %v387_v30 = vld [vmem:[%s3522_s29 + $0x3b0] sm:$0xff] }
  0xd2   : > { %1790 = vmatmul.mubr.f32.gmra.mrb[84].mxu0 %v317_v33  ;;  %1649 = vmatprep.mubr.f32.mxu1 %v334_v34  ;;  %v389_v33 = vld [vmem:[%s3522_s29 + $0x3c0] sm:$0xff]  ;;  %v406_v34 = vld [vmem:[%s3522_s29 + $0x448] sm:$0xff]  ;;  %v531_v16 = vld [vmem:[%s3522_s29 + $0x830] sm:$0xff] }
  0xd3   : > { %1794 = vmatprep.mubr.f32.mxu0 %v336_v35  ;;  %3313 = vmatpush3.bf16.msra.mxu1 %v3312_v36  ;;  %v3328_v35 = vpack.c.bf16 %v794_v24, %v793_v23  ;;  %v408_v36 = vld [vmem:[%s3522_s29 + $0x458] sm:$0xff] }
  0xd4   : > { %3345 = vmatpush3.bf16.msra.mxu0 %v3344_v37  ;;  %3315 = vmatprep.subr.bf16.mxu1 %v3314_v38  ;;  %v3360_v37 = vpack.c.bf16 %v826_v27, %v825_v25  ;;  %v3330_v38 = vpack.c.bf16 %v812_v29, %v811_v28  ;;  %v551_v27 = vld [vmem:[%s3522_s29 + $0x8d0] sm:$0xff]  ;;  %v284_v28 = vld [vmem:[%s3522_s29 + $0x78] sm:$0xff] }
  0xd5   : > { %1650 = vmatmul.mubr.f32.gmra.mrb[86].mxu1 %v333_v46  ;;  %3347 = vmatprep.subr.bf16.mxu0 %v3346_v42  ;;  %v827_v42 = vld [vmem:[%s4900_s1 + $0x870] sm:$0xff]  ;;  %v424_v46 = vld [vmem:[%s3522_s29 + $0x4d8] sm:$0xff] }
  0xd6   : > { %1795 = vmatmul.mubr.f32.gmra.mrb[86].mxu0 %v335_v49  ;;  %1654 = vmatprep.mubr.f32.mxu1 %v352_v50  ;;  %v3364_v49 = vpack.c.bf16 %v828_v43, %v827_v42  ;;  %v423_v50 = vld [vmem:[%s3522_s29 + $0x4d0] sm:$0xff] }
  0xd7   : > { %1799 = vmatprep.mubr.f32.mxu0 %v354_v51  ;;  %3317 = vmatpush3.bf16.msra.mxu1 %v3316_v52  ;;  %v425_v51 = vld [vmem:[%s3522_s29 + $0x4e0] sm:$0xff]  ;;  %v442_v52 = vld [vmem:[%s3522_s29 + $0x568] sm:$0xff] }
  0xd8   : > { %3349 = vmatpush3.bf16.msra.mxu0 %v3348_v53  ;;  %3319 = vmatprep.subr.bf16.mxu1 %v3318_v54  ;;  %v444_v53 = vld [vmem:[%s3522_s29 + $0x578] sm:$0xff]  ;;  %v441_v54 = vld [vmem:[%s3522_s29 + $0x560] sm:$0xff] }
  0xd9   : > { %1655 = vmatmul.mubr.f32.gmra.mrb[88].mxu1 %v351_v62  ;;  %3351 = vmatprep.subr.bf16.mxu0 %v3350_v58  ;;  %v459_v58 = vld [vmem:[%s3522_s29 + $0x5f0] sm:$0xff]  ;;  %v477_v62 = vld [vmem:[%s3522_s29 + $0x680] sm:$0xff] }
  0xda   : > { %1800 = vmatmul.mubr.f32.gmra.mrb[88].mxu0 %v353_v1  ;;  %1659 = vmatprep.mubr.f32.mxu1 %v370_v2  ;;  %v498_v1 = vld [vmem:[%s3522_s29 + $0x728] sm:$0xff]  ;;  %v495_v2 = vld [vmem:[%s3522_s29 + $0x710] sm:$0xff] }
  0xdb   : > { %1804 = vmatprep.mubr.f32.mxu0 %v372_v3  ;;  %3321 = vmatpush3.bf16.msra.mxu1 %v3320_v4  ;;  %v497_v3 = vld [vmem:[%s3522_s29 + $0x720] sm:$0xff]  ;;  %v514_v4 = vld [vmem:[%s3522_s29 + $0x7a8] sm:$0xff] }
  0xdc   : > { %3353 = vmatpush3.bf16.msra.mxu0 %v3352_v5  ;;  %3323 = vmatprep.subr.bf16.mxu1 %v3322_v6  ;;  %v516_v5 = vld [vmem:[%s3522_s29 + $0x7b8] sm:$0xff]  ;;  %v513_v6 = vld [vmem:[%s3522_s29 + $0x7a0] sm:$0xff] }
  0xdd   : > { %1660 = vmatmul.mubr.f32.gmra.mrb[90].mxu1 %v369_v14  ;;  %3355 = vmatprep.subr.bf16.mxu0 %v3354_v10 }
  0xde   : > { %1805 = vmatmul.mubr.f32.gmra.mrb[90].mxu0 %v371_v17  ;;  %1664 = vmatprep.mubr.f32.mxu1 %v388_v18  ;;  %v533_v17 = vld [vmem:[%s3522_s29 + $0x840] sm:$0xff]  ;;  %v550_v18 = vld [vmem:[%s3522_s29 + $0x8c8] sm:$0xff] }
  0xdf   : > { %1809 = vmatprep.mubr.f32.mxu0 %v390_v19  ;;  %3325 = vmatpush3.bf16.msra.mxu1 %v3324_v20 }
  0xe0   : > { %3357 = vmatpush3.bf16.msra.mxu0 %v3356_v21  ;;  %3327 = vmatprep.subr.bf16.mxu1 %v3326_v22  ;;  %v552_v21 = vld [vmem:[%s3522_s29 + $0x8d8] sm:$0xff] }
  0xe1   : > { %1665 = vmatmul.mubr.f32.gmra.mrb[92].mxu1 %v387_v30  ;;  %3359 = vmatprep.subr.bf16.mxu0 %v3358_v26  ;;  %v549_v26 = vld [vmem:[%s3522_s29 + $0x8c0] sm:$0xff] }
  0xe2   : > { %1810 = vmatmul.mubr.f32.gmra.mrb[92].mxu0 %v389_v33  ;;  %1669 = vmatprep.mubr.f32.mxu1 %v406_v34 }
  0xe3   : > { %1814 = vmatprep.mubr.f32.mxu0 %v408_v36  ;;  %3329 = vmatpush3.bf16.msra.mxu1 %v3328_v35  ;;  %v283_v36 = vld [vmem:[%s3522_s29 + $0x70] sm:$0xff] }
  0xe4   : > { %3361 = vmatpush3.bf16.msra.mxu0 %v3360_v37  ;;  %3331 = vmatprep.subr.bf16.mxu1 %v3330_v38  ;;  %v285_v37 = vld [vmem:[%s3522_s29 + $0x80] sm:$0xff]  ;;  %v302_v38 = vld [vmem:[%s3522_s29 + $0x108] sm:$0xff] }
  0xe5   : > { %1670 = vmatmul.mubr.f32.gmra.mrb[94].mxu1 %v405_v44  ;;  %3363 = vmatprep.subr.bf16.mxu0 %v3362_v41  ;;  %v304_v41 = vld [vmem:[%s3522_s29 + $0x118] sm:$0xff] }
  0xe6   : > { %1815 = vmatmul.mubr.f32.gmra.mrb[94].mxu0 %v407_v45  ;;  %1674 = vmatprep.mubr.f32.mxu1 %v424_v46  ;;  %v301_v46 = vld [vmem:[%s3522_s29 + $0x100] sm:$0xff] }
  0xe7   : > { %1819 = vmatprep.mubr.f32.mxu0 %v426_v48  ;;  %3333 = vmatpush3.bf16.msra.mxu1 %v3332_v47  ;;  %v303_v47 = vld [vmem:[%s3522_s29 + $0x110] sm:$0xff]  ;;  %v320_v48 = vld [vmem:[%s3522_s29 + $0x198] sm:$0xff] }
  0xe8   : > { %3365 = vmatpush3.bf16.msra.mxu0 %v3364_v49 }
  0xe9   : > { %1675 = vmatmul.mubr.f32.gmra.mrb[96].mxu1 %v423_v50 }
  0xea   : > { %1820 = vmatmul.mubr.f32.gmra.mrb[96].mxu0 %v425_v51  ;;  %1679 = vmatprep.mubr.f32.mxu1 %v442_v52  ;;  %v322_v51 = vld [vmem:[%s3522_s29 + $0x1a8] sm:$0xff] }
  0xeb   : > { %1824 = vmatprep.mubr.f32.mxu0 %v444_v53 }
  0xed   : > { %1680 = vmatmul.mubr.f32.gmra.mrb[98].mxu1 %v441_v54 }
  0xee   : > { %1825 = vmatmul.mubr.f32.gmra.mrb[98].mxu0 %v443_v55  ;;  %1684 = vmatprep.mubr.f32.mxu1 %v460_v56  ;;  %v319_v56 = vld [vmem:[%s3522_s29 + $0x190] sm:$0xff] }
  0xef   : > { %1829 = vmatprep.mubr.f32.mxu0 %v462_v57  ;;  %v321_v57 = vld [vmem:[%s3522_s29 + $0x1a0] sm:$0xff] }
  0xf1   : > { %1685 = vmatmul.mubr.f32.gmra.mrb[100].mxu1 %v459_v58  ;;  %v338_v58 = vld [vmem:[%s3522_s29 + $0x228] sm:$0xff] }
  0xf2   : > { %1830 = vmatmul.mubr.f32.gmra.mrb[100].mxu0 %v461_v59  ;;  %1689 = vmatprep.mubr.f32.mxu1 %v478_v60 }
  0xf3   : > { %1834 = vmatprep.mubr.f32.mxu0 %v480_v61  ;;  %v340_v61 = vld [vmem:[%s3522_s29 + $0x238] sm:$0xff] }
  0xf5   : > { %1690 = vmatmul.mubr.f32.gmra.mrb[102].mxu1 %v477_v62 }
  0xf6   : > { %1835 = vmatmul.mubr.f32.gmra.mrb[102].mxu0 %v479_v63  ;;  %1694 = vmatprep.mubr.f32.mxu1 %v496_v0 }
  0xf7   : > { %1839 = vmatprep.mubr.f32.mxu0 %v498_v1 }
  0xf9   : > { %1695 = vmatmul.mubr.f32.gmra.mrb[104].mxu1 %v495_v2  ;;  %v337_v2 = vld [vmem:[%s3522_s29 + $0x220] sm:$0xff] }
  0xfa   : > { %1840 = vmatmul.mubr.f32.gmra.mrb[104].mxu0 %v497_v3  ;;  %1699 = vmatprep.mubr.f32.mxu1 %v514_v4  ;;  %v339_v3 = vld [vmem:[%s3522_s29 + $0x230] sm:$0xff]  ;;  %v356_v4 = vld [vmem:[%s3522_s29 + $0x2b8] sm:$0xff] }
  0xfb   : > { %1844 = vmatprep.mubr.f32.mxu0 %v516_v5 }
  0xfc   : > { %v2414_v9 = vpop.f32.mrb[0].mxu1  ;;  %v2390_v10 = vpop.f32.mrb[0].mxu0 }
  0xfd   : > { %v2415_v12 = vpop.f32.mrb[1].mxu1  ;;  %1700 = vmatmul.mubr.f32.gmra.mrb[106].mxu1 %v513_v6  ;;  %v2391_v13 = vpop.f32.mrb[1].mxu0 }
  0xfe   : > { %v4564_v14 = vadd.f32 %v2415_v12, %v2414_v9  ;;  %v4566_v15 = vadd.f32 %v2391_v13, %v2390_v10  ;;  %1845 = vmatmul.mubr.f32.gmra.mrb[106].mxu0 %v515_v7  ;;  %1704 = vmatprep.mubr.f32.mxu1 %v532_v8  ;;  %v358_v7 = vld [vmem:[%s3522_s29 + $0x2c8] sm:$0xff]  ;;  %v355_v12 = vld [vmem:[%s3522_s29 + $0x2b0] sm:$0xff]  ;;  %v357_v13 = vld [vmem:[%s3522_s29 + $0x2c0] sm:$0xff] }
  0xff   : > { %1849 = vmatprep.mubr.f32.mxu0 %v534_v11 }
 0x100   : > { %v2417_v19 = vpop.f32.mrb[2].mxu1  ;;  %v2393_v20 = vpop.f32.mrb[2].mxu0 }
 0x101   : > { %v2418_v22 = vpop.f32.mrb[3].mxu1  ;;  %1705 = vmatmul.mubr.f32.gmra.mrb[108].mxu1 %v531_v16  ;;  %v2394_v23 = vpop.f32.mrb[3].mxu0  ;;  %v374_v16 = vld [vmem:[%s3522_s29 + $0x348] sm:$0xff] }
 0x102   : > { %v4572_v24 = vadd.f32 %v2418_v22, %v2417_v19  ;;  %v4574_v25 = vadd.f32 %v2394_v23, %v2393_v20  ;;  %1850 = vmatmul.mubr.f32.gmra.mrb[108].mxu0 %v533_v17  ;;  %1709 = vmatprep.mubr.f32.mxu1 %v550_v18  ;;  %v376_v19 = vld [vmem:[%s3522_s29 + $0x358] sm:$0xff] }
 0x103   : > { %1854 = vmatprep.mubr.f32.mxu0 %v552_v21 }
 0x104   : > { %v2420_v29 = vpop.f32.mrb[4].mxu1  ;;  %v2396_v30 = vpop.f32.mrb[4].mxu0 }
 0x105   : > { %v2421_v32 = vpop.f32.mrb[5].mxu1  ;;  %1710 = vmatmul.mubr.f32.gmra.mrb[110].mxu1 %v549_v26  ;;  %v2397_v33 = vpop.f32.mrb[5].mxu0  ;;  %v373_v26 = vld [vmem:[%s3522_s29 + $0x340] sm:$0xff] }
 0x106   : > { %v4580_v34 = vadd.f32 %v2421_v32, %v2420_v29  ;;  %v4582_v35 = vadd.f32 %v2397_v33, %v2396_v30  ;;  %1855 = vmatmul.mubr.f32.gmra.mrb[110].mxu0 %v551_v27  ;;  %1924 = vmatprep.mubr.f32.mxu1 %v284_v28  ;;  %v375_v27 = vld [vmem:[%s3522_s29 + $0x350] sm:$0xff]  ;;  %v392_v28 = vld [vmem:[%s3522_s29 + $0x3d8] sm:$0xff]  ;;  %v394_v30 = vld [vmem:[%s3522_s29 + $0x3e8] sm:$0xff] }
 0x107   : > { %2069 = vmatprep.mubr.f32.mxu0 %v286_v31 }
 0x108   : > { %v2423_v39 = vpop.f32.mrb[6].mxu1  ;;  %v2399_v40 = vpop.f32.mrb[6].mxu0 }
 0x109   : > { %v2424_v42 = vpop.f32.mrb[7].mxu1  ;;  %1925 = vmatmul.mubr.f32.vlgmr.msra.gmra.mrb[112].mxu1 %v283_v36  ;;  %v2400_v43 = vpop.f32.mrb[7].mxu0 }
 0x10a   : > { %v4588_v44 = vadd.f32 %v2424_v42, %v2423_v39  ;;  %v4590_v45 = vadd.f32 %v2400_v43, %v2399_v40  ;;  %2070 = vmatmul.mubr.f32.vlgmr.msra.gmra.mrb[112].mxu0 %v285_v37  ;;  %1929 = vmatprep.mubr.f32.mxu1 %v302_v38  ;;  %v391_v37 = vld [vmem:[%s3522_s29 + $0x3d0] sm:$0xff]  ;;  %v393_v39 = vld [vmem:[%s3522_s29 + $0x3e0] sm:$0xff]  ;;  %v410_v40 = vld [vmem:[%s3522_s29 + $0x468] sm:$0xff] }
 0x10b   : > { %2074 = vmatprep.mubr.f32.mxu0 %v304_v41  ;;  %v412_v43 = vld [vmem:[%s3522_s29 + $0x478] sm:$0xff] }
 0x10c   : > { %v2426_v49 = vpop.f32.mrb[8].mxu1  ;;  %v2402_v50 = vpop.f32.mrb[8].mxu0 }
 0x10d   : > { %v2427_v52 = vpop.f32.mrb[9].mxu1  ;;  %1930 = vmatmul.mubr.f32.gmra.mrb[114].mxu1 %v301_v46  ;;  %v2403_v53 = vpop.f32.mrb[9].mxu0 }
 0x10e   : > { %v4596_v54 = vadd.f32 %v2427_v52, %v2426_v49  ;;  %v4598_v55 = vadd.f32 %v2403_v53, %v2402_v50  ;;  %2075 = vmatmul.mubr.f32.gmra.mrb[114].mxu0 %v303_v47  ;;  %1934 = vmatprep.mubr.f32.mxu1 %v320_v48  ;;  %v411_v53 = vld [vmem:[%s3522_s29 + $0x470] sm:$0xff] }
 0x10f   : > { %2079 = vmatprep.mubr.f32.mxu0 %v322_v51  ;;  %v409_v51 = vld [vmem:[%s3522_s29 + $0x460] sm:$0xff] }
 0x110   : > { %v2429_v59 = vpop.f32.mrb[10].mxu1  ;;  %v2405_v60 = vpop.f32.mrb[10].mxu0 }
 0x111   : > { %v2430_v62 = vpop.f32.mrb[11].mxu1  ;;  %1935 = vmatmul.mubr.f32.gmra.mrb[116].mxu1 %v319_v56  ;;  %v2406_v63 = vpop.f32.mrb[11].mxu0  ;;  %v428_v56 = vld [vmem:[%s3522_s29 + $0x4f8] sm:$0xff] }
 0x112   : > { %v4604_v0 = vadd.f32 %v2430_v62, %v2429_v59  ;;  %v4606_v1 = vadd.f32 %v2406_v63, %v2405_v60  ;;  %2080 = vmatmul.mubr.f32.gmra.mrb[116].mxu0 %v321_v57  ;;  %1939 = vmatprep.mubr.f32.mxu1 %v338_v58  ;;  %v430_v58 = vld [vmem:[%s3522_s29 + $0x508] sm:$0xff] }
 0x113   : > { %2084 = vmatprep.mubr.f32.mxu0 %v340_v61 }
 0x114   : > { %v2432_v5 = vpop.f32.mrb[12].mxu1  ;;  %v2408_v6 = vpop.f32.mrb[12].mxu0 }
 0x115   : > { %v2433_v8 = vpop.f32.mrb[13].mxu1  ;;  %1940 = vmatmul.mubr.f32.gmra.mrb[118].mxu1 %v337_v2  ;;  %v2409_v9 = vpop.f32.mrb[13].mxu0  ;;  %v427_v2 = vld [vmem:[%s3522_s29 + $0x4f0] sm:$0xff] }
 0x116   : > { %v4612_v10 = vadd.f32 %v2433_v8, %v2432_v5  ;;  %v4614_v11 = vadd.f32 %v2409_v9, %v2408_v6  ;;  %2085 = vmatmul.mubr.f32.gmra.mrb[118].mxu0 %v339_v3  ;;  %1944 = vmatprep.mubr.f32.mxu1 %v356_v4  ;;  %v429_v4 = vld [vmem:[%s3522_s29 + $0x500] sm:$0xff]  ;;  %v446_v5 = vld [vmem:[%s3522_s29 + $0x588] sm:$0xff] }
 0x117   : > { %2089 = vmatprep.mubr.f32.mxu0 %v358_v7  ;;  %v448_v7 = vld [vmem:[%s3522_s29 + $0x598] sm:$0xff] }
 0x118   : > { %v2435_v17 = vpop.f32.mrb[14].mxu1  ;;  %v2411_v18 = vpop.f32.mrb[14].mxu0 }
 0x119   : > { %v2436_v20 = vpop.f32.mrb[15].mxu1  ;;  %1945 = vmatmul.mubr.f32.gmra.mrb[120].mxu1 %v355_v12  ;;  %v2412_v21 = vpop.f32.mrb[15].mxu0 }
 0x11a   : > { %v4620_v22 = vadd.f32 %v2436_v20, %v2435_v17  ;;  %v4622_v23 = vadd.f32 %v2412_v21, %v2411_v18  ;;  %2090 = vmatmul.mubr.f32.gmra.mrb[120].mxu0 %v357_v13  ;;  %1949 = vmatprep.mubr.f32.mxu1 %v374_v16  ;;  %v445_v17 = vld [vmem:[%s3522_s29 + $0x580] sm:$0xff]  ;;  %v464_v20 = vld [vmem:[%s3522_s29 + $0x618] sm:$0xff] }
 0x11b   : > { %2094 = vmatprep.mubr.f32.mxu0 %v376_v19  ;;  %v447_v19 = vld [vmem:[%s3522_s29 + $0x590] sm:$0xff] }
 0x11c   : > { %v2470_v29 = vpop.f32.mrb[16].mxu1 }
 0x11d   : > { %v2471_v31 = vpop.f32.mrb[17].mxu1  ;;  %1950 = vmatmul.mubr.f32.gmra.mrb[122].mxu1 %v373_v26  ;;  %v2550_v32 = vpop.f32.mrb[16].mxu0  ;;  %v466_v26 = vld [vmem:[%s3522_s29 + $0x628] sm:$0xff] }
 0x11e   : > { %v2472_v33 = vadd.f32 %v2471_v31, %v2470_v29  ;;  %v2551_v36 = vpop.f32.mrb[17].mxu0  ;;  %2095 = vmatmul.mubr.f32.gmra.mrb[122].mxu0 %v375_v27  ;;  %1954 = vmatprep.mubr.f32.mxu1 %v392_v28 }
 0x11f   : > { %v2552_v38 = vadd.f32 %v2551_v36, %v2550_v32  ;;  %2099 = vmatprep.mubr.f32.mxu0 %v394_v30  ;;  %v463_v32 = vld [vmem:[%s3522_s29 + $0x610] sm:$0xff]  ;;  %v465_v36 = vld [vmem:[%s3522_s29 + $0x620] sm:$0xff] }
 0x120   : > { %v1057_v41 = vadd.f32 %v2472_v33, %v4566_v15  ;;  %v2473_v42 = vpop.f32.mrb[18].mxu1 }
 0x121   : > { %v2474_v46 = vpop.f32.mrb[19].mxu1  ;;  %1955 = vmatmul.mubr.f32.gmra.mrb[124].mxu1 %v391_v37  ;;  %v2553_v47 = vpop.f32.mrb[18].mxu0  ;;  %v482_v37 = vld [vmem:[%s3522_s29 + $0x6a8] sm:$0xff] }
 0x122   : > { %v4633_v48 = vadd.f32 %v2552_v38, %v1057_v41  ;;  %v2475_v49 = vadd.f32 %v2474_v46, %v2473_v42  ;;  %v2554_v50 = vpop.f32.mrb[19].mxu0  ;;  %2100 = vmatmul.mubr.f32.gmra.mrb[124].mxu0 %v393_v39  ;;  %1959 = vmatprep.mubr.f32.mxu1 %v410_v40  ;;  %v484_v39 = vld [vmem:[%s3522_s29 + $0x6b8] sm:$0xff] }
 0x123   : > { %v2555_v52 = vadd.f32 %v2554_v50, %v2553_v47  ;;  %2104 = vmatprep.mubr.f32.mxu0 %v412_v43  ;;  %v481_v47 = vld [vmem:[%s3522_s29 + $0x6a0] sm:$0xff]  ;;  %v483_v50 = vld [vmem:[%s3522_s29 + $0x6b0] sm:$0xff] }
 0x124   : > { %v1062_v15 = vadd.f32 %v2475_v49, %v4574_v25  ;;  %v2476_v57 = vpop.f32.mrb[20].mxu1 }
 0x125   : > { %v2477_v59 = vpop.f32.mrb[21].mxu1  ;;  %1960 = vmatmul.mubr.f32.gmra.mrb[126].mxu1 %v409_v51  ;;  %v2556_v60 = vpop.f32.mrb[20].mxu0  ;;  %v500_v51 = vld [vmem:[%s3522_s29 + $0x738] sm:$0xff] }
 0x126   : > { %v4640_v61 = vadd.f32 %v2555_v52, %v1062_v15  ;;  %v2478_v62 = vadd.f32 %v2477_v59, %v2476_v57  ;;  %v2557_v63 = vpop.f32.mrb[21].mxu0  ;;  %2105 = vmatmul.mubr.f32.gmra.mrb[126].mxu0 %v411_v53  ;;  %1964 = vmatprep.mubr.f32.mxu1 %v428_v56  ;;  %v502_v53 = vld [vmem:[%s3522_s29 + $0x748] sm:$0xff] }
 0x127   : > { %v2558_v3 = vadd.f32 %v2557_v63, %v2556_v60  ;;  %2109 = vmatprep.mubr.f32.mxu0 %v430_v58  ;;  %v499_v60 = vld [vmem:[%s3522_s29 + $0x730] sm:$0xff]  ;;  %v501_v63 = vld [vmem:[%s3522_s29 + $0x740] sm:$0xff] }
 0x128   : > { %v1067_v25 = vadd.f32 %v2478_v62, %v4582_v35  ;;  %v2479_v6 = vpop.f32.mrb[22].mxu1 }
 0x129   : > { %v2480_v8 = vpop.f32.mrb[23].mxu1  ;;  %1965 = vmatmul.mubr.f32.gmra.mrb[128].mxu1 %v427_v2  ;;  %v2559_v9 = vpop.f32.mrb[22].mxu0  ;;  %v518_v2 = vld [vmem:[%s3522_s29 + $0x7c8] sm:$0xff] }
 0x12a   : > { %v4647_v12 = vadd.f32 %v2558_v3, %v1067_v25  ;;  %v2481_v13 = vadd.f32 %v2480_v8, %v2479_v6  ;;  %v2560_v16 = vpop.f32.mrb[23].mxu0  ;;  %2110 = vmatmul.mubr.f32.gmra.mrb[128].mxu0 %v429_v4  ;;  %1969 = vmatprep.mubr.f32.mxu1 %v446_v5  ;;  %v520_v4 = vld [vmem:[%s3522_s29 + $0x7d8] sm:$0xff] }
 0x12b   : > { %v2561_v18 = vadd.f32 %v2560_v16, %v2559_v9  ;;  %2114 = vmatprep.mubr.f32.mxu0 %v448_v7  ;;  %v517_v9 = vld [vmem:[%s3522_s29 + $0x7c0] sm:$0xff]  ;;  %v519_v16 = vld [vmem:[%s3522_s29 + $0x7d0] sm:$0xff] }
 0x12c   : > { %v1072_v35 = vadd.f32 %v2481_v13, %v4590_v45  ;;  %v2482_v21 = vpop.f32.mrb[24].mxu1 }
 0x12d   : > { %v2483_v27 = vpop.f32.mrb[25].mxu1  ;;  %1970 = vmatmul.mubr.f32.gmra.mrb[130].mxu1 %v445_v17  ;;  %v2562_v28 = vpop.f32.mrb[24].mxu0  ;;  %v536_v17 = vld [vmem:[%s3522_s29 + $0x858] sm:$0xff] }
 0x12e   : > { %v4654_v29 = vadd.f32 %v2561_v18, %v1072_v35  ;;  %v2484_v30 = vadd.f32 %v2483_v27, %v2482_v21  ;;  %v2563_v31 = vpop.f32.mrb[25].mxu0  ;;  %2115 = vmatmul.mubr.f32.gmra.mrb[130].mxu0 %v447_v19  ;;  %1974 = vmatprep.mubr.f32.mxu1 %v464_v20  ;;  %v538_v19 = vld [vmem:[%s3522_s29 + $0x868] sm:$0xff] }
 0x12f   : > { %v2564_v33 = vadd.f32 %v2563_v31, %v2562_v28  ;;  %2119 = vmatprep.mubr.f32.mxu0 %v466_v26  ;;  %v535_v28 = vld [vmem:[%s3522_s29 + $0x850] sm:$0xff]  ;;  %v537_v31 = vld [vmem:[%s3522_s29 + $0x860] sm:$0xff] }
 0x130   : > { %v1077_v45 = vadd.f32 %v2484_v30, %v4598_v55  ;;  %v2485_v38 = vpop.f32.mrb[26].mxu1 }
 0x131   : > { %v2486_v40 = vpop.f32.mrb[27].mxu1  ;;  %1975 = vmatmul.mubr.f32.gmra.mrb[132].mxu1 %v463_v32  ;;  %v2565_v41 = vpop.f32.mrb[26].mxu0  ;;  %v554_v32 = vld [vmem:[%s3522_s29 + $0x8e8] sm:$0xff] }
 0x132   : > { %v4661_v42 = vadd.f32 %v2564_v33, %v1077_v45  ;;  %v2487_v43 = vadd.f32 %v2486_v40, %v2485_v38  ;;  %v2566_v46 = vpop.f32.mrb[27].mxu0  ;;  %2120 = vmatmul.mubr.f32.gmra.mrb[132].mxu0 %v465_v36  ;;  %1979 = vmatprep.mubr.f32.mxu1 %v482_v37  ;;  %v556_v36 = vld [vmem:[%s3522_s29 + $0x8f8] sm:$0xff] }
 0x133   : > { %v2567_v49 = vadd.f32 %v2566_v46, %v2565_v41  ;;  %2124 = vmatprep.mubr.f32.mxu0 %v484_v39  ;;  %v553_v41 = vld [vmem:[%s3522_s29 + $0x8e0] sm:$0xff]  ;;  %v555_v46 = vld [vmem:[%s3522_s29 + $0x8f0] sm:$0xff] }
 0x134   : > { %v1082_v55 = vadd.f32 %v2487_v43, %v4606_v1  ;;  %v2488_v52 = vpop.f32.mrb[28].mxu1 }
 0x135   : > { %v2489_v56 = vpop.f32.mrb[29].mxu1  ;;  %1980 = vmatmul.mubr.f32.gmra.mrb[134].mxu1 %v481_v47  ;;  %v2568_v15 = vpop.f32.mrb[28].mxu0 }
 0x136   : > { %v4668_v57 = vadd.f32 %v2567_v49, %v1082_v55  ;;  %v2490_v58 = vadd.f32 %v2489_v56, %v2488_v52  ;;  %v2569_v59 = vpop.f32.mrb[29].mxu0  ;;  %2125 = vmatmul.mubr.f32.gmra.mrb[134].mxu0 %v483_v50  ;;  %1984 = vmatprep.mubr.f32.mxu1 %v500_v51 }
 0x137   : > { %v2570_v62 = vadd.f32 %v2569_v59, %v2568_v15  ;;  %2129 = vmatprep.mubr.f32.mxu0 %v502_v53 }
 0x138   : > { %v1087_v1 = vadd.f32 %v2490_v58, %v4614_v11  ;;  %v2491_v3 = vpop.f32.mrb[30].mxu1 }
 0x139   : > { %v2492_v5 = vpop.f32.mrb[31].mxu1  ;;  %1985 = vmatmul.mubr.f32.gmra.mrb[136].mxu1 %v499_v60  ;;  %v2571_v25 = vpop.f32.mrb[30].mxu0 }
 0x13a   : > { %v4675_v6 = vadd.f32 %v2570_v62, %v1087_v1  ;;  %v2493_v7 = vadd.f32 %v2492_v5, %v2491_v3  ;;  %v2572_v8 = vpop.f32.mrb[31].mxu0  ;;  %2130 = vmatmul.mubr.f32.gmra.mrb[136].mxu0 %v501_v63  ;;  %1989 = vmatprep.mubr.f32.mxu1 %v518_v2 }
 0x13b   : > { %v2573_v13 = vadd.f32 %v2572_v8, %v2571_v25  ;;  %2134 = vmatprep.mubr.f32.mxu0 %v520_v4 }
 0x13c   : > { %v1092_v11 = vadd.f32 %v2493_v7, %v4622_v23  ;;  %v2494_v18 = vpop.f32.mrb[32].mxu1 }
 0x13d   : > { %v2495_v20 = vpop.f32.mrb[33].mxu1  ;;  %1990 = vmatmul.mubr.f32.gmra.mrb[138].mxu1 %v517_v9  ;;  %v2574_v35 = vpop.f32.mrb[32].mxu0 }
 0x13e   : > { %v4682_v21 = vadd.f32 %v2573_v13, %v1092_v11  ;;  %v2496_v26 = vadd.f32 %v2495_v20, %v2494_v18  ;;  %v2575_v27 = vpop.f32.mrb[33].mxu0  ;;  %2135 = vmatmul.mubr.f32.gmra.mrb[138].mxu0 %v519_v16  ;;  %1994 = vmatprep.mubr.f32.mxu1 %v536_v17 }
 0x13f   : > { %v2576_v30 = vadd.f32 %v2575_v27, %v2574_v35  ;;  %2139 = vmatprep.mubr.f32.mxu0 %v538_v19 }
 0x140   : > { %v1097_v23 = vadd.f32 %v2496_v26, %v4564_v14  ;;  %v2497_v33 = vpop.f32.mrb[34].mxu1 }
 0x141   : > { %v2498_v37 = vpop.f32.mrb[35].mxu1  ;;  %1995 = vmatmul.mubr.f32.gmra.mrb[140].mxu1 %v535_v28  ;;  %v2577_v45 = vpop.f32.mrb[34].mxu0 }
 0x142   : > { %v4689_v38 = vadd.f32 %v2576_v30, %v1097_v23  ;;  %v2499_v39 = vadd.f32 %v2498_v37, %v2497_v33  ;;  %v2578_v40 = vpop.f32.mrb[35].mxu0  ;;  %2140 = vmatmul.mubr.f32.gmra.mrb[140].mxu0 %v537_v31  ;;  %1999 = vmatprep.mubr.f32.mxu1 %v554_v32 }
 0x143   : > { %v2579_v43 = vadd.f32 %v2578_v40, %v2577_v45  ;;  %2144 = vmatprep.mubr.f32.mxu0 %v556_v36 }
 0x144   : > { %v1102_v47 = vadd.f32 %v2499_v39, %v4572_v24  ;;  %v2500_v49 = vpop.f32.mrb[36].mxu1 }
 0x145   : > { %v2501_v50 = vpop.f32.mrb[37].mxu1  ;;  %2000 = vmatmul.mubr.f32.gmra.mrb[142].mxu1 %v553_v41  ;;  %v2580_v14 = vpop.f32.mrb[36].mxu0 }
 0x146   : > { %v4694_v51 = vadd.f32 %v2579_v43, %v1102_v47  ;;  %v2502_v55 = vadd.f32 %v2501_v50, %v2500_v49  ;;  %v2581_v52 = vpop.f32.mrb[37].mxu0  ;;  %2145 = vmatmul.mubr.f32.gmra.mrb[142].mxu0 %v555_v46 }
 0x147   : > { %v2582_v53 = vadd.f32 %v2581_v52, %v2580_v14 }
 0x148   : > { %v1107_v56 = vadd.f32 %v2502_v55, %v4580_v34  ;;  %v2503_v15 = vpop.f32.mrb[38].mxu1 }
 0x149   : > { %v2504_v58 = vpop.f32.mrb[39].mxu1  ;;  %v2583_v59 = vpop.f32.mrb[38].mxu0 }
 0x14a   : > { %v4697_v60 = vadd.f32 %v2582_v53, %v1107_v56  ;;  %v2505_v62 = vadd.f32 %v2504_v58, %v2503_v15  ;;  %v2584_v63 = vpop.f32.mrb[39].mxu0 }
 0x14b   : > { %v2585_v24 = vadd.f32 %v2584_v63, %v2583_v59 }
 0x14c   : > { %v1112_v2 = vadd.f32 %v2505_v62, %v4588_v44  ;;  %v2506_v1 = vpop.f32.mrb[40].mxu1 }
 0x14d   : > { %v2507_v3 = vpop.f32.mrb[41].mxu1  ;;  %v2586_v4 = vpop.f32.mrb[40].mxu0 }
 0x14e   : > { %v4700_v5 = vadd.f32 %v2585_v24, %v1112_v2  ;;  %v2508_v25 = vadd.f32 %v2507_v3, %v2506_v1  ;;  %v2587_v7 = vpop.f32.mrb[41].mxu0 }
 0x14f   : > { %v2588_v8 = vadd.f32 %v2587_v7, %v2586_v4 }
 0x150   : > { %v1117_v34 = vadd.f32 %v2508_v25, %v4596_v54  ;;  %v2509_v9 = vpop.f32.mrb[42].mxu1 }
 0x151   : > { %v2510_v13 = vpop.f32.mrb[43].mxu1  ;;  %v2589_v16 = vpop.f32.mrb[42].mxu0 }
 0x152   : > { %v4703_v17 = vadd.f32 %v2588_v8, %v1117_v34  ;;  %v2511_v11 = vadd.f32 %v2510_v13, %v2509_v9  ;;  %v2590_v18 = vpop.f32.mrb[43].mxu0 }
 0x153   : > { %v2591_v19 = vadd.f32 %v2590_v18, %v2589_v16 }
 0x154   : > { %v1122_v44 = vadd.f32 %v2511_v11, %v4604_v0  ;;  %v2512_v20 = vpop.f32.mrb[44].mxu1 }
 0x155   : > { %v2513_v35 = vpop.f32.mrb[45].mxu1  ;;  %v2592_v26 = vpop.f32.mrb[44].mxu0 }
 0x156   : > { %v4706_v27 = vadd.f32 %v2591_v19, %v1122_v44  ;;  %v2514_v28 = vadd.f32 %v2513_v35, %v2512_v20  ;;  %v2593_v30 = vpop.f32.mrb[45].mxu0 }
 0x157   : > { %v2594_v31 = vadd.f32 %v2593_v30, %v2592_v26 }
 0x158   : > { %v1127_v54 = vadd.f32 %v2514_v28, %v4612_v10  ;;  %v2515_v32 = vpop.f32.mrb[46].mxu1 }
 0x159   : > { %v2516_v23 = vpop.f32.mrb[47].mxu1  ;;  %v2595_v33 = vpop.f32.mrb[46].mxu0 }
 0x15a   : > { %v4709_v36 = vadd.f32 %v2594_v31, %v1127_v54  ;;  %v2517_v37 = vadd.f32 %v2516_v23, %v2515_v32  ;;  %v2596_v45 = vpop.f32.mrb[47].mxu0 }
 0x15b   : > { %v2597_v39 = vadd.f32 %v2596_v45, %v2595_v33 }
 0x15c   : > { %v1132_v0 = vadd.f32 %v2517_v37, %v4620_v22  ;;  %v2630_v40 = vpop.f32.mrb[48].mxu1 }
 0x15d   : > { %v2631_v41 = vpop.f32.mrb[49].mxu1  ;;  %v2710_v43 = vpop.f32.mrb[48].mxu0 }
 0x15e   : > { %v4712_v46 = vadd.f32 %v2597_v39, %v1132_v0  ;;  %v2632_v47 = vadd.f32 %v2631_v41, %v2630_v40  ;;  %v2711_v49 = vpop.f32.mrb[49].mxu0 }
 0x15f   : > { %v2712_v50 = vadd.f32 %v2711_v49, %v2710_v43 }
 0x160   : > { %v1347_v10 = vadd.f32 %v2632_v47, %v4633_v48  ;;  %v2633_v14 = vpop.f32.mrb[50].mxu1 }
 0x161   : > { %v2634_v55 = vpop.f32.mrb[51].mxu1  ;;  %v2713_v52 = vpop.f32.mrb[50].mxu0 }
 0x162   : > { %v4715_v53 = vadd.f32 %v2712_v50, %v1347_v10  ;;  %v2635_v56 = vadd.f32 %v2634_v55, %v2633_v14  ;;  %v2714_v15 = vpop.f32.mrb[51].mxu0 }
 0x163   : > { %v2715_v58 = vadd.f32 %v2714_v15, %v2713_v52 }
 0x164   : > { %v1352_v22 = vadd.f32 %v2635_v56, %v4640_v61  ;;  %v2636_v59 = vpop.f32.mrb[52].mxu1 }
 0x165   : > { %v2637_v62 = vpop.f32.mrb[53].mxu1  ;;  %v2716_v63 = vpop.f32.mrb[52].mxu0 }
 0x166   : > { %v4718_v24 = vadd.f32 %v2715_v58, %v1352_v22  ;;  %v2638_v2 = vadd.f32 %v2637_v62, %v2636_v59  ;;  %v2717_v1 = vpop.f32.mrb[53].mxu0 }
 0x167   : > { %v2718_v3 = vadd.f32 %v2717_v1, %v2716_v63 }
 0x168   : > { %v1357_v48 = vadd.f32 %v2638_v2, %v4647_v12  ;;  %v2639_v4 = vpop.f32.mrb[54].mxu1 }
 0x169   : > { %v2640_v25 = vpop.f32.mrb[55].mxu1  ;;  %v2719_v7 = vpop.f32.mrb[54].mxu0 }
 0x16a   : > { %v4721_v8 = vadd.f32 %v2718_v3, %v1357_v48  ;;  %v2641_v34 = vadd.f32 %v2640_v25, %v2639_v4  ;;  %v2720_v9 = vpop.f32.mrb[55].mxu0 }
 0x16b   : > { %v2721_v13 = vadd.f32 %v2720_v9, %v2719_v7 }
 0x16c   : > { %v1362_v61 = vadd.f32 %v2641_v34, %v4654_v29  ;;  %v2642_v16 = vpop.f32.mrb[56].mxu1 }
 0x16d   : > { %v2643_v11 = vpop.f32.mrb[57].mxu1  ;;  %v2722_v18 = vpop.f32.mrb[56].mxu0 }
 0x16e   : > { %v4724_v19 = vadd.f32 %v2721_v13, %v1362_v61  ;;  %v2644_v44 = vadd.f32 %v2643_v11, %v2642_v16  ;;  %v2723_v20 = vpop.f32.mrb[57].mxu0 }
 0x16f   : > { %v2724_v35 = vadd.f32 %v2723_v20, %v2722_v18 }
 0x170   : > { %v1367_v12 = vadd.f32 %v2644_v44, %v4661_v42  ;;  %v2645_v26 = vpop.f32.mrb[58].mxu1 }
 0x171   : > { %v2646_v28 = vpop.f32.mrb[59].mxu1  ;;  %v2725_v30 = vpop.f32.mrb[58].mxu0 }
 0x172   : > { %v4727_v31 = vadd.f32 %v2724_v35, %v1367_v12  ;;  %v2647_v54 = vadd.f32 %v2646_v28, %v2645_v26  ;;  %v2726_v32 = vpop.f32.mrb[59].mxu0 }
 0x173   : > { %v2727_v23 = vadd.f32 %v2726_v32, %v2725_v30 }
 0x174   : > { %v1372_v29 = vadd.f32 %v2647_v54, %v4668_v57  ;;  %v2648_v33 = vpop.f32.mrb[60].mxu1 }
 0x175   : > { %v2649_v37 = vpop.f32.mrb[61].mxu1  ;;  %v2728_v45 = vpop.f32.mrb[60].mxu0 }
 0x176   : > { %v4730_v39 = vadd.f32 %v2727_v23, %v1372_v29  ;;  %v2650_v0 = vadd.f32 %v2649_v37, %v2648_v33  ;;  %v2729_v40 = vpop.f32.mrb[61].mxu0 }
 0x177   : > { %v2730_v41 = vadd.f32 %v2729_v40, %v2728_v45 }
 0x178   : > { %v1377_v42 = vadd.f32 %v2650_v0, %v4675_v6  ;;  %v2651_v43 = vpop.f32.mrb[62].mxu1 }
 0x179   : > { %v2652_v47 = vpop.f32.mrb[63].mxu1  ;;  %v2731_v49 = vpop.f32.mrb[62].mxu0 }
 0x17a   : > { %v4733_v50 = vadd.f32 %v2730_v41, %v1377_v42  ;;  %v2653_v10 = vadd.f32 %v2652_v47, %v2651_v43  ;;  %v2732_v14 = vpop.f32.mrb[63].mxu0 }
 0x17b   : > { %v2733_v55 = vadd.f32 %v2732_v14, %v2731_v49 }
 0x17c   : > { %v1382_v57 = vadd.f32 %v2653_v10, %v4682_v21  ;;  %v2654_v52 = vpop.f32.mrb[64].mxu1 }
 0x17d   : > { %v2655_v56 = vpop.f32.mrb[65].mxu1  ;;  %v2734_v15 = vpop.f32.mrb[64].mxu0 }
 0x17e   : > { %v4736_v58 = vadd.f32 %v2733_v55, %v1382_v57  ;;  %v2656_v22 = vadd.f32 %v2655_v56, %v2654_v52  ;;  %v2735_v59 = vpop.f32.mrb[65].mxu0 }
 0x17f   : > { %v2736_v62 = vadd.f32 %v2735_v59, %v2734_v15 }
 0x180   : > { %v1387_v6 = vadd.f32 %v2656_v22, %v4689_v38  ;;  %v2657_v63 = vpop.f32.mrb[66].mxu1 }
 0x181   : > { %v2658_v2 = vpop.f32.mrb[67].mxu1  ;;  %v2737_v1 = vpop.f32.mrb[66].mxu0 }
 0x182   : > { %v4739_v3 = vadd.f32 %v2736_v62, %v1387_v6  ;;  %v2659_v48 = vadd.f32 %v2658_v2, %v2657_v63  ;;  %v2738_v4 = vpop.f32.mrb[67].mxu0 }
 0x183   : > { %v2739_v25 = vadd.f32 %v2738_v4, %v2737_v1 }
 0x184   : > { %v1392_v21 = vadd.f32 %v2659_v48, %v4694_v51  ;;  %v2660_v7 = vpop.f32.mrb[68].mxu1 }
 0x185   : > { %v2661_v34 = vpop.f32.mrb[69].mxu1  ;;  %v2740_v9 = vpop.f32.mrb[68].mxu0 }
 0x186   : > { %v4742_v13 = vadd.f32 %v2739_v25, %v1392_v21  ;;  %v2662_v61 = vadd.f32 %v2661_v34, %v2660_v7  ;;  %v2741_v16 = vpop.f32.mrb[69].mxu0 }
 0x187   : > { %v2742_v11 = vadd.f32 %v2741_v16, %v2740_v9 }
 0x188   : > { %v1397_v38 = vadd.f32 %v2662_v61, %v4697_v60  ;;  %v2663_v18 = vpop.f32.mrb[70].mxu1 }
 0x189   : > { %v2664_v44 = vpop.f32.mrb[71].mxu1  ;;  %v2743_v20 = vpop.f32.mrb[70].mxu0 }
 0x18a   : > { %v4745_v35 = vadd.f32 %v2742_v11, %v1397_v38  ;;  %v2665_v12 = vadd.f32 %v2664_v44, %v2663_v18  ;;  %v2744_v26 = vpop.f32.mrb[71].mxu0 }
 0x18b   : > { %v2745_v28 = vadd.f32 %v2744_v26, %v2743_v20 }
 0x18c   : > { %v1402_v51 = vadd.f32 %v2665_v12, %v4700_v5  ;;  %v2666_v30 = vpop.f32.mrb[72].mxu1 }
 0x18d   : > { %v2667_v54 = vpop.f32.mrb[73].mxu1  ;;  %v2746_v32 = vpop.f32.mrb[72].mxu0 }
 0x18e   : > { %v4748_v23 = vadd.f32 %v2745_v28, %v1402_v51  ;;  %v2668_v29 = vadd.f32 %v2667_v54, %v2666_v30  ;;  %v2747_v33 = vpop.f32.mrb[73].mxu0 }
 0x18f   : > { %v2748_v37 = vadd.f32 %v2747_v33, %v2746_v32 }
 0x190   : > { %v1407_v60 = vadd.f32 %v2668_v29, %v4703_v17  ;;  %v2669_v45 = vpop.f32.mrb[74].mxu1 }
 0x191   : > { %v2670_v0 = vpop.f32.mrb[75].mxu1  ;;  %v2749_v40 = vpop.f32.mrb[74].mxu0 }
 0x192   : > { %v4751_v41 = vadd.f32 %v2748_v37, %v1407_v60  ;;  %v2671_v42 = vadd.f32 %v2670_v0, %v2669_v45  ;;  %v2750_v43 = vpop.f32.mrb[75].mxu0 }
 0x193   : > { %v2751_v47 = vadd.f32 %v2750_v43, %v2749_v40 }
 0x194   : > { %v1412_v5 = vadd.f32 %v2671_v42, %v4706_v27  ;;  %v2672_v49 = vpop.f32.mrb[76].mxu1 }
 0x195   : > { %v2673_v10 = vpop.f32.mrb[77].mxu1  ;;  %v2752_v14 = vpop.f32.mrb[76].mxu0 }
 0x196   : > { %v4754_v55 = vadd.f32 %v2751_v47, %v1412_v5  ;;  %v2674_v57 = vadd.f32 %v2673_v10, %v2672_v49  ;;  %v2753_v52 = vpop.f32.mrb[77].mxu0 }
 0x197   : > { %v2754_v56 = vadd.f32 %v2753_v52, %v2752_v14 }
 0x198   : > { %v1417_v17 = vadd.f32 %v2674_v57, %v4709_v36  ;;  %v2675_v15 = vpop.f32.mrb[78].mxu1 }
 0x199   : > { %v2676_v22 = vpop.f32.mrb[79].mxu1  ;;  %v2755_v59 = vpop.f32.mrb[78].mxu0 }
 0x19a   : > { %v4757_v62 = vadd.f32 %v2754_v56, %v1417_v17  ;;  %v2677_v6 = vadd.f32 %v2676_v22, %v2675_v15  ;;  %v2756_v63 = vpop.f32.mrb[79].mxu0 }
 0x19b   : > { %v2757_v2 = vadd.f32 %v2756_v63, %v2755_v59 }
 0x19c   : > { %v1422_v27 = vadd.f32 %v2677_v6, %v4712_v46  ;;  %v2790_v1 = vpop.f32.mrb[80].mxu1 }
 0x19d   : > { %v2791_v48 = vpop.f32.mrb[81].mxu1  ;;  %v2870_v4 = vpop.f32.mrb[80].mxu0 }
 0x19e   : > { %v4760_v25 = vadd.f32 %v2757_v2, %v1422_v27  ;;  %v2792_v21 = vadd.f32 %v2791_v48, %v2790_v1  ;;  %v2871_v7 = vpop.f32.mrb[81].mxu0 }
 0x19f   : > { %v2872_v34 = vadd.f32 %v2871_v7, %v2870_v4 }
 0x1a0   : > { %v1637_v36 = vadd.f32 %v2792_v21, %v4715_v53  ;;  %v2793_v9 = vpop.f32.mrb[82].mxu1 }
 0x1a1   : > { %v2794_v61 = vpop.f32.mrb[83].mxu1  ;;  %v2873_v16 = vpop.f32.mrb[82].mxu0 }
 0x1a2   : > { %v4763_v11 = vadd.f32 %v2872_v34, %v1637_v36  ;;  %v2795_v38 = vadd.f32 %v2794_v61, %v2793_v9  ;;  %v2874_v18 = vpop.f32.mrb[83].mxu0 }
 0x1a3   : > { %v2875_v44 = vadd.f32 %v2874_v18, %v2873_v16 }
 0x1a4   : > { %v1642_v46 = vadd.f32 %v2795_v38, %v4718_v24  ;;  %v2796_v20 = vpop.f32.mrb[84].mxu1 }
 0x1a5   : > { %v2797_v12 = vpop.f32.mrb[85].mxu1  ;;  %v2876_v26 = vpop.f32.mrb[84].mxu0 }
 0x1a6   : > { %v4766_v28 = vadd.f32 %v2875_v44, %v1642_v46  ;;  %v2798_v51 = vadd.f32 %v2797_v12, %v2796_v20  ;;  %v2877_v30 = vpop.f32.mrb[85].mxu0 }
 0x1a7   : > { %v2878_v54 = vadd.f32 %v2877_v30, %v2876_v26 }
 0x1a8   : > { %v1647_v53 = vadd.f32 %v2798_v51, %v4721_v8  ;;  %v2799_v32 = vpop.f32.mrb[86].mxu1 }
 0x1a9   : > { %v2800_v29 = vpop.f32.mrb[87].mxu1  ;;  %v2879_v33 = vpop.f32.mrb[86].mxu0 }
 0x1aa   : > { %v4769_v37 = vadd.f32 %v2878_v54, %v1647_v53  ;;  %v2801_v60 = vadd.f32 %v2800_v29, %v2799_v32  ;;  %v2880_v45 = vpop.f32.mrb[87].mxu0 }
 0x1ab   : > { %v2881_v0 = vadd.f32 %v2880_v45, %v2879_v33 }
 0x1ac   : > { %v1652_v24 = vadd.f32 %v2801_v60, %v4724_v19  ;;  %v2802_v40 = vpop.f32.mrb[88].mxu1 }
 0x1ad   : > { %v2803_v42 = vpop.f32.mrb[89].mxu1  ;;  %v2882_v43 = vpop.f32.mrb[88].mxu0 }
 0x1ae   : > { %v4772_v47 = vadd.f32 %v2881_v0, %v1652_v24  ;;  %v2804_v5 = vadd.f32 %v2803_v42, %v2802_v40  ;;  %v2883_v49 = vpop.f32.mrb[89].mxu0 }
 0x1af   : > { %v2884_v10 = vadd.f32 %v2883_v49, %v2882_v43 }
 0x1b0   : > { %v1657_v8 = vadd.f32 %v2804_v5, %v4727_v31  ;;  %v2805_v14 = vpop.f32.mrb[90].mxu1 }
 0x1b1   : > { %v2806_v57 = vpop.f32.mrb[91].mxu1  ;;  %v2885_v52 = vpop.f32.mrb[90].mxu0 }
 0x1b2   : > { %v4775_v56 = vadd.f32 %v2884_v10, %v1657_v8  ;;  %v2807_v17 = vadd.f32 %v2806_v57, %v2805_v14  ;;  %v2886_v15 = vpop.f32.mrb[91].mxu0 }
 0x1b3   : > { %v2887_v22 = vadd.f32 %v2886_v15, %v2885_v52 }
 0x1b4   : > { %v1662_v19 = vadd.f32 %v2807_v17, %v4730_v39  ;;  %v2808_v59 = vpop.f32.mrb[92].mxu1 }
 0x1b5   : > { %v2809_v6 = vpop.f32.mrb[93].mxu1  ;;  %v2888_v63 = vpop.f32.mrb[92].mxu0 }
 0x1b6   : > { %v4778_v2 = vadd.f32 %v2887_v22, %v1662_v19  ;;  %v2810_v27 = vadd.f32 %v2809_v6, %v2808_v59  ;;  %v2889_v1 = vpop.f32.mrb[93].mxu0 }
 0x1b7   : > { %v2890_v48 = vadd.f32 %v2889_v1, %v2888_v63 }
 0x1b8   : > { %v1667_v31 = vadd.f32 %v2810_v27, %v4733_v50  ;;  %v2811_v4 = vpop.f32.mrb[94].mxu1 }
 0x1b9   : > { %v2812_v21 = vpop.f32.mrb[95].mxu1  ;;  %v2891_v7 = vpop.f32.mrb[94].mxu0 }
 0x1ba   : > { %v4781_v34 = vadd.f32 %v2890_v48, %v1667_v31  ;;  %v2813_v36 = vadd.f32 %v2812_v21, %v2811_v4  ;;  %v2892_v9 = vpop.f32.mrb[95].mxu0 }
 0x1bb   : > { %v2893_v61 = vadd.f32 %v2892_v9, %v2891_v7 }
 0x1bc   : > { %v1672_v39 = vadd.f32 %v2813_v36, %v4736_v58  ;;  %v2814_v16 = vpop.f32.mrb[96].mxu1 }
 0x1bd   : > { %v2815_v38 = vpop.f32.mrb[97].mxu1  ;;  %v2894_v18 = vpop.f32.mrb[96].mxu0 }
 0x1be   : > { %v4784_v44 = vadd.f32 %v2893_v61, %v1672_v39  ;;  %v2816_v46 = vadd.f32 %v2815_v38, %v2814_v16  ;;  %v2895_v20 = vpop.f32.mrb[97].mxu0 }
 0x1bf   : > { %v2896_v12 = vadd.f32 %v2895_v20, %v2894_v18 }
 0x1c0   : > { %v1677_v50 = vadd.f32 %v2816_v46, %v4739_v3  ;;  %v2817_v26 = vpop.f32.mrb[98].mxu1 }
 0x1c1   : > { %v2818_v51 = vpop.f32.mrb[99].mxu1  ;;  %v2897_v30 = vpop.f32.mrb[98].mxu0 }
 0x1c2   : > { %v4787_v54 = vadd.f32 %v2896_v12, %v1677_v50  ;;  %v2819_v53 = vadd.f32 %v2818_v51, %v2817_v26  ;;  %v2898_v32 = vpop.f32.mrb[99].mxu0 }
 0x1c3   : > { %v2899_v29 = vadd.f32 %v2898_v32, %v2897_v30 }
 0x1c4   : > { %v1682_v58 = vadd.f32 %v2819_v53, %v4742_v13  ;;  %v2820_v33 = vpop.f32.mrb[100].mxu1 }
 0x1c5   : > { %v2821_v60 = vpop.f32.mrb[101].mxu1  ;;  %v2900_v45 = vpop.f32.mrb[100].mxu0 }
 0x1c6   : > { %v4790_v0 = vadd.f32 %v2899_v29, %v1682_v58  ;;  %v2822_v24 = vadd.f32 %v2821_v60, %v2820_v33  ;;  %v2901_v40 = vpop.f32.mrb[101].mxu0 }
 0x1c7   : > { %v2902_v42 = vadd.f32 %v2901_v40, %v2900_v45 }
 0x1c8   : > { %v1687_v3 = vadd.f32 %v2822_v24, %v4745_v35  ;;  %v2823_v43 = vpop.f32.mrb[102].mxu1  ;;  %v4814_v24 = vld [vmem:[%s4901_s2] ss:$0 sm:$0xff] }
 0x1c9   : > { %v2824_v5 = vpop.f32.mrb[103].mxu1  ;;  %v2903_v49 = vpop.f32.mrb[102].mxu0 }
 0x1ca   : > { %v4793_v10 = vadd.f32 %v2902_v42, %v1687_v3  ;;  %v2825_v8 = vadd.f32 %v2824_v5, %v2823_v43  ;;  %v2904_v14 = vpop.f32.mrb[103].mxu0  ;;  %v4819_v5 = vld [vmem:[%s4902_s3] ss:$0 sm:$0xff] }
 0x1cb   : > { %v2905_v57 = vadd.f32 %v2904_v14, %v2903_v49 }
 0x1cc   : > { %v1692_v13 = vadd.f32 %v2825_v8, %v4748_v23  ;;  %v2826_v52 = vpop.f32.mrb[104].mxu1 }
 0x1cd   : > { %v2827_v17 = vpop.f32.mrb[105].mxu1  ;;  %v2906_v15 = vpop.f32.mrb[104].mxu0 }
 0x1ce   : > { %v4796_v22 = vadd.f32 %v2905_v57, %v1692_v13  ;;  %v2828_v19 = vadd.f32 %v2827_v17, %v2826_v52  ;;  %v2907_v59 = vpop.f32.mrb[105].mxu0 }
 0x1cf   : > { %v2908_v6 = vadd.f32 %v2907_v59, %v2906_v15 }
 0x1d0   : > { %v1697_v35 = vadd.f32 %v2828_v19, %v4751_v41  ;;  %v2829_v63 = vpop.f32.mrb[106].mxu1 }
 0x1d1   : > { %v2830_v27 = vpop.f32.mrb[107].mxu1  ;;  %v2909_v1 = vpop.f32.mrb[106].mxu0 }
 0x1d2   : > { %v4799_v48 = vadd.f32 %v2908_v6, %v1697_v35  ;;  %v2831_v31 = vadd.f32 %v2830_v27, %v2829_v63  ;;  %v2910_v4 = vpop.f32.mrb[107].mxu0 }
 0x1d3   : > { %v2911_v21 = vadd.f32 %v2910_v4, %v2909_v1 }
 0x1d4   : > { %v1702_v23 = vadd.f32 %v2831_v31, %v4754_v55  ;;  %v2832_v7 = vpop.f32.mrb[108].mxu1 }
 0x1d5   : > { %v2833_v36 = vpop.f32.mrb[109].mxu1  ;;  %v2912_v9 = vpop.f32.mrb[108].mxu0 }
 0x1d6   : > { %v4802_v61 = vadd.f32 %v2911_v21, %v1702_v23  ;;  %v2834_v39 = vadd.f32 %v2833_v36, %v2832_v7  ;;  %v2913_v16 = vpop.f32.mrb[109].mxu0 }
 0x1d7   : > { %v2914_v38 = vadd.f32 %v2913_v16, %v2912_v9 }
 0x1d8   : > { %v1707_v41 = vadd.f32 %v2834_v39, %v4757_v62  ;;  %v2835_v18 = vpop.f32.mrb[110].mxu1 }
 0x1d9   : > { %v2836_v46 = vpop.f32.mrb[111].mxu1  ;;  %v2915_v20 = vpop.f32.mrb[110].mxu0 }
 0x1da   : > { %v4805_v12 = vadd.f32 %v2914_v38, %v1707_v41  ;;  %v2837_v50 = vadd.f32 %v2836_v46, %v2835_v18  ;;  %v2916_v26 = vpop.f32.mrb[111].mxu0 }
 0x1db   : > { %v2917_v51 = vadd.f32 %v2916_v26, %v2915_v20 }
 0x1dc   : > { %v1712_v55 = vadd.f32 %v2837_v50, %v4760_v25  ;;  %v2950_v30 = vpop.f32.mrb[112].mxu1 }
 0x1dd   : > { %v2951_v53 = vpop.f32.mrb[113].mxu1  ;;  %v3030_v32 = vpop.f32.mrb[112].mxu0 }
 0x1de   : > { %v4808_v29 = vadd.f32 %v2917_v51, %v1712_v55  ;;  %v2952_v58 = vadd.f32 %v2951_v53, %v2950_v30  ;;  %v3031_v33 = vpop.f32.mrb[113].mxu0 }
 0x1df   : > { %v3032_v60 = vadd.f32 %v3031_v33, %v3030_v32 }
 0x1e0   : > { %v1927_v62 = vadd.f32 %v2952_v58, %v4763_v11  ;;  %v2953_v45 = vpop.f32.mrb[114].mxu1 }
 0x1e1   : > { %v2954_v40 = vpop.f32.mrb[115].mxu1  ;;  %v3033_v42 = vpop.f32.mrb[114].mxu0 }
 0x1e2   : > { %v2072_v25 = vadd.f32 %v3032_v60, %v1927_v62  ;;  %v2955_v3 = vadd.f32 %v2954_v40, %v2953_v45  ;;  %v3034_v43 = vpop.f32.mrb[115].mxu0 }
 0x1e3   : > { %v3035_v49 = vadd.f32 %v3034_v43, %v3033_v42 }
 0x1e4   : > { %v2157_v11 = vmul.f32 %v4814_v24, %v2072_v25  ;;  %v1932_v8 = vadd.f32 %v2955_v3, %v4766_v28  ;;  %v2956_v14 = vpop.f32.mrb[116].mxu1 }
 0x1e5   : > { %v2957_v57 = vpop.f32.mrb[117].mxu1  ;;  %v3036_v13 = vpop.f32.mrb[116].mxu0 }
 0x1e6   : > { %v2180_v52 = vadd.f32 %v4819_v5, %v2157_v11  ;;  %v2077_v17 = vadd.f32 %v3035_v49, %v1932_v8  ;;  %v2958_v15 = vadd.f32 %v2957_v57, %v2956_v14  ;;  %v3037_v19 = vpop.f32.mrb[117].mxu0 }
 0x1e7   : > { %v3038_v59 = vadd.f32 %v3037_v19, %v3036_v13 }
 0x1e8   : > { %v2196_v6 = vmax.f32 %v2180_v52, 0.0  ;;  %v2158_v35 = vmul.f32 %v4814_v24, %v2077_v17  ;;  %v1937_v28 = vadd.f32 %v2958_v15, %v4769_v37  ;;  %v2959_v63 = vpop.f32.mrb[118].mxu1 }
 0x1e9   : > { %v2960_v27 = vpop.f32.mrb[119].mxu1  ;;  %v3039_v1 = vpop.f32.mrb[118].mxu0 }
 0x1ea   : > { %2212 = vst [vmem:[%s4828_s12] sm:$0xff] %v2196_v6  ;;  %v2181_v31 = vadd.f32 %v4819_v5, %v2158_v35  ;;  %v2082_v4 = vadd.f32 %v3038_v59, %v1937_v28  ;;  %v2961_v21 = vadd.f32 %v2960_v27, %v2959_v63  ;;  %v3040_v23 = vpop.f32.mrb[119].mxu0 }
 0x1eb   : > { %v3041_v7 = vadd.f32 %v3040_v23, %v3039_v1 }
 0x1ec   : > { %v2197_v36 = vmax.f32 %v2181_v31, 0.0  ;;  %v2159_v9 = vmul.f32 %v4814_v24, %v2082_v4  ;;  %v1942_v39 = vadd.f32 %v2961_v21, %v4772_v47  ;;  %v2962_v16 = vpop.f32.mrb[120].mxu1 }
 0x1ed   : > { %v2963_v38 = vpop.f32.mrb[121].mxu1  ;;  %v3042_v37 = vpop.f32.mrb[120].mxu0 }
 0x1ee   : > { %2213 = vst [vmem:[%s4828_s12 + $0x8] sm:$0xff] %v2197_v36  ;;  %v2182_v41 = vadd.f32 %v4819_v5, %v2159_v9  ;;  %v2087_v18 = vadd.f32 %v3041_v7, %v1942_v39  ;;  %v2964_v46 = vadd.f32 %v2963_v38, %v2962_v16  ;;  %v3043_v20 = vpop.f32.mrb[121].mxu0 }
 0x1ef   : > { %v3044_v50 = vadd.f32 %v3043_v20, %v3042_v37 }
 0x1f0   : > { %v2198_v26 = vmax.f32 %v2182_v41, 0.0  ;;  %v2160_v51 = vmul.f32 %v4814_v24, %v2087_v18  ;;  %v1947_v55 = vadd.f32 %v2964_v46, %v4775_v56  ;;  %v2965_v30 = vpop.f32.mrb[122].mxu1 }
 0x1f1   : > { %v2966_v53 = vpop.f32.mrb[123].mxu1  ;;  %v3045_v47 = vpop.f32.mrb[122].mxu0 }
 0x1f2   : > { %2214 = vst [vmem:[%s4828_s12 + $0x10] sm:$0xff] %v2198_v26  ;;  %v2183_v32 = vadd.f32 %v4819_v5, %v2160_v51  ;;  %v2092_v58 = vadd.f32 %v3044_v50, %v1947_v55  ;;  %v2967_v33 = vadd.f32 %v2966_v53, %v2965_v30  ;;  %v3046_v60 = vpop.f32.mrb[123].mxu0 }
 0x1f3   : > { %v3047_v62 = vadd.f32 %v3046_v60, %v3045_v47 }
 0x1f4   : > { %v2199_v45 = vmax.f32 %v2183_v32, 0.0  ;;  %v2161_v40 = vmul.f32 %v4814_v24, %v2092_v58  ;;  %v1952_v42 = vadd.f32 %v2967_v33, %v4778_v2  ;;  %v2968_v25 = vpop.f32.mrb[124].mxu1 }
 0x1f5   : > { %v2969_v3 = vpop.f32.mrb[125].mxu1  ;;  %v3048_v56 = vpop.f32.mrb[124].mxu0 }
 0x1f6   : > { %2215 = vst [vmem:[%s4828_s12 + $0x18] sm:$0xff] %v2199_v45  ;;  %v2184_v43 = vadd.f32 %v4819_v5, %v2161_v40  ;;  %v2097_v49 = vadd.f32 %v3047_v62, %v1952_v42  ;;  %v2970_v11 = vadd.f32 %v2969_v3, %v2968_v25  ;;  %v3049_v8 = vpop.f32.mrb[125].mxu0 }
 0x1f7   : > { %v3050_v14 = vadd.f32 %v3049_v8, %v3048_v56 }
 0x1f8   : > { %v2200_v57 = vmax.f32 %v2184_v43, 0.0  ;;  %v2162_v13 = vmul.f32 %v4814_v24, %v2097_v49  ;;  %v1957_v52 = vadd.f32 %v2970_v11, %v4781_v34  ;;  %v2971_v17 = vpop.f32.mrb[126].mxu1 }
 0x1f9   : > { %v2972_v15 = vpop.f32.mrb[127].mxu1  ;;  %v3051_v2 = vpop.f32.mrb[126].mxu0 }
 0x1fa   : > { %2216 = vst [vmem:[%s4828_s12 + $0x20] sm:$0xff] %v2200_v57  ;;  %v2185_v19 = vadd.f32 %v4819_v5, %v2162_v13  ;;  %v2102_v59 = vadd.f32 %v3050_v14, %v1957_v52  ;;  %v2973_v6 = vadd.f32 %v2972_v15, %v2971_v17  ;;  %v3052_v35 = vpop.f32.mrb[127].mxu0 }
 0x1fb   : > { %v3053_v28 = vadd.f32 %v3052_v35, %v3051_v2 }
 0x1fc   : > { %v2201_v63 = vmax.f32 %v2185_v19, 0.0  ;;  %v2163_v27 = vmul.f32 %v4814_v24, %v2102_v59  ;;  %v1962_v1 = vadd.f32 %v2973_v6, %v4784_v44  ;;  %v2974_v31 = vpop.f32.mrb[128].mxu1 }
 0x1fd   : > { %v2975_v4 = vpop.f32.mrb[129].mxu1  ;;  %v3054_v34 = vpop.f32.mrb[128].mxu0 }
 0x1fe   : > { %2217 = vst [vmem:[%s4828_s12 + $0x28] sm:$0xff] %v2201_v63  ;;  %v2186_v21 = vadd.f32 %v4819_v5, %v2163_v27  ;;  %v2107_v23 = vadd.f32 %v3053_v28, %v1962_v1  ;;  %v2976_v7 = vadd.f32 %v2975_v4, %v2974_v31  ;;  %v3055_v36 = vpop.f32.mrb[129].mxu0 }
 0x1ff   : > { %v3056_v9 = vadd.f32 %v3055_v36, %v3054_v34 }
 0x200   : > { %v2202_v39 = vmax.f32 %v2186_v21, 0.0  ;;  %v2164_v16 = vmul.f32 %v4814_v24, %v2107_v23  ;;  %v1967_v38 = vadd.f32 %v2976_v7, %v4787_v54  ;;  %v2977_v37 = vpop.f32.mrb[130].mxu1 }
 0x201   : > { %v2978_v41 = vpop.f32.mrb[131].mxu1  ;;  %v3057_v44 = vpop.f32.mrb[130].mxu0 }
 0x202   : > { %2218 = vst [vmem:[%s4828_s12 + $0x30] sm:$0xff] %v2202_v39  ;;  %v2187_v18 = vadd.f32 %v4819_v5, %v2164_v16  ;;  %v2112_v46 = vadd.f32 %v3056_v9, %v1967_v38  ;;  %v2979_v20 = vadd.f32 %v2978_v41, %v2977_v37  ;;  %v3058_v50 = vpop.f32.mrb[131].mxu0 }
 0x203   : > { %v3059_v26 = vadd.f32 %v3058_v50, %v3057_v44 }
 0x204   : > { %v2203_v51 = vmax.f32 %v2187_v18, 0.0  ;;  %v2165_v55 = vmul.f32 %v4814_v24, %v2112_v46  ;;  %v1972_v30 = vadd.f32 %v2979_v20, %v4790_v0  ;;  %v2980_v53 = vpop.f32.mrb[132].mxu1 }
 0x205   : > { %v2981_v47 = vpop.f32.mrb[133].mxu1  ;;  %v3060_v54 = vpop.f32.mrb[132].mxu0 }
 0x206   : > { %2219 = vst [vmem:[%s4828_s12 + $0x38] sm:$0xff] %v2203_v51  ;;  %v2188_v32 = vadd.f32 %v4819_v5, %v2165_v55  ;;  %v2117_v58 = vadd.f32 %v3059_v26, %v1972_v30  ;;  %v2982_v33 = vadd.f32 %v2981_v47, %v2980_v53  ;;  %v3061_v60 = vpop.f32.mrb[133].mxu0 }
 0x207   : > { %v3062_v62 = vadd.f32 %v3061_v60, %v3060_v54 }
 0x208   : > { %v2204_v45 = vmax.f32 %v2188_v32, 0.0  ;;  %v2166_v40 = vmul.f32 %v4814_v24, %v2117_v58  ;;  %v1977_v42 = vadd.f32 %v2982_v33, %v4793_v10  ;;  %v2983_v25 = vpop.f32.mrb[134].mxu1 }
 0x209   : > { %v2984_v3 = vpop.f32.mrb[135].mxu1  ;;  %v3063_v0 = vpop.f32.mrb[134].mxu0 }
 0x20a   : > { %2220 = vst [vmem:[%s4828_s12 + $0x40] sm:$0xff] %v2204_v45  ;;  %v2189_v56 = vadd.f32 %v4819_v5, %v2166_v40  ;;  %v2122_v43 = vadd.f32 %v3062_v62, %v1977_v42  ;;  %v2985_v49 = vadd.f32 %v2984_v3, %v2983_v25  ;;  %v3064_v11 = vpop.f32.mrb[135].mxu0 }
 0x20b   : > { %v3065_v8 = vadd.f32 %v3064_v11, %v3063_v0 }
 0x20c   : > { %v2205_v14 = vmax.f32 %v2189_v56, 0.0  ;;  %v2167_v57 = vmul.f32 %v4814_v24, %v2122_v43  ;;  %v1982_v13 = vadd.f32 %v2985_v49, %v4796_v22  ;;  %v2986_v52 = vpop.f32.mrb[136].mxu1 }
 0x20d   : > { %v2987_v17 = vpop.f32.mrb[137].mxu1  ;;  %v3066_v10 = vpop.f32.mrb[136].mxu0 }
 0x20e   : > { %2221 = vst [vmem:[%s4828_s12 + $0x48] sm:$0xff] %v2205_v14  ;;  %v2190_v15 = vadd.f32 %v4819_v5, %v2167_v57  ;;  %v2127_v2 = vadd.f32 %v3065_v8, %v1982_v13  ;;  %v2988_v19 = vadd.f32 %v2987_v17, %v2986_v52  ;;  %v3067_v59 = vpop.f32.mrb[137].mxu0 }
 0x20f   : > { %v3068_v6 = vadd.f32 %v3067_v59, %v3066_v10 }
 0x210   : > { %v2206_v35 = vmax.f32 %v2190_v15, 0.0  ;;  %v2168_v28 = vmul.f32 %v4814_v24, %v2127_v2  ;;  %v1987_v63 = vadd.f32 %v2988_v19, %v4799_v48  ;;  %v2989_v27 = vpop.f32.mrb[138].mxu1 }
 0x211   : > { %v2990_v1 = vpop.f32.mrb[139].mxu1  ;;  %v3069_v22 = vpop.f32.mrb[138].mxu0 }
 0x212   : > { %2222 = vst [vmem:[%s4828_s12 + $0x50] sm:$0xff] %v2206_v35  ;;  %v2191_v31 = vadd.f32 %v4819_v5, %v2168_v28  ;;  %v2132_v4 = vadd.f32 %v3068_v6, %v1987_v63  ;;  %v2991_v34 = vadd.f32 %v2990_v1, %v2989_v27  ;;  %v3070_v21 = vpop.f32.mrb[139].mxu0 }
 0x213   : > { %v3071_v23 = vadd.f32 %v3070_v21, %v3069_v22 }
 0x214   : > { %v2207_v7 = vmax.f32 %v2191_v31, 0.0  ;;  %v2169_v36 = vmul.f32 %v4814_v24, %v2132_v4  ;;  %v1992_v9 = vadd.f32 %v2991_v34, %v4802_v61  ;;  %v2992_v39 = vpop.f32.mrb[140].mxu1 }
 0x215   : > { %v2993_v16 = vpop.f32.mrb[141].mxu1  ;;  %v3072_v48 = vpop.f32.mrb[140].mxu0 }
 0x216   : > { %2223 = vst [vmem:[%s4828_s12 + $0x58] sm:$0xff] %v2207_v7  ;;  %v2192_v38 = vadd.f32 %v4819_v5, %v2169_v36  ;;  %v2137_v37 = vadd.f32 %v3071_v23, %v1992_v9  ;;  %v2994_v41 = vadd.f32 %v2993_v16, %v2992_v39  ;;  %v3073_v44 = vpop.f32.mrb[141].mxu0 }
 0x217   : > { %v3074_v18 = vadd.f32 %v3073_v44, %v3072_v48 }
 0x218   : > { %v2208_v46 = vmax.f32 %v2192_v38, 0.0  ;;  %v2170_v20 = vmul.f32 %v4814_v24, %v2137_v37  ;;  %v1997_v50 = vadd.f32 %v2994_v41, %v4805_v12  ;;  %v2995_v26 = vpop.f32.mrb[142].mxu1 }
 0x219   : > { %v2996_v51 = vpop.f32.mrb[143].mxu1  ;;  %v3075_v61 = vpop.f32.mrb[142].mxu0 }
 0x21a   : > { %2224 = vst [vmem:[%s4828_s12 + $0x60] sm:$0xff] %v2208_v46  ;;  %v2193_v55 = vadd.f32 %v4819_v5, %v2170_v20  ;;  %v2142_v30 = vadd.f32 %v3074_v18, %v1997_v50  ;;  %v2997_v53 = vadd.f32 %v2996_v51, %v2995_v26  ;;  %v3076_v47 = vpop.f32.mrb[143].mxu0 }
 0x21b   : > { %v3077_v54 = vadd.f32 %v3076_v47, %v3075_v61 }
 0x21c   : > { %v2209_v32 = vmax.f32 %v2193_v55, 0.0  ;;  %v2171_v58 = vmul.f32 %v4814_v24, %v2142_v30  ;;  %v2002_v33 = vadd.f32 %v2997_v53, %v4808_v29 }
 0x21e   : > { %2225 = vst [vmem:[%s4828_s12 + $0x68] sm:$0xff] %v2209_v32  ;;  %v2194_v12 = vadd.f32 %v4819_v5, %v2171_v58  ;;  %v2147_v60 = vadd.f32 %v3077_v54, %v2002_v33 }
 0x220   : > { %v2210_v62 = vmax.f32 %v2194_v12, 0.0  ;;  %v2172_v45 = vmul.f32 %v4814_v24, %v2147_v60 }
 0x222   : > { %2226 = vst [vmem:[%s4828_s12 + $0x70] sm:$0xff] %v2210_v62  ;;  %v2195_v40 = vadd.f32 %v4819_v5, %v2172_v45 }
 0x224   : > { %v2211_v42 = vmax.f32 %v2195_v40, 0.0 }
 0x226   : > { %2227 = vst [vmem:[%s4828_s12 + $0x78] sm:$0xff] %v2211_v42 }
 0x227 PF: > { %s14_s17 = sadd.s32 1, %s3429_s17   ;;  %s4904_s15 = smov %s3425_s16 }
 0x228   : > { %p11_p5 = scmp.ge.s32.totalorder %s14_s17, 4   ;;  %s4905_s16 = smov %s4907_s18 }
 0x22a   :  { %13 = sbr.rel (!%p11_p5) target bundleno = 2 (0x2), region = 75 }

// kernel: res_cnn_forward.6
= control target key start
LH: loop header
LB: loop body
LE: loop exit
PB: predicated region body
PF: predicated region fallthrough
CT: control target
= control target key end

     0   :  { %vm1124_vm0 = vmmov 0   ;;  %s1760_s1 = inlined_call_operand.vmem [shape: f32[1152,128], index: 1, kind: input, shape index: {}]   ;;  %s1761_s0 = inlined_call_operand.vmem [shape: f32[40,1152], index: 0, kind: input, shape index: {}]   ;;  %s1762_s2 = inlined_call_operand.vmem [shape: f32[1,128], index: 2, kind: input, shape index: {}]   ;;  %s1763_s3 = inlined_call_operand.vmem [shape: f32[1,128], index: 3, kind: input, shape index: {}]   ;;  %s1764_s4 = inlined_call_operand.vmem [shape: f32[40,128], index: 4, kind: output, shape index: {}]  }
   0x1   :  { %v78_v0 = vld [vmem:[%s1760_s1 + $0x80] sm:$0xff]  ;;  %v79_v1 = vld [vmem:[%s1760_s1 + $0x88] sm:$0xff]  ;;  %v80_v11 = vld [vmem:[%s1760_s1 + $0x90] sm:$0xff] }
   0x2   :  { %v110_v2 = vld [vmem:[%s1760_s1 + $0x180] sm:$0xff]  ;;  %v952_v3 = vpack.c.bf16 %v79_v1, %v78_v0  ;;  %v111_v4 = vld [vmem:[%s1760_s1 + $0x188] sm:$0xff]  ;;  %v81_v13 = vld [vmem:[%s1760_s1 + $0x98] sm:$0xff] }
   0x3   :  { %v62_v5 = vld [vmem:[%s1760_s1] sm:$0xff]  ;;  %v63_v6 = vld [vmem:[%s1760_s1 + $0x8] sm:$0xff]  ;;  %v984_v7 = vpack.c.bf16 %v111_v4, %v110_v2  ;;  %v112_v14 = vld [vmem:[%s1760_s1 + $0x190] sm:$0xff]  ;;  %v956_v16 = vpack.c.bf16 %v81_v13, %v80_v11 }
   0x4   :  { %v954_v8 = vpack.c.bf16 %v63_v6, %v62_v5  ;;  %v94_v9 = vld [vmem:[%s1760_s1 + $0x100] sm:$0xff]  ;;  %v95_v10 = vld [vmem:[%s1760_s1 + $0x108] sm:$0xff]  ;;  %953 = vmatprep.subr.bf16.mxu0 %v952_v3  ;;  %v113_v15 = vld [vmem:[%s1760_s1 + $0x198] sm:$0xff] }
   0x5   :  { %v986_v12 = vpack.c.bf16 %v95_v10, %v94_v9  ;;  %985 = vmatprep.subr.bf16.mxu1 %v984_v7  ;;  %v988_v17 = vpack.c.bf16 %v113_v15, %v112_v14  ;;  %v64_v18 = vld [vmem:[%s1760_s1 + $0x10] sm:$0xff]  ;;  %v65_v19 = vld [vmem:[%s1760_s1 + $0x18] sm:$0xff]  ;;  %v82_v23 = vld [vmem:[%s1760_s1 + $0xa0] sm:$0xff] }
   0x6   :  { %955 = vmatpush3.bf16.msra.mxu0 %v954_v8  ;;  %v96_v20 = vld [vmem:[%s1760_s1 + $0x110] sm:$0xff]  ;;  %v958_v21 = vpack.c.bf16 %v65_v19, %v64_v18  ;;  %v97_v22 = vld [vmem:[%s1760_s1 + $0x118] sm:$0xff]  ;;  %v83_v24 = vld [vmem:[%s1760_s1 + $0xa8] sm:$0xff] }
   0x7   :  { %987 = vmatpush3.bf16.msra.mxu1 %v986_v12  ;;  %957 = vmatprep.subr.bf16.mxu0 %v956_v16  ;;  %v990_v25 = vpack.c.bf16 %v97_v22, %v96_v20  ;;  %v960_v26 = vpack.c.bf16 %v83_v24, %v82_v23  ;;  %v114_v27 = vld [vmem:[%s1760_s1 + $0x1a0] sm:$0xff]  ;;  %v115_v28 = vld [vmem:[%s1760_s1 + $0x1a8] sm:$0xff]  ;;  %v84_v35 = vld [vmem:[%s1760_s1 + $0xb0] sm:$0xff] }
   0x8   :  { %989 = vmatprep.subr.bf16.mxu1 %v988_v17  ;;  %v66_v29 = vld [vmem:[%s1760_s1 + $0x20] sm:$0xff]  ;;  %v992_v30 = vpack.c.bf16 %v115_v28, %v114_v27  ;;  %v67_v31 = vld [vmem:[%s1760_s1 + $0x28] sm:$0xff]  ;;  %v85_v36 = vld [vmem:[%s1760_s1 + $0xb8] sm:$0xff] }
   0x9   :  { %v98_v32 = vld [vmem:[%s1760_s1 + $0x120] sm:$0xff]  ;;  %v99_v33 = vld [vmem:[%s1760_s1 + $0x128] sm:$0xff]  ;;  %v962_v34 = vpack.c.bf16 %v67_v31, %v66_v29  ;;  %v116_v37 = vld [vmem:[%s1760_s1 + $0x1b0] sm:$0xff]  ;;  %v964_v39 = vpack.c.bf16 %v85_v36, %v84_v35 }
   0xa   :  { %959 = vmatpush3.bf16.msra.mxu0 %v958_v21  ;;  %v994_v38 = vpack.c.bf16 %v99_v33, %v98_v32  ;;  %v117_v40 = vld [vmem:[%s1760_s1 + $0x1b8] sm:$0xff]  ;;  %v68_v41 = vld [vmem:[%s1760_s1 + $0x30] sm:$0xff]  ;;  %v86_v46 = vld [vmem:[%s1760_s1 + $0xc0] sm:$0xff] }
   0xb   :  { %991 = vmatpush3.bf16.msra.mxu1 %v990_v25  ;;  %961 = vmatprep.subr.bf16.mxu0 %v960_v26  ;;  %v69_v42 = vld [vmem:[%s1760_s1 + $0x38] sm:$0xff]  ;;  %v996_v43 = vpack.c.bf16 %v117_v40, %v116_v37  ;;  %v100_v44 = vld [vmem:[%s1760_s1 + $0x130] sm:$0xff]  ;;  %v87_v47 = vld [vmem:[%s1760_s1 + $0xc8] sm:$0xff] }
   0xc   :  { %993 = vmatprep.subr.bf16.mxu1 %v992_v30  ;;  %v101_v45 = vld [vmem:[%s1760_s1 + $0x138] sm:$0xff]  ;;  %v118_v48 = vld [vmem:[%s1760_s1 + $0x1c0] sm:$0xff]  ;;  %v119_v49 = vld [vmem:[%s1760_s1 + $0x1c8] sm:$0xff]  ;;  %v966_v50 = vpack.c.bf16 %v69_v42, %v68_v41  ;;  %v968_v52 = vpack.c.bf16 %v87_v47, %v86_v46 }
   0xd   :  { %v998_v51 = vpack.c.bf16 %v101_v45, %v100_v44  ;;  %v70_v53 = vld [vmem:[%s1760_s1 + $0x40] sm:$0xff]  ;;  %v71_v54 = vld [vmem:[%s1760_s1 + $0x48] sm:$0xff]  ;;  %v1000_v56 = vpack.c.bf16 %v119_v49, %v118_v48  ;;  %v88_v58 = vld [vmem:[%s1760_s1 + $0xd0] sm:$0xff] }
   0xe   :  { %963 = vmatpush3.bf16.msra.mxu0 %v962_v34  ;;  %v102_v55 = vld [vmem:[%s1760_s1 + $0x140] sm:$0xff]  ;;  %v103_v57 = vld [vmem:[%s1760_s1 + $0x148] sm:$0xff]  ;;  %v89_v59 = vld [vmem:[%s1760_s1 + $0xd8] sm:$0xff]  ;;  %v970_v62 = vpack.c.bf16 %v71_v54, %v70_v53 }
   0xf   :  { %995 = vmatpush3.bf16.msra.mxu1 %v994_v38  ;;  %965 = vmatprep.subr.bf16.mxu0 %v964_v39  ;;  %v120_v60 = vld [vmem:[%s1760_s1 + $0x1d0] sm:$0xff]  ;;  %v121_v61 = vld [vmem:[%s1760_s1 + $0x1d8] sm:$0xff]  ;;  %v1002_v63 = vpack.c.bf16 %v103_v57, %v102_v55  ;;  %v972_v0 = vpack.c.bf16 %v89_v59, %v88_v58  ;;  %v90_v6 = vld [vmem:[%s1760_s1 + $0xe0] sm:$0xff] }
  0x10   :  { %997 = vmatprep.subr.bf16.mxu1 %v996_v43  ;;  %v72_v1 = vld [vmem:[%s1760_s1 + $0x50] sm:$0xff]  ;;  %v73_v2 = vld [vmem:[%s1760_s1 + $0x58] sm:$0xff]  ;;  %v1004_v4 = vpack.c.bf16 %v121_v61, %v120_v60  ;;  %v91_v7 = vld [vmem:[%s1760_s1 + $0xe8] sm:$0xff] }
  0x11   :  { %v104_v3 = vld [vmem:[%s1760_s1 + $0x150] sm:$0xff]  ;;  %v105_v5 = vld [vmem:[%s1760_s1 + $0x158] sm:$0xff]  ;;  %v122_v8 = vld [vmem:[%s1760_s1 + $0x1e0] sm:$0xff]  ;;  %v974_v10 = vpack.c.bf16 %v73_v2, %v72_v1  ;;  %v976_v14 = vpack.c.bf16 %v91_v7, %v90_v6 }
  0x12   :  { %967 = vmatpush3.bf16.msra.mxu0 %v966_v50  ;;  %v123_v9 = vld [vmem:[%s1760_s1 + $0x1e8] sm:$0xff]  ;;  %v74_v11 = vld [vmem:[%s1760_s1 + $0x60] sm:$0xff]  ;;  %v1006_v13 = vpack.c.bf16 %v105_v5, %v104_v3  ;;  %v20_v17 = vld [vmem:[%s1761_s0 + $0x18] sm:$0xff] }
  0x13   :  { %999 = vmatpush3.bf16.msra.mxu1 %v998_v51  ;;  %969 = vmatprep.subr.bf16.mxu0 %v968_v52  ;;  %v75_v12 = vld [vmem:[%s1760_s1 + $0x68] sm:$0xff]  ;;  %v106_v15 = vld [vmem:[%s1760_s1 + $0x160] sm:$0xff]  ;;  %v1008_v18 = vpack.c.bf16 %v123_v9, %v122_v8  ;;  %v92_v20 = vld [vmem:[%s1760_s1 + $0xf0] sm:$0xff] }
  0x14   :  { %1001 = vmatprep.subr.bf16.mxu1 %v1000_v56  ;;  %v18_v16 = vld [vmem:[%s1761_s0 + $0x8] sm:$0xff]  ;;  %v93_v21 = vld [vmem:[%s1760_s1 + $0xf8] sm:$0xff]  ;;  %v124_v22 = vld [vmem:[%s1760_s1 + $0x1f0] sm:$0xff]  ;;  %360 = vmatprep.mubr.f32.mxu1 %v20_v17  ;;  %v978_v24 = vpack.c.bf16 %v75_v12, %v74_v11 }
  0x15   :  { %v107_v19 = vld [vmem:[%s1760_s1 + $0x168] sm:$0xff]  ;;  %270 = vmatprep.mubr.f32.mxu0 %v18_v16  ;;  %v125_v23 = vld [vmem:[%s1760_s1 + $0x1f8] sm:$0xff]  ;;  %v980_v26 = vpack.c.bf16 %v93_v21, %v92_v20  ;;  %v76_v27 = vld [vmem:[%s1760_s1 + $0x70] sm:$0xff] }
  0x16   :  { %971 = vmatpush3.bf16.msra.mxu0 %v970_v62  ;;  %v1010_v25 = vpack.c.bf16 %v107_v19, %v106_v15  ;;  %v77_v28 = vld [vmem:[%s1760_s1 + $0x78] sm:$0xff]  ;;  %v108_v29 = vld [vmem:[%s1760_s1 + $0x170] sm:$0xff]  ;;  %v1012_v30 = vpack.c.bf16 %v125_v23, %v124_v22  ;;  %v142_v32 = vld [vmem:[%s1760_s1 + $0x280] sm:$0xff] }
  0x17   :  { %1003 = vmatpush3.bf16.msra.mxu1 %v1002_v63  ;;  %973 = vmatprep.subr.bf16.mxu0 %v972_v0  ;;  %v109_v31 = vld [vmem:[%s1760_s1 + $0x178] sm:$0xff]  ;;  %v143_v33 = vld [vmem:[%s1760_s1 + $0x288] sm:$0xff]  ;;  %v174_v34 = vld [vmem:[%s1760_s1 + $0x380] sm:$0xff]  ;;  %v982_v36 = vpack.c.bf16 %v77_v28, %v76_v27 }
  0x18   :  { %1005 = vmatprep.subr.bf16.mxu1 %v1004_v4  ;;  %v175_v35 = vld [vmem:[%s1760_s1 + $0x388] sm:$0xff]  ;;  %v1014_v37 = vpack.c.bf16 %v109_v31, %v108_v29  ;;  %v1016_v38 = vpack.c.bf16 %v143_v33, %v142_v32  ;;  %v126_v39 = vld [vmem:[%s1760_s1 + $0x200] sm:$0xff]  ;;  %v144_v44 = vld [vmem:[%s1760_s1 + $0x290] sm:$0xff] }
  0x19   :  { %v127_v40 = vld [vmem:[%s1760_s1 + $0x208] sm:$0xff]  ;;  %v158_v41 = vld [vmem:[%s1760_s1 + $0x300] sm:$0xff]  ;;  %v1048_v42 = vpack.c.bf16 %v175_v35, %v174_v34  ;;  %v145_v45 = vld [vmem:[%s1760_s1 + $0x298] sm:$0xff] }
  0x1a   :  { %975 = vmatpush3.bf16.msra.mxu0 %v974_v10  ;;  %v159_v43 = vld [vmem:[%s1760_s1 + $0x308] sm:$0xff]  ;;  %v176_v46 = vld [vmem:[%s1760_s1 + $0x390] sm:$0xff]  ;;  %v177_v47 = vld [vmem:[%s1760_s1 + $0x398] sm:$0xff]  ;;  %v1018_v50 = vpack.c.bf16 %v127_v40, %v126_v39  ;;  %v1020_v52 = vpack.c.bf16 %v145_v45, %v144_v44 }
  0x1b   :  { %1007 = vmatpush3.bf16.msra.mxu1 %v1006_v13  ;;  %977 = vmatprep.subr.bf16.mxu0 %v976_v14  ;;  %v17_v48 = vld [vmem:[%s1761_s0] sm:$0xff]  ;;  %v19_v49 = vld [vmem:[%s1761_s0 + $0x10] sm:$0xff]  ;;  %v1050_v51 = vpack.c.bf16 %v159_v43, %v158_v41  ;;  %v129_v54 = vld [vmem:[%s1760_s1 + $0x218] sm:$0xff]  ;;  %v1052_v56 = vpack.c.bf16 %v177_v47, %v176_v46 }
  0x1c   :  { %1009 = vmatprep.subr.bf16.mxu1 %v1008_v18  ;;  %v128_v53 = vld [vmem:[%s1760_s1 + $0x210] sm:$0xff]  ;;  %v161_v57 = vld [vmem:[%s1760_s1 + $0x318] sm:$0xff]  ;;  %v146_v58 = vld [vmem:[%s1760_s1 + $0x2a0] sm:$0xff] }
  0x1d   :  { %v160_v55 = vld [vmem:[%s1760_s1 + $0x310] sm:$0xff]  ;;  %v147_v59 = vld [vmem:[%s1760_s1 + $0x2a8] sm:$0xff]  ;;  %v178_v60 = vld [vmem:[%s1760_s1 + $0x3a0] sm:$0xff]  ;;  %v1022_v63 = vpack.c.bf16 %v129_v54, %v128_v53 }
  0x1e   :  { %979 = vmatpush3.bf16.msra.mxu0 %v978_v24  ;;  %v179_v61 = vld [vmem:[%s1760_s1 + $0x3a8] sm:$0xff]  ;;  %v27_v62 = vld [vmem:[%s1761_s0 + $0x50] sm:$0xff]  ;;  %v130_v0 = vld [vmem:[%s1760_s1 + $0x220] sm:$0xff]  ;;  %v1054_v3 = vpack.c.bf16 %v161_v57, %v160_v55  ;;  %v1024_v4 = vpack.c.bf16 %v147_v59, %v146_v58 }
  0x1f   :  { %1011 = vmatpush3.bf16.msra.mxu1 %v1010_v25  ;;  %981 = vmatprep.subr.bf16.mxu0 %v980_v26  ;;  %v29_v1 = vld [vmem:[%s1761_s0 + $0x60] sm:$0xff]  ;;  %v26_v2 = vld [vmem:[%s1761_s0 + $0x48] sm:$0xff]  ;;  %v28_v7 = vld [vmem:[%s1761_s0 + $0x58] sm:$0xff]  ;;  %v1056_v8 = vpack.c.bf16 %v179_v61, %v178_v60 }
  0x20   :  { %1013 = vmatprep.subr.bf16.mxu1 %v1012_v30  ;;  %v131_v5 = vld [vmem:[%s1760_s1 + $0x228] sm:$0xff]  ;;  %v162_v6 = vld [vmem:[%s1760_s1 + $0x320] sm:$0xff]  ;;  %v148_v10 = vld [vmem:[%s1760_s1 + $0x2b0] sm:$0xff] }
  0x21   :  { %v163_v9 = vld [vmem:[%s1760_s1 + $0x328] sm:$0xff]  ;;  %v149_v11 = vld [vmem:[%s1760_s1 + $0x2b8] sm:$0xff]  ;;  %v180_v12 = vld [vmem:[%s1760_s1 + $0x3b0] sm:$0xff]  ;;  %v1026_v15 = vpack.c.bf16 %v131_v5, %v130_v0 }
  0x22   :  { %983 = vmatpush3.bf16.msra.mxu0 %v982_v36  ;;  %v181_v13 = vld [vmem:[%s1760_s1 + $0x3b8] sm:$0xff]  ;;  %v132_v16 = vld [vmem:[%s1760_s1 + $0x230] sm:$0xff]  ;;  %v38_v17 = vld [vmem:[%s1761_s0 + $0xa8] sm:$0xff]  ;;  %v1058_v19 = vpack.c.bf16 %v163_v9, %v162_v6  ;;  %v1028_v20 = vpack.c.bf16 %v149_v11, %v148_v10 }
  0x23   :  { %1015 = vmatpush3.bf16.msra.mxu1 %v1014_v37  ;;  %1017 = vmatprep.subr.bf16.mxu0 %v1016_v38  ;;  %v36_v14 = vld [vmem:[%s1761_s0 + $0x98] sm:$0xff]  ;;  %v35_v18 = vld [vmem:[%s1761_s0 + $0x90] sm:$0xff]  ;;  %v37_v23 = vld [vmem:[%s1761_s0 + $0xa0] sm:$0xff]  ;;  %v1060_v24 = vpack.c.bf16 %v181_v13, %v180_v12 }
  0x24   :  { %1049 = vmatprep.subr.bf16.mxu1 %v1048_v42  ;;  %v133_v21 = vld [vmem:[%s1760_s1 + $0x238] sm:$0xff]  ;;  %v164_v22 = vld [vmem:[%s1760_s1 + $0x330] sm:$0xff]  ;;  %v150_v26 = vld [vmem:[%s1760_s1 + $0x2c0] sm:$0xff] }
  0x25   :  { %271 = vmatmul.mubr.f32.vlgmr.msra.gmra.mrb[0].mxu0 %v17_v48  ;;  %v165_v25 = vld [vmem:[%s1760_s1 + $0x338] sm:$0xff]  ;;  %v151_v27 = vld [vmem:[%s1760_s1 + $0x2c8] sm:$0xff]  ;;  %v182_v28 = vld [vmem:[%s1760_s1 + $0x3c0] sm:$0xff]  ;;  %v1030_v31 = vpack.c.bf16 %v133_v21, %v132_v16 }
  0x26   :  { %361 = vmatmul.mubr.f32.vlgmr.msra.gmra.mrb[0].mxu1 %v19_v49  ;;  %1019 = vmatpush3.bf16.msra.mxu0 %v1018_v50  ;;  %v183_v29 = vld [vmem:[%s1760_s1 + $0x3c8] sm:$0xff]  ;;  %v45_v30 = vld [vmem:[%s1761_s0 + $0xe0] sm:$0xff]  ;;  %v47_v33 = vld [vmem:[%s1761_s0 + $0xf0] sm:$0xff]  ;;  %v1062_v35 = vpack.c.bf16 %v165_v25, %v164_v22  ;;  %v1032_v36 = vpack.c.bf16 %v151_v27, %v150_v26  ;;  %v1123_v26 = vmov 0.0|0.0  }
  0x27   :  { %1051 = vmatpush3.bf16.msra.mxu1 %v1050_v51  ;;  %1021 = vmatprep.subr.bf16.mxu0 %v1020_v52  ;;  %v134_v32 = vld [vmem:[%s1760_s1 + $0x240] sm:$0xff]  ;;  %v44_v34 = vld [vmem:[%s1761_s0 + $0xd8] sm:$0xff]  ;;  %v135_v37 = vld [vmem:[%s1760_s1 + $0x248] sm:$0xff]  ;;  %v1064_v40 = vpack.c.bf16 %v183_v29, %v182_v28 }
  0x28   :  { %1053 = vmatprep.subr.bf16.mxu1 %v1052_v56  ;;  %275 = vmatprep.mubr.f32.mxu0 %v27_v62  ;;  %v166_v38 = vld [vmem:[%s1760_s1 + $0x340] sm:$0xff]  ;;  %v46_v39 = vld [vmem:[%s1761_s0 + $0xe8] sm:$0xff]  ;;  %v152_v42 = vld [vmem:[%s1760_s1 + $0x2d0] sm:$0xff]  ;;  %v1034_v47 = vpack.c.bf16 %v135_v37, %v134_v32 }
  0x29   :  { %365 = vmatprep.mubr.f32.mxu1 %v29_v1  ;;  %276 = vmatmul.mubr.f32.gmra.mrb[2].mxu0 %v26_v2  ;;  %v167_v41 = vld [vmem:[%s1760_s1 + $0x348] sm:$0xff]  ;;  %v153_v43 = vld [vmem:[%s1760_s1 + $0x2d8] sm:$0xff]  ;;  %v184_v44 = vld [vmem:[%s1760_s1 + $0x3d0] sm:$0xff] }
  0x2a   :  { %1023 = vmatpush3.bf16.msra.mxu0 %v1022_v63  ;;  %366 = vmatmul.mubr.f32.gmra.mrb[2].mxu1 %v28_v7  ;;  %v185_v45 = vld [vmem:[%s1760_s1 + $0x3d8] sm:$0xff]  ;;  %v54_v46 = vld [vmem:[%s1761_s0 + $0x128] sm:$0xff]  ;;  %v136_v48 = vld [vmem:[%s1760_s1 + $0x250] sm:$0xff]  ;;  %v1066_v51 = vpack.c.bf16 %v167_v41, %v166_v38  ;;  %v1036_v52 = vpack.c.bf16 %v153_v43, %v152_v42 }
  0x2b   :  { %1055 = vmatpush3.bf16.msra.mxu1 %v1054_v3  ;;  %1025 = vmatprep.subr.bf16.mxu0 %v1024_v4  ;;  %v56_v49 = vld [vmem:[%s1761_s0 + $0x138] sm:$0xff]  ;;  %v53_v50 = vld [vmem:[%s1761_s0 + $0x120] sm:$0xff]  ;;  %v168_v54 = vld [vmem:[%s1760_s1 + $0x350] sm:$0xff]  ;;  %v1068_v56 = vpack.c.bf16 %v185_v45, %v184_v44 }
  0x2c   :  { %1057 = vmatprep.subr.bf16.mxu1 %v1056_v8  ;;  %280 = vmatprep.mubr.f32.mxu0 %v36_v14  ;;  %v137_v53 = vld [vmem:[%s1760_s1 + $0x258] sm:$0xff]  ;;  %v55_v55 = vld [vmem:[%s1761_s0 + $0x130] sm:$0xff]  ;;  %v154_v58 = vld [vmem:[%s1760_s1 + $0x2e0] sm:$0xff] }
  0x2d   :  { %370 = vmatprep.mubr.f32.mxu1 %v38_v17  ;;  %281 = vmatmul.mubr.f32.gmra.mrb[4].mxu0 %v35_v18  ;;  %v169_v57 = vld [vmem:[%s1760_s1 + $0x358] sm:$0xff]  ;;  %v155_v59 = vld [vmem:[%s1760_s1 + $0x2e8] sm:$0xff]  ;;  %v186_v60 = vld [vmem:[%s1760_s1 + $0x3e0] sm:$0xff]  ;;  %v1038_v63 = vpack.c.bf16 %v137_v53, %v136_v48 }
  0x2e   :  { %1027 = vmatpush3.bf16.msra.mxu0 %v1026_v15  ;;  %371 = vmatmul.mubr.f32.gmra.mrb[4].mxu1 %v37_v23  ;;  %v187_v61 = vld [vmem:[%s1760_s1 + $0x3e8] sm:$0xff]  ;;  %v24_v0 = vld [vmem:[%s1761_s0 + $0x38] sm:$0xff]  ;;  %v1070_v1 = vpack.c.bf16 %v169_v57, %v168_v54  ;;  %v1040_v2 = vpack.c.bf16 %v155_v59, %v154_v58  ;;  %v138_v3 = vld [vmem:[%s1760_s1 + $0x260] sm:$0xff] }
  0x2f   :  { %1059 = vmatpush3.bf16.msra.mxu1 %v1058_v19  ;;  %1029 = vmatprep.subr.bf16.mxu0 %v1028_v20  ;;  %v22_v62 = vld [vmem:[%s1761_s0 + $0x28] sm:$0xff]  ;;  %v170_v5 = vld [vmem:[%s1760_s1 + $0x360] sm:$0xff]  ;;  %v1072_v6 = vpack.c.bf16 %v187_v61, %v186_v60  ;;  %v156_v8 = vld [vmem:[%s1760_s1 + $0x2f0] sm:$0xff]  ;;  %v1125_v61 = vmov 0.0  }
  0x30   :  { %1061 = vmatprep.subr.bf16.mxu1 %v1060_v24  ;;  %285 = vmatprep.mubr.f32.mxu0 %v45_v30  ;;  %v139_v4 = vld [vmem:[%s1760_s1 + $0x268] sm:$0xff]  ;;  %v157_v9 = vld [vmem:[%s1760_s1 + $0x2f8] sm:$0xff]  ;;  %v188_v10 = vld [vmem:[%s1760_s1 + $0x3f0] sm:$0xff] }
  0x31   :  { %375 = vmatprep.mubr.f32.mxu1 %v47_v33  ;;  %286 = vmatmul.mubr.f32.gmra.mrb[6].mxu0 %v44_v34  ;;  %v171_v7 = vld [vmem:[%s1760_s1 + $0x368] sm:$0xff]  ;;  %v189_v11 = vld [vmem:[%s1760_s1 + $0x3f8] sm:$0xff]  ;;  %v1042_v12 = vpack.c.bf16 %v139_v4, %v138_v3  ;;  %v1044_v14 = vpack.c.bf16 %v157_v9, %v156_v8  ;;  %v140_v15 = vld [vmem:[%s1760_s1 + $0x270] sm:$0xff] }
  0x32   :  { %1031 = vmatpush3.bf16.msra.mxu0 %v1030_v31  ;;  %376 = vmatmul.mubr.f32.gmra.mrb[6].mxu1 %v46_v39  ;;  %v1074_v13 = vpack.c.bf16 %v171_v7, %v170_v5  ;;  %v141_v16 = vld [vmem:[%s1760_s1 + $0x278] sm:$0xff]  ;;  %v1076_v17 = vpack.c.bf16 %v189_v11, %v188_v10  ;;  %v172_v18 = vld [vmem:[%s1760_s1 + $0x370] sm:$0xff]  ;;  %v190_v22 = vld [vmem:[%s1760_s1 + $0x400] sm:$0xff] }
  0x33   :  { %1063 = vmatpush3.bf16.msra.mxu1 %v1062_v35  ;;  %1033 = vmatprep.subr.bf16.mxu0 %v1032_v36  ;;  %v173_v19 = vld [vmem:[%s1760_s1 + $0x378] sm:$0xff]  ;;  %v1046_v20 = vpack.c.bf16 %v141_v16, %v140_v15  ;;  %v191_v23 = vld [vmem:[%s1760_s1 + $0x408] sm:$0xff]  ;;  %v21_v24 = vld [vmem:[%s1761_s0 + $0x20] sm:$0xff] }
  0x34   :  { %1065 = vmatprep.subr.bf16.mxu1 %v1064_v40  ;;  %290 = vmatprep.mubr.f32.mxu0 %v54_v46  ;;  %v1078_v21 = vpack.c.bf16 %v173_v19, %v172_v18  ;;  %v1081_v25 = vpack.c.bf16 %v191_v23, %v190_v22  ;;  %v23_v27 = vld [vmem:[%s1761_s0 + $0x30] sm:$0xff]  ;;  %v193_v29 = vld [vmem:[%s1760_s1 + $0x418] sm:$0xff]  ;;  %v30_v31 = vld [vmem:[%s1761_s0 + $0x68] sm:$0xff] }
  0x35   :  { %380 = vmatprep.mubr.f32.mxu1 %v56_v49  ;;  %291 = vmatmul.mubr.f32.gmra.mrb[8].mxu0 %v53_v50  ;;  %v192_v28 = vld [vmem:[%s1760_s1 + $0x410] sm:$0xff]  ;;  %v33_v32 = vld [vmem:[%s1761_s0 + $0x80] sm:$0xff]  ;;  %v32_v34 = vld [vmem:[%s1761_s0 + $0x78] sm:$0xff] }
  0x36   :  { %1035 = vmatpush3.bf16.msra.mxu0 %v1034_v47  ;;  %381 = vmatmul.mubr.f32.gmra.mrb[8].mxu1 %v55_v55  ;;  %v31_v30 = vld [vmem:[%s1761_s0 + $0x70] sm:$0xff]  ;;  %v1084_v33 = vpack.c.bf16 %v193_v29, %v192_v28  ;;  %v194_v35 = vld [vmem:[%s1760_s1 + $0x420] sm:$0xff]  ;;  %v195_v36 = vld [vmem:[%s1760_s1 + $0x428] sm:$0xff] }
  0x37   :  { %1067 = vmatpush3.bf16.msra.mxu1 %v1066_v51  ;;  %1037 = vmatprep.subr.bf16.mxu0 %v1036_v52  ;;  %v40_v37 = vld [vmem:[%s1761_s0 + $0xb8] sm:$0xff]  ;;  %v39_v38 = vld [vmem:[%s1761_s0 + $0xb0] sm:$0xff]  ;;  %v42_v39 = vld [vmem:[%s1761_s0 + $0xc8] sm:$0xff]  ;;  %v1087_v40 = vpack.c.bf16 %v195_v36, %v194_v35 }
  0x38   :  { %1069 = vmatprep.subr.bf16.mxu1 %v1068_v56  ;;  %450 = vmatprep.mubr.f32.mxu0 %v22_v62  ;;  %v41_v41 = vld [vmem:[%s1761_s0 + $0xc0] sm:$0xff]  ;;  %v196_v42 = vld [vmem:[%s1760_s1 + $0x430] sm:$0xff]  ;;  %v197_v43 = vld [vmem:[%s1760_s1 + $0x438] sm:$0xff] }
  0x39   :  { %540 = vmatprep.mubr.f32.mxu1 %v24_v0  ;;  %v49_v44 = vld [vmem:[%s1761_s0 + $0x100] sm:$0xff]  ;;  %v48_v45 = vld [vmem:[%s1761_s0 + $0xf8] sm:$0xff]  ;;  %v51_v46 = vld [vmem:[%s1761_s0 + $0x110] sm:$0xff]  ;;  %v1090_v47 = vpack.c.bf16 %v197_v43, %v196_v42 }
  0x3a   :  { %1039 = vmatpush3.bf16.msra.mxu0 %v1038_v63  ;;  %v50_v48 = vld [vmem:[%s1761_s0 + $0x108] sm:$0xff]  ;;  %v198_v49 = vld [vmem:[%s1760_s1 + $0x440] sm:$0xff]  ;;  %v60_v53 = vld [vmem:[%s1761_s0 + $0x158] sm:$0xff] }
  0x3b   :  { %1071 = vmatpush3.bf16.msra.mxu1 %v1070_v1  ;;  %1041 = vmatprep.subr.bf16.mxu0 %v1040_v2  ;;  %v199_v50 = vld [vmem:[%s1760_s1 + $0x448] sm:$0xff]  ;;  %v57_v52 = vld [vmem:[%s1761_s0 + $0x140] sm:$0xff]  ;;  %v59_v55 = vld [vmem:[%s1761_s0 + $0x150] sm:$0xff] }
  0x3c   :  { %1073 = vmatprep.subr.bf16.mxu1 %v1072_v6  ;;  %v58_v51 = vld [vmem:[%s1761_s0 + $0x148] sm:$0xff]  ;;  %v1093_v54 = vpack.c.bf16 %v199_v50, %v198_v49  ;;  %v200_v56 = vld [vmem:[%s1760_s1 + $0x450] sm:$0xff]  ;;  %v201_v57 = vld [vmem:[%s1760_s1 + $0x458] sm:$0xff] }
  0x3d   :  { %v1096_v58 = vpack.c.bf16 %v201_v57, %v200_v56  ;;  %v202_v59 = vld [vmem:[%s1760_s1 + $0x460] sm:$0xff]  ;;  %v203_v60 = vld [vmem:[%s1760_s1 + $0x468] sm:$0xff]  ;;  %v204_v63 = vld [vmem:[%s1760_s1 + $0x470] sm:$0xff] }
  0x3e   :  { %1043 = vmatpush3.bf16.msra.mxu0 %v1042_v12  ;;  %v1099_v62 = vpack.c.bf16 %v203_v60, %v202_v59  ;;  %v205_v0 = vld [vmem:[%s1760_s1 + $0x478] sm:$0xff]  ;;  %v25_v2 = vld [vmem:[%s1761_s0 + $0x40] sm:$0xff]  ;;  %v34_v4 = vld [vmem:[%s1761_s0 + $0x88] sm:$0xff] }
  0x3f   :  { %1075 = vmatpush3.bf16.msra.mxu1 %v1074_v13  ;;  %1045 = vmatprep.subr.bf16.mxu0 %v1044_v14  ;;  %v1102_v1 = vpack.c.bf16 %v205_v0, %v204_v63  ;;  %v52_v3 = vld [vmem:[%s1761_s0 + $0x118] sm:$0xff]  ;;  %v61_v5 = vld [vmem:[%s1761_s0 + $0x160] sm:$0xff]  ;;  %v43_v6 = vld [vmem:[%s1761_s0 + $0xd0] sm:$0xff] }
  0x40   :  { %1077 = vmatprep.subr.bf16.mxu1 %v1076_v17 }
  0x42   :  { %1047 = vmatpush3.bf16.msra.mxu0 %v1046_v20 }
  0x43   :  { %1079 = vmatpush3.bf16.msra.mxu1 %v1078_v21  ;;  %1080 = vmatprep.subr.bf16.mxu0 %v1123_v26 }
  0x44   :  { %1104 = vmatprep.subr.bf16.mxu1 %v1123_v26 }
  0x45   :  { %451 = vmatmul.mubr.f32.vlgmr.msra.gmra.mrb[10].mxu0 %v21_v24 }
  0x46   :  { %541 = vmatmul.mubr.f32.vlgmr.msra.gmra.mrb[10].mxu1 %v23_v27  ;;  %1082 = vmatpush3.bf16.msra.mxu0 %v1081_v25 }
  0x47   :  { %1112 = vmatpush3.bf16.msra.mxu1 %v1081_v25  ;;  %455 = vmatprep.mubr.f32.mxu0 %v31_v30 }
  0x48   :  { %1083 = vmatprep.subr.bf16.mxu0 %v1123_v26  ;;  %1105 = vmatprep.subr.bf16.mxu1 %v1123_v26 }
  0x49   :  { %456 = vmatmul.mubr.f32.gmra.mrb[12].mxu0 %v30_v31  ;;  %545 = vmatprep.mubr.f32.mxu1 %v33_v32 }
  0x4a   :  { %1085 = vmatpush3.bf16.msra.mxu0 %v1084_v33  ;;  %546 = vmatmul.mubr.f32.gmra.mrb[12].mxu1 %v32_v34 }
  0x4b   :  { %1113 = vmatpush3.bf16.msra.mxu1 %v1084_v33  ;;  %460 = vmatprep.mubr.f32.mxu0 %v40_v37 }
  0x4c   :  { %1086 = vmatprep.subr.bf16.mxu0 %v1123_v26  ;;  %1106 = vmatprep.subr.bf16.mxu1 %v1123_v26 }
  0x4d   :  { %461 = vmatmul.mubr.f32.gmra.mrb[14].mxu0 %v39_v38  ;;  %550 = vmatprep.mubr.f32.mxu1 %v42_v39 }
  0x4e   :  { %1088 = vmatpush3.bf16.msra.mxu0 %v1087_v40  ;;  %551 = vmatmul.mubr.f32.gmra.mrb[14].mxu1 %v41_v41 }
  0x4f   :  { %1114 = vmatpush3.bf16.msra.mxu1 %v1087_v40  ;;  %465 = vmatprep.mubr.f32.mxu0 %v49_v44 }
  0x50   :  { %1089 = vmatprep.subr.bf16.mxu0 %v1123_v26  ;;  %1107 = vmatprep.subr.bf16.mxu1 %v1123_v26 }
  0x51   :  { %466 = vmatmul.mubr.f32.gmra.mrb[16].mxu0 %v48_v45  ;;  %555 = vmatprep.mubr.f32.mxu1 %v51_v46 }
  0x52   :  { %1091 = vmatpush3.bf16.msra.mxu0 %v1090_v47  ;;  %556 = vmatmul.mubr.f32.gmra.mrb[16].mxu1 %v50_v48 }
  0x53   :  { %1115 = vmatpush3.bf16.msra.mxu1 %v1090_v47  ;;  %470 = vmatprep.mubr.f32.mxu0 %v58_v51 }
  0x54   :  { %1092 = vmatprep.subr.bf16.mxu0 %v1123_v26  ;;  %1108 = vmatprep.subr.bf16.mxu1 %v1123_v26 }
  0x55   :  { %471 = vmatmul.mubr.f32.gmra.mrb[18].mxu0 %v57_v52  ;;  %560 = vmatprep.mubr.f32.mxu1 %v60_v53 }
  0x56   :  { %1094 = vmatpush3.bf16.msra.mxu0 %v1093_v54  ;;  %561 = vmatmul.mubr.f32.gmra.mrb[18].mxu1 %v59_v55 }
  0x57   :  { %1116 = vmatpush3.bf16.msra.mxu1 %v1093_v54  ;;  %1095 = vmatprep.subr.bf16.mxu0 %v1123_v26 }
  0x58   :  { %1109 = vmatprep.subr.bf16.mxu1 %v1123_v26  ;;  %937 = vmatprep.mubr.msk.f32.mxu0 %vm1124_vm0, %v1125_v61 }
  0x59   :  { %946 = vmatprep.mubr.msk.f32.mxu1 %vm1124_vm0, %v1125_v61 }
  0x5a   :  { %1097 = vmatpush3.bf16.msra.mxu0 %v1096_v58 }
  0x5b   :  { %1117 = vmatpush3.bf16.msra.mxu1 %v1096_v58  ;;  %1098 = vmatprep.subr.bf16.mxu0 %v1123_v26 }
  0x5c   :  { %1110 = vmatprep.subr.bf16.mxu1 %v1123_v26 }
  0x5e   :  { %1100 = vmatpush3.bf16.msra.mxu0 %v1099_v62 }
  0x5f   :  { %1118 = vmatpush3.bf16.msra.mxu1 %v1099_v62  ;;  %1101 = vmatprep.subr.bf16.mxu0 %v1123_v26 }
  0x60   :  { %1111 = vmatprep.subr.bf16.mxu1 %v1123_v26 }
  0x62   :  { %1103 = vmatpush3.bf16.msra.mxu0 %v1102_v1 }
  0x63   :  { %1119 = vmatpush3.bf16.msra.mxu1 %v1102_v1 }
  0x65   :  { %938 = vmatmul.mubr.f32.vlgmr.msra.gmra.mrb[20].mxu0 %v25_v2 }
  0x66   :  { %947 = vmatmul.mubr.f32.vlgmr.msra.gmra.mrb[20].mxu1 %v52_v3  ;;  %940 = vmatprep.mubr.msk.f32.mxu0 %vm1124_vm0, %v1125_v61 }
  0x67   :  { %949 = vmatprep.mubr.msk.f32.mxu1 %vm1124_vm0, %v1125_v61 }
  0x69   :  { %941 = vmatmul.mubr.f32.gmra.mrb[22].mxu0 %v34_v4 }
  0x6a   :  { %950 = vmatmul.mubr.f32.gmra.mrb[22].mxu1 %v61_v5  ;;  %943 = vmatprep.mubr.msk.f32.mxu0 %vm1124_vm0, %v1125_v61 }
  0x6d   :  { %944 = vmatmul.mubr.f32.gmra.mrb[24].mxu0 %v43_v6 }
  0xf8   :  { %v728_v7 = vpop.f32.mrb[0].mxu0 }
  0xf9   :  { %v775_v8 = vpop.f32.mrb[0].mxu1  ;;  %v729_v9 = vpop.f32.mrb[1].mxu0 }
  0xfa   :  { %v730_v10 = vadd.f32 %v729_v9, %v728_v7  ;;  %v776_v11 = vpop.f32.mrb[1].mxu1 }
  0xfb   :  { %v777_v12 = vadd.f32 %v776_v11, %v775_v8 }
  0xfc   :  { %v731_v13 = vpop.f32.mrb[2].mxu0 }
  0xfd   :  { %v363_v14 = vadd.f32 %v777_v12, %v730_v10  ;;  %v778_v15 = vpop.f32.mrb[2].mxu1  ;;  %v732_v16 = vpop.f32.mrb[3].mxu0 }
  0xfe   :  { %v733_v17 = vadd.f32 %v732_v16, %v731_v13  ;;  %v779_v18 = vpop.f32.mrb[3].mxu1 }
  0xff   :  { %v780_v19 = vadd.f32 %v779_v18, %v778_v15 }
 0x100   :  { %v734_v20 = vpop.f32.mrb[4].mxu0 }
 0x101   :  { %v368_v21 = vadd.f32 %v780_v19, %v733_v17  ;;  %v781_v22 = vpop.f32.mrb[4].mxu1  ;;  %v735_v23 = vpop.f32.mrb[5].mxu0  ;;  %v694_v19 = vld [vmem:[%s1762_s2] ss:$0 sm:$0xff] }
 0x102   :  { %v736_v24 = vadd.f32 %v735_v23, %v734_v20  ;;  %v782_v25 = vpop.f32.mrb[5].mxu1  ;;  %v695_v23 = vld [vmem:[%s1763_s3] ss:$0 sm:$0xff] }
 0x103   :  { %v783_v26 = vadd.f32 %v782_v25, %v781_v22 }
 0x104   :  { %v737_v27 = vpop.f32.mrb[6].mxu0 }
 0x105   :  { %v373_v28 = vadd.f32 %v783_v26, %v736_v24  ;;  %v784_v29 = vpop.f32.mrb[6].mxu1  ;;  %v738_v30 = vpop.f32.mrb[7].mxu0 }
 0x106   :  { %v739_v31 = vadd.f32 %v738_v30, %v737_v27  ;;  %v785_v32 = vpop.f32.mrb[7].mxu1 }
 0x107   :  { %v786_v33 = vadd.f32 %v785_v32, %v784_v29 }
 0x108   :  { %v740_v34 = vpop.f32.mrb[8].mxu0 }
 0x109   :  { %v378_v35 = vadd.f32 %v786_v33, %v739_v31  ;;  %v787_v36 = vpop.f32.mrb[8].mxu1  ;;  %v741_v37 = vpop.f32.mrb[9].mxu0 }
 0x10a   :  { %v742_v38 = vadd.f32 %v741_v37, %v740_v34  ;;  %v788_v39 = vpop.f32.mrb[9].mxu1 }
 0x10b   :  { %v789_v40 = vadd.f32 %v788_v39, %v787_v36 }
 0x10d   :  { %v383_v41 = vadd.f32 %v789_v40, %v742_v38 }
 0x118   :  { %v822_v42 = vpop.f32.mrb[10].mxu0 }
 0x119   :  { %v823_v43 = vpop.f32.mrb[11].mxu0  ;;  %v869_v44 = vpop.f32.mrb[10].mxu1 }
 0x11a   :  { %v824_v45 = vadd.f32 %v823_v43, %v822_v42  ;;  %v870_v46 = vpop.f32.mrb[11].mxu1 }
 0x11b   :  { %v871_v47 = vadd.f32 %v870_v46, %v869_v44 }
 0x11c   :  { %v453_v48 = vadd.f32 %v824_v45, %v363_v14  ;;  %v825_v49 = vpop.f32.mrb[12].mxu0 }
 0x11d   :  { %v826_v50 = vpop.f32.mrb[13].mxu0  ;;  %v872_v51 = vpop.f32.mrb[12].mxu1 }
 0x11e   :  { %v827_v52 = vadd.f32 %v826_v50, %v825_v49  ;;  %v873_v53 = vpop.f32.mrb[13].mxu1  ;;  %v543_v54 = vadd.f32 %v871_v47, %v453_v48 }
 0x11f   :  { %v874_v55 = vadd.f32 %v873_v53, %v872_v51 }
 0x120   :  { %v458_v56 = vadd.f32 %v827_v52, %v368_v21  ;;  %v828_v57 = vpop.f32.mrb[14].mxu0 }
 0x121   :  { %v829_v58 = vpop.f32.mrb[15].mxu0  ;;  %v875_v59 = vpop.f32.mrb[14].mxu1 }
 0x122   :  { %v830_v60 = vadd.f32 %v829_v58, %v828_v57  ;;  %v876_v61 = vpop.f32.mrb[15].mxu1  ;;  %v548_v62 = vadd.f32 %v874_v55, %v458_v56 }
 0x123   :  { %v877_v63 = vadd.f32 %v876_v61, %v875_v59 }
 0x124   :  { %v463_v0 = vadd.f32 %v830_v60, %v373_v28  ;;  %v831_v1 = vpop.f32.mrb[16].mxu0 }
 0x125   :  { %v832_v2 = vpop.f32.mrb[17].mxu0  ;;  %v878_v3 = vpop.f32.mrb[16].mxu1 }
 0x126   :  { %v833_v4 = vadd.f32 %v832_v2, %v831_v1  ;;  %v879_v5 = vpop.f32.mrb[17].mxu1  ;;  %v553_v6 = vadd.f32 %v877_v63, %v463_v0 }
 0x127   :  { %v880_v7 = vadd.f32 %v879_v5, %v878_v3 }
 0x128   :  { %v468_v8 = vadd.f32 %v833_v4, %v378_v35  ;;  %v834_v9 = vpop.f32.mrb[18].mxu0 }
 0x129   :  { %v835_v10 = vpop.f32.mrb[19].mxu0  ;;  %v881_v11 = vpop.f32.mrb[18].mxu1 }
 0x12a   :  { %v836_v12 = vadd.f32 %v835_v10, %v834_v9  ;;  %v882_v13 = vpop.f32.mrb[19].mxu1  ;;  %v558_v14 = vadd.f32 %v880_v7, %v468_v8 }
 0x12b   :  { %v883_v15 = vadd.f32 %v882_v13, %v881_v11 }
 0x12c   :  { %v473_v16 = vadd.f32 %v836_v12, %v383_v41 }
 0x12e   :  { %v563_v17 = vadd.f32 %v883_v15, %v473_v16 }
 0x138   :  { %v632_v18 = vpop.f32.mrb[20].mxu0 }
 0x139   :  { %v633_v20 = vadd.f32 %v632_v18, %v543_v54  ;;  %v647_v21 = vpop.f32.mrb[20].mxu1  ;;  %v939_v22 = vpop.f32.mrb[21].mxu0 }
 0x13a   :  { %v648_v24 = vadd.f32 %v647_v21, %v558_v14  ;;  %v948_v25 = vpop.f32.mrb[21].mxu1 }
 0x13b   :  { %v663_v26 = vmul.f32 %v694_v19, %v633_v20 }
 0x13c   :  { %v666_v27 = vmul.f32 %v694_v19, %v648_v24  ;;  %v637_v28 = vpop.f32.mrb[22].mxu0 }
 0x13d   :  { %v675_v29 = vadd.f32 %v695_v23, %v663_v26  ;;  %v638_v30 = vadd.f32 %v637_v28, %v548_v62  ;;  %v652_v31 = vpop.f32.mrb[22].mxu1  ;;  %v942_v32 = vpop.f32.mrb[23].mxu0 }
 0x13e   :  { %v678_v33 = vadd.f32 %v695_v23, %v666_v27  ;;  %v653_v34 = vadd.f32 %v652_v31, %v563_v17  ;;  %v951_v35 = vpop.f32.mrb[23].mxu1 }
 0x13f   :  { %v680_v36 = vmax.f32 %v675_v29, 0.0  ;;  %v664_v37 = vmul.f32 %v694_v19, %v638_v30 }
 0x140   :  { %v683_v38 = vmax.f32 %v678_v33, 0.0  ;;  %v667_v39 = vmul.f32 %v694_v19, %v653_v34  ;;  %v642_v40 = vpop.f32.mrb[24].mxu0 }
 0x141   :  { %685 = vst [vmem:[%s1764_s4] sm:$0xff] %v680_v36  ;;  %v676_v41 = vadd.f32 %v695_v23, %v664_v37  ;;  %v643_v42 = vadd.f32 %v642_v40, %v553_v6  ;;  %v945_v43 = vpop.f32.mrb[25].mxu0 }
 0x142   :  { %688 = vst [vmem:[%s1764_s4 + $0x18] sm:$0xff] %v683_v38  ;;  %v679_v44 = vadd.f32 %v695_v23, %v667_v39 }
 0x143   :  { %v681_v45 = vmax.f32 %v676_v41, 0.0  ;;  %v665_v46 = vmul.f32 %v694_v19, %v643_v42 }
 0x144   :  { %v684_v47 = vmax.f32 %v679_v44, 0.0 }
 0x145   :  { %686 = vst [vmem:[%s1764_s4 + $0x8] sm:$0xff] %v681_v45  ;;  %v677_v48 = vadd.f32 %v695_v23, %v665_v46 }
 0x146   :  { %689 = vst [vmem:[%s1764_s4 + $0x20] sm:$0xff] %v684_v47 }
 0x147   :  { %v682_v49 = vmax.f32 %v677_v48, 0.0 }
 0x149   :  { %687 = vst [vmem:[%s1764_s4 + $0x10] sm:$0xff] %v682_v49 }

// kernel: res_cnn_forward.7
= control target key start
LH: loop header
LB: loop body
LE: loop exit
PB: predicated region body
PF: predicated region fallthrough
CT: control target
= control target key end

     0   :  { %s3539_s15 = smov 0   ;;  %s3541_s16 = smov 0   ;;  %s4637_s0 = inlined_call_operand.vmem [shape: f32[8,2560], index: 0, kind: input, shape index: {}]   ;;  %s4638_s1 = inlined_call_operand.vmem [shape: f32[2560,256], index: 1, kind: input, shape index: {}]   ;;  %s4639_s2 = inlined_call_operand.vmem [shape: f32[1,256], index: 2, kind: input, shape index: {}]   ;;  %s4640_s3 = inlined_call_operand.vmem [shape: f32[1,256], index: 3, kind: input, shape index: {}]   ;;  %s4641_s4 = inlined_call_operand.vmem [shape: f32[8,256], index: 4, kind: output, shape index: {}]  }
   0x1   :  { %s3543_s17 = smov 0   ;;  %s3545_s18 = smov 0  }
   0x2   :  { %s3547_s19 = smov 0  }
   0x3 LB: > { %s23_s20 = sadd.s32 1, %s3508_s18  ;;  %p66_p1 = scmp.ne.s32.totalorder %s3500_s16, %s3496_s15  ;;  %s3512_s19 = sphi %s3547_s19, %s14_s19   ;;  %s3508_s18 = sphi %s3545_s18, %s4645_s18   ;;  %s3504_s17 = sphi %s3543_s17, %s4644_s17   ;;  %s3500_s16 = sphi %s3541_s16, %s4643_s16   ;;  %s3496_s15 = sphi %s3539_s15, %s4642_s15  }
   0x4   : > { %p24_p0 = scmp.ge.s32.totalorder %s23_s20, 2  ;;  %p67_p2 = scmp.eq.s32.totalorder %s3512_s19, 0 }
   0x5   : > { %s59_s22 = sadd.s32 1, %s3500_s16  ;;  %p2754_p5 = scmp.ge.s32.totalorder %s3512_s19, 2 }
   0x6   : > { %s4647_s20 = smov (%p24_p0, %s23_s20), 0  ;;  %p68_p3 = por %p67_p2, %p66_p1 }
   0x7   : > { %s56_s21 = ssub.s32 %s3508_s18, %s4647_s20  ;;  %180 = sbr.rel (%p2754_p5) target bundleno = 178 (0xb2), region = 20 }
   0x8   : > { %p57_p4 = scmp.eq.s32.totalorder %s56_s21, 0 }
   0xa   : > { %s3574_s23 = scalar_select %p57_p4, %s3500_s16, %s59_s22  }
   0xe   : > { %183 = sbr.rel (!%p68_p3) target bundleno = 178 (0xb2), region = 24  ;;  %s185_s24 = sand.u32 (%p68_p3), 1, %s3500_s16  }
   0xf   : > { %s2755_s25 = sshll.u32 (%p68_p3), %s3508_s18, 3  ;;  %s3432_s26 = smul.u32 (%p68_p3), 2560, %s185_s24 }
  0x10   : > { %s3582_s29 = scalar_lea.vmem (%p68_p3), %s4638_s1, %s2755_s25 }
  0x11   : > { %v855_v0 = vld [vmem:[%s3582_s29] sm:$0xff] (%p68_p3)  ;;  %v857_v1 = vld [vmem:[%s3582_s29 + $0x10] sm:$0xff] (%p68_p3)  ;;  %s3590_s30 = scalar_lea.vmem (%p68_p3), [#allocation2], %s3432_s26 }
  0x12   : > { %v859_v2 = vld [vmem:[%s3582_s29 + $0x20] sm:$0xff] (%p68_p3)  ;;  %v861_v3 = vld [vmem:[%s3582_s29 + $0x30] sm:$0xff] (%p68_p3)  ;;  %856 = vst [vmem:[%s3590_s30] sm:$0xff] (%p68_p3), %v855_v0  ;;  %858 = vst [vmem:[%s3590_s30 + $0x8] sm:$0xff] (%p68_p3), %v857_v1 }
  0x13   : > { %v863_v4 = vld [vmem:[%s3582_s29 + $0x40] sm:$0xff] (%p68_p3)  ;;  %v865_v5 = vld [vmem:[%s3582_s29 + $0x50] sm:$0xff] (%p68_p3)  ;;  %860 = vst [vmem:[%s3590_s30 + $0x10] sm:$0xff] (%p68_p3), %v859_v2  ;;  %862 = vst [vmem:[%s3590_s30 + $0x18] sm:$0xff] (%p68_p3), %v861_v3 }
  0x14   : > { %864 = vst [vmem:[%s3590_s30 + $0x20] sm:$0xff] (%p68_p3), %v863_v4  ;;  %866 = vst [vmem:[%s3590_s30 + $0x28] sm:$0xff] (%p68_p3), %v865_v5  ;;  %v867_v6 = vld [vmem:[%s3582_s29 + $0x60] sm:$0xff] (%p68_p3)  ;;  %v869_v7 = vld [vmem:[%s3582_s29 + $0x70] sm:$0xff] (%p68_p3) }
  0x15   : > { %v871_v8 = vld [vmem:[%s3582_s29 + $0x80] sm:$0xff]  ;;  %868 = vst [vmem:[%s3590_s30 + $0x30] sm:$0xff] %v867_v6  ;;  %870 = vst [vmem:[%s3590_s30 + $0x38] sm:$0xff] %v869_v7  ;;  %v873_v9 = vld [vmem:[%s3582_s29 + $0x90] sm:$0xff] }
  0x16   : > { %872 = vst [vmem:[%s3590_s30 + $0x40] sm:$0xff] %v871_v8  ;;  %v875_v10 = vld [vmem:[%s3582_s29 + $0xa0] sm:$0xff]  ;;  %v877_v11 = vld [vmem:[%s3582_s29 + $0xb0] sm:$0xff]  ;;  %874 = vst [vmem:[%s3590_s30 + $0x48] sm:$0xff] %v873_v9 }
  0x17   : > { %876 = vst [vmem:[%s3590_s30 + $0x50] sm:$0xff] %v875_v10  ;;  %878 = vst [vmem:[%s3590_s30 + $0x58] sm:$0xff] %v877_v11  ;;  %v879_v12 = vld [vmem:[%s3582_s29 + $0xc0] sm:$0xff]  ;;  %v881_v13 = vld [vmem:[%s3582_s29 + $0xd0] sm:$0xff] }
  0x18   : > { %v883_v14 = vld [vmem:[%s3582_s29 + $0xe0] sm:$0xff]  ;;  %880 = vst [vmem:[%s3590_s30 + $0x60] sm:$0xff] %v879_v12  ;;  %882 = vst [vmem:[%s3590_s30 + $0x68] sm:$0xff] %v881_v13  ;;  %v885_v15 = vld [vmem:[%s3582_s29 + $0xf0] sm:$0xff] }
  0x19   : > { %884 = vst [vmem:[%s3590_s30 + $0x70] sm:$0xff] %v883_v14  ;;  %v887_v16 = vld [vmem:[%s3582_s29 + $0x100] sm:$0xff]  ;;  %v889_v17 = vld [vmem:[%s3582_s29 + $0x110] sm:$0xff]  ;;  %886 = vst [vmem:[%s3590_s30 + $0x78] sm:$0xff] %v885_v15 }
  0x1a   : > { %888 = vst [vmem:[%s3590_s30 + $0x80] sm:$0xff] %v887_v16  ;;  %890 = vst [vmem:[%s3590_s30 + $0x88] sm:$0xff] %v889_v17  ;;  %v891_v18 = vld [vmem:[%s3582_s29 + $0x120] sm:$0xff]  ;;  %v893_v19 = vld [vmem:[%s3582_s29 + $0x130] sm:$0xff] }
  0x1b   : > { %v895_v20 = vld [vmem:[%s3582_s29 + $0x140] sm:$0xff]  ;;  %892 = vst [vmem:[%s3590_s30 + $0x90] sm:$0xff] %v891_v18  ;;  %894 = vst [vmem:[%s3590_s30 + $0x98] sm:$0xff] %v893_v19  ;;  %v897_v21 = vld [vmem:[%s3582_s29 + $0x150] sm:$0xff] }
  0x1c   : > { %896 = vst [vmem:[%s3590_s30 + $0xa0] sm:$0xff] %v895_v20  ;;  %v899_v22 = vld [vmem:[%s3582_s29 + $0x160] sm:$0xff]  ;;  %v901_v23 = vld [vmem:[%s3582_s29 + $0x170] sm:$0xff]  ;;  %898 = vst [vmem:[%s3590_s30 + $0xa8] sm:$0xff] %v897_v21 }
  0x1d   : > { %900 = vst [vmem:[%s3590_s30 + $0xb0] sm:$0xff] %v899_v22  ;;  %902 = vst [vmem:[%s3590_s30 + $0xb8] sm:$0xff] %v901_v23  ;;  %v903_v24 = vld [vmem:[%s3582_s29 + $0x180] sm:$0xff]  ;;  %v905_v25 = vld [vmem:[%s3582_s29 + $0x190] sm:$0xff] }
  0x1e   : > { %v907_v26 = vld [vmem:[%s3582_s29 + $0x1a0] sm:$0xff]  ;;  %904 = vst [vmem:[%s3590_s30 + $0xc0] sm:$0xff] %v903_v24  ;;  %906 = vst [vmem:[%s3590_s30 + $0xc8] sm:$0xff] %v905_v25  ;;  %v909_v27 = vld [vmem:[%s3582_s29 + $0x1b0] sm:$0xff] }
  0x1f   : > { %908 = vst [vmem:[%s3590_s30 + $0xd0] sm:$0xff] %v907_v26  ;;  %v911_v28 = vld [vmem:[%s3582_s29 + $0x1c0] sm:$0xff]  ;;  %v913_v29 = vld [vmem:[%s3582_s29 + $0x1d0] sm:$0xff]  ;;  %910 = vst [vmem:[%s3590_s30 + $0xd8] sm:$0xff] %v909_v27 }
  0x20   : > { %912 = vst [vmem:[%s3590_s30 + $0xe0] sm:$0xff] %v911_v28  ;;  %914 = vst [vmem:[%s3590_s30 + $0xe8] sm:$0xff] %v913_v29  ;;  %v915_v30 = vld [vmem:[%s3582_s29 + $0x1e0] sm:$0xff]  ;;  %v917_v31 = vld [vmem:[%s3582_s29 + $0x1f0] sm:$0xff] }
  0x21   : > { %v919_v32 = vld [vmem:[%s3582_s29 + $0x200] sm:$0xff]  ;;  %916 = vst [vmem:[%s3590_s30 + $0xf0] sm:$0xff] %v915_v30  ;;  %918 = vst [vmem:[%s3590_s30 + $0xf8] sm:$0xff] %v917_v31  ;;  %v921_v33 = vld [vmem:[%s3582_s29 + $0x210] sm:$0xff] }
  0x22   : > { %920 = vst [vmem:[%s3590_s30 + $0x100] sm:$0xff] %v919_v32  ;;  %v923_v34 = vld [vmem:[%s3582_s29 + $0x220] sm:$0xff]  ;;  %v925_v35 = vld [vmem:[%s3582_s29 + $0x230] sm:$0xff]  ;;  %922 = vst [vmem:[%s3590_s30 + $0x108] sm:$0xff] %v921_v33 }
  0x23   : > { %924 = vst [vmem:[%s3590_s30 + $0x110] sm:$0xff] %v923_v34  ;;  %926 = vst [vmem:[%s3590_s30 + $0x118] sm:$0xff] %v925_v35  ;;  %v927_v36 = vld [vmem:[%s3582_s29 + $0x240] sm:$0xff]  ;;  %v929_v37 = vld [vmem:[%s3582_s29 + $0x250] sm:$0xff] }
  0x24   : > { %v931_v38 = vld [vmem:[%s3582_s29 + $0x260] sm:$0xff]  ;;  %928 = vst [vmem:[%s3590_s30 + $0x120] sm:$0xff] %v927_v36  ;;  %930 = vst [vmem:[%s3590_s30 + $0x128] sm:$0xff] %v929_v37  ;;  %v933_v39 = vld [vmem:[%s3582_s29 + $0x270] sm:$0xff] }
  0x25   : > { %932 = vst [vmem:[%s3590_s30 + $0x130] sm:$0xff] %v931_v38  ;;  %v935_v40 = vld [vmem:[%s3582_s29 + $0x280] sm:$0xff]  ;;  %v937_v41 = vld [vmem:[%s3582_s29 + $0x290] sm:$0xff]  ;;  %934 = vst [vmem:[%s3590_s30 + $0x138] sm:$0xff] %v933_v39 }
  0x26   : > { %936 = vst [vmem:[%s3590_s30 + $0x140] sm:$0xff] %v935_v40  ;;  %938 = vst [vmem:[%s3590_s30 + $0x148] sm:$0xff] %v937_v41  ;;  %v939_v42 = vld [vmem:[%s3582_s29 + $0x2a0] sm:$0xff]  ;;  %v941_v43 = vld [vmem:[%s3582_s29 + $0x2b0] sm:$0xff] }
  0x27   : > { %v943_v44 = vld [vmem:[%s3582_s29 + $0x2c0] sm:$0xff]  ;;  %940 = vst [vmem:[%s3590_s30 + $0x150] sm:$0xff] %v939_v42  ;;  %942 = vst [vmem:[%s3590_s30 + $0x158] sm:$0xff] %v941_v43  ;;  %v945_v45 = vld [vmem:[%s3582_s29 + $0x2d0] sm:$0xff] }
  0x28   : > { %944 = vst [vmem:[%s3590_s30 + $0x160] sm:$0xff] %v943_v44  ;;  %v947_v46 = vld [vmem:[%s3582_s29 + $0x2e0] sm:$0xff]  ;;  %v949_v47 = vld [vmem:[%s3582_s29 + $0x2f0] sm:$0xff]  ;;  %946 = vst [vmem:[%s3590_s30 + $0x168] sm:$0xff] %v945_v45 }
  0x29   : > { %948 = vst [vmem:[%s3590_s30 + $0x170] sm:$0xff] %v947_v46  ;;  %950 = vst [vmem:[%s3590_s30 + $0x178] sm:$0xff] %v949_v47  ;;  %v951_v48 = vld [vmem:[%s3582_s29 + $0x300] sm:$0xff]  ;;  %v953_v49 = vld [vmem:[%s3582_s29 + $0x310] sm:$0xff] }
  0x2a   : > { %v955_v50 = vld [vmem:[%s3582_s29 + $0x320] sm:$0xff]  ;;  %952 = vst [vmem:[%s3590_s30 + $0x180] sm:$0xff] %v951_v48  ;;  %954 = vst [vmem:[%s3590_s30 + $0x188] sm:$0xff] %v953_v49  ;;  %v957_v51 = vld [vmem:[%s3582_s29 + $0x330] sm:$0xff] }
  0x2b   : > { %956 = vst [vmem:[%s3590_s30 + $0x190] sm:$0xff] %v955_v50  ;;  %v959_v52 = vld [vmem:[%s3582_s29 + $0x340] sm:$0xff]  ;;  %v961_v53 = vld [vmem:[%s3582_s29 + $0x350] sm:$0xff]  ;;  %958 = vst [vmem:[%s3590_s30 + $0x198] sm:$0xff] %v957_v51 }
  0x2c   : > { %960 = vst [vmem:[%s3590_s30 + $0x1a0] sm:$0xff] %v959_v52  ;;  %962 = vst [vmem:[%s3590_s30 + $0x1a8] sm:$0xff] %v961_v53  ;;  %v963_v54 = vld [vmem:[%s3582_s29 + $0x360] sm:$0xff]  ;;  %v965_v55 = vld [vmem:[%s3582_s29 + $0x370] sm:$0xff] }
  0x2d   : > { %v967_v56 = vld [vmem:[%s3582_s29 + $0x380] sm:$0xff]  ;;  %964 = vst [vmem:[%s3590_s30 + $0x1b0] sm:$0xff] %v963_v54  ;;  %966 = vst [vmem:[%s3590_s30 + $0x1b8] sm:$0xff] %v965_v55  ;;  %v969_v57 = vld [vmem:[%s3582_s29 + $0x390] sm:$0xff] }
  0x2e   : > { %968 = vst [vmem:[%s3590_s30 + $0x1c0] sm:$0xff] %v967_v56  ;;  %v971_v58 = vld [vmem:[%s3582_s29 + $0x3a0] sm:$0xff]  ;;  %v973_v59 = vld [vmem:[%s3582_s29 + $0x3b0] sm:$0xff]  ;;  %970 = vst [vmem:[%s3590_s30 + $0x1c8] sm:$0xff] %v969_v57 }
  0x2f   : > { %972 = vst [vmem:[%s3590_s30 + $0x1d0] sm:$0xff] %v971_v58  ;;  %974 = vst [vmem:[%s3590_s30 + $0x1d8] sm:$0xff] %v973_v59  ;;  %v975_v60 = vld [vmem:[%s3582_s29 + $0x3c0] sm:$0xff]  ;;  %v977_v61 = vld [vmem:[%s3582_s29 + $0x3d0] sm:$0xff] }
  0x30   : > { %v979_v62 = vld [vmem:[%s3582_s29 + $0x3e0] sm:$0xff]  ;;  %976 = vst [vmem:[%s3590_s30 + $0x1e0] sm:$0xff] %v975_v60  ;;  %978 = vst [vmem:[%s3590_s30 + $0x1e8] sm:$0xff] %v977_v61  ;;  %v981_v63 = vld [vmem:[%s3582_s29 + $0x3f0] sm:$0xff] }
  0x31   : > { %980 = vst [vmem:[%s3590_s30 + $0x1f0] sm:$0xff] %v979_v62  ;;  %v983_v0 = vld [vmem:[%s3582_s29 + $0x400] sm:$0xff]  ;;  %v985_v1 = vld [vmem:[%s3582_s29 + $0x410] sm:$0xff]  ;;  %982 = vst [vmem:[%s3590_s30 + $0x1f8] sm:$0xff] %v981_v63 }
  0x32   : > { %984 = vst [vmem:[%s3590_s30 + $0x200] sm:$0xff] %v983_v0  ;;  %986 = vst [vmem:[%s3590_s30 + $0x208] sm:$0xff] %v985_v1  ;;  %v987_v2 = vld [vmem:[%s3582_s29 + $0x420] sm:$0xff]  ;;  %v989_v3 = vld [vmem:[%s3582_s29 + $0x430] sm:$0xff] }
  0x33   : > { %v991_v4 = vld [vmem:[%s3582_s29 + $0x440] sm:$0xff]  ;;  %988 = vst [vmem:[%s3590_s30 + $0x210] sm:$0xff] %v987_v2  ;;  %990 = vst [vmem:[%s3590_s30 + $0x218] sm:$0xff] %v989_v3  ;;  %v993_v5 = vld [vmem:[%s3582_s29 + $0x450] sm:$0xff] }
  0x34   : > { %992 = vst [vmem:[%s3590_s30 + $0x220] sm:$0xff] %v991_v4  ;;  %v995_v6 = vld [vmem:[%s3582_s29 + $0x460] sm:$0xff]  ;;  %v997_v7 = vld [vmem:[%s3582_s29 + $0x470] sm:$0xff]  ;;  %994 = vst [vmem:[%s3590_s30 + $0x228] sm:$0xff] %v993_v5 }
  0x35   : > { %996 = vst [vmem:[%s3590_s30 + $0x230] sm:$0xff] %v995_v6  ;;  %998 = vst [vmem:[%s3590_s30 + $0x238] sm:$0xff] %v997_v7  ;;  %v999_v8 = vld [vmem:[%s3582_s29 + $0x480] sm:$0xff]  ;;  %v1001_v9 = vld [vmem:[%s3582_s29 + $0x490] sm:$0xff] }
  0x36   : > { %v1003_v10 = vld [vmem:[%s3582_s29 + $0x4a0] sm:$0xff]  ;;  %1000 = vst [vmem:[%s3590_s30 + $0x240] sm:$0xff] %v999_v8  ;;  %1002 = vst [vmem:[%s3590_s30 + $0x248] sm:$0xff] %v1001_v9  ;;  %v1005_v11 = vld [vmem:[%s3582_s29 + $0x4b0] sm:$0xff] }
  0x37   : > { %1004 = vst [vmem:[%s3590_s30 + $0x250] sm:$0xff] %v1003_v10  ;;  %v1007_v12 = vld [vmem:[%s3582_s29 + $0x4c0] sm:$0xff]  ;;  %v1009_v13 = vld [vmem:[%s3582_s29 + $0x4d0] sm:$0xff]  ;;  %1006 = vst [vmem:[%s3590_s30 + $0x258] sm:$0xff] %v1005_v11 }
  0x38   : > { %1008 = vst [vmem:[%s3590_s30 + $0x260] sm:$0xff] %v1007_v12  ;;  %1010 = vst [vmem:[%s3590_s30 + $0x268] sm:$0xff] %v1009_v13  ;;  %v1011_v14 = vld [vmem:[%s3582_s29 + $0x4e0] sm:$0xff]  ;;  %v1013_v15 = vld [vmem:[%s3582_s29 + $0x4f0] sm:$0xff] }
  0x39   : > { %v1015_v16 = vld [vmem:[%s3582_s29 + $0x500] sm:$0xff]  ;;  %1012 = vst [vmem:[%s3590_s30 + $0x270] sm:$0xff] %v1011_v14  ;;  %1014 = vst [vmem:[%s3590_s30 + $0x278] sm:$0xff] %v1013_v15  ;;  %v1017_v17 = vld [vmem:[%s3582_s29 + $0x510] sm:$0xff] }
  0x3a   : > { %1016 = vst [vmem:[%s3590_s30 + $0x280] sm:$0xff] %v1015_v16  ;;  %v1019_v18 = vld [vmem:[%s3582_s29 + $0x520] sm:$0xff]  ;;  %v1021_v19 = vld [vmem:[%s3582_s29 + $0x530] sm:$0xff]  ;;  %1018 = vst [vmem:[%s3590_s30 + $0x288] sm:$0xff] %v1017_v17 }
  0x3b   : > { %1020 = vst [vmem:[%s3590_s30 + $0x290] sm:$0xff] %v1019_v18  ;;  %1022 = vst [vmem:[%s3590_s30 + $0x298] sm:$0xff] %v1021_v19  ;;  %v1023_v20 = vld [vmem:[%s3582_s29 + $0x540] sm:$0xff]  ;;  %v1025_v21 = vld [vmem:[%s3582_s29 + $0x550] sm:$0xff] }
  0x3c   : > { %v1027_v22 = vld [vmem:[%s3582_s29 + $0x560] sm:$0xff]  ;;  %1024 = vst [vmem:[%s3590_s30 + $0x2a0] sm:$0xff] %v1023_v20  ;;  %1026 = vst [vmem:[%s3590_s30 + $0x2a8] sm:$0xff] %v1025_v21  ;;  %v1029_v23 = vld [vmem:[%s3582_s29 + $0x570] sm:$0xff] }
  0x3d   : > { %1028 = vst [vmem:[%s3590_s30 + $0x2b0] sm:$0xff] %v1027_v22  ;;  %v1031_v24 = vld [vmem:[%s3582_s29 + $0x580] sm:$0xff]  ;;  %v1033_v25 = vld [vmem:[%s3582_s29 + $0x590] sm:$0xff]  ;;  %1030 = vst [vmem:[%s3590_s30 + $0x2b8] sm:$0xff] %v1029_v23 }
  0x3e   : > { %1032 = vst [vmem:[%s3590_s30 + $0x2c0] sm:$0xff] %v1031_v24  ;;  %1034 = vst [vmem:[%s3590_s30 + $0x2c8] sm:$0xff] %v1033_v25  ;;  %v1035_v26 = vld [vmem:[%s3582_s29 + $0x5a0] sm:$0xff]  ;;  %v1037_v27 = vld [vmem:[%s3582_s29 + $0x5b0] sm:$0xff] }
  0x3f   : > { %v1039_v28 = vld [vmem:[%s3582_s29 + $0x5c0] sm:$0xff]  ;;  %1036 = vst [vmem:[%s3590_s30 + $0x2d0] sm:$0xff] %v1035_v26  ;;  %1038 = vst [vmem:[%s3590_s30 + $0x2d8] sm:$0xff] %v1037_v27  ;;  %v1041_v29 = vld [vmem:[%s3582_s29 + $0x5d0] sm:$0xff] }
  0x40   : > { %1040 = vst [vmem:[%s3590_s30 + $0x2e0] sm:$0xff] %v1039_v28  ;;  %v1043_v30 = vld [vmem:[%s3582_s29 + $0x5e0] sm:$0xff]  ;;  %v1045_v31 = vld [vmem:[%s3582_s29 + $0x5f0] sm:$0xff]  ;;  %1042 = vst [vmem:[%s3590_s30 + $0x2e8] sm:$0xff] %v1041_v29 }
  0x41   : > { %1044 = vst [vmem:[%s3590_s30 + $0x2f0] sm:$0xff] %v1043_v30  ;;  %1046 = vst [vmem:[%s3590_s30 + $0x2f8] sm:$0xff] %v1045_v31  ;;  %v1047_v32 = vld [vmem:[%s3582_s29 + $0x600] sm:$0xff]  ;;  %v1049_v33 = vld [vmem:[%s3582_s29 + $0x610] sm:$0xff] }
  0x42   : > { %v1051_v34 = vld [vmem:[%s3582_s29 + $0x620] sm:$0xff]  ;;  %1048 = vst [vmem:[%s3590_s30 + $0x300] sm:$0xff] %v1047_v32  ;;  %1050 = vst [vmem:[%s3590_s30 + $0x308] sm:$0xff] %v1049_v33  ;;  %v1053_v35 = vld [vmem:[%s3582_s29 + $0x630] sm:$0xff] }
  0x43   : > { %1052 = vst [vmem:[%s3590_s30 + $0x310] sm:$0xff] %v1051_v34  ;;  %v1055_v36 = vld [vmem:[%s3582_s29 + $0x640] sm:$0xff]  ;;  %v1057_v37 = vld [vmem:[%s3582_s29 + $0x650] sm:$0xff]  ;;  %1054 = vst [vmem:[%s3590_s30 + $0x318] sm:$0xff] %v1053_v35 }
  0x44   : > { %1056 = vst [vmem:[%s3590_s30 + $0x320] sm:$0xff] %v1055_v36  ;;  %1058 = vst [vmem:[%s3590_s30 + $0x328] sm:$0xff] %v1057_v37  ;;  %v1059_v38 = vld [vmem:[%s3582_s29 + $0x660] sm:$0xff]  ;;  %v1061_v39 = vld [vmem:[%s3582_s29 + $0x670] sm:$0xff] }
  0x45   : > { %v1063_v40 = vld [vmem:[%s3582_s29 + $0x680] sm:$0xff]  ;;  %1060 = vst [vmem:[%s3590_s30 + $0x330] sm:$0xff] %v1059_v38  ;;  %1062 = vst [vmem:[%s3590_s30 + $0x338] sm:$0xff] %v1061_v39  ;;  %v1065_v41 = vld [vmem:[%s3582_s29 + $0x690] sm:$0xff] }
  0x46   : > { %1064 = vst [vmem:[%s3590_s30 + $0x340] sm:$0xff] %v1063_v40  ;;  %v1067_v42 = vld [vmem:[%s3582_s29 + $0x6a0] sm:$0xff]  ;;  %v1069_v43 = vld [vmem:[%s3582_s29 + $0x6b0] sm:$0xff]  ;;  %1066 = vst [vmem:[%s3590_s30 + $0x348] sm:$0xff] %v1065_v41 }
  0x47   : > { %1068 = vst [vmem:[%s3590_s30 + $0x350] sm:$0xff] %v1067_v42  ;;  %1070 = vst [vmem:[%s3590_s30 + $0x358] sm:$0xff] %v1069_v43  ;;  %v1071_v44 = vld [vmem:[%s3582_s29 + $0x6c0] sm:$0xff]  ;;  %v1073_v45 = vld [vmem:[%s3582_s29 + $0x6d0] sm:$0xff] }
  0x48   : > { %v1075_v46 = vld [vmem:[%s3582_s29 + $0x6e0] sm:$0xff]  ;;  %1072 = vst [vmem:[%s3590_s30 + $0x360] sm:$0xff] %v1071_v44  ;;  %1074 = vst [vmem:[%s3590_s30 + $0x368] sm:$0xff] %v1073_v45  ;;  %v1077_v47 = vld [vmem:[%s3582_s29 + $0x6f0] sm:$0xff] }
  0x49   : > { %1076 = vst [vmem:[%s3590_s30 + $0x370] sm:$0xff] %v1075_v46  ;;  %v1079_v48 = vld [vmem:[%s3582_s29 + $0x700] sm:$0xff]  ;;  %v1081_v49 = vld [vmem:[%s3582_s29 + $0x710] sm:$0xff]  ;;  %1078 = vst [vmem:[%s3590_s30 + $0x378] sm:$0xff] %v1077_v47 }
  0x4a   : > { %1080 = vst [vmem:[%s3590_s30 + $0x380] sm:$0xff] %v1079_v48  ;;  %1082 = vst [vmem:[%s3590_s30 + $0x388] sm:$0xff] %v1081_v49  ;;  %v1083_v50 = vld [vmem:[%s3582_s29 + $0x720] sm:$0xff]  ;;  %v1085_v51 = vld [vmem:[%s3582_s29 + $0x730] sm:$0xff] }
  0x4b   : > { %v1087_v52 = vld [vmem:[%s3582_s29 + $0x740] sm:$0xff]  ;;  %1084 = vst [vmem:[%s3590_s30 + $0x390] sm:$0xff] %v1083_v50  ;;  %1086 = vst [vmem:[%s3590_s30 + $0x398] sm:$0xff] %v1085_v51  ;;  %v1089_v53 = vld [vmem:[%s3582_s29 + $0x750] sm:$0xff] }
  0x4c   : > { %1088 = vst [vmem:[%s3590_s30 + $0x3a0] sm:$0xff] %v1087_v52  ;;  %v1091_v54 = vld [vmem:[%s3582_s29 + $0x760] sm:$0xff]  ;;  %v1093_v55 = vld [vmem:[%s3582_s29 + $0x770] sm:$0xff]  ;;  %1090 = vst [vmem:[%s3590_s30 + $0x3a8] sm:$0xff] %v1089_v53 }
  0x4d   : > { %1092 = vst [vmem:[%s3590_s30 + $0x3b0] sm:$0xff] %v1091_v54  ;;  %1094 = vst [vmem:[%s3590_s30 + $0x3b8] sm:$0xff] %v1093_v55  ;;  %v1095_v56 = vld [vmem:[%s3582_s29 + $0x780] sm:$0xff]  ;;  %v1097_v57 = vld [vmem:[%s3582_s29 + $0x790] sm:$0xff] }
  0x4e   : > { %v1099_v58 = vld [vmem:[%s3582_s29 + $0x7a0] sm:$0xff]  ;;  %1096 = vst [vmem:[%s3590_s30 + $0x3c0] sm:$0xff] %v1095_v56  ;;  %1098 = vst [vmem:[%s3590_s30 + $0x3c8] sm:$0xff] %v1097_v57  ;;  %v1101_v59 = vld [vmem:[%s3582_s29 + $0x7b0] sm:$0xff] }
  0x4f   : > { %1100 = vst [vmem:[%s3590_s30 + $0x3d0] sm:$0xff] %v1099_v58  ;;  %v1103_v60 = vld [vmem:[%s3582_s29 + $0x7c0] sm:$0xff]  ;;  %v1105_v61 = vld [vmem:[%s3582_s29 + $0x7d0] sm:$0xff]  ;;  %1102 = vst [vmem:[%s3590_s30 + $0x3d8] sm:$0xff] %v1101_v59 }
  0x50   : > { %1104 = vst [vmem:[%s3590_s30 + $0x3e0] sm:$0xff] %v1103_v60  ;;  %1106 = vst [vmem:[%s3590_s30 + $0x3e8] sm:$0xff] %v1105_v61  ;;  %v1107_v62 = vld [vmem:[%s3582_s29 + $0x7e0] sm:$0xff]  ;;  %v1109_v63 = vld [vmem:[%s3582_s29 + $0x7f0] sm:$0xff] }
  0x51   : > { %v1111_v0 = vld [vmem:[%s3582_s29 + $0x800] sm:$0xff]  ;;  %1108 = vst [vmem:[%s3590_s30 + $0x3f0] sm:$0xff] %v1107_v62  ;;  %1110 = vst [vmem:[%s3590_s30 + $0x3f8] sm:$0xff] %v1109_v63  ;;  %v1113_v1 = vld [vmem:[%s3582_s29 + $0x810] sm:$0xff] }
  0x52   : > { %1112 = vst [vmem:[%s3590_s30 + $0x400] sm:$0xff] %v1111_v0  ;;  %v1115_v2 = vld [vmem:[%s3582_s29 + $0x820] sm:$0xff]  ;;  %v1117_v3 = vld [vmem:[%s3582_s29 + $0x830] sm:$0xff]  ;;  %1114 = vst [vmem:[%s3590_s30 + $0x408] sm:$0xff] %v1113_v1 }
  0x53   : > { %1116 = vst [vmem:[%s3590_s30 + $0x410] sm:$0xff] %v1115_v2  ;;  %1118 = vst [vmem:[%s3590_s30 + $0x418] sm:$0xff] %v1117_v3  ;;  %v1119_v4 = vld [vmem:[%s3582_s29 + $0x840] sm:$0xff]  ;;  %v1121_v5 = vld [vmem:[%s3582_s29 + $0x850] sm:$0xff] }
  0x54   : > { %v1123_v6 = vld [vmem:[%s3582_s29 + $0x860] sm:$0xff]  ;;  %1120 = vst [vmem:[%s3590_s30 + $0x420] sm:$0xff] %v1119_v4  ;;  %1122 = vst [vmem:[%s3590_s30 + $0x428] sm:$0xff] %v1121_v5  ;;  %v1125_v7 = vld [vmem:[%s3582_s29 + $0x870] sm:$0xff] }
  0x55   : > { %1124 = vst [vmem:[%s3590_s30 + $0x430] sm:$0xff] %v1123_v6  ;;  %v1127_v8 = vld [vmem:[%s3582_s29 + $0x880] sm:$0xff]  ;;  %v1129_v9 = vld [vmem:[%s3582_s29 + $0x890] sm:$0xff]  ;;  %1126 = vst [vmem:[%s3590_s30 + $0x438] sm:$0xff] %v1125_v7 }
  0x56   : > { %1128 = vst [vmem:[%s3590_s30 + $0x440] sm:$0xff] %v1127_v8  ;;  %1130 = vst [vmem:[%s3590_s30 + $0x448] sm:$0xff] %v1129_v9  ;;  %v1131_v10 = vld [vmem:[%s3582_s29 + $0x8a0] sm:$0xff]  ;;  %v1133_v11 = vld [vmem:[%s3582_s29 + $0x8b0] sm:$0xff] }
  0x57   : > { %v1135_v12 = vld [vmem:[%s3582_s29 + $0x8c0] sm:$0xff]  ;;  %1132 = vst [vmem:[%s3590_s30 + $0x450] sm:$0xff] %v1131_v10  ;;  %1134 = vst [vmem:[%s3590_s30 + $0x458] sm:$0xff] %v1133_v11  ;;  %v1137_v13 = vld [vmem:[%s3582_s29 + $0x8d0] sm:$0xff] }
  0x58   : > { %1136 = vst [vmem:[%s3590_s30 + $0x460] sm:$0xff] %v1135_v12  ;;  %v1139_v14 = vld [vmem:[%s3582_s29 + $0x8e0] sm:$0xff]  ;;  %v1141_v15 = vld [vmem:[%s3582_s29 + $0x8f0] sm:$0xff]  ;;  %1138 = vst [vmem:[%s3590_s30 + $0x468] sm:$0xff] %v1137_v13 }
  0x59   : > { %1140 = vst [vmem:[%s3590_s30 + $0x470] sm:$0xff] %v1139_v14  ;;  %1142 = vst [vmem:[%s3590_s30 + $0x478] sm:$0xff] %v1141_v15  ;;  %v1143_v16 = vld [vmem:[%s3582_s29 + $0x900] sm:$0xff]  ;;  %v1145_v17 = vld [vmem:[%s3582_s29 + $0x910] sm:$0xff] }
  0x5a   : > { %v1147_v18 = vld [vmem:[%s3582_s29 + $0x920] sm:$0xff]  ;;  %1144 = vst [vmem:[%s3590_s30 + $0x480] sm:$0xff] %v1143_v16  ;;  %1146 = vst [vmem:[%s3590_s30 + $0x488] sm:$0xff] %v1145_v17  ;;  %v1149_v19 = vld [vmem:[%s3582_s29 + $0x930] sm:$0xff] }
  0x5b   : > { %1148 = vst [vmem:[%s3590_s30 + $0x490] sm:$0xff] %v1147_v18  ;;  %v1151_v20 = vld [vmem:[%s3582_s29 + $0x940] sm:$0xff]  ;;  %v1153_v21 = vld [vmem:[%s3582_s29 + $0x950] sm:$0xff]  ;;  %1150 = vst [vmem:[%s3590_s30 + $0x498] sm:$0xff] %v1149_v19 }
  0x5c   : > { %1152 = vst [vmem:[%s3590_s30 + $0x4a0] sm:$0xff] %v1151_v20  ;;  %1154 = vst [vmem:[%s3590_s30 + $0x4a8] sm:$0xff] %v1153_v21  ;;  %v1155_v22 = vld [vmem:[%s3582_s29 + $0x960] sm:$0xff]  ;;  %v1157_v23 = vld [vmem:[%s3582_s29 + $0x970] sm:$0xff] }
  0x5d   : > { %v1159_v24 = vld [vmem:[%s3582_s29 + $0x980] sm:$0xff]  ;;  %1156 = vst [vmem:[%s3590_s30 + $0x4b0] sm:$0xff] %v1155_v22  ;;  %1158 = vst [vmem:[%s3590_s30 + $0x4b8] sm:$0xff] %v1157_v23  ;;  %v1161_v25 = vld [vmem:[%s3582_s29 + $0x990] sm:$0xff] }
  0x5e   : > { %1160 = vst [vmem:[%s3590_s30 + $0x4c0] sm:$0xff] %v1159_v24  ;;  %v1163_v26 = vld [vmem:[%s3582_s29 + $0x9a0] sm:$0xff]  ;;  %v1165_v27 = vld [vmem:[%s3582_s29 + $0x9b0] sm:$0xff]  ;;  %1162 = vst [vmem:[%s3590_s30 + $0x4c8] sm:$0xff] %v1161_v25 }
  0x5f   : > { %1164 = vst [vmem:[%s3590_s30 + $0x4d0] sm:$0xff] %v1163_v26  ;;  %1166 = vst [vmem:[%s3590_s30 + $0x4d8] sm:$0xff] %v1165_v27  ;;  %v1167_v28 = vld [vmem:[%s3582_s29 + $0x9c0] sm:$0xff]  ;;  %v1169_v29 = vld [vmem:[%s3582_s29 + $0x9d0] sm:$0xff] }
  0x60   : > { %v1171_v30 = vld [vmem:[%s3582_s29 + $0x9e0] sm:$0xff]  ;;  %1168 = vst [vmem:[%s3590_s30 + $0x4e0] sm:$0xff] %v1167_v28  ;;  %1170 = vst [vmem:[%s3590_s30 + $0x4e8] sm:$0xff] %v1169_v29  ;;  %v1173_v31 = vld [vmem:[%s3582_s29 + $0x9f0] sm:$0xff] }
  0x61   : > { %1172 = vst [vmem:[%s3590_s30 + $0x4f0] sm:$0xff] %v1171_v30  ;;  %v1175_v32 = vld [vmem:[%s3582_s29 + $0xa00] sm:$0xff]  ;;  %v1177_v33 = vld [vmem:[%s3582_s29 + $0xa10] sm:$0xff]  ;;  %1174 = vst [vmem:[%s3590_s30 + $0x4f8] sm:$0xff] %v1173_v31 }
  0x62   : > { %1176 = vst [vmem:[%s3590_s30 + $0x500] sm:$0xff] %v1175_v32  ;;  %1178 = vst [vmem:[%s3590_s30 + $0x508] sm:$0xff] %v1177_v33  ;;  %v1179_v34 = vld [vmem:[%s3582_s29 + $0xa20] sm:$0xff]  ;;  %v1181_v35 = vld [vmem:[%s3582_s29 + $0xa30] sm:$0xff] }
  0x63   : > { %v1183_v36 = vld [vmem:[%s3582_s29 + $0xa40] sm:$0xff]  ;;  %1180 = vst [vmem:[%s3590_s30 + $0x510] sm:$0xff] %v1179_v34  ;;  %1182 = vst [vmem:[%s3590_s30 + $0x518] sm:$0xff] %v1181_v35  ;;  %v1185_v37 = vld [vmem:[%s3582_s29 + $0xa50] sm:$0xff] }
  0x64   : > { %1184 = vst [vmem:[%s3590_s30 + $0x520] sm:$0xff] %v1183_v36  ;;  %v1187_v38 = vld [vmem:[%s3582_s29 + $0xa60] sm:$0xff]  ;;  %v1189_v39 = vld [vmem:[%s3582_s29 + $0xa70] sm:$0xff]  ;;  %1186 = vst [vmem:[%s3590_s30 + $0x528] sm:$0xff] %v1185_v37 }
  0x65   : > { %1188 = vst [vmem:[%s3590_s30 + $0x530] sm:$0xff] %v1187_v38  ;;  %1190 = vst [vmem:[%s3590_s30 + $0x538] sm:$0xff] %v1189_v39  ;;  %v1191_v40 = vld [vmem:[%s3582_s29 + $0xa80] sm:$0xff]  ;;  %v1193_v41 = vld [vmem:[%s3582_s29 + $0xa90] sm:$0xff] }
  0x66   : > { %v1195_v42 = vld [vmem:[%s3582_s29 + $0xaa0] sm:$0xff]  ;;  %1192 = vst [vmem:[%s3590_s30 + $0x540] sm:$0xff] %v1191_v40  ;;  %1194 = vst [vmem:[%s3590_s30 + $0x548] sm:$0xff] %v1193_v41  ;;  %v1197_v43 = vld [vmem:[%s3582_s29 + $0xab0] sm:$0xff] }
  0x67   : > { %1196 = vst [vmem:[%s3590_s30 + $0x550] sm:$0xff] %v1195_v42  ;;  %v1199_v44 = vld [vmem:[%s3582_s29 + $0xac0] sm:$0xff]  ;;  %v1201_v45 = vld [vmem:[%s3582_s29 + $0xad0] sm:$0xff]  ;;  %1198 = vst [vmem:[%s3590_s30 + $0x558] sm:$0xff] %v1197_v43 }
  0x68   : > { %1200 = vst [vmem:[%s3590_s30 + $0x560] sm:$0xff] %v1199_v44  ;;  %1202 = vst [vmem:[%s3590_s30 + $0x568] sm:$0xff] %v1201_v45  ;;  %v1203_v46 = vld [vmem:[%s3582_s29 + $0xae0] sm:$0xff]  ;;  %v1205_v47 = vld [vmem:[%s3582_s29 + $0xaf0] sm:$0xff] }
  0x69   : > { %v1207_v48 = vld [vmem:[%s3582_s29 + $0xb00] sm:$0xff]  ;;  %1204 = vst [vmem:[%s3590_s30 + $0x570] sm:$0xff] %v1203_v46  ;;  %1206 = vst [vmem:[%s3590_s30 + $0x578] sm:$0xff] %v1205_v47  ;;  %v1209_v49 = vld [vmem:[%s3582_s29 + $0xb10] sm:$0xff] }
  0x6a   : > { %1208 = vst [vmem:[%s3590_s30 + $0x580] sm:$0xff] %v1207_v48  ;;  %v1211_v50 = vld [vmem:[%s3582_s29 + $0xb20] sm:$0xff]  ;;  %v1213_v51 = vld [vmem:[%s3582_s29 + $0xb30] sm:$0xff]  ;;  %1210 = vst [vmem:[%s3590_s30 + $0x588] sm:$0xff] %v1209_v49 }
  0x6b   : > { %1212 = vst [vmem:[%s3590_s30 + $0x590] sm:$0xff] %v1211_v50  ;;  %1214 = vst [vmem:[%s3590_s30 + $0x598] sm:$0xff] %v1213_v51  ;;  %v1215_v52 = vld [vmem:[%s3582_s29 + $0xb40] sm:$0xff]  ;;  %v1217_v53 = vld [vmem:[%s3582_s29 + $0xb50] sm:$0xff] }
  0x6c   : > { %v1219_v54 = vld [vmem:[%s3582_s29 + $0xb60] sm:$0xff]  ;;  %1216 = vst [vmem:[%s3590_s30 + $0x5a0] sm:$0xff] %v1215_v52  ;;  %1218 = vst [vmem:[%s3590_s30 + $0x5a8] sm:$0xff] %v1217_v53  ;;  %v1221_v55 = vld [vmem:[%s3582_s29 + $0xb70] sm:$0xff] }
  0x6d   : > { %1220 = vst [vmem:[%s3590_s30 + $0x5b0] sm:$0xff] %v1219_v54  ;;  %v1223_v56 = vld [vmem:[%s3582_s29 + $0xb80] sm:$0xff]  ;;  %v1225_v57 = vld [vmem:[%s3582_s29 + $0xb90] sm:$0xff]  ;;  %1222 = vst [vmem:[%s3590_s30 + $0x5b8] sm:$0xff] %v1221_v55 }
  0x6e   : > { %1224 = vst [vmem:[%s3590_s30 + $0x5c0] sm:$0xff] %v1223_v56  ;;  %1226 = vst [vmem:[%s3590_s30 + $0x5c8] sm:$0xff] %v1225_v57  ;;  %v1227_v58 = vld [vmem:[%s3582_s29 + $0xba0] sm:$0xff]  ;;  %v1229_v59 = vld [vmem:[%s3582_s29 + $0xbb0] sm:$0xff] }
  0x6f   : > { %v1231_v60 = vld [vmem:[%s3582_s29 + $0xbc0] sm:$0xff]  ;;  %1228 = vst [vmem:[%s3590_s30 + $0x5d0] sm:$0xff] %v1227_v58  ;;  %1230 = vst [vmem:[%s3590_s30 + $0x5d8] sm:$0xff] %v1229_v59  ;;  %v1233_v61 = vld [vmem:[%s3582_s29 + $0xbd0] sm:$0xff] }
  0x70   : > { %1232 = vst [vmem:[%s3590_s30 + $0x5e0] sm:$0xff] %v1231_v60  ;;  %v1235_v62 = vld [vmem:[%s3582_s29 + $0xbe0] sm:$0xff]  ;;  %v1237_v63 = vld [vmem:[%s3582_s29 + $0xbf0] sm:$0xff]  ;;  %1234 = vst [vmem:[%s3590_s30 + $0x5e8] sm:$0xff] %v1233_v61 }
  0x71   : > { %1236 = vst [vmem:[%s3590_s30 + $0x5f0] sm:$0xff] %v1235_v62  ;;  %1238 = vst [vmem:[%s3590_s30 + $0x5f8] sm:$0xff] %v1237_v63  ;;  %v1239_v0 = vld [vmem:[%s3582_s29 + $0xc00] sm:$0xff]  ;;  %v1241_v1 = vld [vmem:[%s3582_s29 + $0xc10] sm:$0xff] }
  0x72   : > { %v1243_v2 = vld [vmem:[%s3582_s29 + $0xc20] sm:$0xff]  ;;  %1240 = vst [vmem:[%s3590_s30 + $0x600] sm:$0xff] %v1239_v0  ;;  %1242 = vst [vmem:[%s3590_s30 + $0x608] sm:$0xff] %v1241_v1  ;;  %v1245_v3 = vld [vmem:[%s3582_s29 + $0xc30] sm:$0xff] }
  0x73   : > { %1244 = vst [vmem:[%s3590_s30 + $0x610] sm:$0xff] %v1243_v2  ;;  %v1247_v4 = vld [vmem:[%s3582_s29 + $0xc40] sm:$0xff]  ;;  %v1249_v5 = vld [vmem:[%s3582_s29 + $0xc50] sm:$0xff]  ;;  %1246 = vst [vmem:[%s3590_s30 + $0x618] sm:$0xff] %v1245_v3 }
  0x74   : > { %1248 = vst [vmem:[%s3590_s30 + $0x620] sm:$0xff] %v1247_v4  ;;  %1250 = vst [vmem:[%s3590_s30 + $0x628] sm:$0xff] %v1249_v5  ;;  %v1251_v6 = vld [vmem:[%s3582_s29 + $0xc60] sm:$0xff]  ;;  %v1253_v7 = vld [vmem:[%s3582_s29 + $0xc70] sm:$0xff] }
  0x75   : > { %v1255_v8 = vld [vmem:[%s3582_s29 + $0xc80] sm:$0xff]  ;;  %1252 = vst [vmem:[%s3590_s30 + $0x630] sm:$0xff] %v1251_v6  ;;  %1254 = vst [vmem:[%s3590_s30 + $0x638] sm:$0xff] %v1253_v7  ;;  %v1257_v9 = vld [vmem:[%s3582_s29 + $0xc90] sm:$0xff] }
  0x76   : > { %1256 = vst [vmem:[%s3590_s30 + $0x640] sm:$0xff] %v1255_v8  ;;  %v1259_v10 = vld [vmem:[%s3582_s29 + $0xca0] sm:$0xff]  ;;  %v1261_v11 = vld [vmem:[%s3582_s29 + $0xcb0] sm:$0xff]  ;;  %1258 = vst [vmem:[%s3590_s30 + $0x648] sm:$0xff] %v1257_v9 }
  0x77   : > { %1260 = vst [vmem:[%s3590_s30 + $0x650] sm:$0xff] %v1259_v10  ;;  %1262 = vst [vmem:[%s3590_s30 + $0x658] sm:$0xff] %v1261_v11  ;;  %v1263_v12 = vld [vmem:[%s3582_s29 + $0xcc0] sm:$0xff]  ;;  %v1265_v13 = vld [vmem:[%s3582_s29 + $0xcd0] sm:$0xff] }
  0x78   : > { %v1267_v14 = vld [vmem:[%s3582_s29 + $0xce0] sm:$0xff]  ;;  %1264 = vst [vmem:[%s3590_s30 + $0x660] sm:$0xff] %v1263_v12  ;;  %1266 = vst [vmem:[%s3590_s30 + $0x668] sm:$0xff] %v1265_v13  ;;  %v1269_v15 = vld [vmem:[%s3582_s29 + $0xcf0] sm:$0xff] }
  0x79   : > { %1268 = vst [vmem:[%s3590_s30 + $0x670] sm:$0xff] %v1267_v14  ;;  %v1271_v16 = vld [vmem:[%s3582_s29 + $0xd00] sm:$0xff]  ;;  %v1273_v17 = vld [vmem:[%s3582_s29 + $0xd10] sm:$0xff]  ;;  %1270 = vst [vmem:[%s3590_s30 + $0x678] sm:$0xff] %v1269_v15 }
  0x7a   : > { %1272 = vst [vmem:[%s3590_s30 + $0x680] sm:$0xff] %v1271_v16  ;;  %1274 = vst [vmem:[%s3590_s30 + $0x688] sm:$0xff] %v1273_v17  ;;  %v1275_v18 = vld [vmem:[%s3582_s29 + $0xd20] sm:$0xff]  ;;  %v1277_v19 = vld [vmem:[%s3582_s29 + $0xd30] sm:$0xff] }
  0x7b   : > { %v1279_v20 = vld [vmem:[%s3582_s29 + $0xd40] sm:$0xff]  ;;  %1276 = vst [vmem:[%s3590_s30 + $0x690] sm:$0xff] %v1275_v18  ;;  %1278 = vst [vmem:[%s3590_s30 + $0x698] sm:$0xff] %v1277_v19  ;;  %v1281_v21 = vld [vmem:[%s3582_s29 + $0xd50] sm:$0xff] }
  0x7c   : > { %1280 = vst [vmem:[%s3590_s30 + $0x6a0] sm:$0xff] %v1279_v20  ;;  %v1283_v22 = vld [vmem:[%s3582_s29 + $0xd60] sm:$0xff]  ;;  %v1285_v23 = vld [vmem:[%s3582_s29 + $0xd70] sm:$0xff]  ;;  %1282 = vst [vmem:[%s3590_s30 + $0x6a8] sm:$0xff] %v1281_v21 }
  0x7d   : > { %1284 = vst [vmem:[%s3590_s30 + $0x6b0] sm:$0xff] %v1283_v22  ;;  %1286 = vst [vmem:[%s3590_s30 + $0x6b8] sm:$0xff] %v1285_v23  ;;  %v1287_v24 = vld [vmem:[%s3582_s29 + $0xd80] sm:$0xff]  ;;  %v1289_v25 = vld [vmem:[%s3582_s29 + $0xd90] sm:$0xff] }
  0x7e   : > { %v1291_v26 = vld [vmem:[%s3582_s29 + $0xda0] sm:$0xff]  ;;  %1288 = vst [vmem:[%s3590_s30 + $0x6c0] sm:$0xff] %v1287_v24  ;;  %1290 = vst [vmem:[%s3590_s30 + $0x6c8] sm:$0xff] %v1289_v25  ;;  %v1293_v27 = vld [vmem:[%s3582_s29 + $0xdb0] sm:$0xff] }
  0x7f   : > { %1292 = vst [vmem:[%s3590_s30 + $0x6d0] sm:$0xff] %v1291_v26  ;;  %v1295_v28 = vld [vmem:[%s3582_s29 + $0xdc0] sm:$0xff]  ;;  %v1297_v29 = vld [vmem:[%s3582_s29 + $0xdd0] sm:$0xff]  ;;  %1294 = vst [vmem:[%s3590_s30 + $0x6d8] sm:$0xff] %v1293_v27 }
  0x80   : > { %1296 = vst [vmem:[%s3590_s30 + $0x6e0] sm:$0xff] %v1295_v28  ;;  %1298 = vst [vmem:[%s3590_s30 + $0x6e8] sm:$0xff] %v1297_v29  ;;  %v1299_v30 = vld [vmem:[%s3582_s29 + $0xde0] sm:$0xff]  ;;  %v1301_v31 = vld [vmem:[%s3582_s29 + $0xdf0] sm:$0xff] }
  0x81   : > { %v1303_v32 = vld [vmem:[%s3582_s29 + $0xe00] sm:$0xff]  ;;  %1300 = vst [vmem:[%s3590_s30 + $0x6f0] sm:$0xff] %v1299_v30  ;;  %1302 = vst [vmem:[%s3590_s30 + $0x6f8] sm:$0xff] %v1301_v31  ;;  %v1305_v33 = vld [vmem:[%s3582_s29 + $0xe10] sm:$0xff] }
  0x82   : > { %1304 = vst [vmem:[%s3590_s30 + $0x700] sm:$0xff] %v1303_v32  ;;  %v1307_v34 = vld [vmem:[%s3582_s29 + $0xe20] sm:$0xff]  ;;  %v1309_v35 = vld [vmem:[%s3582_s29 + $0xe30] sm:$0xff]  ;;  %1306 = vst [vmem:[%s3590_s30 + $0x708] sm:$0xff] %v1305_v33 }
  0x83   : > { %1308 = vst [vmem:[%s3590_s30 + $0x710] sm:$0xff] %v1307_v34  ;;  %1310 = vst [vmem:[%s3590_s30 + $0x718] sm:$0xff] %v1309_v35  ;;  %v1311_v36 = vld [vmem:[%s3582_s29 + $0xe40] sm:$0xff]  ;;  %v1313_v37 = vld [vmem:[%s3582_s29 + $0xe50] sm:$0xff] }
  0x84   : > { %v1315_v38 = vld [vmem:[%s3582_s29 + $0xe60] sm:$0xff]  ;;  %1312 = vst [vmem:[%s3590_s30 + $0x720] sm:$0xff] %v1311_v36  ;;  %1314 = vst [vmem:[%s3590_s30 + $0x728] sm:$0xff] %v1313_v37  ;;  %v1317_v39 = vld [vmem:[%s3582_s29 + $0xe70] sm:$0xff] }
  0x85   : > { %1316 = vst [vmem:[%s3590_s30 + $0x730] sm:$0xff] %v1315_v38  ;;  %v1319_v40 = vld [vmem:[%s3582_s29 + $0xe80] sm:$0xff]  ;;  %v1321_v41 = vld [vmem:[%s3582_s29 + $0xe90] sm:$0xff]  ;;  %1318 = vst [vmem:[%s3590_s30 + $0x738] sm:$0xff] %v1317_v39 }
  0x86   : > { %1320 = vst [vmem:[%s3590_s30 + $0x740] sm:$0xff] %v1319_v40  ;;  %1322 = vst [vmem:[%s3590_s30 + $0x748] sm:$0xff] %v1321_v41  ;;  %v1323_v42 = vld [vmem:[%s3582_s29 + $0xea0] sm:$0xff]  ;;  %v1325_v43 = vld [vmem:[%s3582_s29 + $0xeb0] sm:$0xff] }
  0x87   : > { %v1327_v44 = vld [vmem:[%s3582_s29 + $0xec0] sm:$0xff]  ;;  %1324 = vst [vmem:[%s3590_s30 + $0x750] sm:$0xff] %v1323_v42  ;;  %1326 = vst [vmem:[%s3590_s30 + $0x758] sm:$0xff] %v1325_v43  ;;  %v1329_v45 = vld [vmem:[%s3582_s29 + $0xed0] sm:$0xff] }
  0x88   : > { %1328 = vst [vmem:[%s3590_s30 + $0x760] sm:$0xff] %v1327_v44  ;;  %v1331_v46 = vld [vmem:[%s3582_s29 + $0xee0] sm:$0xff]  ;;  %v1333_v47 = vld [vmem:[%s3582_s29 + $0xef0] sm:$0xff]  ;;  %1330 = vst [vmem:[%s3590_s30 + $0x768] sm:$0xff] %v1329_v45 }
  0x89   : > { %1332 = vst [vmem:[%s3590_s30 + $0x770] sm:$0xff] %v1331_v46  ;;  %1334 = vst [vmem:[%s3590_s30 + $0x778] sm:$0xff] %v1333_v47  ;;  %v1335_v48 = vld [vmem:[%s3582_s29 + $0xf00] sm:$0xff]  ;;  %v1337_v49 = vld [vmem:[%s3582_s29 + $0xf10] sm:$0xff] }
  0x8a   : > { %v1339_v50 = vld [vmem:[%s3582_s29 + $0xf20] sm:$0xff]  ;;  %1336 = vst [vmem:[%s3590_s30 + $0x780] sm:$0xff] %v1335_v48  ;;  %1338 = vst [vmem:[%s3590_s30 + $0x788] sm:$0xff] %v1337_v49  ;;  %v1341_v51 = vld [vmem:[%s3582_s29 + $0xf30] sm:$0xff] }
  0x8b   : > { %1340 = vst [vmem:[%s3590_s30 + $0x790] sm:$0xff] %v1339_v50  ;;  %v1343_v52 = vld [vmem:[%s3582_s29 + $0xf40] sm:$0xff]  ;;  %v1345_v53 = vld [vmem:[%s3582_s29 + $0xf50] sm:$0xff]  ;;  %1342 = vst [vmem:[%s3590_s30 + $0x798] sm:$0xff] %v1341_v51 }
  0x8c   : > { %1344 = vst [vmem:[%s3590_s30 + $0x7a0] sm:$0xff] %v1343_v52  ;;  %1346 = vst [vmem:[%s3590_s30 + $0x7a8] sm:$0xff] %v1345_v53  ;;  %v1347_v54 = vld [vmem:[%s3582_s29 + $0xf60] sm:$0xff]  ;;  %v1349_v55 = vld [vmem:[%s3582_s29 + $0xf70] sm:$0xff] }
  0x8d   : > { %v1351_v56 = vld [vmem:[%s3582_s29 + $0xf80] sm:$0xff]  ;;  %1348 = vst [vmem:[%s3590_s30 + $0x7b0] sm:$0xff] %v1347_v54  ;;  %1350 = vst [vmem:[%s3590_s30 + $0x7b8] sm:$0xff] %v1349_v55  ;;  %v1353_v57 = vld [vmem:[%s3582_s29 + $0xf90] sm:$0xff] }
  0x8e   : > { %1352 = vst [vmem:[%s3590_s30 + $0x7c0] sm:$0xff] %v1351_v56  ;;  %v1355_v58 = vld [vmem:[%s3582_s29 + $0xfa0] sm:$0xff]  ;;  %v1357_v59 = vld [vmem:[%s3582_s29 + $0xfb0] sm:$0xff]  ;;  %1354 = vst [vmem:[%s3590_s30 + $0x7c8] sm:$0xff] %v1353_v57 }
  0x8f   : > { %1356 = vst [vmem:[%s3590_s30 + $0x7d0] sm:$0xff] %v1355_v58  ;;  %1358 = vst [vmem:[%s3590_s30 + $0x7d8] sm:$0xff] %v1357_v59  ;;  %v1359_v60 = vld [vmem:[%s3582_s29 + $0xfc0] sm:$0xff]  ;;  %v1361_v61 = vld [vmem:[%s3582_s29 + $0xfd0] sm:$0xff] }
  0x90   : > { %v1363_v62 = vld [vmem:[%s3582_s29 + $0xfe0] sm:$0xff]  ;;  %1360 = vst [vmem:[%s3590_s30 + $0x7e0] sm:$0xff] %v1359_v60  ;;  %1362 = vst [vmem:[%s3590_s30 + $0x7e8] sm:$0xff] %v1361_v61  ;;  %v1365_v63 = vld [vmem:[%s3582_s29 + $0xff0] sm:$0xff] }
  0x91   : > { %1364 = vst [vmem:[%s3590_s30 + $0x7f0] sm:$0xff] %v1363_v62  ;;  %v1367_v0 = vld [vmem:[%s3582_s29 + $0x1000] sm:$0xff]  ;;  %v1369_v1 = vld [vmem:[%s3582_s29 + $0x1010] sm:$0xff]  ;;  %1366 = vst [vmem:[%s3590_s30 + $0x7f8] sm:$0xff] %v1365_v63 }
  0x92   : > { %1368 = vst [vmem:[%s3590_s30 + $0x800] sm:$0xff] %v1367_v0  ;;  %1370 = vst [vmem:[%s3590_s30 + $0x808] sm:$0xff] %v1369_v1  ;;  %v1371_v2 = vld [vmem:[%s3582_s29 + $0x1020] sm:$0xff]  ;;  %v1373_v3 = vld [vmem:[%s3582_s29 + $0x1030] sm:$0xff] }
  0x93   : > { %v1375_v4 = vld [vmem:[%s3582_s29 + $0x1040] sm:$0xff]  ;;  %1372 = vst [vmem:[%s3590_s30 + $0x810] sm:$0xff] %v1371_v2  ;;  %1374 = vst [vmem:[%s3590_s30 + $0x818] sm:$0xff] %v1373_v3  ;;  %v1377_v5 = vld [vmem:[%s3582_s29 + $0x1050] sm:$0xff] }
  0x94   : > { %1376 = vst [vmem:[%s3590_s30 + $0x820] sm:$0xff] %v1375_v4  ;;  %v1379_v6 = vld [vmem:[%s3582_s29 + $0x1060] sm:$0xff]  ;;  %v1381_v7 = vld [vmem:[%s3582_s29 + $0x1070] sm:$0xff]  ;;  %1378 = vst [vmem:[%s3590_s30 + $0x828] sm:$0xff] %v1377_v5 }
  0x95   : > { %1380 = vst [vmem:[%s3590_s30 + $0x830] sm:$0xff] %v1379_v6  ;;  %1382 = vst [vmem:[%s3590_s30 + $0x838] sm:$0xff] %v1381_v7  ;;  %v1383_v8 = vld [vmem:[%s3582_s29 + $0x1080] sm:$0xff]  ;;  %v1385_v9 = vld [vmem:[%s3582_s29 + $0x1090] sm:$0xff] }
  0x96   : > { %v1387_v10 = vld [vmem:[%s3582_s29 + $0x10a0] sm:$0xff]  ;;  %1384 = vst [vmem:[%s3590_s30 + $0x840] sm:$0xff] %v1383_v8  ;;  %1386 = vst [vmem:[%s3590_s30 + $0x848] sm:$0xff] %v1385_v9  ;;  %v1389_v11 = vld [vmem:[%s3582_s29 + $0x10b0] sm:$0xff] }
  0x97   : > { %1388 = vst [vmem:[%s3590_s30 + $0x850] sm:$0xff] %v1387_v10  ;;  %v1391_v12 = vld [vmem:[%s3582_s29 + $0x10c0] sm:$0xff]  ;;  %v1393_v13 = vld [vmem:[%s3582_s29 + $0x10d0] sm:$0xff]  ;;  %1390 = vst [vmem:[%s3590_s30 + $0x858] sm:$0xff] %v1389_v11 }
  0x98   : > { %1392 = vst [vmem:[%s3590_s30 + $0x860] sm:$0xff] %v1391_v12  ;;  %1394 = vst [vmem:[%s3590_s30 + $0x868] sm:$0xff] %v1393_v13  ;;  %v1395_v14 = vld [vmem:[%s3582_s29 + $0x10e0] sm:$0xff]  ;;  %v1397_v15 = vld [vmem:[%s3582_s29 + $0x10f0] sm:$0xff] }
  0x99   : > { %v1399_v16 = vld [vmem:[%s3582_s29 + $0x1100] sm:$0xff]  ;;  %1396 = vst [vmem:[%s3590_s30 + $0x870] sm:$0xff] %v1395_v14  ;;  %1398 = vst [vmem:[%s3590_s30 + $0x878] sm:$0xff] %v1397_v15  ;;  %v1401_v17 = vld [vmem:[%s3582_s29 + $0x1110] sm:$0xff] }
  0x9a   : > { %1400 = vst [vmem:[%s3590_s30 + $0x880] sm:$0xff] %v1399_v16  ;;  %v1403_v18 = vld [vmem:[%s3582_s29 + $0x1120] sm:$0xff]  ;;  %v1405_v19 = vld [vmem:[%s3582_s29 + $0x1130] sm:$0xff]  ;;  %1402 = vst [vmem:[%s3590_s30 + $0x888] sm:$0xff] %v1401_v17 }
  0x9b   : > { %1404 = vst [vmem:[%s3590_s30 + $0x890] sm:$0xff] %v1403_v18  ;;  %1406 = vst [vmem:[%s3590_s30 + $0x898] sm:$0xff] %v1405_v19  ;;  %v1407_v20 = vld [vmem:[%s3582_s29 + $0x1140] sm:$0xff]  ;;  %v1409_v21 = vld [vmem:[%s3582_s29 + $0x1150] sm:$0xff] }
  0x9c   : > { %v1411_v22 = vld [vmem:[%s3582_s29 + $0x1160] sm:$0xff]  ;;  %1408 = vst [vmem:[%s3590_s30 + $0x8a0] sm:$0xff] %v1407_v20  ;;  %1410 = vst [vmem:[%s3590_s30 + $0x8a8] sm:$0xff] %v1409_v21  ;;  %v1413_v23 = vld [vmem:[%s3582_s29 + $0x1170] sm:$0xff] }
  0x9d   : > { %1412 = vst [vmem:[%s3590_s30 + $0x8b0] sm:$0xff] %v1411_v22  ;;  %v1415_v24 = vld [vmem:[%s3582_s29 + $0x1180] sm:$0xff]  ;;  %v1417_v25 = vld [vmem:[%s3582_s29 + $0x1190] sm:$0xff]  ;;  %1414 = vst [vmem:[%s3590_s30 + $0x8b8] sm:$0xff] %v1413_v23 }
  0x9e   : > { %1416 = vst [vmem:[%s3590_s30 + $0x8c0] sm:$0xff] %v1415_v24  ;;  %1418 = vst [vmem:[%s3590_s30 + $0x8c8] sm:$0xff] %v1417_v25  ;;  %v1419_v26 = vld [vmem:[%s3582_s29 + $0x11a0] sm:$0xff]  ;;  %v1421_v27 = vld [vmem:[%s3582_s29 + $0x11b0] sm:$0xff] }
  0x9f   : > { %v1423_v28 = vld [vmem:[%s3582_s29 + $0x11c0] sm:$0xff]  ;;  %1420 = vst [vmem:[%s3590_s30 + $0x8d0] sm:$0xff] %v1419_v26  ;;  %1422 = vst [vmem:[%s3590_s30 + $0x8d8] sm:$0xff] %v1421_v27  ;;  %v1425_v29 = vld [vmem:[%s3582_s29 + $0x11d0] sm:$0xff] }
  0xa0   : > { %1424 = vst [vmem:[%s3590_s30 + $0x8e0] sm:$0xff] %v1423_v28  ;;  %v1427_v30 = vld [vmem:[%s3582_s29 + $0x11e0] sm:$0xff]  ;;  %v1429_v31 = vld [vmem:[%s3582_s29 + $0x11f0] sm:$0xff]  ;;  %1426 = vst [vmem:[%s3590_s30 + $0x8e8] sm:$0xff] %v1425_v29 }
  0xa1   : > { %1428 = vst [vmem:[%s3590_s30 + $0x8f0] sm:$0xff] %v1427_v30  ;;  %1430 = vst [vmem:[%s3590_s30 + $0x8f8] sm:$0xff] %v1429_v31  ;;  %v1431_v32 = vld [vmem:[%s3582_s29 + $0x1200] sm:$0xff]  ;;  %v1433_v33 = vld [vmem:[%s3582_s29 + $0x1210] sm:$0xff] }
  0xa2   : > { %v1435_v34 = vld [vmem:[%s3582_s29 + $0x1220] sm:$0xff]  ;;  %1432 = vst [vmem:[%s3590_s30 + $0x900] sm:$0xff] %v1431_v32  ;;  %1434 = vst [vmem:[%s3590_s30 + $0x908] sm:$0xff] %v1433_v33  ;;  %v1437_v35 = vld [vmem:[%s3582_s29 + $0x1230] sm:$0xff] }
  0xa3   : > { %1436 = vst [vmem:[%s3590_s30 + $0x910] sm:$0xff] %v1435_v34  ;;  %v1439_v36 = vld [vmem:[%s3582_s29 + $0x1240] sm:$0xff]  ;;  %v1441_v37 = vld [vmem:[%s3582_s29 + $0x1250] sm:$0xff]  ;;  %1438 = vst [vmem:[%s3590_s30 + $0x918] sm:$0xff] %v1437_v35 }
  0xa4   : > { %1440 = vst [vmem:[%s3590_s30 + $0x920] sm:$0xff] %v1439_v36  ;;  %1442 = vst [vmem:[%s3590_s30 + $0x928] sm:$0xff] %v1441_v37  ;;  %v1443_v38 = vld [vmem:[%s3582_s29 + $0x1260] sm:$0xff]  ;;  %v1445_v39 = vld [vmem:[%s3582_s29 + $0x1270] sm:$0xff] }
  0xa5   : > { %v1447_v40 = vld [vmem:[%s3582_s29 + $0x1280] sm:$0xff]  ;;  %1444 = vst [vmem:[%s3590_s30 + $0x930] sm:$0xff] %v1443_v38  ;;  %1446 = vst [vmem:[%s3590_s30 + $0x938] sm:$0xff] %v1445_v39  ;;  %v1449_v41 = vld [vmem:[%s3582_s29 + $0x1290] sm:$0xff] }
  0xa6   : > { %1448 = vst [vmem:[%s3590_s30 + $0x940] sm:$0xff] %v1447_v40  ;;  %v1451_v42 = vld [vmem:[%s3582_s29 + $0x12a0] sm:$0xff]  ;;  %v1453_v43 = vld [vmem:[%s3582_s29 + $0x12b0] sm:$0xff]  ;;  %1450 = vst [vmem:[%s3590_s30 + $0x948] sm:$0xff] %v1449_v41 }
  0xa7   : > { %1452 = vst [vmem:[%s3590_s30 + $0x950] sm:$0xff] %v1451_v42  ;;  %1454 = vst [vmem:[%s3590_s30 + $0x958] sm:$0xff] %v1453_v43  ;;  %v1455_v44 = vld [vmem:[%s3582_s29 + $0x12c0] sm:$0xff]  ;;  %v1457_v45 = vld [vmem:[%s3582_s29 + $0x12d0] sm:$0xff] }
  0xa8   : > { %v1459_v46 = vld [vmem:[%s3582_s29 + $0x12e0] sm:$0xff]  ;;  %1456 = vst [vmem:[%s3590_s30 + $0x960] sm:$0xff] %v1455_v44  ;;  %1458 = vst [vmem:[%s3590_s30 + $0x968] sm:$0xff] %v1457_v45  ;;  %v1461_v47 = vld [vmem:[%s3582_s29 + $0x12f0] sm:$0xff] }
  0xa9   : > { %1460 = vst [vmem:[%s3590_s30 + $0x970] sm:$0xff] %v1459_v46  ;;  %v1463_v48 = vld [vmem:[%s3582_s29 + $0x1300] sm:$0xff]  ;;  %v1465_v49 = vld [vmem:[%s3582_s29 + $0x1310] sm:$0xff]  ;;  %1462 = vst [vmem:[%s3590_s30 + $0x978] sm:$0xff] %v1461_v47 }
  0xaa   : > { %1464 = vst [vmem:[%s3590_s30 + $0x980] sm:$0xff] %v1463_v48  ;;  %1466 = vst [vmem:[%s3590_s30 + $0x988] sm:$0xff] %v1465_v49  ;;  %v1467_v50 = vld [vmem:[%s3582_s29 + $0x1320] sm:$0xff]  ;;  %v1469_v51 = vld [vmem:[%s3582_s29 + $0x1330] sm:$0xff] }
  0xab   : > { %v1471_v52 = vld [vmem:[%s3582_s29 + $0x1340] sm:$0xff]  ;;  %1468 = vst [vmem:[%s3590_s30 + $0x990] sm:$0xff] %v1467_v50  ;;  %1470 = vst [vmem:[%s3590_s30 + $0x998] sm:$0xff] %v1469_v51  ;;  %v1473_v53 = vld [vmem:[%s3582_s29 + $0x1350] sm:$0xff] }
  0xac   : > { %1472 = vst [vmem:[%s3590_s30 + $0x9a0] sm:$0xff] %v1471_v52  ;;  %v1475_v54 = vld [vmem:[%s3582_s29 + $0x1360] sm:$0xff]  ;;  %v1477_v55 = vld [vmem:[%s3582_s29 + $0x1370] sm:$0xff]  ;;  %1474 = vst [vmem:[%s3590_s30 + $0x9a8] sm:$0xff] %v1473_v53 }
  0xad   : > { %1476 = vst [vmem:[%s3590_s30 + $0x9b0] sm:$0xff] %v1475_v54  ;;  %1478 = vst [vmem:[%s3590_s30 + $0x9b8] sm:$0xff] %v1477_v55  ;;  %v1479_v56 = vld [vmem:[%s3582_s29 + $0x1380] sm:$0xff]  ;;  %v1481_v57 = vld [vmem:[%s3582_s29 + $0x1390] sm:$0xff] }
  0xae   : > { %v1483_v58 = vld [vmem:[%s3582_s29 + $0x13a0] sm:$0xff]  ;;  %1480 = vst [vmem:[%s3590_s30 + $0x9c0] sm:$0xff] %v1479_v56  ;;  %1482 = vst [vmem:[%s3590_s30 + $0x9c8] sm:$0xff] %v1481_v57  ;;  %v1485_v59 = vld [vmem:[%s3582_s29 + $0x13b0] sm:$0xff] }
  0xaf   : > { %1484 = vst [vmem:[%s3590_s30 + $0x9d0] sm:$0xff] %v1483_v58  ;;  %v1487_v60 = vld [vmem:[%s3582_s29 + $0x13c0] sm:$0xff]  ;;  %v1489_v61 = vld [vmem:[%s3582_s29 + $0x13d0] sm:$0xff]  ;;  %1486 = vst [vmem:[%s3590_s30 + $0x9d8] sm:$0xff] %v1485_v59 }
  0xb0   : > { %1488 = vst [vmem:[%s3590_s30 + $0x9e0] sm:$0xff] %v1487_v60  ;;  %1490 = vst [vmem:[%s3590_s30 + $0x9e8] sm:$0xff] %v1489_v61  ;;  %v1491_v62 = vld [vmem:[%s3582_s29 + $0x13e0] sm:$0xff]  ;;  %v1493_v63 = vld [vmem:[%s3582_s29 + $0x13f0] sm:$0xff] }
  0xb1   : > { %1492 = vst [vmem:[%s3590_s30 + $0x9f0] sm:$0xff] %v1491_v62  ;;  %1494 = vst [vmem:[%s3590_s30 + $0x9f8] sm:$0xff] %v1493_v63 }
  0xb2 PF: > { %p2756_p6 = scmp.ge.s32.totalorder %s3512_s19, 1  ;;  %p1511_p7 = scmp.lt.s32.totalorder %s3512_s19, 3 }
  0xb4   : > { %p1512_p8 = pnand %p2756_p6, %p1511_p7 }
  0xb5   : > { %s1518_s5 = sand.u32 (!%p1512_p8), 1, %s3496_s15   ;;  %v1577_v0 = vld [vmem:[%s4637_s0 + $0x8] sm:$0xff] (!%p1512_p8)  ;;  %v1579_v1 = vld [vmem:[%s4637_s0 + $0x18] sm:$0xff] (!%p1512_p8)  ;;  %p1562_p9 = scmp.lt.s32.totalorder (!%p1512_p8), %s3504_s17, 1 }
  0xb6   : > { %1515 = sbr.rel (%p1512_p8) target bundleno = 574 (0x23e), region = 70  ;;  %1980 = vmatprep.mubr.f32.mxu0 (!%p1512_p8), %v1577_v0  ;;  %2050 = vmatprep.mubr.f32.mxu1 (!%p1512_p8), %v1579_v1 }
  0xb7   : > { %s3433_s10 = smul.u32 (!%p1512_p8), 2560, %s1518_s5 }
  0xb9   : > { %s4235_s11 = scalar_lea.vmem (!%p1512_p8), [#allocation2], %s3433_s10 }
  0xba   : > { %v1612_v2 = vld [vmem:[%s4235_s11 + $0x80] sm:$0xff] (!%p1512_p8)  ;;  %v1613_v3 = vld [vmem:[%s4235_s11 + $0x88] sm:$0xff] (!%p1512_p8)  ;;  %v1614_v13 = vld [vmem:[%s4235_s11 + $0x90] sm:$0xff] (!%p1512_p8) }
  0xbb   : > { %v1644_v4 = vld [vmem:[%s4235_s11 + $0x180] sm:$0xff] (!%p1512_p8)  ;;  %v3112_v5 = vpack.c.bf16 (!%p1512_p8), %v1613_v3, %v1612_v2  ;;  %v1645_v6 = vld [vmem:[%s4235_s11 + $0x188] sm:$0xff] (!%p1512_p8)  ;;  %v1615_v15 = vld [vmem:[%s4235_s11 + $0x98] sm:$0xff] (!%p1512_p8) }
  0xbc   : > { %v1596_v7 = vld [vmem:[%s4235_s11] sm:$0xff] (!%p1512_p8)  ;;  %v1597_v8 = vld [vmem:[%s4235_s11 + $0x8] sm:$0xff] (!%p1512_p8)  ;;  %v3144_v9 = vpack.c.bf16 (!%p1512_p8), %v1645_v6, %v1644_v4  ;;  %v1646_v16 = vld [vmem:[%s4235_s11 + $0x190] sm:$0xff] (!%p1512_p8)  ;;  %v3116_v18 = vpack.c.bf16 (!%p1512_p8), %v1615_v15, %v1614_v13 }
  0xbd   : > { %v3114_v10 = vpack.c.bf16 %v1597_v8, %v1596_v7  ;;  %v1628_v11 = vld [vmem:[%s4235_s11 + $0x100] sm:$0xff]  ;;  %v1629_v12 = vld [vmem:[%s4235_s11 + $0x108] sm:$0xff]  ;;  %3113 = vmatprep.subr.bf16.mxu0 %v3112_v5  ;;  %v1647_v17 = vld [vmem:[%s4235_s11 + $0x198] sm:$0xff]  ;;  %s4649_s17 = smov (!%p1562_p9, %s3504_s17), 1 }
  0xbe   : > { %v3146_v14 = vpack.c.bf16 %v1629_v12, %v1628_v11  ;;  %3145 = vmatprep.subr.bf16.mxu1 %v3144_v9  ;;  %v3148_v19 = vpack.c.bf16 %v1647_v17, %v1646_v16  ;;  %v1598_v20 = vld [vmem:[%s4235_s11 + $0x10] sm:$0xff]  ;;  %v1599_v21 = vld [vmem:[%s4235_s11 + $0x18] sm:$0xff]  ;;  %v1616_v25 = vld [vmem:[%s4235_s11 + $0xa0] sm:$0xff]  ;;  %s1564_s10 = scalar_lea.vmem %s4639_s2, %s4649_s17  ;;  %s1567_s14 = scalar_lea.vmem %s4640_s3, %s4649_s17 }
  0xbf   : > { %3115 = vmatpush3.bf16.msra.mxu0 %v3114_v10  ;;  %v1630_v22 = vld [vmem:[%s4235_s11 + $0x110] sm:$0xff]  ;;  %v3118_v23 = vpack.c.bf16 %v1599_v21, %v1598_v20  ;;  %v1631_v24 = vld [vmem:[%s4235_s11 + $0x118] sm:$0xff]  ;;  %v1617_v26 = vld [vmem:[%s4235_s11 + $0xa8] sm:$0xff]  ;;  %s2757_s15 = sshll.u32 %s4649_s17, 3 }
  0xc0   : > { %3147 = vmatpush3.bf16.msra.mxu1 %v3146_v14  ;;  %3117 = vmatprep.subr.bf16.mxu0 %v3116_v18  ;;  %v3150_v27 = vpack.c.bf16 %v1631_v24, %v1630_v22  ;;  %v3120_v28 = vpack.c.bf16 %v1617_v26, %v1616_v25  ;;  %v1648_v29 = vld [vmem:[%s4235_s11 + $0x1a0] sm:$0xff]  ;;  %v1649_v30 = vld [vmem:[%s4235_s11 + $0x1a8] sm:$0xff]  ;;  %v1618_v37 = vld [vmem:[%s4235_s11 + $0xb0] sm:$0xff]  ;;  %s1575_s24 = scalar_lea.vmem %s4641_s4, %s2757_s15 }
  0xc1   : > { %3149 = vmatprep.subr.bf16.mxu1 %v3148_v19  ;;  %v1600_v31 = vld [vmem:[%s4235_s11 + $0x20] sm:$0xff]  ;;  %v3152_v32 = vpack.c.bf16 %v1649_v30, %v1648_v29  ;;  %v1601_v33 = vld [vmem:[%s4235_s11 + $0x28] sm:$0xff]  ;;  %v1619_v38 = vld [vmem:[%s4235_s11 + $0xb8] sm:$0xff] }
  0xc2   : > { %v1632_v34 = vld [vmem:[%s4235_s11 + $0x120] sm:$0xff]  ;;  %v1633_v35 = vld [vmem:[%s4235_s11 + $0x128] sm:$0xff]  ;;  %v3122_v36 = vpack.c.bf16 %v1601_v33, %v1600_v31  ;;  %v1650_v39 = vld [vmem:[%s4235_s11 + $0x1b0] sm:$0xff]  ;;  %v3124_v41 = vpack.c.bf16 %v1619_v38, %v1618_v37 }
  0xc3   : > { %3119 = vmatpush3.bf16.msra.mxu0 %v3118_v23  ;;  %v3154_v40 = vpack.c.bf16 %v1633_v35, %v1632_v34  ;;  %v1651_v42 = vld [vmem:[%s4235_s11 + $0x1b8] sm:$0xff]  ;;  %v1602_v43 = vld [vmem:[%s4235_s11 + $0x30] sm:$0xff]  ;;  %v1620_v48 = vld [vmem:[%s4235_s11 + $0xc0] sm:$0xff] }
  0xc4   : > { %3151 = vmatpush3.bf16.msra.mxu1 %v3150_v27  ;;  %3121 = vmatprep.subr.bf16.mxu0 %v3120_v28  ;;  %v1603_v44 = vld [vmem:[%s4235_s11 + $0x38] sm:$0xff]  ;;  %v3156_v45 = vpack.c.bf16 %v1651_v42, %v1650_v39  ;;  %v1634_v46 = vld [vmem:[%s4235_s11 + $0x130] sm:$0xff]  ;;  %v1621_v49 = vld [vmem:[%s4235_s11 + $0xc8] sm:$0xff] }
  0xc5   : > { %3153 = vmatprep.subr.bf16.mxu1 %v3152_v32  ;;  %v1635_v47 = vld [vmem:[%s4235_s11 + $0x138] sm:$0xff]  ;;  %v1652_v50 = vld [vmem:[%s4235_s11 + $0x1c0] sm:$0xff]  ;;  %v1653_v51 = vld [vmem:[%s4235_s11 + $0x1c8] sm:$0xff]  ;;  %v3126_v52 = vpack.c.bf16 %v1603_v44, %v1602_v43  ;;  %v3128_v54 = vpack.c.bf16 %v1621_v49, %v1620_v48 }
  0xc6   : > { %v3158_v53 = vpack.c.bf16 %v1635_v47, %v1634_v46  ;;  %v1604_v55 = vld [vmem:[%s4235_s11 + $0x40] sm:$0xff]  ;;  %v1605_v56 = vld [vmem:[%s4235_s11 + $0x48] sm:$0xff]  ;;  %v3160_v58 = vpack.c.bf16 %v1653_v51, %v1652_v50  ;;  %v1622_v60 = vld [vmem:[%s4235_s11 + $0xd0] sm:$0xff] }
  0xc7   : > { %3123 = vmatpush3.bf16.msra.mxu0 %v3122_v36  ;;  %v1636_v57 = vld [vmem:[%s4235_s11 + $0x140] sm:$0xff]  ;;  %v1637_v59 = vld [vmem:[%s4235_s11 + $0x148] sm:$0xff]  ;;  %v1623_v61 = vld [vmem:[%s4235_s11 + $0xd8] sm:$0xff]  ;;  %v3130_v0 = vpack.c.bf16 %v1605_v56, %v1604_v55 }
  0xc8   : > { %3155 = vmatpush3.bf16.msra.mxu1 %v3154_v40  ;;  %3125 = vmatprep.subr.bf16.mxu0 %v3124_v41  ;;  %v1654_v62 = vld [vmem:[%s4235_s11 + $0x1d0] sm:$0xff]  ;;  %v1655_v63 = vld [vmem:[%s4235_s11 + $0x1d8] sm:$0xff]  ;;  %v3162_v1 = vpack.c.bf16 %v1637_v59, %v1636_v57  ;;  %v3132_v2 = vpack.c.bf16 %v1623_v61, %v1622_v60  ;;  %v1624_v8 = vld [vmem:[%s4235_s11 + $0xe0] sm:$0xff] }
  0xc9   : > { %3157 = vmatprep.subr.bf16.mxu1 %v3156_v45  ;;  %v1606_v3 = vld [vmem:[%s4235_s11 + $0x50] sm:$0xff]  ;;  %v1607_v4 = vld [vmem:[%s4235_s11 + $0x58] sm:$0xff]  ;;  %v3164_v6 = vpack.c.bf16 %v1655_v63, %v1654_v62  ;;  %v1625_v9 = vld [vmem:[%s4235_s11 + $0xe8] sm:$0xff] }
  0xca   : > { %v1638_v5 = vld [vmem:[%s4235_s11 + $0x150] sm:$0xff]  ;;  %v1639_v7 = vld [vmem:[%s4235_s11 + $0x158] sm:$0xff]  ;;  %v1656_v10 = vld [vmem:[%s4235_s11 + $0x1e0] sm:$0xff]  ;;  %v3134_v12 = vpack.c.bf16 %v1607_v4, %v1606_v3  ;;  %v3136_v14 = vpack.c.bf16 %v1625_v9, %v1624_v8 }
  0xcb   : > { %3127 = vmatpush3.bf16.msra.mxu0 %v3126_v52  ;;  %v1657_v11 = vld [vmem:[%s4235_s11 + $0x1e8] sm:$0xff]  ;;  %v3166_v13 = vpack.c.bf16 %v1639_v7, %v1638_v5  ;;  %v1608_v15 = vld [vmem:[%s4235_s11 + $0x60] sm:$0xff]  ;;  %v1626_v20 = vld [vmem:[%s4235_s11 + $0xf0] sm:$0xff] }
  0xcc   : > { %3159 = vmatpush3.bf16.msra.mxu1 %v3158_v53  ;;  %3129 = vmatprep.subr.bf16.mxu0 %v3128_v54  ;;  %v1609_v16 = vld [vmem:[%s4235_s11 + $0x68] sm:$0xff]  ;;  %v1640_v17 = vld [vmem:[%s4235_s11 + $0x160] sm:$0xff]  ;;  %v3168_v18 = vpack.c.bf16 %v1657_v11, %v1656_v10  ;;  %v1627_v21 = vld [vmem:[%s4235_s11 + $0xf8] sm:$0xff] }
  0xcd   : > { %3161 = vmatprep.subr.bf16.mxu1 %v3160_v58  ;;  %v1641_v19 = vld [vmem:[%s4235_s11 + $0x168] sm:$0xff]  ;;  %v1658_v22 = vld [vmem:[%s4235_s11 + $0x1f0] sm:$0xff]  ;;  %v1659_v23 = vld [vmem:[%s4235_s11 + $0x1f8] sm:$0xff]  ;;  %v3138_v24 = vpack.c.bf16 %v1609_v16, %v1608_v15  ;;  %v3140_v26 = vpack.c.bf16 %v1627_v21, %v1626_v20 }
  0xce   : > { %v3170_v25 = vpack.c.bf16 %v1641_v19, %v1640_v17  ;;  %v1610_v27 = vld [vmem:[%s4235_s11 + $0x70] sm:$0xff]  ;;  %v1611_v28 = vld [vmem:[%s4235_s11 + $0x78] sm:$0xff]  ;;  %v3172_v30 = vpack.c.bf16 %v1659_v23, %v1658_v22  ;;  %v1676_v32 = vld [vmem:[%s4235_s11 + $0x280] sm:$0xff] }
  0xcf   : > { %3131 = vmatpush3.bf16.msra.mxu0 %v3130_v0  ;;  %v1642_v29 = vld [vmem:[%s4235_s11 + $0x170] sm:$0xff]  ;;  %v1643_v31 = vld [vmem:[%s4235_s11 + $0x178] sm:$0xff]  ;;  %v1677_v33 = vld [vmem:[%s4235_s11 + $0x288] sm:$0xff]  ;;  %v3142_v36 = vpack.c.bf16 %v1611_v28, %v1610_v27 }
  0xd0   : > { %3163 = vmatpush3.bf16.msra.mxu1 %v3162_v1  ;;  %3133 = vmatprep.subr.bf16.mxu0 %v3132_v2  ;;  %v1708_v34 = vld [vmem:[%s4235_s11 + $0x380] sm:$0xff]  ;;  %v1709_v35 = vld [vmem:[%s4235_s11 + $0x388] sm:$0xff]  ;;  %v3174_v37 = vpack.c.bf16 %v1643_v31, %v1642_v29  ;;  %v3176_v38 = vpack.c.bf16 %v1677_v33, %v1676_v32  ;;  %v1678_v44 = vld [vmem:[%s4235_s11 + $0x290] sm:$0xff] }
  0xd1   : > { %3165 = vmatprep.subr.bf16.mxu1 %v3164_v6  ;;  %v1660_v39 = vld [vmem:[%s4235_s11 + $0x200] sm:$0xff]  ;;  %v1661_v40 = vld [vmem:[%s4235_s11 + $0x208] sm:$0xff]  ;;  %v3208_v42 = vpack.c.bf16 %v1709_v35, %v1708_v34  ;;  %v1679_v45 = vld [vmem:[%s4235_s11 + $0x298] sm:$0xff] }
  0xd2   : > { %v1692_v41 = vld [vmem:[%s4235_s11 + $0x300] sm:$0xff]  ;;  %v1693_v43 = vld [vmem:[%s4235_s11 + $0x308] sm:$0xff]  ;;  %v1710_v46 = vld [vmem:[%s4235_s11 + $0x390] sm:$0xff]  ;;  %v3178_v50 = vpack.c.bf16 %v1661_v40, %v1660_v39  ;;  %v3180_v52 = vpack.c.bf16 %v1679_v45, %v1678_v44 }
  0xd3   : > { %3135 = vmatpush3.bf16.msra.mxu0 %v3134_v12  ;;  %v1711_v47 = vld [vmem:[%s4235_s11 + $0x398] sm:$0xff]  ;;  %v1576_v48 = vld [vmem:[%s4637_s0] sm:$0xff]  ;;  %v1578_v49 = vld [vmem:[%s4637_s0 + $0x10] sm:$0xff]  ;;  %v3210_v51 = vpack.c.bf16 %v1693_v43, %v1692_v41 }
  0xd4   : > { %3167 = vmatpush3.bf16.msra.mxu1 %v3166_v13  ;;  %3137 = vmatprep.subr.bf16.mxu0 %v3136_v14  ;;  %v1662_v53 = vld [vmem:[%s4235_s11 + $0x210] sm:$0xff]  ;;  %v1663_v54 = vld [vmem:[%s4235_s11 + $0x218] sm:$0xff]  ;;  %v3212_v56 = vpack.c.bf16 %v1711_v47, %v1710_v46  ;;  %v1680_v58 = vld [vmem:[%s4235_s11 + $0x2a0] sm:$0xff] }
  0xd5   : > { %3169 = vmatprep.subr.bf16.mxu1 %v3168_v18  ;;  %v1694_v55 = vld [vmem:[%s4235_s11 + $0x310] sm:$0xff]  ;;  %v1695_v57 = vld [vmem:[%s4235_s11 + $0x318] sm:$0xff]  ;;  %v1681_v59 = vld [vmem:[%s4235_s11 + $0x2a8] sm:$0xff]  ;;  %v3182_v63 = vpack.c.bf16 %v1663_v54, %v1662_v53 }
  0xd6   : > { %v1712_v60 = vld [vmem:[%s4235_s11 + $0x3a0] sm:$0xff]  ;;  %v1713_v61 = vld [vmem:[%s4235_s11 + $0x3a8] sm:$0xff]  ;;  %v1583_v0 = vld [vmem:[%s4637_s0 + $0x38] sm:$0xff]  ;;  %v3214_v1 = vpack.c.bf16 %v1695_v57, %v1694_v55  ;;  %v3184_v2 = vpack.c.bf16 %v1681_v59, %v1680_v58 }
  0xd7   : > { %3139 = vmatpush3.bf16.msra.mxu0 %v3138_v24  ;;  %v1581_v62 = vld [vmem:[%s4637_s0 + $0x28] sm:$0xff]  ;;  %v1664_v3 = vld [vmem:[%s4235_s11 + $0x220] sm:$0xff]  ;;  %v3216_v6 = vpack.c.bf16 %v1713_v61, %v1712_v60  ;;  %v1682_v8 = vld [vmem:[%s4235_s11 + $0x2b0] sm:$0xff] }
  0xd8   : > { %3171 = vmatpush3.bf16.msra.mxu1 %v3170_v25  ;;  %3141 = vmatprep.subr.bf16.mxu0 %v3140_v26  ;;  %v1665_v4 = vld [vmem:[%s4235_s11 + $0x228] sm:$0xff]  ;;  %v1696_v5 = vld [vmem:[%s4235_s11 + $0x320] sm:$0xff]  ;;  %v1683_v9 = vld [vmem:[%s4235_s11 + $0x2b8] sm:$0xff] }
  0xd9   : > { %3173 = vmatprep.subr.bf16.mxu1 %v3172_v30  ;;  %v1697_v7 = vld [vmem:[%s4235_s11 + $0x328] sm:$0xff]  ;;  %v1714_v10 = vld [vmem:[%s4235_s11 + $0x3b0] sm:$0xff]  ;;  %v1715_v11 = vld [vmem:[%s4235_s11 + $0x3b8] sm:$0xff]  ;;  %v3186_v12 = vpack.c.bf16 %v1665_v4, %v1664_v3  ;;  %v3188_v14 = vpack.c.bf16 %v1683_v9, %v1682_v8 }
  0xda   : > { %v3218_v13 = vpack.c.bf16 %v1697_v7, %v1696_v5  ;;  %v1666_v15 = vld [vmem:[%s4235_s11 + $0x230] sm:$0xff]  ;;  %v1667_v16 = vld [vmem:[%s4235_s11 + $0x238] sm:$0xff]  ;;  %v3220_v18 = vpack.c.bf16 %v1715_v11, %v1714_v10  ;;  %v1684_v20 = vld [vmem:[%s4235_s11 + $0x2c0] sm:$0xff] }
  0xdb   : > { %3143 = vmatpush3.bf16.msra.mxu0 %v3142_v36  ;;  %v1698_v17 = vld [vmem:[%s4235_s11 + $0x330] sm:$0xff]  ;;  %v1699_v19 = vld [vmem:[%s4235_s11 + $0x338] sm:$0xff]  ;;  %v1685_v21 = vld [vmem:[%s4235_s11 + $0x2c8] sm:$0xff]  ;;  %v3190_v24 = vpack.c.bf16 %v1667_v16, %v1666_v15 }
  0xdc   : > { %3175 = vmatpush3.bf16.msra.mxu1 %v3174_v37  ;;  %3177 = vmatprep.subr.bf16.mxu0 %v3176_v38  ;;  %v1716_v22 = vld [vmem:[%s4235_s11 + $0x3c0] sm:$0xff]  ;;  %v1717_v23 = vld [vmem:[%s4235_s11 + $0x3c8] sm:$0xff]  ;;  %v3222_v25 = vpack.c.bf16 %v1699_v19, %v1698_v17  ;;  %v3192_v26 = vpack.c.bf16 %v1685_v21, %v1684_v20  ;;  %v1686_v32 = vld [vmem:[%s4235_s11 + $0x2d0] sm:$0xff] }
  0xdd   : > { %3209 = vmatprep.subr.bf16.mxu1 %v3208_v42  ;;  %v1668_v27 = vld [vmem:[%s4235_s11 + $0x240] sm:$0xff]  ;;  %v1669_v28 = vld [vmem:[%s4235_s11 + $0x248] sm:$0xff]  ;;  %v3224_v30 = vpack.c.bf16 %v1717_v23, %v1716_v22  ;;  %v1687_v33 = vld [vmem:[%s4235_s11 + $0x2d8] sm:$0xff] }
  0xde   : > { %1981 = vmatmul.mubr.f32.vlgmr.msra.gmra.mrb[0].mxu0 %v1576_v48  ;;  %v1700_v29 = vld [vmem:[%s4235_s11 + $0x340] sm:$0xff]  ;;  %v1701_v31 = vld [vmem:[%s4235_s11 + $0x348] sm:$0xff]  ;;  %v1718_v34 = vld [vmem:[%s4235_s11 + $0x3d0] sm:$0xff]  ;;  %v3194_v36 = vpack.c.bf16 %v1669_v28, %v1668_v27  ;;  %v3196_v38 = vpack.c.bf16 %v1687_v33, %v1686_v32 }
  0xdf   : > { %2051 = vmatmul.mubr.f32.vlgmr.msra.gmra.mrb[0].mxu1 %v1578_v49  ;;  %3179 = vmatpush3.bf16.msra.mxu0 %v3178_v50  ;;  %v1719_v35 = vld [vmem:[%s4235_s11 + $0x3d8] sm:$0xff]  ;;  %v3226_v37 = vpack.c.bf16 %v1701_v31, %v1700_v29  ;;  %v1670_v39 = vld [vmem:[%s4235_s11 + $0x250] sm:$0xff]  ;;  %v1688_v44 = vld [vmem:[%s4235_s11 + $0x2e0] sm:$0xff] }
  0xe0   : > { %3211 = vmatpush3.bf16.msra.mxu1 %v3210_v51  ;;  %3181 = vmatprep.subr.bf16.mxu0 %v3180_v52  ;;  %v1671_v40 = vld [vmem:[%s4235_s11 + $0x258] sm:$0xff]  ;;  %v1702_v41 = vld [vmem:[%s4235_s11 + $0x350] sm:$0xff]  ;;  %v3228_v42 = vpack.c.bf16 %v1719_v35, %v1718_v34  ;;  %v1689_v45 = vld [vmem:[%s4235_s11 + $0x2e8] sm:$0xff] }
  0xe1   : > { %3213 = vmatprep.subr.bf16.mxu1 %v3212_v56  ;;  %2120 = vmatprep.mubr.f32.mxu0 %v1581_v62  ;;  %v1703_v43 = vld [vmem:[%s4235_s11 + $0x358] sm:$0xff]  ;;  %v1720_v46 = vld [vmem:[%s4235_s11 + $0x3e0] sm:$0xff]  ;;  %v1721_v47 = vld [vmem:[%s4235_s11 + $0x3e8] sm:$0xff]  ;;  %v3198_v48 = vpack.c.bf16 %v1671_v40, %v1670_v39  ;;  %v3200_v50 = vpack.c.bf16 %v1689_v45, %v1688_v44 }
  0xe2   : > { %2190 = vmatprep.mubr.f32.mxu1 %v1583_v0  ;;  %v3230_v49 = vpack.c.bf16 %v1703_v43, %v1702_v41  ;;  %v1672_v51 = vld [vmem:[%s4235_s11 + $0x260] sm:$0xff]  ;;  %v1673_v52 = vld [vmem:[%s4235_s11 + $0x268] sm:$0xff]  ;;  %v3232_v54 = vpack.c.bf16 %v1721_v47, %v1720_v46  ;;  %v1690_v56 = vld [vmem:[%s4235_s11 + $0x2f0] sm:$0xff] }
  0xe3   : > { %3183 = vmatpush3.bf16.msra.mxu0 %v3182_v63  ;;  %v1704_v53 = vld [vmem:[%s4235_s11 + $0x360] sm:$0xff]  ;;  %v1705_v55 = vld [vmem:[%s4235_s11 + $0x368] sm:$0xff]  ;;  %v1691_v57 = vld [vmem:[%s4235_s11 + $0x2f8] sm:$0xff]  ;;  %v3202_v60 = vpack.c.bf16 %v1673_v52, %v1672_v51 }
  0xe4   : > { %3215 = vmatpush3.bf16.msra.mxu1 %v3214_v1  ;;  %3185 = vmatprep.subr.bf16.mxu0 %v3184_v2  ;;  %v1722_v58 = vld [vmem:[%s4235_s11 + $0x3f0] sm:$0xff]  ;;  %v1723_v59 = vld [vmem:[%s4235_s11 + $0x3f8] sm:$0xff]  ;;  %v3234_v61 = vpack.c.bf16 %v1705_v55, %v1704_v53  ;;  %v3204_v62 = vpack.c.bf16 %v1691_v57, %v1690_v56  ;;  %v1740_v4 = vld [vmem:[%s4235_s11 + $0x480] sm:$0xff] }
  0xe5   : > { %3217 = vmatprep.subr.bf16.mxu1 %v3216_v6  ;;  %v1674_v63 = vld [vmem:[%s4235_s11 + $0x270] sm:$0xff]  ;;  %v1675_v0 = vld [vmem:[%s4235_s11 + $0x278] sm:$0xff]  ;;  %v3236_v2 = vpack.c.bf16 %v1723_v59, %v1722_v58  ;;  %v1741_v5 = vld [vmem:[%s4235_s11 + $0x488] sm:$0xff] }
  0xe6   : > { %v1706_v1 = vld [vmem:[%s4235_s11 + $0x370] sm:$0xff]  ;;  %v1707_v3 = vld [vmem:[%s4235_s11 + $0x378] sm:$0xff]  ;;  %v1772_v6 = vld [vmem:[%s4235_s11 + $0x580] sm:$0xff]  ;;  %v3206_v8 = vpack.c.bf16 %v1675_v0, %v1674_v63  ;;  %v3240_v10 = vpack.c.bf16 %v1741_v5, %v1740_v4 }
  0xe7   : > { %3187 = vmatpush3.bf16.msra.mxu0 %v3186_v12  ;;  %v1773_v7 = vld [vmem:[%s4235_s11 + $0x588] sm:$0xff]  ;;  %v3238_v9 = vpack.c.bf16 %v1707_v3, %v1706_v1  ;;  %v1724_v11 = vld [vmem:[%s4235_s11 + $0x400] sm:$0xff]  ;;  %v1742_v16 = vld [vmem:[%s4235_s11 + $0x490] sm:$0xff] }
  0xe8   : > { %3219 = vmatpush3.bf16.msra.mxu1 %v3218_v13  ;;  %3189 = vmatprep.subr.bf16.mxu0 %v3188_v14  ;;  %v1725_v12 = vld [vmem:[%s4235_s11 + $0x408] sm:$0xff]  ;;  %v1756_v13 = vld [vmem:[%s4235_s11 + $0x500] sm:$0xff]  ;;  %v3272_v14 = vpack.c.bf16 %v1773_v7, %v1772_v6  ;;  %v1743_v17 = vld [vmem:[%s4235_s11 + $0x498] sm:$0xff] }
  0xe9   : > { %3221 = vmatprep.subr.bf16.mxu1 %v3220_v18  ;;  %v1757_v15 = vld [vmem:[%s4235_s11 + $0x508] sm:$0xff]  ;;  %v1774_v18 = vld [vmem:[%s4235_s11 + $0x590] sm:$0xff]  ;;  %v1775_v19 = vld [vmem:[%s4235_s11 + $0x598] sm:$0xff]  ;;  %v3242_v21 = vpack.c.bf16 %v1725_v12, %v1724_v11 }
  0xea   : > { %v1580_v20 = vld [vmem:[%s4637_s0 + $0x20] sm:$0xff]  ;;  %v1582_v22 = vld [vmem:[%s4637_s0 + $0x30] sm:$0xff]  ;;  %v3274_v23 = vpack.c.bf16 %v1757_v15, %v1756_v13  ;;  %v3276_v28 = vpack.c.bf16 %v1775_v19, %v1774_v18  ;;  %v1759_v29 = vld [vmem:[%s4235_s11 + $0x518] sm:$0xff] }
  0xeb   : > { %3191 = vmatpush3.bf16.msra.mxu0 %v3190_v24  ;;  %v3244_v24 = vpack.c.bf16 %v1743_v17, %v1742_v16  ;;  %v1758_v27 = vld [vmem:[%s4235_s11 + $0x510] sm:$0xff]  ;;  %v1745_v31 = vld [vmem:[%s4235_s11 + $0x4a8] sm:$0xff]  ;;  %v1776_v32 = vld [vmem:[%s4235_s11 + $0x5a0] sm:$0xff] }
  0xec   : > { %3223 = vmatpush3.bf16.msra.mxu1 %v3222_v25  ;;  %3193 = vmatprep.subr.bf16.mxu0 %v3192_v26  ;;  %v1726_v25 = vld [vmem:[%s4235_s11 + $0x410] sm:$0xff]  ;;  %v1727_v26 = vld [vmem:[%s4235_s11 + $0x418] sm:$0xff]  ;;  %v1777_v33 = vld [vmem:[%s4235_s11 + $0x5a8] sm:$0xff] }
  0xed   : > { %3225 = vmatprep.subr.bf16.mxu1 %v3224_v30  ;;  %v1744_v30 = vld [vmem:[%s4235_s11 + $0x4a0] sm:$0xff]  ;;  %v1585_v34 = vld [vmem:[%s4637_s0 + $0x48] sm:$0xff]  ;;  %v3246_v35 = vpack.c.bf16 %v1727_v26, %v1726_v25  ;;  %v1746_v44 = vld [vmem:[%s4235_s11 + $0x4b0] sm:$0xff] }
  0xee   : > { %v1728_v39 = vld [vmem:[%s4235_s11 + $0x420] sm:$0xff]  ;;  %v1729_v40 = vld [vmem:[%s4235_s11 + $0x428] sm:$0xff]  ;;  %v1747_v45 = vld [vmem:[%s4235_s11 + $0x4b8] sm:$0xff] }
  0xef   : > { %3195 = vmatpush3.bf16.msra.mxu0 %v3194_v36  ;;  %v1587_v36 = vld [vmem:[%s4637_s0 + $0x58] sm:$0xff]  ;;  %v1760_v41 = vld [vmem:[%s4235_s11 + $0x520] sm:$0xff]  ;;  %v1761_v43 = vld [vmem:[%s4235_s11 + $0x528] sm:$0xff] }
  0xf0   : > { %3227 = vmatpush3.bf16.msra.mxu1 %v3226_v37  ;;  %3197 = vmatprep.subr.bf16.mxu0 %v3196_v38  ;;  %v3278_v37 = vpack.c.bf16 %v1759_v29, %v1758_v27  ;;  %v3248_v38 = vpack.c.bf16 %v1745_v31, %v1744_v30  ;;  %v1778_v46 = vld [vmem:[%s4235_s11 + $0x5b0] sm:$0xff]  ;;  %v1779_v47 = vld [vmem:[%s4235_s11 + $0x5b8] sm:$0xff]  ;;  %v1748_v56 = vld [vmem:[%s4235_s11 + $0x4c0] sm:$0xff] }
  0xf1   : > { %3229 = vmatprep.subr.bf16.mxu1 %v3228_v42  ;;  %v3280_v42 = vpack.c.bf16 %v1777_v33, %v1776_v32  ;;  %v1730_v51 = vld [vmem:[%s4235_s11 + $0x430] sm:$0xff]  ;;  %v1731_v52 = vld [vmem:[%s4235_s11 + $0x438] sm:$0xff]  ;;  %v1749_v57 = vld [vmem:[%s4235_s11 + $0x4c8] sm:$0xff] }
  0xf2   : > { %v1762_v53 = vld [vmem:[%s4235_s11 + $0x530] sm:$0xff]  ;;  %v1763_v55 = vld [vmem:[%s4235_s11 + $0x538] sm:$0xff]  ;;  %v1780_v58 = vld [vmem:[%s4235_s11 + $0x5c0] sm:$0xff] }
  0xf3   : > { %3199 = vmatpush3.bf16.msra.mxu0 %v3198_v48  ;;  %v3250_v48 = vpack.c.bf16 %v1729_v40, %v1728_v39  ;;  %v1781_v59 = vld [vmem:[%s4235_s11 + $0x5c8] sm:$0xff]  ;;  %v1732_v63 = vld [vmem:[%s4235_s11 + $0x440] sm:$0xff]  ;;  %v1750_v4 = vld [vmem:[%s4235_s11 + $0x4d0] sm:$0xff] }
  0xf4   : > { %3231 = vmatpush3.bf16.msra.mxu1 %v3230_v49  ;;  %3201 = vmatprep.subr.bf16.mxu0 %v3200_v50  ;;  %v3282_v49 = vpack.c.bf16 %v1761_v43, %v1760_v41  ;;  %v3252_v50 = vpack.c.bf16 %v1747_v45, %v1746_v44  ;;  %v1733_v0 = vld [vmem:[%s4235_s11 + $0x448] sm:$0xff]  ;;  %v1764_v1 = vld [vmem:[%s4235_s11 + $0x540] sm:$0xff]  ;;  %v1751_v5 = vld [vmem:[%s4235_s11 + $0x4d8] sm:$0xff] }
  0xf5   : > { %3233 = vmatprep.subr.bf16.mxu1 %v3232_v54  ;;  %v3284_v54 = vpack.c.bf16 %v1779_v47, %v1778_v46  ;;  %v1765_v3 = vld [vmem:[%s4235_s11 + $0x548] sm:$0xff]  ;;  %v1782_v6 = vld [vmem:[%s4235_s11 + $0x5d0] sm:$0xff]  ;;  %v1783_v7 = vld [vmem:[%s4235_s11 + $0x5d8] sm:$0xff] }
  0xf6   : > { %v1734_v11 = vld [vmem:[%s4235_s11 + $0x450] sm:$0xff]  ;;  %v1735_v12 = vld [vmem:[%s4235_s11 + $0x458] sm:$0xff]  ;;  %v1752_v16 = vld [vmem:[%s4235_s11 + $0x4e0] sm:$0xff] }
  0xf7   : > { %3203 = vmatpush3.bf16.msra.mxu0 %v3202_v60  ;;  %v3254_v60 = vpack.c.bf16 %v1731_v52, %v1730_v51  ;;  %v1766_v13 = vld [vmem:[%s4235_s11 + $0x550] sm:$0xff]  ;;  %v1767_v15 = vld [vmem:[%s4235_s11 + $0x558] sm:$0xff]  ;;  %v1753_v17 = vld [vmem:[%s4235_s11 + $0x4e8] sm:$0xff] }
  0xf8   : > { %3235 = vmatpush3.bf16.msra.mxu1 %v3234_v61  ;;  %3205 = vmatprep.subr.bf16.mxu0 %v3204_v62  ;;  %v3286_v61 = vpack.c.bf16 %v1763_v55, %v1762_v53  ;;  %v3256_v62 = vpack.c.bf16 %v1749_v57, %v1748_v56  ;;  %v1784_v18 = vld [vmem:[%s4235_s11 + $0x5e0] sm:$0xff]  ;;  %v1785_v19 = vld [vmem:[%s4235_s11 + $0x5e8] sm:$0xff]  ;;  %v1755_v29 = vld [vmem:[%s4235_s11 + $0x4f8] sm:$0xff] }
  0xf9   : > { %3237 = vmatprep.subr.bf16.mxu1 %v3236_v2  ;;  %v3288_v2 = vpack.c.bf16 %v1781_v59, %v1780_v58  ;;  %v1768_v25 = vld [vmem:[%s4235_s11 + $0x560] sm:$0xff]  ;;  %v3296_v26 = vpack.c.bf16 %v1785_v19, %v1784_v18  ;;  %v1769_v27 = vld [vmem:[%s4235_s11 + $0x568] sm:$0xff]  ;;  %v1786_v30 = vld [vmem:[%s4235_s11 + $0x5f0] sm:$0xff] }
  0xfa   : > { %v1787_v31 = vld [vmem:[%s4235_s11 + $0x5f8] sm:$0xff]  ;;  %v3298_v33 = vpack.c.bf16 %v1769_v27, %v1768_v25  ;;  %v1804_v40 = vld [vmem:[%s4235_s11 + $0x680] sm:$0xff]  ;;  %v1805_v41 = vld [vmem:[%s4235_s11 + $0x688] sm:$0xff] }
  0xfb   : > { %3207 = vmatpush3.bf16.msra.mxu0 %v3206_v8  ;;  %v3258_v8 = vpack.c.bf16 %v1733_v0, %v1732_v63  ;;  %v1771_v39 = vld [vmem:[%s4235_s11 + $0x578] sm:$0xff]  ;;  %v1837_v43 = vld [vmem:[%s4235_s11 + $0x788] sm:$0xff]  ;;  %v3304_v46 = vpack.c.bf16 %v1805_v41, %v1804_v40  ;;  %v1788_v47 = vld [vmem:[%s4235_s11 + $0x600] sm:$0xff] }
  0xfc   : > { %3239 = vmatpush3.bf16.msra.mxu1 %v3238_v9  ;;  %3241 = vmatprep.subr.bf16.mxu0 %v3240_v10  ;;  %v3290_v9 = vpack.c.bf16 %v1765_v3, %v1764_v1  ;;  %v3260_v10 = vpack.c.bf16 %v1751_v5, %v1750_v4  ;;  %v1821_v51 = vld [vmem:[%s4235_s11 + $0x708] sm:$0xff]  ;;  %v1806_v52 = vld [vmem:[%s4235_s11 + $0x690] sm:$0xff]  ;;  %v1807_v53 = vld [vmem:[%s4235_s11 + $0x698] sm:$0xff] }
  0xfd   : > { %3273 = vmatprep.subr.bf16.mxu1 %v3272_v14  ;;  %v3292_v14 = vpack.c.bf16 %v1783_v7, %v1782_v6  ;;  %v1839_v55 = vld [vmem:[%s4235_s11 + $0x798] sm:$0xff]  ;;  %v1584_v56 = vld [vmem:[%s4637_s0 + $0x40] sm:$0xff]  ;;  %v1586_v58 = vld [vmem:[%s4637_s0 + $0x50] sm:$0xff] }
  0xfe   : > { %2121 = vmatmul.mubr.f32.vlgmr.msra.gmra.mrb[2].mxu0 %v1580_v20  ;;  %v3262_v20 = vpack.c.bf16 %v1735_v12, %v1734_v11  ;;  %v1822_v63 = vld [vmem:[%s4235_s11 + $0x710] sm:$0xff]  ;;  %v1823_v1 = vld [vmem:[%s4235_s11 + $0x718] sm:$0xff]  ;;  %v1809_v3 = vld [vmem:[%s4235_s11 + $0x6a8] sm:$0xff] }
  0xff   : > { %3243 = vmatpush3.bf16.msra.mxu0 %v3242_v21  ;;  %2191 = vmatmul.mubr.f32.vlgmr.msra.gmra.mrb[2].mxu1 %v1582_v22  ;;  %v3294_v21 = vpack.c.bf16 %v1767_v15, %v1766_v13  ;;  %v3264_v22 = vpack.c.bf16 %v1753_v17, %v1752_v16  ;;  %v1840_v4 = vld [vmem:[%s4235_s11 + $0x7a0] sm:$0xff]  ;;  %v1841_v5 = vld [vmem:[%s4235_s11 + $0x7a8] sm:$0xff]  ;;  %v1810_v16 = vld [vmem:[%s4235_s11 + $0x6b0] sm:$0xff] }
 0x100   : > { %3275 = vmatpush3.bf16.msra.mxu1 %v3274_v23  ;;  %3245 = vmatprep.subr.bf16.mxu0 %v3244_v24  ;;  %v1736_v23 = vld [vmem:[%s4235_s11 + $0x460] sm:$0xff]  ;;  %v1737_v24 = vld [vmem:[%s4235_s11 + $0x468] sm:$0xff]  ;;  %v1811_v17 = vld [vmem:[%s4235_s11 + $0x6b8] sm:$0xff] }
 0x101   : > { %3277 = vmatprep.subr.bf16.mxu1 %v3276_v28  ;;  %2260 = vmatprep.mubr.f32.mxu0 %v1585_v34  ;;  %v1754_v28 = vld [vmem:[%s4235_s11 + $0x4f0] sm:$0xff]  ;;  %v3266_v32 = vpack.c.bf16 %v1737_v24, %v1736_v23  ;;  %v1589_v6 = vld [vmem:[%s4637_s0 + $0x68] sm:$0xff]  ;;  %v1792_v11 = vld [vmem:[%s4235_s11 + $0x620] sm:$0xff] }
 0x102   : > { %2330 = vmatprep.mubr.f32.mxu1 %v1587_v36  ;;  %v3268_v34 = vpack.c.bf16 %v1755_v29, %v1754_v28  ;;  %v1739_v36 = vld [vmem:[%s4235_s11 + $0x478] sm:$0xff]  ;;  %v1793_v12 = vld [vmem:[%s4235_s11 + $0x628] sm:$0xff]  ;;  %v1824_v13 = vld [vmem:[%s4235_s11 + $0x720] sm:$0xff] }
 0x103   : > { %3247 = vmatpush3.bf16.msra.mxu0 %v3246_v35  ;;  %v1738_v35 = vld [vmem:[%s4235_s11 + $0x470] sm:$0xff]  ;;  %v1825_v15 = vld [vmem:[%s4235_s11 + $0x728] sm:$0xff]  ;;  %v1843_v19 = vld [vmem:[%s4235_s11 + $0x7b8] sm:$0xff] }
 0x104   : > { %3279 = vmatpush3.bf16.msra.mxu1 %v3278_v37  ;;  %3249 = vmatprep.subr.bf16.mxu0 %v3248_v38  ;;  %v1770_v37 = vld [vmem:[%s4235_s11 + $0x570] sm:$0xff]  ;;  %v3300_v38 = vpack.c.bf16 %v1787_v31, %v1786_v30  ;;  %v3270_v44 = vpack.c.bf16 %v1739_v36, %v1738_v35  ;;  %v1795_v24 = vld [vmem:[%s4235_s11 + $0x638] sm:$0xff]  ;;  %v1812_v28 = vld [vmem:[%s4235_s11 + $0x6c0] sm:$0xff] }
 0x105   : > { %3281 = vmatprep.subr.bf16.mxu1 %v3280_v42  ;;  %v1836_v42 = vld [vmem:[%s4235_s11 + $0x780] sm:$0xff]  ;;  %v3302_v45 = vpack.c.bf16 %v1771_v39, %v1770_v37  ;;  %v1842_v18 = vld [vmem:[%s4235_s11 + $0x7b0] sm:$0xff]  ;;  %v1827_v27 = vld [vmem:[%s4235_s11 + $0x738] sm:$0xff] }
 0x106   : > { %v1794_v23 = vld [vmem:[%s4235_s11 + $0x630] sm:$0xff]  ;;  %v1813_v29 = vld [vmem:[%s4235_s11 + $0x6c8] sm:$0xff]  ;;  %v1844_v30 = vld [vmem:[%s4235_s11 + $0x7c0] sm:$0xff] }
 0x107   : > { %3251 = vmatpush3.bf16.msra.mxu0 %v3250_v48  ;;  %v1789_v48 = vld [vmem:[%s4235_s11 + $0x608] sm:$0xff]  ;;  %v1826_v25 = vld [vmem:[%s4235_s11 + $0x730] sm:$0xff]  ;;  %v1796_v35 = vld [vmem:[%s4235_s11 + $0x640] sm:$0xff] }
 0x108   : > { %3283 = vmatpush3.bf16.msra.mxu1 %v3282_v49  ;;  %3253 = vmatprep.subr.bf16.mxu0 %v3252_v50  ;;  %v1820_v49 = vld [vmem:[%s4235_s11 + $0x700] sm:$0xff]  ;;  %v3336_v50 = vpack.c.bf16 %v1837_v43, %v1836_v42  ;;  %v3306_v57 = vpack.c.bf16 %v1789_v48, %v1788_v47  ;;  %v1845_v31 = vld [vmem:[%s4235_s11 + $0x7c8] sm:$0xff]  ;;  %v1814_v40 = vld [vmem:[%s4235_s11 + $0x6d0] sm:$0xff] }
 0x109   : > { %3285 = vmatprep.subr.bf16.mxu1 %v3284_v54  ;;  %v1838_v54 = vld [vmem:[%s4235_s11 + $0x790] sm:$0xff]  ;;  %v3338_v59 = vpack.c.bf16 %v1821_v51, %v1820_v49  ;;  %v1797_v36 = vld [vmem:[%s4235_s11 + $0x648] sm:$0xff]  ;;  %v1828_v37 = vld [vmem:[%s4235_s11 + $0x740] sm:$0xff] }
 0x10a   : > { %v3340_v0 = vpack.c.bf16 %v1839_v55, %v1838_v54  ;;  %v1829_v39 = vld [vmem:[%s4235_s11 + $0x748] sm:$0xff]  ;;  %v1815_v41 = vld [vmem:[%s4235_s11 + $0x6d8] sm:$0xff]  ;;  %v1846_v42 = vld [vmem:[%s4235_s11 + $0x7d0] sm:$0xff] }
 0x10b   : > { %3255 = vmatpush3.bf16.msra.mxu0 %v3254_v60  ;;  %v3308_v60 = vpack.c.bf16 %v1807_v53, %v1806_v52  ;;  %v1847_v43 = vld [vmem:[%s4235_s11 + $0x7d8] sm:$0xff]  ;;  %v1798_v47 = vld [vmem:[%s4235_s11 + $0x650] sm:$0xff]  ;;  %v1816_v52 = vld [vmem:[%s4235_s11 + $0x6e0] sm:$0xff] }
 0x10c   : > { %3287 = vmatpush3.bf16.msra.mxu1 %v3286_v61  ;;  %3257 = vmatprep.subr.bf16.mxu0 %v3256_v62  ;;  %v1790_v61 = vld [vmem:[%s4235_s11 + $0x610] sm:$0xff]  ;;  %v1791_v62 = vld [vmem:[%s4235_s11 + $0x618] sm:$0xff]  ;;  %v1817_v53 = vld [vmem:[%s4235_s11 + $0x6e8] sm:$0xff] }
 0x10d   : > { %3289 = vmatprep.subr.bf16.mxu1 %v3288_v2  ;;  %v1808_v2 = vld [vmem:[%s4235_s11 + $0x6a0] sm:$0xff]  ;;  %v3310_v7 = vpack.c.bf16 %v1791_v62, %v1790_v61  ;;  %v1799_v48 = vld [vmem:[%s4235_s11 + $0x658] sm:$0xff]  ;;  %v1830_v49 = vld [vmem:[%s4235_s11 + $0x750] sm:$0xff] }
 0x10e   : > { %v1831_v51 = vld [vmem:[%s4235_s11 + $0x758] sm:$0xff]  ;;  %v1848_v54 = vld [vmem:[%s4235_s11 + $0x7e0] sm:$0xff]  ;;  %v1849_v55 = vld [vmem:[%s4235_s11 + $0x7e8] sm:$0xff] }
 0x10f   : > { %3259 = vmatpush3.bf16.msra.mxu0 %v3258_v8  ;;  %v1591_v8 = vld [vmem:[%s4637_s0 + $0x78] sm:$0xff]  ;;  %v1832_v61 = vld [vmem:[%s4235_s11 + $0x760] sm:$0xff]  ;;  %v3360_v62 = vpack.c.bf16 %v1849_v55, %v1848_v54  ;;  %v1906_v54 = vld [vmem:[%s4235_s11 + $0x9b0] sm:$0xff] }
 0x110   : > { %3291 = vmatpush3.bf16.msra.mxu1 %v3290_v9  ;;  %3261 = vmatprep.subr.bf16.mxu0 %v3260_v10  ;;  %v3342_v9 = vpack.c.bf16 %v1823_v1, %v1822_v63  ;;  %v3312_v10 = vpack.c.bf16 %v1809_v3, %v1808_v2  ;;  %v1833_v63 = vld [vmem:[%s4235_s11 + $0x768] sm:$0xff]  ;;  %v1819_v1 = vld [vmem:[%s4235_s11 + $0x6f8] sm:$0xff]  ;;  %v1850_v2 = vld [vmem:[%s4235_s11 + $0x7f0] sm:$0xff] }
 0x111   : > { %3293 = vmatprep.subr.bf16.mxu1 %v3292_v14  ;;  %v3344_v14 = vpack.c.bf16 %v1841_v5, %v1840_v4  ;;  %v1851_v3 = vld [vmem:[%s4235_s11 + $0x7f8] sm:$0xff]  ;;  %v3362_v5 = vpack.c.bf16 %v1833_v63, %v1832_v61  ;;  %v1890_v61 = vld [vmem:[%s4235_s11 + $0x930] sm:$0xff] }
 0x112   : > { %v1907_v55 = vld [vmem:[%s4235_s11 + $0x9b8] sm:$0xff] }
 0x113   : > { %3263 = vmatpush3.bf16.msra.mxu0 %v3262_v20  ;;  %v3314_v20 = vpack.c.bf16 %v1793_v12, %v1792_v11  ;;  %v1835_v11 = vld [vmem:[%s4235_s11 + $0x778] sm:$0xff]  ;;  %v1868_v12 = vld [vmem:[%s4235_s11 + $0x880] sm:$0xff] }
 0x114   : > { %3295 = vmatpush3.bf16.msra.mxu1 %v3294_v21  ;;  %3265 = vmatprep.subr.bf16.mxu0 %v3264_v22  ;;  %v3346_v21 = vpack.c.bf16 %v1825_v15, %v1824_v13  ;;  %v3316_v22 = vpack.c.bf16 %v1811_v17, %v1810_v16  ;;  %v1869_v13 = vld [vmem:[%s4235_s11 + $0x888] sm:$0xff]  ;;  %v1891_v63 = vld [vmem:[%s4235_s11 + $0x938] sm:$0xff] }
 0x115   : > { %3297 = vmatprep.subr.bf16.mxu1 %v3296_v26  ;;  %v3348_v26 = vpack.c.bf16 %v1843_v19, %v1842_v18  ;;  %v1901_v15 = vld [vmem:[%s4235_s11 + $0x988] sm:$0xff]  ;;  %v3368_v18 = vpack.c.bf16 %v1869_v13, %v1868_v12  ;;  %v1852_v19 = vld [vmem:[%s4235_s11 + $0x800] sm:$0xff]  ;;  %v1878_v12 = vld [vmem:[%s4235_s11 + $0x8d0] sm:$0xff] }
 0x116   : > { %v1879_v13 = vld [vmem:[%s4235_s11 + $0x8d8] sm:$0xff] }
 0x117   : > { %3267 = vmatpush3.bf16.msra.mxu0 %v3266_v32  ;;  %v3318_v32 = vpack.c.bf16 %v1795_v24, %v1794_v23  ;;  %v1885_v23 = vld [vmem:[%s4235_s11 + $0x908] sm:$0xff]  ;;  %v1870_v24 = vld [vmem:[%s4235_s11 + $0x890] sm:$0xff] }
 0x118   : > { %3299 = vmatpush3.bf16.msra.mxu1 %v3298_v33  ;;  %3269 = vmatprep.subr.bf16.mxu0 %v3268_v34  ;;  %v3350_v33 = vpack.c.bf16 %v1827_v27, %v1826_v25  ;;  %v3320_v34 = vpack.c.bf16 %v1813_v29, %v1812_v28  ;;  %v1871_v25 = vld [vmem:[%s4235_s11 + $0x898] sm:$0xff]  ;;  %v1588_v28 = vld [vmem:[%s4637_s0 + $0x60] sm:$0xff] }
 0x119   : > { %3301 = vmatprep.subr.bf16.mxu1 %v3300_v38  ;;  %v3352_v38 = vpack.c.bf16 %v1845_v31, %v1844_v30  ;;  %v1903_v27 = vld [vmem:[%s4235_s11 + $0x998] sm:$0xff]  ;;  %v1590_v30 = vld [vmem:[%s4637_s0 + $0x70] sm:$0xff] }
 0x11b   : > { %3271 = vmatpush3.bf16.msra.mxu0 %v3270_v44  ;;  %v3322_v44 = vpack.c.bf16 %v1797_v36, %v1796_v35  ;;  %v1886_v35 = vld [vmem:[%s4235_s11 + $0x910] sm:$0xff] }
 0x11c   : > { %3303 = vmatpush3.bf16.msra.mxu1 %v3302_v45  ;;  %3305 = vmatprep.subr.bf16.mxu0 %v3304_v46  ;;  %v3354_v45 = vpack.c.bf16 %v1829_v39, %v1828_v37  ;;  %v3324_v46 = vpack.c.bf16 %v1815_v41, %v1814_v40  ;;  %v1887_v37 = vld [vmem:[%s4235_s11 + $0x918] sm:$0xff]  ;;  %v1873_v39 = vld [vmem:[%s4235_s11 + $0x8a8] sm:$0xff]  ;;  %v1904_v40 = vld [vmem:[%s4235_s11 + $0x9a0] sm:$0xff] }
 0x11d   : > { %3337 = vmatprep.subr.bf16.mxu1 %v3336_v50  ;;  %v3356_v50 = vpack.c.bf16 %v1847_v43, %v1846_v42  ;;  %v1905_v41 = vld [vmem:[%s4235_s11 + $0x9a8] sm:$0xff] }
 0x11e   : > { %2261 = vmatmul.mubr.f32.vlgmr.msra.gmra.mrb[4].mxu0 %v1584_v56  ;;  %v3326_v56 = vpack.c.bf16 %v1799_v48, %v1798_v47  ;;  %v1593_v42 = vld [vmem:[%s4637_s0 + $0x88] sm:$0xff]  ;;  %v1856_v47 = vld [vmem:[%s4235_s11 + $0x820] sm:$0xff] }
 0x11f   : > { %3307 = vmatpush3.bf16.msra.mxu0 %v3306_v57  ;;  %2331 = vmatmul.mubr.f32.vlgmr.msra.gmra.mrb[4].mxu1 %v1586_v58  ;;  %v3358_v57 = vpack.c.bf16 %v1831_v51, %v1830_v49  ;;  %v3328_v58 = vpack.c.bf16 %v1817_v53, %v1816_v52  ;;  %v1857_v48 = vld [vmem:[%s4235_s11 + $0x828] sm:$0xff]  ;;  %v1888_v49 = vld [vmem:[%s4235_s11 + $0x920] sm:$0xff]  ;;  %v1874_v52 = vld [vmem:[%s4235_s11 + $0x8b0] sm:$0xff] }
 0x120   : > { %3339 = vmatpush3.bf16.msra.mxu1 %v3338_v59  ;;  %3309 = vmatprep.subr.bf16.mxu0 %v3308_v60  ;;  %v1800_v59 = vld [vmem:[%s4235_s11 + $0x660] sm:$0xff]  ;;  %v1801_v60 = vld [vmem:[%s4235_s11 + $0x668] sm:$0xff]  ;;  %v1875_v53 = vld [vmem:[%s4235_s11 + $0x8b8] sm:$0xff] }
 0x121   : > { %3341 = vmatprep.subr.bf16.mxu1 %v3340_v0  ;;  %2400 = vmatprep.mubr.f32.mxu0 %v1589_v6  ;;  %v1818_v0 = vld [vmem:[%s4235_s11 + $0x6f0] sm:$0xff]  ;;  %v3330_v4 = vpack.c.bf16 %v1801_v60, %v1800_v59  ;;  %v1889_v51 = vld [vmem:[%s4235_s11 + $0x928] sm:$0xff]  ;;  %v1859_v60 = vld [vmem:[%s4235_s11 + $0x838] sm:$0xff] }
 0x122   : > { %2470 = vmatprep.mubr.f32.mxu1 %v1591_v8  ;;  %v3332_v6 = vpack.c.bf16 %v1819_v1, %v1818_v0  ;;  %v1803_v8 = vld [vmem:[%s4235_s11 + $0x678] sm:$0xff]  ;;  %v1858_v59 = vld [vmem:[%s4235_s11 + $0x830] sm:$0xff]  ;;  %v1876_v0 = vld [vmem:[%s4235_s11 + $0x8c0] sm:$0xff] }
 0x123   : > { %3311 = vmatpush3.bf16.msra.mxu0 %v3310_v7  ;;  %v1802_v7 = vld [vmem:[%s4235_s11 + $0x670] sm:$0xff]  ;;  %v1877_v1 = vld [vmem:[%s4235_s11 + $0x8c8] sm:$0xff] }
 0x124   : > { %3343 = vmatpush3.bf16.msra.mxu1 %v3342_v9  ;;  %3313 = vmatprep.subr.bf16.mxu0 %v3312_v10  ;;  %v1834_v9 = vld [vmem:[%s4235_s11 + $0x770] sm:$0xff]  ;;  %v3364_v10 = vpack.c.bf16 %v1851_v3, %v1850_v2  ;;  %v3334_v16 = vpack.c.bf16 %v1803_v8, %v1802_v7  ;;  %v1908_v2 = vld [vmem:[%s4235_s11 + $0x9c0] sm:$0xff]  ;;  %v1909_v3 = vld [vmem:[%s4235_s11 + $0x9c8] sm:$0xff] }
 0x125   : > { %3345 = vmatprep.subr.bf16.mxu1 %v3344_v14  ;;  %v1900_v14 = vld [vmem:[%s4235_s11 + $0x980] sm:$0xff]  ;;  %v3366_v17 = vpack.c.bf16 %v1835_v11, %v1834_v9  ;;  %v1861_v8 = vld [vmem:[%s4235_s11 + $0x848] sm:$0xff] }
 0x126   : > { %v1860_v7 = vld [vmem:[%s4235_s11 + $0x840] sm:$0xff]  ;;  %v1893_v11 = vld [vmem:[%s4235_s11 + $0x948] sm:$0xff] }
 0x127   : > { %3315 = vmatpush3.bf16.msra.mxu0 %v3314_v20  ;;  %v1853_v20 = vld [vmem:[%s4235_s11 + $0x808] sm:$0xff]  ;;  %v1892_v9 = vld [vmem:[%s4235_s11 + $0x940] sm:$0xff] }
 0x128   : > { %3347 = vmatpush3.bf16.msra.mxu1 %v3346_v21  ;;  %3317 = vmatprep.subr.bf16.mxu0 %v3316_v22  ;;  %v1884_v21 = vld [vmem:[%s4235_s11 + $0x900] sm:$0xff]  ;;  %v3400_v22 = vpack.c.bf16 %v1901_v15, %v1900_v14  ;;  %v3370_v29 = vpack.c.bf16 %v1853_v20, %v1852_v19  ;;  %v1910_v14 = vld [vmem:[%s4235_s11 + $0x9d0] sm:$0xff]  ;;  %v1911_v15 = vld [vmem:[%s4235_s11 + $0x9d8] sm:$0xff] }
 0x129   : > { %3349 = vmatprep.subr.bf16.mxu1 %v3348_v26  ;;  %v1902_v26 = vld [vmem:[%s4235_s11 + $0x990] sm:$0xff]  ;;  %v3402_v31 = vpack.c.bf16 %v1885_v23, %v1884_v21  ;;  %v1863_v20 = vld [vmem:[%s4235_s11 + $0x858] sm:$0xff] }
 0x12a   : > { %v3404_v36 = vpack.c.bf16 %v1903_v27, %v1902_v26  ;;  %v1862_v19 = vld [vmem:[%s4235_s11 + $0x850] sm:$0xff]  ;;  %v1895_v23 = vld [vmem:[%s4235_s11 + $0x958] sm:$0xff]  ;;  %v1912_v26 = vld [vmem:[%s4235_s11 + $0x9e0] sm:$0xff] }
 0x12b   : > { %3319 = vmatpush3.bf16.msra.mxu0 %v3318_v32  ;;  %v3372_v32 = vpack.c.bf16 %v1871_v25, %v1870_v24  ;;  %v1894_v21 = vld [vmem:[%s4235_s11 + $0x950] sm:$0xff]  ;;  %v1880_v24 = vld [vmem:[%s4235_s11 + $0x8e0] sm:$0xff]  ;;  %v1881_v25 = vld [vmem:[%s4235_s11 + $0x8e8] sm:$0xff] }
 0x12c   : > { %3351 = vmatpush3.bf16.msra.mxu1 %v3350_v33  ;;  %3321 = vmatprep.subr.bf16.mxu0 %v3320_v34  ;;  %v1854_v33 = vld [vmem:[%s4235_s11 + $0x810] sm:$0xff]  ;;  %v1855_v34 = vld [vmem:[%s4235_s11 + $0x818] sm:$0xff]  ;;  %v1913_v27 = vld [vmem:[%s4235_s11 + $0x9e8] sm:$0xff] }
 0x12d   : > { %3353 = vmatprep.subr.bf16.mxu1 %v3352_v38  ;;  %v1872_v38 = vld [vmem:[%s4235_s11 + $0x8a0] sm:$0xff]  ;;  %v3374_v43 = vpack.c.bf16 %v1855_v34, %v1854_v33  ;;  %v3424_v34 = vpack.c.bf16 %v1913_v27, %v1912_v26 }
 0x12e   : > { %v1896_v33 = vld [vmem:[%s4235_s11 + $0x960] sm:$0xff] }
 0x12f   : > { %3323 = vmatpush3.bf16.msra.mxu0 %v3322_v44  ;;  %v1595_v44 = vld [vmem:[%s4637_s0 + $0x98] sm:$0xff]  ;;  %v2758_v26 = vld [vmem:[%s1564_s10] ss:$0 sm:$0xff] }
 0x130   : > { %3355 = vmatpush3.bf16.msra.mxu1 %v3354_v45  ;;  %3325 = vmatprep.subr.bf16.mxu0 %v3324_v46  ;;  %v3406_v45 = vpack.c.bf16 %v1887_v37, %v1886_v35  ;;  %v3376_v46 = vpack.c.bf16 %v1873_v39, %v1872_v38  ;;  %v1897_v35 = vld [vmem:[%s4235_s11 + $0x968] sm:$0xff]  ;;  %v1883_v37 = vld [vmem:[%s4235_s11 + $0x8f8] sm:$0xff]  ;;  %v1914_v38 = vld [vmem:[%s4235_s11 + $0x9f0] sm:$0xff] }
 0x131   : > { %3357 = vmatprep.subr.bf16.mxu1 %v3356_v50  ;;  %v3408_v50 = vpack.c.bf16 %v1905_v41, %v1904_v40  ;;  %v1915_v39 = vld [vmem:[%s4235_s11 + $0x9f8] sm:$0xff]  ;;  %v3426_v41 = vpack.c.bf16 %v1897_v35, %v1896_v33 }
 0x133   : > { %3327 = vmatpush3.bf16.msra.mxu0 %v3326_v56  ;;  %v3378_v56 = vpack.c.bf16 %v1857_v48, %v1856_v47  ;;  %v1899_v47 = vld [vmem:[%s4235_s11 + $0x978] sm:$0xff] }
 0x134   : > { %3359 = vmatpush3.bf16.msra.mxu1 %v3358_v57  ;;  %3329 = vmatprep.subr.bf16.mxu0 %v3328_v58  ;;  %v3410_v57 = vpack.c.bf16 %v1889_v51, %v1888_v49  ;;  %v3380_v58 = vpack.c.bf16 %v1875_v53, %v1874_v52  ;;  %v1594_v51 = vld [vmem:[%s4637_s0 + $0x90] sm:$0xff] }
 0x135   : > { %3361 = vmatprep.subr.bf16.mxu1 %v3360_v62  ;;  %v3412_v62 = vpack.c.bf16 %v1907_v55, %v1906_v54 }
 0x137   : > { %3331 = vmatpush3.bf16.msra.mxu0 %v3330_v4  ;;  %v3382_v4 = vpack.c.bf16 %v1859_v60, %v1858_v59 }
 0x138   : > { %3363 = vmatpush3.bf16.msra.mxu1 %v3362_v5  ;;  %3333 = vmatprep.subr.bf16.mxu0 %v3332_v6  ;;  %v3414_v5 = vpack.c.bf16 %v1891_v63, %v1890_v61  ;;  %v3384_v6 = vpack.c.bf16 %v1877_v1, %v1876_v0 }
 0x139   : > { %3365 = vmatprep.subr.bf16.mxu1 %v3364_v10  ;;  %v3416_v10 = vpack.c.bf16 %v1909_v3, %v1908_v2 }
 0x13b   : > { %3335 = vmatpush3.bf16.msra.mxu0 %v3334_v16  ;;  %v3386_v16 = vpack.c.bf16 %v1861_v8, %v1860_v7 }
 0x13c   : > { %3367 = vmatpush3.bf16.msra.mxu1 %v3366_v17  ;;  %3369 = vmatprep.subr.bf16.mxu0 %v3368_v18  ;;  %v3418_v17 = vpack.c.bf16 %v1893_v11, %v1892_v9  ;;  %v3388_v18 = vpack.c.bf16 %v1879_v13, %v1878_v12 }
 0x13d   : > { %3401 = vmatprep.subr.bf16.mxu1 %v3400_v22  ;;  %v3420_v22 = vpack.c.bf16 %v1911_v15, %v1910_v14 }
 0x13e   : > { %2401 = vmatmul.mubr.f32.vlgmr.msra.gmra.mrb[6].mxu0 %v1588_v28  ;;  %v3390_v28 = vpack.c.bf16 %v1863_v20, %v1862_v19 }
 0x13f   : > { %3371 = vmatpush3.bf16.msra.mxu0 %v3370_v29  ;;  %2471 = vmatmul.mubr.f32.vlgmr.msra.gmra.mrb[6].mxu1 %v1590_v30  ;;  %v3422_v29 = vpack.c.bf16 %v1895_v23, %v1894_v21  ;;  %v3392_v30 = vpack.c.bf16 %v1881_v25, %v1880_v24 }
 0x140   : > { %3403 = vmatpush3.bf16.msra.mxu1 %v3402_v31  ;;  %3373 = vmatprep.subr.bf16.mxu0 %v3372_v32  ;;  %v1864_v31 = vld [vmem:[%s4235_s11 + $0x860] sm:$0xff]  ;;  %v1865_v32 = vld [vmem:[%s4235_s11 + $0x868] sm:$0xff] }
 0x141   : > { %3405 = vmatprep.subr.bf16.mxu1 %v3404_v36  ;;  %2540 = vmatprep.mubr.f32.mxu0 %v1593_v42  ;;  %v1882_v36 = vld [vmem:[%s4235_s11 + $0x8f0] sm:$0xff]  ;;  %v3394_v40 = vpack.c.bf16 %v1865_v32, %v1864_v31 }
 0x142   : > { %2610 = vmatprep.mubr.f32.mxu1 %v1595_v44  ;;  %v3396_v42 = vpack.c.bf16 %v1883_v37, %v1882_v36  ;;  %v1867_v44 = vld [vmem:[%s4235_s11 + $0x878] sm:$0xff] }
 0x143   : > { %3375 = vmatpush3.bf16.msra.mxu0 %v3374_v43  ;;  %v1866_v43 = vld [vmem:[%s4235_s11 + $0x870] sm:$0xff] }
 0x144   : > { %3407 = vmatpush3.bf16.msra.mxu1 %v3406_v45  ;;  %3377 = vmatprep.subr.bf16.mxu0 %v3376_v46  ;;  %v3428_v45 = vpack.c.bf16 %v1915_v39, %v1914_v38  ;;  %v1898_v46 = vld [vmem:[%s4235_s11 + $0x970] sm:$0xff]  ;;  %v3398_v48 = vpack.c.bf16 %v1867_v44, %v1866_v43 }
 0x145   : > { %3409 = vmatprep.subr.bf16.mxu1 %v3408_v50  ;;  %v3430_v49 = vpack.c.bf16 %v1899_v47, %v1898_v46  ;;  %v1592_v50 = vld [vmem:[%s4637_s0 + $0x80] sm:$0xff] }
 0x147   : > { %3379 = vmatpush3.bf16.msra.mxu0 %v3378_v56 }
 0x148   : > { %3411 = vmatpush3.bf16.msra.mxu1 %v3410_v57  ;;  %3381 = vmatprep.subr.bf16.mxu0 %v3380_v58 }
 0x149   : > { %3413 = vmatprep.subr.bf16.mxu1 %v3412_v62 }
 0x14b   : > { %3383 = vmatpush3.bf16.msra.mxu0 %v3382_v4 }
 0x14c   : > { %3415 = vmatpush3.bf16.msra.mxu1 %v3414_v5  ;;  %3385 = vmatprep.subr.bf16.mxu0 %v3384_v6 }
 0x14d   : > { %3417 = vmatprep.subr.bf16.mxu1 %v3416_v10 }
 0x14f   : > { %3387 = vmatpush3.bf16.msra.mxu0 %v3386_v16 }
 0x150   : > { %3419 = vmatpush3.bf16.msra.mxu1 %v3418_v17  ;;  %3389 = vmatprep.subr.bf16.mxu0 %v3388_v18 }
 0x151   : > { %3421 = vmatprep.subr.bf16.mxu1 %v3420_v22 }
 0x153   : > { %3391 = vmatpush3.bf16.msra.mxu0 %v3390_v28  ;;  %v2759_v28 = vld [vmem:[%s1567_s14] ss:$0 sm:$0xff] }
 0x154   : > { %3423 = vmatpush3.bf16.msra.mxu1 %v3422_v29  ;;  %3393 = vmatprep.subr.bf16.mxu0 %v3392_v30 }
 0x155   : > { %3425 = vmatprep.subr.bf16.mxu1 %v3424_v34 }
 0x157   : > { %3395 = vmatpush3.bf16.msra.mxu0 %v3394_v40 }
 0x158   : > { %3427 = vmatpush3.bf16.msra.mxu1 %v3426_v41  ;;  %3397 = vmatprep.subr.bf16.mxu0 %v3396_v42 }
 0x159   : > { %3429 = vmatprep.subr.bf16.mxu1 %v3428_v45 }
 0x15b   : > { %3399 = vmatpush3.bf16.msra.mxu0 %v3398_v48 }
 0x15c   : > { %3431 = vmatpush3.bf16.msra.mxu1 %v3430_v49 }
 0x15e   : > { %2541 = vmatmul.mubr.f32.vlgmr.msra.gmra.mrb[8].mxu0 %v1592_v50 }
 0x15f   : > { %2611 = vmatmul.mubr.f32.vlgmr.msra.gmra.mrb[8].mxu1 %v1594_v51 }
 0x1b1   : > { %v2794_v52 = vpop.f32.mrb[0].mxu0 }
 0x1b2   : > { %v2829_v53 = vpop.f32.mrb[0].mxu1  ;;  %v2795_v54 = vpop.f32.mrb[1].mxu0 }
 0x1b3   : > { %v2796_v55 = vadd.f32 %v2795_v54, %v2794_v52  ;;  %v2830_v56 = vpop.f32.mrb[1].mxu1 }
 0x1b4   : > { %v2831_v57 = vadd.f32 %v2830_v56, %v2829_v53 }
 0x1b6   : > { %v2053_v58 = vadd.f32 %v2831_v57, %v2796_v55 }
 0x1d1   : > { %v2864_v59 = vpop.f32.mrb[2].mxu0 }
 0x1d2   : > { %v2865_v60 = vpop.f32.mrb[3].mxu0  ;;  %v2899_v61 = vpop.f32.mrb[2].mxu1 }
 0x1d3   : > { %v2866_v62 = vadd.f32 %v2865_v60, %v2864_v59  ;;  %v2900_v63 = vpop.f32.mrb[3].mxu1 }
 0x1d4   : > { %v2901_v0 = vadd.f32 %v2900_v63, %v2899_v61 }
 0x1d5   : > { %v2123_v1 = vadd.f32 %v2866_v62, %v2053_v58 }
 0x1d7   : > { %v2193_v2 = vadd.f32 %v2901_v0, %v2123_v1 }
 0x1f1   : > { %v2934_v3 = vpop.f32.mrb[4].mxu0 }
 0x1f2   : > { %v2935_v4 = vpop.f32.mrb[5].mxu0  ;;  %v2969_v5 = vpop.f32.mrb[4].mxu1 }
 0x1f3   : > { %v2936_v6 = vadd.f32 %v2935_v4, %v2934_v3  ;;  %v2970_v7 = vpop.f32.mrb[5].mxu1 }
 0x1f4   : > { %v2971_v8 = vadd.f32 %v2970_v7, %v2969_v5 }
 0x1f5   : > { %v2263_v9 = vadd.f32 %v2936_v6, %v2193_v2 }
 0x1f7   : > { %v2333_v10 = vadd.f32 %v2971_v8, %v2263_v9 }
 0x211   : > { %v3004_v11 = vpop.f32.mrb[6].mxu0 }
 0x212   : > { %v3005_v12 = vpop.f32.mrb[7].mxu0  ;;  %v3039_v13 = vpop.f32.mrb[6].mxu1 }
 0x213   : > { %v3006_v14 = vadd.f32 %v3005_v12, %v3004_v11  ;;  %v3040_v15 = vpop.f32.mrb[7].mxu1 }
 0x214   : > { %v3041_v16 = vadd.f32 %v3040_v15, %v3039_v13 }
 0x215   : > { %v2403_v17 = vadd.f32 %v3006_v14, %v2333_v10 }
 0x217   : > { %v2473_v18 = vadd.f32 %v3041_v16, %v2403_v17 }
 0x231   : > { %v3074_v19 = vpop.f32.mrb[8].mxu0 }
 0x232   : > { %v3075_v20 = vpop.f32.mrb[9].mxu0  ;;  %v3109_v21 = vpop.f32.mrb[8].mxu1 }
 0x233   : > { %v3076_v22 = vadd.f32 %v3075_v20, %v3074_v19  ;;  %v3110_v23 = vpop.f32.mrb[9].mxu1 }
 0x234   : > { %v3111_v24 = vadd.f32 %v3110_v23, %v3109_v21 }
 0x235   : > { %v2543_v25 = vadd.f32 %v3076_v22, %v2473_v18 }
 0x237   : > { %v2613_v27 = vadd.f32 %v3111_v24, %v2543_v25 }
 0x239   : > { %v2623_v29 = vmul.f32 %v2758_v26, %v2613_v27 }
 0x23b   : > { %v2631_v30 = vadd.f32 %v2759_v28, %v2623_v29 }
 0x23d   : > { %2632 = vst [vmem:[%s1575_s24] sm:$0xff] %v2631_v30 }
 0x23e PF: > { %s14_s19 = sadd.s32 1, %s3512_s19   ;;  %s4642_s15 = smov %s3500_s16 }
 0x23f   : > { %p11_p10 = scmp.ge.s32.totalorder %s14_s19, 4   ;;  %s4643_s16 = smov %s3574_s23 }
 0x240   : > { %s4644_s17 = smov %s3508_s18  ;;  %s4645_s18 = smov %s4647_s20 }
 0x241   :  { %13 = sbr.rel (!%p11_p10) target bundleno = 3 (0x3), region = 118 }

</bundles_post_ra>
